<compile_context>
chip_gen: v6e
topology: v6e:2x2x1
jax: 0.10.0
libtpu: 0.0.40
codegen_flags: <defaults>
</compile_context>

<pallas_src>
import functools

import jax
import jax.numpy as jnp
from jax.experimental import pallas as pl
from jax.experimental.pallas import tpu as pltpu


# --------------------------- Pallas kernels ---------------------------------
def _conv3x3_bn_relu_kernel(xp_ref, w_ref, scale_ref, shift_ref, o_ref):
    """3x3 conv (stride 1, pad 1) + folded BN + ReLU for one sample.

    xp_ref:    (H+2, W+2, Cin)  zero-padded input sample (VMEM)
    w_ref:     (9, Cin, Cout)   taps ordered (kh, kw)
    scale_ref: (1, Cout), shift_ref: (1, Cout)   folded BatchNorm affine
    o_ref:     (H*W, Cout)
    """
    Hp, Wp, Cin = xp_ref.shape
    H, W = Hp - 2, Wp - 2
    Cout = o_ref.shape[-1]
    acc = jnp.zeros((H * W, Cout), jnp.float32)
    for kh in range(3):                                   # static unroll: 9 taps
        for kw in range(3):
            patch = xp_ref[kh:kh + H, kw:kw + W, :].reshape(H * W, Cin)
            acc = acc + jnp.dot(patch, w_ref[kh * 3 + kw],
                                preferred_element_type=jnp.float32)
    y = jnp.maximum(acc * scale_ref[...] + shift_ref[...], 0.0)
    o_ref[...] = y.astype(o_ref.dtype)


def _make_exit_conv_pool_kernel(ch_splits):
    """1x1 exit conv over the (virtually concatenated) OSA features + folded BN
    + ReLU, with the ESE global-average-pool fused into the epilogue."""
    offs = [0]
    for c in ch_splits:
        offs.append(offs[-1] + c)

    def kernel(*refs):
        nfeat = len(ch_splits)
        feat_refs = refs[:nfeat]
        w_ref, scale_ref, shift_ref, o_ref, pool_ref = refs[nfeat:]
        HW, Cout = o_ref.shape
        acc = jnp.zeros((HW, Cout), jnp.float32)
        for i, f_ref in enumerate(feat_refs):             # concat-free 1x1 conv
            acc = acc + jnp.dot(f_ref[...], w_ref[offs[i]:offs[i + 1], :],
                                preferred_element_type=jnp.float32)
        z = jnp.maximum(acc * scale_ref[...] + shift_ref[...], 0.0)
        o_ref[...] = z.astype(o_ref.dtype)
        pool_ref[...] = jnp.mean(z, axis=0, keepdims=True).astype(pool_ref.dtype)

    return kernel


def _gate_res_kernel(z_ref, g_ref, r_ref, o_ref):
    # out = z * gate (per-sample, per-channel hard-sigmoid) + residual
    o_ref[...] = (z_ref[...] * g_ref[...] + r_ref[...]).astype(o_ref.dtype)


def _gate_kernel(z_ref, g_ref, o_ref):
    o_ref[...] = (z_ref[...] * g_ref[...]).astype(o_ref.dtype)


# ------------------------------ wrappers -------------------------------------
def conv3x3_bn_relu(x_nhwc, w, scale, shift):
    """x: (N,H,W,Cin), w: (3,3,Cin,Cout) -> (N, H*W, Cout)."""
    N, H, W, Cin = x_nhwc.shape
    Cout = w.shape[-1]
    xp = jnp.pad(x_nhwc, ((0, 0), (1, 1), (1, 1), (0, 0)))
    w9 = w.reshape(9, Cin, Cout)
    return pl.pallas_call(
        _conv3x3_bn_relu_kernel,
        out_shape=jax.ShapeDtypeStruct((N, H * W, Cout), jnp.float32),
        grid=(N,),
        in_specs=[
            pl.BlockSpec((None, H + 2, W + 2, Cin), lambda n: (n, 0, 0, 0)),
            pl.BlockSpec((9, Cin, Cout), lambda n: (0, 0, 0)),
            pl.BlockSpec((1, Cout), lambda n: (0, 0)),
            pl.BlockSpec((1, Cout), lambda n: (0, 0)),
        ],
        out_specs=pl.BlockSpec((None, H * W, Cout), lambda n: (n, 0, 0)),
        compiler_params=pltpu.CompilerParams(dimension_semantics=("parallel",)),
    )(xp, w9, scale.reshape(1, Cout), shift.reshape(1, Cout))


def exit_conv_pool(feats, w, scale, shift):
    """feats: list of (N, HW, C_i); w: (sum C_i, Cout).
    Returns (z, pooled): exit activation (N, HW, Cout) and its spatial mean (N, 1, Cout)."""
    N, HW = feats[0].shape[:2]
    ch_splits = [int(f.shape[-1]) for f in feats]
    Ct, Cout = w.shape
    kern = _make_exit_conv_pool_kernel(ch_splits)
    in_specs = [pl.BlockSpec((None, HW, c), lambda n: (n, 0, 0)) for c in ch_splits]
    in_specs += [
        pl.BlockSpec((Ct, Cout), lambda n: (0, 0)),
        pl.BlockSpec((1, Cout), lambda n: (0, 0)),
        pl.BlockSpec((1, Cout), lambda n: (0, 0)),
    ]
    return pl.pallas_call(
        kern,
        out_shape=(jax.ShapeDtypeStruct((N, HW, Cout), jnp.float32),
                   jax.ShapeDtypeStruct((N, 1, Cout), jnp.float32)),
        grid=(N,),
        in_specs=in_specs,
        out_specs=(pl.BlockSpec((None, HW, Cout), lambda n: (n, 0, 0)),
                   pl.BlockSpec((None, 1, Cout), lambda n: (n, 0, 0))),
        compiler_params=pltpu.CompilerParams(dimension_semantics=("parallel",)),
    )(*feats, w, scale.reshape(1, Cout), shift.reshape(1, Cout))


def ese_gate_apply(z, gate, residual=None):
    """z: (N,HW,C), gate: (N,1,C) -> z * gate (+ residual)."""
    N, HW, C = z.shape
    in_specs = [
        pl.BlockSpec((None, HW, C), lambda n: (n, 0, 0)),
        pl.BlockSpec((None, 1, C), lambda n: (n, 0, 0)),
    ]
    args = [z, gate]
    if residual is None:
        kern = _gate_kernel
    else:
        kern = _gate_res_kernel
        in_specs.append(pl.BlockSpec((None, HW, C), lambda n: (n, 0, 0)))
        args.append(residual)
    return pl.pallas_call(
        kern,
        out_shape=jax.ShapeDtypeStruct((N, HW, C), jnp.float32),
        grid=(N,),
        in_specs=in_specs,
        out_specs=pl.BlockSpec((None, HW, C), lambda n: (n, 0, 0)),
        compiler_params=pltpu.CompilerParams(dimension_semantics=("parallel",)),
    )(*args)


# ------------------------------- glue ----------------------------------------
def bn_fold(bn, eps=1e-5):
    gamma, beta, mean, var = bn
    scale = gamma / jnp.sqrt(var + eps)
    shift = beta - mean * scale
    return scale, shift


def max_pool_3x3_s2(x_nhwc):
    # TODO(synk): downsample max-pool handled in plain JAX (lax.reduce_window), not Pallas.
    return jax.lax.reduce_window(
        x_nhwc, -jnp.inf, jax.lax.max,
        window_dimensions=(1, 3, 3, 1), window_strides=(1, 2, 2, 1),
        padding=((0, 0), (1, 1), (1, 1), (0, 0)))


def make_params(key, in_ch, inner_ch, out_ch, repeats):
    ks = iter(jax.random.split(key, 64))

    def w(shape, s=0.1):
        return s * jax.random.normal(next(ks), shape, jnp.float32)

    def bn(c):
        return (1.0 + 0.1 * jax.random.normal(next(ks), (c,), jnp.float32),
                0.1 * jax.random.normal(next(ks), (c,), jnp.float32),
                0.1 * jax.random.normal(next(ks), (c,), jnp.float32),
                1.0 + 0.1 * jnp.abs(jax.random.normal(next(ks), (c,), jnp.float32)))

    layers = []
    cin = in_ch
    for _ in range(repeats):
        layers.append({'w': w((3, 3, cin, inner_ch)), 'bn': bn(inner_ch)})
        cin = inner_ch
    cat_ch = in_ch + repeats * inner_ch
    return {'layers': layers,
            'exit_w': w((cat_ch, out_ch)), 'exit_bn': bn(out_ch),
            'ese_w': w((out_ch, out_ch)), 'ese_b': w((out_ch,))}


# ----------------------------- _OSA forward ----------------------------------
def osa_forward(x_nchw, p, *, repeats, downsample=False):
    x_in = jnp.transpose(x_nchw, (0, 2, 3, 1))                  # NCHW -> NHWC
    x = max_pool_3x3_s2(x_in) if downsample else x_in
    N, H, W, _ = x.shape
    HW = H * W

    feats = [x.reshape(N, HW, x.shape[-1])]                     # OSA feature list
    cur = x
    for r in range(repeats):
        s, b = bn_fold(p['layers'][r]['bn'])
        y = conv3x3_bn_relu(cur, p['layers'][r]['w'], s, b)     # (N, HW, inner)
        feats.append(y)
        cur = y.reshape(N, H, W, y.shape[-1])

    se_, be_ = bn_fold(p['exit_bn'])
    z, pooled = exit_conv_pool(feats, p['exit_w'], se_, be_)    # (N,HW,out), (N,1,out)

    # ESE excitation: tiny (N,out)@(out,out) matmul + hard-sigmoid in plain jnp
    # (a pallas_call here would be pure launch/DMA overhead).
    y_se = pooled.reshape(N, -1) @ p['ese_w'] + p['ese_b']
    gate = (jnp.clip(y_se + 3.0, 0.0, 6.0) / 6.0).reshape(N, 1, -1)

    res = None if downsample else x_in.reshape(N, HW, -1)
    out = ese_gate_apply(z, gate, residual=res)                 # (N, HW, out)
    out_ch = out.shape[-1]
    return jnp.transpose(out.reshape(N, H, W, out_ch), (0, 3, 1, 2))


# --------------------------- plain-JAX reference ------------------------------
def osa_reference(x_nchw, p, *, repeats, downsample=False):
    x_in = jnp.transpose(x_nchw, (0, 2, 3, 1))
    x = max_pool_3x3_s2(x_in) if downsample else x_in
    feats = [x]
    cur = x
    for r in range(repeats):
        s, b = bn_fold(p['layers'][r]['bn'])
        y = jax.lax.conv_general_dilated(
            cur, p['layers'][r]['w'], window_strides=(1, 1), padding='SAME',
            dimension_numbers=('NHWC', 'HWIO', 'NHWC'))
        y = jnp.maximum(y * s + b, 0.0)
        feats.append(y)
        cur = y
    cat = jnp.concatenate(feats, axis=-1)
    se_, be_ = bn_fold(p['exit_bn'])
    z = jnp.maximum(jnp.einsum('nhwc,co->nhwo', cat, p['exit_w']) * se_ + be_, 0.0)
    pooled = jnp.mean(z, axis=(1, 2))
    y_se = pooled @ p['ese_w'] + p['ese_b']
    gate = jnp.clip(y_se + 3.0, 0.0, 6.0) / 6.0
    out = z * gate[:, None, None, :]
    if not downsample:
        out = out + x_in
    return jnp.transpose(out, (0, 3, 1, 2))


# --------------------------------- main ---------------------------------------
if __name__ == "__main__":
    # _OSA(in_ch=16, inner_ch=32, out_ch=16, repeats=3, kernel_size=3, stride=1,
    #      downsample=False)  -- out_ch == in_ch so the residual add is exercised.
    N, in_ch, inner_ch, out_ch, H, W, repeats = 2, 16, 32, 16, 16, 16, 3

    key = jax.random.PRNGKey(0)
    kx, kp = jax.random.split(key)
    x = jax.random.normal(kx, (N, in_ch, H, W), jnp.float32)    # PyTorch NCHW input
    params = make_params(kp, in_ch, inner_ch, out_ch, repeats)

    fwd = jax.jit(functools.partial(osa_forward, repeats=repeats, downsample=False))
    y = fwd(x, params)
    jax.block_until_ready(y)

    y_ref = osa_reference(x, params, repeats=repeats, downsample=False)
    assert y.shape == (N, out_ch, H, W), y.shape
    max_err = float(jnp.max(jnp.abs(y - y_ref)))
    assert jnp.allclose(y, y_ref, rtol=1e-4, atol=1e-4), max_err
    print("KERNEL_OK")
</pallas_src>

<mosaic_0001>
module attributes {stable_mosaic.version = 11 : i64} {
  func.func @_conv3x3_bn_relu_kernel(%arg0: i32, %arg1: memref<1x18x18x16xf32, #tpu.memory_space<vmem>>, %arg2: memref<9x16x32xf32, #tpu.memory_space<vmem>>, %arg3: memref<1x32xf32, #tpu.memory_space<vmem>>, %arg4: memref<1x32xf32, #tpu.memory_space<vmem>>, %arg5: memref<1x256x32xf32, #tpu.memory_space<vmem>>) attributes {dimension_semantics = [#tpu.dimension_semantics<parallel>], iteration_bounds = array<i64: 2>, scalar_prefetch = 0 : i64, scratch_operands = 0 : i64, tpu.core_type = #tpu.core_type<tc>, window_params = [{transform_indices = @transform_0, window_bounds = array<i64: 1, 18, 18, 16>}, {pipeline_mode = #tpu.pipeline_mode<synchronous>, transform_indices = @transform_1, window_bounds = array<i64: 9, 16, 32>}, {pipeline_mode = #tpu.pipeline_mode<synchronous>, transform_indices = @transform_2, window_bounds = array<i64: 1, 32>}, {pipeline_mode = #tpu.pipeline_mode<synchronous>, transform_indices = @transform_3, window_bounds = array<i64: 1, 32>}, {transform_indices = @transform_4, window_bounds = array<i64: 1, 256, 32>}]} {
    %cst = arith.constant 0.000000e+00 : f32
    %0 = vector.broadcast %cst : f32 to vector<256x32xf32>
    %c0 = arith.constant 0 : index
    %c0_0 = arith.constant 0 : index
    %c0_1 = arith.constant 0 : index
    %c0_2 = arith.constant 0 : index
    %1 = vector.load %arg1[%c0, %c0_0, %c0_1, %c0_2] : memref<1x18x18x16xf32, #tpu.memory_space<vmem>>, vector<1x16x16x16xf32>
    %2 = vector.shape_cast %1 : vector<1x16x16x16xf32> to vector<16x16x16xf32>
    %3 = vector.shape_cast %2 : vector<16x16x16xf32> to vector<256x16xf32>
    %c0_3 = arith.constant 0 : index
    %c0_4 = arith.constant 0 : index
    %c0_5 = arith.constant 0 : index
    %4 = vector.load %arg2[%c0_3, %c0_4, %c0_5] : memref<9x16x32xf32, #tpu.memory_space<vmem>>, vector<1x16x32xf32>
    %5 = vector.shape_cast %4 : vector<1x16x32xf32> to vector<16x32xf32>
    %cst_6 = arith.constant dense<0.000000e+00> : vector<256x32xf32>
    %6 = tpu.matmul %3, %5, %cst_6 {dimension_numbers = #tpu.dot_dimension_numbers<[1], [0], [0], [1], [0, 0, 1, 1], [], []>} : vector<256x16xf32>, vector<16x32xf32>, vector<256x32xf32> -> vector<256x32xf32>
    %7 = arith.addf %0, %6 : vector<256x32xf32>
    %c0_7 = arith.constant 0 : index
    %c0_8 = arith.constant 0 : index
    %c1 = arith.constant 1 : index
    %c0_9 = arith.constant 0 : index
    %8 = vector.load %arg1[%c0_7, %c0_8, %c1, %c0_9] : memref<1x18x18x16xf32, #tpu.memory_space<vmem>>, vector<1x16x16x16xf32>
    %9 = vector.shape_cast %8 : vector<1x16x16x16xf32> to vector<16x16x16xf32>
    %10 = vector.shape_cast %9 : vector<16x16x16xf32> to vector<256x16xf32>
    %c1_10 = arith.constant 1 : index
    %c0_11 = arith.constant 0 : index
    %c0_12 = arith.constant 0 : index
    %11 = vector.load %arg2[%c1_10, %c0_11, %c0_12] : memref<9x16x32xf32, #tpu.memory_space<vmem>>, vector<1x16x32xf32>
    %12 = vector.shape_cast %11 : vector<1x16x32xf32> to vector<16x32xf32>
    %cst_13 = arith.constant dense<0.000000e+00> : vector<256x32xf32>
    %13 = tpu.matmul %10, %12, %cst_13 {dimension_numbers = #tpu.dot_dimension_numbers<[1], [0], [0], [1], [0, 0, 1, 1], [], []>} : vector<256x16xf32>, vector<16x32xf32>, vector<256x32xf32> -> vector<256x32xf32>
    %14 = arith.addf %7, %13 : vector<256x32xf32>
    %c0_14 = arith.constant 0 : index
    %c0_15 = arith.constant 0 : index
    %c2 = arith.constant 2 : index
    %c0_16 = arith.constant 0 : index
    %15 = vector.load %arg1[%c0_14, %c0_15, %c2, %c0_16] : memref<1x18x18x16xf32, #tpu.memory_space<vmem>>, vector<1x16x16x16xf32>
    %16 = vector.shape_cast %15 : vector<1x16x16x16xf32> to vector<16x16x16xf32>
    %17 = vector.shape_cast %16 : vector<16x16x16xf32> to vector<256x16xf32>
    %c2_17 = arith.constant 2 : index
    %c0_18 = arith.constant 0 : index
    %c0_19 = arith.constant 0 : index
    %18 = vector.load %arg2[%c2_17, %c0_18, %c0_19] : memref<9x16x32xf32, #tpu.memory_space<vmem>>, vector<1x16x32xf32>
    %19 = vector.shape_cast %18 : vector<1x16x32xf32> to vector<16x32xf32>
    %cst_20 = arith.constant dense<0.000000e+00> : vector<256x32xf32>
    %20 = tpu.matmul %17, %19, %cst_20 {dimension_numbers = #tpu.dot_dimension_numbers<[1], [0], [0], [1], [0, 0, 1, 1], [], []>} : vector<256x16xf32>, vector<16x32xf32>, vector<256x32xf32> -> vector<256x32xf32>
    %21 = arith.addf %14, %20 : vector<256x32xf32>
    %c0_21 = arith.constant 0 : index
    %c1_22 = arith.constant 1 : index
    %c0_23 = arith.constant 0 : index
    %c0_24 = arith.constant 0 : index
    %22 = vector.load %arg1[%c0_21, %c1_22, %c0_23, %c0_24] : memref<1x18x18x16xf32, #tpu.memory_space<vmem>>, vector<1x16x16x16xf32>
    %23 = vector.shape_cast %22 : vector<1x16x16x16xf32> to vector<16x16x16xf32>
    %24 = vector.shape_cast %23 : vector<16x16x16xf32> to vector<256x16xf32>
    %c3 = arith.constant 3 : index
    %c0_25 = arith.constant 0 : index
    %c0_26 = arith.constant 0 : index
    %25 = vector.load %arg2[%c3, %c0_25, %c0_26] : memref<9x16x32xf32, #tpu.memory_space<vmem>>, vector<1x16x32xf32>
    %26 = vector.shape_cast %25 : vector<1x16x32xf32> to vector<16x32xf32>
    %cst_27 = arith.constant dense<0.000000e+00> : vector<256x32xf32>
    %27 = tpu.matmul %24, %26, %cst_27 {dimension_numbers = #tpu.dot_dimension_numbers<[1], [0], [0], [1], [0, 0, 1, 1], [], []>} : vector<256x16xf32>, vector<16x32xf32>, vector<256x32xf32> -> vector<256x32xf32>
    %28 = arith.addf %21, %27 : vector<256x32xf32>
    %c0_28 = arith.constant 0 : index
    %c1_29 = arith.constant 1 : index
    %c1_30 = arith.constant 1 : index
    %c0_31 = arith.constant 0 : index
    %29 = vector.load %arg1[%c0_28, %c1_29, %c1_30, %c0_31] : memref<1x18x18x16xf32, #tpu.memory_space<vmem>>, vector<1x16x16x16xf32>
    %30 = vector.shape_cast %29 : vector<1x16x16x16xf32> to vector<16x16x16xf32>
    %31 = vector.shape_cast %30 : vector<16x16x16xf32> to vector<256x16xf32>
    %c4 = arith.constant 4 : index
    %c0_32 = arith.constant 0 : index
    %c0_33 = arith.constant 0 : index
    %32 = vector.load %arg2[%c4, %c0_32, %c0_33] : memref<9x16x32xf32, #tpu.memory_space<vmem>>, vector<1x16x32xf32>
    %33 = vector.shape_cast %32 : vector<1x16x32xf32> to vector<16x32xf32>
    %cst_34 = arith.constant dense<0.000000e+00> : vector<256x32xf32>
    %34 = tpu.matmul %31, %33, %cst_34 {dimension_numbers = #tpu.dot_dimension_numbers<[1], [0], [0], [1], [0, 0, 1, 1], [], []>} : vector<256x16xf32>, vector<16x32xf32>, vector<256x32xf32> -> vector<256x32xf32>
    %35 = arith.addf %28, %34 : vector<256x32xf32>
    %c0_35 = arith.constant 0 : index
    %c1_36 = arith.constant 1 : index
    %c2_37 = arith.constant 2 : index
    %c0_38 = arith.constant 0 : index
    %36 = vector.load %arg1[%c0_35, %c1_36, %c2_37, %c0_38] : memref<1x18x18x16xf32, #tpu.memory_space<vmem>>, vector<1x16x16x16xf32>
    %37 = vector.shape_cast %36 : vector<1x16x16x16xf32> to vector<16x16x16xf32>
    %38 = vector.shape_cast %37 : vector<16x16x16xf32> to vector<256x16xf32>
    %c5 = arith.constant 5 : index
    %c0_39 = arith.constant 0 : index
    %c0_40 = arith.constant 0 : index
    %39 = vector.load %arg2[%c5, %c0_39, %c0_40] : memref<9x16x32xf32, #tpu.memory_space<vmem>>, vector<1x16x32xf32>
    %40 = vector.shape_cast %39 : vector<1x16x32xf32> to vector<16x32xf32>
    %cst_41 = arith.constant dense<0.000000e+00> : vector<256x32xf32>
    %41 = tpu.matmul %38, %40, %cst_41 {dimension_numbers = #tpu.dot_dimension_numbers<[1], [0], [0], [1], [0, 0, 1, 1], [], []>} : vector<256x16xf32>, vector<16x32xf32>, vector<256x32xf32> -> vector<256x32xf32>
    %42 = arith.addf %35, %41 : vector<256x32xf32>
    %c0_42 = arith.constant 0 : index
    %c2_43 = arith.constant 2 : index
    %c0_44 = arith.constant 0 : index
    %c0_45 = arith.constant 0 : index
    %43 = vector.load %arg1[%c0_42, %c2_43, %c0_44, %c0_45] : memref<1x18x18x16xf32, #tpu.memory_space<vmem>>, vector<1x16x16x16xf32>
    %44 = vector.shape_cast %43 : vector<1x16x16x16xf32> to vector<16x16x16xf32>
    %45 = vector.shape_cast %44 : vector<16x16x16xf32> to vector<256x16xf32>
    %c6 = arith.constant 6 : index
    %c0_46 = arith.constant 0 : index
    %c0_47 = arith.constant 0 : index
    %46 = vector.load %arg2[%c6, %c0_46, %c0_47] : memref<9x16x32xf32, #tpu.memory_space<vmem>>, vector<1x16x32xf32>
    %47 = vector.shape_cast %46 : vector<1x16x32xf32> to vector<16x32xf32>
    %cst_48 = arith.constant dense<0.000000e+00> : vector<256x32xf32>
    %48 = tpu.matmul %45, %47, %cst_48 {dimension_numbers = #tpu.dot_dimension_numbers<[1], [0], [0], [1], [0, 0, 1, 1], [], []>} : vector<256x16xf32>, vector<16x32xf32>, vector<256x32xf32> -> vector<256x32xf32>
    %49 = arith.addf %42, %48 : vector<256x32xf32>
    %c0_49 = arith.constant 0 : index
    %c2_50 = arith.constant 2 : index
    %c1_51 = arith.constant 1 : index
    %c0_52 = arith.constant 0 : index
    %50 = vector.load %arg1[%c0_49, %c2_50, %c1_51, %c0_52] : memref<1x18x18x16xf32, #tpu.memory_space<vmem>>, vector<1x16x16x16xf32>
    %51 = vector.shape_cast %50 : vector<1x16x16x16xf32> to vector<16x16x16xf32>
    %52 = vector.shape_cast %51 : vector<16x16x16xf32> to vector<256x16xf32>
    %c7 = arith.constant 7 : index
    %c0_53 = arith.constant 0 : index
    %c0_54 = arith.constant 0 : index
    %53 = vector.load %arg2[%c7, %c0_53, %c0_54] : memref<9x16x32xf32, #tpu.memory_space<vmem>>, vector<1x16x32xf32>
    %54 = vector.shape_cast %53 : vector<1x16x32xf32> to vector<16x32xf32>
    %cst_55 = arith.constant dense<0.000000e+00> : vector<256x32xf32>
    %55 = tpu.matmul %52, %54, %cst_55 {dimension_numbers = #tpu.dot_dimension_numbers<[1], [0], [0], [1], [0, 0, 1, 1], [], []>} : vector<256x16xf32>, vector<16x32xf32>, vector<256x32xf32> -> vector<256x32xf32>
    %56 = arith.addf %49, %55 : vector<256x32xf32>
    %c0_56 = arith.constant 0 : index
    %c2_57 = arith.constant 2 : index
    %c2_58 = arith.constant 2 : index
    %c0_59 = arith.constant 0 : index
    %57 = vector.load %arg1[%c0_56, %c2_57, %c2_58, %c0_59] : memref<1x18x18x16xf32, #tpu.memory_space<vmem>>, vector<1x16x16x16xf32>
    %58 = vector.shape_cast %57 : vector<1x16x16x16xf32> to vector<16x16x16xf32>
    %59 = vector.shape_cast %58 : vector<16x16x16xf32> to vector<256x16xf32>
    %c8 = arith.constant 8 : index
    %c0_60 = arith.constant 0 : index
    %c0_61 = arith.constant 0 : index
    %60 = vector.load %arg2[%c8, %c0_60, %c0_61] : memref<9x16x32xf32, #tpu.memory_space<vmem>>, vector<1x16x32xf32>
    %61 = vector.shape_cast %60 : vector<1x16x32xf32> to vector<16x32xf32>
    %cst_62 = arith.constant dense<0.000000e+00> : vector<256x32xf32>
    %62 = tpu.matmul %59, %61, %cst_62 {dimension_numbers = #tpu.dot_dimension_numbers<[1], [0], [0], [1], [0, 0, 1, 1], [], []>} : vector<256x16xf32>, vector<16x32xf32>, vector<256x32xf32> -> vector<256x32xf32>
    %63 = arith.addf %56, %62 : vector<256x32xf32>
    %c0_63 = arith.constant 0 : index
    %c0_64 = arith.constant 0 : index
    %64 = vector.load %arg3[%c0_63, %c0_64] : memref<1x32xf32, #tpu.memory_space<vmem>>, vector<1x32xf32>
    %65 = vector.broadcast %64 : vector<1x32xf32> to vector<256x32xf32>
    %66 = arith.mulf %63, %65 : vector<256x32xf32>
    %c0_65 = arith.constant 0 : index
    %c0_66 = arith.constant 0 : index
    %67 = vector.load %arg4[%c0_65, %c0_66] : memref<1x32xf32, #tpu.memory_space<vmem>>, vector<1x32xf32>
    %68 = vector.broadcast %67 : vector<1x32xf32> to vector<256x32xf32>
    %69 = arith.addf %66, %68 : vector<256x32xf32>
    %cst_67 = arith.constant 0.000000e+00 : f32
    %70 = vector.broadcast %cst_67 : f32 to vector<256x32xf32>
    %71 = arith.maximumf %69, %70 : vector<256x32xf32>
    %c0_68 = arith.constant 0 : index
    %c0_69 = arith.constant 0 : index
    %c0_70 = arith.constant 0 : index
    %72 = vector.load %arg5[%c0_68, %c0_69, %c0_70] : memref<1x256x32xf32, #tpu.memory_space<vmem>>, vector<1x256x32xf32>
    %73 = vector.shape_cast %72 : vector<1x256x32xf32> to vector<256x32xf32>
    %74 = vector.shape_cast %71 : vector<256x32xf32> to vector<1x256x32xf32>
    tpu.vector_store %arg5[%c0_68, %c0_69, %c0_70], %74 {strides = array<i32>} : memref<1x256x32xf32, #tpu.memory_space<vmem>>, vector<1x256x32xf32>,
    return
  }
  func.func @transform_0(%arg0: i32) -> (i32, i32, i32, i32) {
    %c0_i32 = arith.constant 0 : i32
    %c0_i32_0 = arith.constant 0 : i32
    %c0_i32_1 = arith.constant 0 : i32
    %c0_i32_2 = arith.constant 0 : i32
    return %arg0, %c0_i32, %c0_i32_0, %c0_i32_1 : i32, i32, i32, i32
  }
  func.func @transform_1(%arg0: i32) -> (i32, i32, i32) {
    %c0_i32 = arith.constant 0 : i32
    %c0_i32_0 = arith.constant 0 : i32
    %c0_i32_1 = arith.constant 0 : i32
    %c0_i32_2 = arith.constant 0 : i32
    return %c0_i32, %c0_i32_0, %c0_i32_1 : i32, i32, i32
  }
  func.func @transform_2(%arg0: i32) -> (i32, i32) {
    %c0_i32 = arith.constant 0 : i32
    %c0_i32_0 = arith.constant 0 : i32
    %c0_i32_1 = arith.constant 0 : i32
    return %c0_i32, %c0_i32_0 : i32, i32
  }
  func.func @transform_3(%arg0: i32) -> (i32, i32) {
    %c0_i32 = arith.constant 0 : i32
    %c0_i32_0 = arith.constant 0 : i32
    %c0_i32_1 = arith.constant 0 : i32
    return %c0_i32, %c0_i32_0 : i32, i32
  }
  func.func @transform_4(%arg0: i32) -> (i32, i32, i32) {
    %c0_i32 = arith.constant 0 : i32
    %c0_i32_0 = arith.constant 0 : i32
    %c0_i32_1 = arith.constant 0 : i32
    return %arg0, %c0_i32, %c0_i32_0 : i32, i32, i32
  }
}

module attributes {stable_mosaic.version = 11 : i64} {
  func.func @_conv3x3_bn_relu_kernel(%arg0: i32, %arg1: memref<1x18x18x32xf32, #tpu.memory_space<vmem>>, %arg2: memref<9x32x32xf32, #tpu.memory_space<vmem>>, %arg3: memref<1x32xf32, #tpu.memory_space<vmem>>, %arg4: memref<1x32xf32, #tpu.memory_space<vmem>>, %arg5: memref<1x256x32xf32, #tpu.memory_space<vmem>>) attributes {dimension_semantics = [#tpu.dimension_semantics<parallel>], iteration_bounds = array<i64: 2>, scalar_prefetch = 0 : i64, scratch_operands = 0 : i64, tpu.core_type = #tpu.core_type<tc>, window_params = [{transform_indices = @transform_0, window_bounds = array<i64: 1, 18, 18, 32>}, {pipeline_mode = #tpu.pipeline_mode<synchronous>, transform_indices = @transform_1, window_bounds = array<i64: 9, 32, 32>}, {pipeline_mode = #tpu.pipeline_mode<synchronous>, transform_indices = @transform_2, window_bounds = array<i64: 1, 32>}, {pipeline_mode = #tpu.pipeline_mode<synchronous>, transform_indices = @transform_3, window_bounds = array<i64: 1, 32>}, {transform_indices = @transform_4, window_bounds = array<i64: 1, 256, 32>}]} {
    %cst = arith.constant 0.000000e+00 : f32
    %0 = vector.broadcast %cst : f32 to vector<256x32xf32>
    %c0 = arith.constant 0 : index
    %c0_0 = arith.constant 0 : index
    %c0_1 = arith.constant 0 : index
    %c0_2 = arith.constant 0 : index
    %1 = vector.load %arg1[%c0, %c0_0, %c0_1, %c0_2] : memref<1x18x18x32xf32, #tpu.memory_space<vmem>>, vector<1x16x16x32xf32>
    %2 = vector.shape_cast %1 : vector<1x16x16x32xf32> to vector<16x16x32xf32>
    %3 = vector.shape_cast %2 : vector<16x16x32xf32> to vector<256x32xf32>
    %c0_3 = arith.constant 0 : index
    %c0_4 = arith.constant 0 : index
    %c0_5 = arith.constant 0 : index
    %4 = vector.load %arg2[%c0_3, %c0_4, %c0_5] : memref<9x32x32xf32, #tpu.memory_space<vmem>>, vector<1x32x32xf32>
    %5 = vector.shape_cast %4 : vector<1x32x32xf32> to vector<32x32xf32>
    %cst_6 = arith.constant dense<0.000000e+00> : vector<256x32xf32>
    %6 = tpu.matmul %3, %5, %cst_6 {dimension_numbers = #tpu.dot_dimension_numbers<[1], [0], [0], [1], [0, 0, 1, 1], [], []>} : vector<256x32xf32>, vector<32x32xf32>, vector<256x32xf32> -> vector<256x32xf32>
    %7 = arith.addf %0, %6 : vector<256x32xf32>
    %c0_7 = arith.constant 0 : index
    %c0_8 = arith.constant 0 : index
    %c1 = arith.constant 1 : index
    %c0_9 = arith.constant 0 : index
    %8 = vector.load %arg1[%c0_7, %c0_8, %c1, %c0_9] : memref<1x18x18x32xf32, #tpu.memory_space<vmem>>, vector<1x16x16x32xf32>
    %9 = vector.shape_cast %8 : vector<1x16x16x32xf32> to vector<16x16x32xf32>
    %10 = vector.shape_cast %9 : vector<16x16x32xf32> to vector<256x32xf32>
    %c1_10 = arith.constant 1 : index
    %c0_11 = arith.constant 0 : index
    %c0_12 = arith.constant 0 : index
    %11 = vector.load %arg2[%c1_10, %c0_11, %c0_12] : memref<9x32x32xf32, #tpu.memory_space<vmem>>, vector<1x32x32xf32>
    %12 = vector.shape_cast %11 : vector<1x32x32xf32> to vector<32x32xf32>
    %cst_13 = arith.constant dense<0.000000e+00> : vector<256x32xf32>
    %13 = tpu.matmul %10, %12, %cst_13 {dimension_numbers = #tpu.dot_dimension_numbers<[1], [0], [0], [1], [0, 0, 1, 1], [], []>} : vector<256x32xf32>, vector<32x32xf32>, vector<256x32xf32> -> vector<256x32xf32>
    %14 = arith.addf %7, %13 : vector<256x32xf32>
    %c0_14 = arith.constant 0 : index
    %c0_15 = arith.constant 0 : index
    %c2 = arith.constant 2 : index
    %c0_16 = arith.constant 0 : index
    %15 = vector.load %arg1[%c0_14, %c0_15, %c2, %c0_16] : memref<1x18x18x32xf32, #tpu.memory_space<vmem>>, vector<1x16x16x32xf32>
    %16 = vector.shape_cast %15 : vector<1x16x16x32xf32> to vector<16x16x32xf32>
    %17 = vector.shape_cast %16 : vector<16x16x32xf32> to vector<256x32xf32>
    %c2_17 = arith.constant 2 : index
    %c0_18 = arith.constant 0 : index
    %c0_19 = arith.constant 0 : index
    %18 = vector.load %arg2[%c2_17, %c0_18, %c0_19] : memref<9x32x32xf32, #tpu.memory_space<vmem>>, vector<1x32x32xf32>
    %19 = vector.shape_cast %18 : vector<1x32x32xf32> to vector<32x32xf32>
    %cst_20 = arith.constant dense<0.000000e+00> : vector<256x32xf32>
    %20 = tpu.matmul %17, %19, %cst_20 {dimension_numbers = #tpu.dot_dimension_numbers<[1], [0], [0], [1], [0, 0, 1, 1], [], []>} : vector<256x32xf32>, vector<32x32xf32>, vector<256x32xf32> -> vector<256x32xf32>
    %21 = arith.addf %14, %20 : vector<256x32xf32>
    %c0_21 = arith.constant 0 : index
    %c1_22 = arith.constant 1 : index
    %c0_23 = arith.constant 0 : index
    %c0_24 = arith.constant 0 : index
    %22 = vector.load %arg1[%c0_21, %c1_22, %c0_23, %c0_24] : memref<1x18x18x32xf32, #tpu.memory_space<vmem>>, vector<1x16x16x32xf32>
    %23 = vector.shape_cast %22 : vector<1x16x16x32xf32> to vector<16x16x32xf32>
    %24 = vector.shape_cast %23 : vector<16x16x32xf32> to vector<256x32xf32>
    %c3 = arith.constant 3 : index
    %c0_25 = arith.constant 0 : index
    %c0_26 = arith.constant 0 : index
    %25 = vector.load %arg2[%c3, %c0_25, %c0_26] : memref<9x32x32xf32, #tpu.memory_space<vmem>>, vector<1x32x32xf32>
    %26 = vector.shape_cast %25 : vector<1x32x32xf32> to vector<32x32xf32>
    %cst_27 = arith.constant dense<0.000000e+00> : vector<256x32xf32>
    %27 = tpu.matmul %24, %26, %cst_27 {dimension_numbers = #tpu.dot_dimension_numbers<[1], [0], [0], [1], [0, 0, 1, 1], [], []>} : vector<256x32xf32>, vector<32x32xf32>, vector<256x32xf32> -> vector<256x32xf32>
    %28 = arith.addf %21, %27 : vector<256x32xf32>
    %c0_28 = arith.constant 0 : index
    %c1_29 = arith.constant 1 : index
    %c1_30 = arith.constant 1 : index
    %c0_31 = arith.constant 0 : index
    %29 = vector.load %arg1[%c0_28, %c1_29, %c1_30, %c0_31] : memref<1x18x18x32xf32, #tpu.memory_space<vmem>>, vector<1x16x16x32xf32>
    %30 = vector.shape_cast %29 : vector<1x16x16x32xf32> to vector<16x16x32xf32>
    %31 = vector.shape_cast %30 : vector<16x16x32xf32> to vector<256x32xf32>
    %c4 = arith.constant 4 : index
    %c0_32 = arith.constant 0 : index
    %c0_33 = arith.constant 0 : index
    %32 = vector.load %arg2[%c4, %c0_32, %c0_33] : memref<9x32x32xf32, #tpu.memory_space<vmem>>, vector<1x32x32xf32>
    %33 = vector.shape_cast %32 : vector<1x32x32xf32> to vector<32x32xf32>
    %cst_34 = arith.constant dense<0.000000e+00> : vector<256x32xf32>
    %34 = tpu.matmul %31, %33, %cst_34 {dimension_numbers = #tpu.dot_dimension_numbers<[1], [0], [0], [1], [0, 0, 1, 1], [], []>} : vector<256x32xf32>, vector<32x32xf32>, vector<256x32xf32> -> vector<256x32xf32>
    %35 = arith.addf %28, %34 : vector<256x32xf32>
    %c0_35 = arith.constant 0 : index
    %c1_36 = arith.constant 1 : index
    %c2_37 = arith.constant 2 : index
    %c0_38 = arith.constant 0 : index
    %36 = vector.load %arg1[%c0_35, %c1_36, %c2_37, %c0_38] : memref<1x18x18x32xf32, #tpu.memory_space<vmem>>, vector<1x16x16x32xf32>
    %37 = vector.shape_cast %36 : vector<1x16x16x32xf32> to vector<16x16x32xf32>
    %38 = vector.shape_cast %37 : vector<16x16x32xf32> to vector<256x32xf32>
    %c5 = arith.constant 5 : index
    %c0_39 = arith.constant 0 : index
    %c0_40 = arith.constant 0 : index
    %39 = vector.load %arg2[%c5, %c0_39, %c0_40] : memref<9x32x32xf32, #tpu.memory_space<vmem>>, vector<1x32x32xf32>
    %40 = vector.shape_cast %39 : vector<1x32x32xf32> to vector<32x32xf32>
    %cst_41 = arith.constant dense<0.000000e+00> : vector<256x32xf32>
    %41 = tpu.matmul %38, %40, %cst_41 {dimension_numbers = #tpu.dot_dimension_numbers<[1], [0], [0], [1], [0, 0, 1, 1], [], []>} : vector<256x32xf32>, vector<32x32xf32>, vector<256x32xf32> -> vector<256x32xf32>
    %42 = arith.addf %35, %41 : vector<256x32xf32>
    %c0_42 = arith.constant 0 : index
    %c2_43 = arith.constant 2 : index
    %c0_44 = arith.constant 0 : index
    %c0_45 = arith.constant 0 : index
    %43 = vector.load %arg1[%c0_42, %c2_43, %c0_44, %c0_45] : memref<1x18x18x32xf32, #tpu.memory_space<vmem>>, vector<1x16x16x32xf32>
    %44 = vector.shape_cast %43 : vector<1x16x16x32xf32> to vector<16x16x32xf32>
    %45 = vector.shape_cast %44 : vector<16x16x32xf32> to vector<256x32xf32>
    %c6 = arith.constant 6 : index
    %c0_46 = arith.constant 0 : index
    %c0_47 = arith.constant 0 : index
    %46 = vector.load %arg2[%c6, %c0_46, %c0_47] : memref<9x32x32xf32, #tpu.memory_space<vmem>>, vector<1x32x32xf32>
    %47 = vector.shape_cast %46 : vector<1x32x32xf32> to vector<32x32xf32>
    %cst_48 = arith.constant dense<0.000000e+00> : vector<256x32xf32>
    %48 = tpu.matmul %45, %47, %cst_48 {dimension_numbers = #tpu.dot_dimension_numbers<[1], [0], [0], [1], [0, 0, 1, 1], [], []>} : vector<256x32xf32>, vector<32x32xf32>, vector<256x32xf32> -> vector<256x32xf32>
    %49 = arith.addf %42, %48 : vector<256x32xf32>
    %c0_49 = arith.constant 0 : index
    %c2_50 = arith.constant 2 : index
    %c1_51 = arith.constant 1 : index
    %c0_52 = arith.constant 0 : index
    %50 = vector.load %arg1[%c0_49, %c2_50, %c1_51, %c0_52] : memref<1x18x18x32xf32, #tpu.memory_space<vmem>>, vector<1x16x16x32xf32>
    %51 = vector.shape_cast %50 : vector<1x16x16x32xf32> to vector<16x16x32xf32>
    %52 = vector.shape_cast %51 : vector<16x16x32xf32> to vector<256x32xf32>
    %c7 = arith.constant 7 : index
    %c0_53 = arith.constant 0 : index
    %c0_54 = arith.constant 0 : index
    %53 = vector.load %arg2[%c7, %c0_53, %c0_54] : memref<9x32x32xf32, #tpu.memory_space<vmem>>, vector<1x32x32xf32>
    %54 = vector.shape_cast %53 : vector<1x32x32xf32> to vector<32x32xf32>
    %cst_55 = arith.constant dense<0.000000e+00> : vector<256x32xf32>
    %55 = tpu.matmul %52, %54, %cst_55 {dimension_numbers = #tpu.dot_dimension_numbers<[1], [0], [0], [1], [0, 0, 1, 1], [], []>} : vector<256x32xf32>, vector<32x32xf32>, vector<256x32xf32> -> vector<256x32xf32>
    %56 = arith.addf %49, %55 : vector<256x32xf32>
    %c0_56 = arith.constant 0 : index
    %c2_57 = arith.constant 2 : index
    %c2_58 = arith.constant 2 : index
    %c0_59 = arith.constant 0 : index
    %57 = vector.load %arg1[%c0_56, %c2_57, %c2_58, %c0_59] : memref<1x18x18x32xf32, #tpu.memory_space<vmem>>, vector<1x16x16x32xf32>
    %58 = vector.shape_cast %57 : vector<1x16x16x32xf32> to vector<16x16x32xf32>
    %59 = vector.shape_cast %58 : vector<16x16x32xf32> to vector<256x32xf32>
    %c8 = arith.constant 8 : index
    %c0_60 = arith.constant 0 : index
    %c0_61 = arith.constant 0 : index
    %60 = vector.load %arg2[%c8, %c0_60, %c0_61] : memref<9x32x32xf32, #tpu.memory_space<vmem>>, vector<1x32x32xf32>
    %61 = vector.shape_cast %60 : vector<1x32x32xf32> to vector<32x32xf32>
    %cst_62 = arith.constant dense<0.000000e+00> : vector<256x32xf32>
    %62 = tpu.matmul %59, %61, %cst_62 {dimension_numbers = #tpu.dot_dimension_numbers<[1], [0], [0], [1], [0, 0, 1, 1], [], []>} : vector<256x32xf32>, vector<32x32xf32>, vector<256x32xf32> -> vector<256x32xf32>
    %63 = arith.addf %56, %62 : vector<256x32xf32>
    %c0_63 = arith.constant 0 : index
    %c0_64 = arith.constant 0 : index
    %64 = vector.load %arg3[%c0_63, %c0_64] : memref<1x32xf32, #tpu.memory_space<vmem>>, vector<1x32xf32>
    %65 = vector.broadcast %64 : vector<1x32xf32> to vector<256x32xf32>
    %66 = arith.mulf %63, %65 : vector<256x32xf32>
    %c0_65 = arith.constant 0 : index
    %c0_66 = arith.constant 0 : index
    %67 = vector.load %arg4[%c0_65, %c0_66] : memref<1x32xf32, #tpu.memory_space<vmem>>, vector<1x32xf32>
    %68 = vector.broadcast %67 : vector<1x32xf32> to vector<256x32xf32>
    %69 = arith.addf %66, %68 : vector<256x32xf32>
    %cst_67 = arith.constant 0.000000e+00 : f32
    %70 = vector.broadcast %cst_67 : f32 to vector<256x32xf32>
    %71 = arith.maximumf %69, %70 : vector<256x32xf32>
    %c0_68 = arith.constant 0 : index
    %c0_69 = arith.constant 0 : index
    %c0_70 = arith.constant 0 : index
    %72 = vector.load %arg5[%c0_68, %c0_69, %c0_70] : memref<1x256x32xf32, #tpu.memory_space<vmem>>, vector<1x256x32xf32>
    %73 = vector.shape_cast %72 : vector<1x256x32xf32> to vector<256x32xf32>
    %74 = vector.shape_cast %71 : vector<256x32xf32> to vector<1x256x32xf32>
    tpu.vector_store %arg5[%c0_68, %c0_69, %c0_70], %74 {strides = array<i32>} : memref<1x256x32xf32, #tpu.memory_space<vmem>>, vector<1x256x32xf32>,
    return
  }
  func.func @transform_0(%arg0: i32) -> (i32, i32, i32, i32) {
    %c0_i32 = arith.constant 0 : i32
    %c0_i32_0 = arith.constant 0 : i32
    %c0_i32_1 = arith.constant 0 : i32
    %c0_i32_2 = arith.constant 0 : i32
    return %arg0, %c0_i32, %c0_i32_0, %c0_i32_1 : i32, i32, i32, i32
  }
  func.func @transform_1(%arg0: i32) -> (i32, i32, i32) {
    %c0_i32 = arith.constant 0 : i32
    %c0_i32_0 = arith.constant 0 : i32
    %c0_i32_1 = arith.constant 0 : i32
    %c0_i32_2 = arith.constant 0 : i32
    return %c0_i32, %c0_i32_0, %c0_i32_1 : i32, i32, i32
  }
  func.func @transform_2(%arg0: i32) -> (i32, i32) {
    %c0_i32 = arith.constant 0 : i32
    %c0_i32_0 = arith.constant 0 : i32
    %c0_i32_1 = arith.constant 0 : i32
    return %c0_i32, %c0_i32_0 : i32, i32
  }
  func.func @transform_3(%arg0: i32) -> (i32, i32) {
    %c0_i32 = arith.constant 0 : i32
    %c0_i32_0 = arith.constant 0 : i32
    %c0_i32_1 = arith.constant 0 : i32
    return %c0_i32, %c0_i32_0 : i32, i32
  }
  func.func @transform_4(%arg0: i32) -> (i32, i32, i32) {
    %c0_i32 = arith.constant 0 : i32
    %c0_i32_0 = arith.constant 0 : i32
    %c0_i32_1 = arith.constant 0 : i32
    return %arg0, %c0_i32, %c0_i32_0 : i32, i32, i32
  }
}

module attributes {stable_mosaic.version = 11 : i64} {
  func.func @kernel(%arg0: i32, %arg1: memref<1x256x16xf32, #tpu.memory_space<vmem>>, %arg2: memref<1x256x32xf32, #tpu.memory_space<vmem>>, %arg3: memref<1x256x32xf32, #tpu.memory_space<vmem>>, %arg4: memref<1x256x32xf32, #tpu.memory_space<vmem>>, %arg5: memref<112x16xf32, #tpu.memory_space<vmem>>, %arg6: memref<1x16xf32, #tpu.memory_space<vmem>>, %arg7: memref<1x16xf32, #tpu.memory_space<vmem>>, %arg8: memref<1x256x16xf32, #tpu.memory_space<vmem>>, %arg9: memref<1x1x16xf32, #tpu.memory_space<vmem>>) attributes {dimension_semantics = [#tpu.dimension_semantics<parallel>], iteration_bounds = array<i64: 2>, scalar_prefetch = 0 : i64, scratch_operands = 0 : i64, tpu.core_type = #tpu.core_type<tc>, window_params = [{transform_indices = @transform_0, window_bounds = array<i64: 1, 256, 16>}, {transform_indices = @transform_1, window_bounds = array<i64: 1, 256, 32>}, {transform_indices = @transform_2, window_bounds = array<i64: 1, 256, 32>}, {transform_indices = @transform_3, window_bounds = array<i64: 1, 256, 32>}, {pipeline_mode = #tpu.pipeline_mode<synchronous>, transform_indices = @transform_4, window_bounds = array<i64: 112, 16>}, {pipeline_mode = #tpu.pipeline_mode<synchronous>, transform_indices = @transform_5, window_bounds = array<i64: 1, 16>}, {pipeline_mode = #tpu.pipeline_mode<synchronous>, transform_indices = @transform_6, window_bounds = array<i64: 1, 16>}, {transform_indices = @transform_7, window_bounds = array<i64: 1, 256, 16>}, {transform_indices = @transform_8, window_bounds = array<i64: 1, 1, 16>}]} {
    %cst = arith.constant 0.000000e+00 : f32
    %0 = vector.broadcast %cst : f32 to vector<256x16xf32>
    %c0 = arith.constant 0 : index
    %c0_0 = arith.constant 0 : index
    %c0_1 = arith.constant 0 : index
    %1 = vector.load %arg1[%c0, %c0_0, %c0_1] : memref<1x256x16xf32, #tpu.memory_space<vmem>>, vector<1x256x16xf32>
    %2 = vector.shape_cast %1 : vector<1x256x16xf32> to vector<256x16xf32>
    %c0_2 = arith.constant 0 : index
    %c0_3 = arith.constant 0 : index
    %3 = vector.load %arg5[%c0_2, %c0_3] : memref<112x16xf32, #tpu.memory_space<vmem>>, vector<16x16xf32>
    %cst_4 = arith.constant dense<0.000000e+00> : vector<256x16xf32>
    %4 = tpu.matmul %2, %3, %cst_4 {dimension_numbers = #tpu.dot_dimension_numbers<[1], [0], [0], [1], [0, 0, 1, 1], [], []>} : vector<256x16xf32>, vector<16x16xf32>, vector<256x16xf32> -> vector<256x16xf32>
    %5 = arith.addf %0, %4 : vector<256x16xf32>
    %c0_5 = arith.constant 0 : index
    %c0_6 = arith.constant 0 : index
    %c0_7 = arith.constant 0 : index
    %6 = vector.load %arg2[%c0_5, %c0_6, %c0_7] : memref<1x256x32xf32, #tpu.memory_space<vmem>>, vector<1x256x32xf32>
    %7 = vector.shape_cast %6 : vector<1x256x32xf32> to vector<256x32xf32>
    %c16 = arith.constant 16 : index
    %c0_8 = arith.constant 0 : index
    %8 = vector.load %arg5[%c16, %c0_8] : memref<112x16xf32, #tpu.memory_space<vmem>>, vector<32x16xf32>
    %cst_9 = arith.constant dense<0.000000e+00> : vector<256x16xf32>
    %9 = tpu.matmul %7, %8, %cst_9 {dimension_numbers = #tpu.dot_dimension_numbers<[1], [0], [0], [1], [0, 0, 1, 1], [], []>} : vector<256x32xf32>, vector<32x16xf32>, vector<256x16xf32> -> vector<256x16xf32>
    %10 = arith.addf %5, %9 : vector<256x16xf32>
    %c0_10 = arith.constant 0 : index
    %c0_11 = arith.constant 0 : index
    %c0_12 = arith.constant 0 : index
    %11 = vector.load %arg3[%c0_10, %c0_11, %c0_12] : memref<1x256x32xf32, #tpu.memory_space<vmem>>, vector<1x256x32xf32>
    %12 = vector.shape_cast %11 : vector<1x256x32xf32> to vector<256x32xf32>
    %c48 = arith.constant 48 : index
    %c0_13 = arith.constant 0 : index
    %13 = vector.load %arg5[%c48, %c0_13] : memref<112x16xf32, #tpu.memory_space<vmem>>, vector<32x16xf32>
    %cst_14 = arith.constant dense<0.000000e+00> : vector<256x16xf32>
    %14 = tpu.matmul %12, %13, %cst_14 {dimension_numbers = #tpu.dot_dimension_numbers<[1], [0], [0], [1], [0, 0, 1, 1], [], []>} : vector<256x32xf32>, vector<32x16xf32>, vector<256x16xf32> -> vector<256x16xf32>
    %15 = arith.addf %10, %14 : vector<256x16xf32>
    %c0_15 = arith.constant 0 : index
    %c0_16 = arith.constant 0 : index
    %c0_17 = arith.constant 0 : index
    %16 = vector.load %arg4[%c0_15, %c0_16, %c0_17] : memref<1x256x32xf32, #tpu.memory_space<vmem>>, vector<1x256x32xf32>
    %17 = vector.shape_cast %16 : vector<1x256x32xf32> to vector<256x32xf32>
    %c80 = arith.constant 80 : index
    %c0_18 = arith.constant 0 : index
    %18 = vector.load %arg5[%c80, %c0_18] : memref<112x16xf32, #tpu.memory_space<vmem>>, vector<32x16xf32>
    %cst_19 = arith.constant dense<0.000000e+00> : vector<256x16xf32>
    %19 = tpu.matmul %17, %18, %cst_19 {dimension_numbers = #tpu.dot_dimension_numbers<[1], [0], [0], [1], [0, 0, 1, 1], [], []>} : vector<256x32xf32>, vector<32x16xf32>, vector<256x16xf32> -> vector<256x16xf32>
    %20 = arith.addf %15, %19 : vector<256x16xf32>
    %c0_20 = arith.constant 0 : index
    %c0_21 = arith.constant 0 : index
    %21 = vector.load %arg6[%c0_20, %c0_21] : memref<1x16xf32, #tpu.memory_space<vmem>>, vector<1x16xf32>
    %22 = vector.broadcast %21 : vector<1x16xf32> to vector<256x16xf32>
    %23 = arith.mulf %20, %22 : vector<256x16xf32>
    %c0_22 = arith.constant 0 : index
    %c0_23 = arith.constant 0 : index
    %24 = vector.load %arg7[%c0_22, %c0_23] : memref<1x16xf32, #tpu.memory_space<vmem>>, vector<1x16xf32>
    %25 = vector.broadcast %24 : vector<1x16xf32> to vector<256x16xf32>
    %26 = arith.addf %23, %25 : vector<256x16xf32>
    %cst_24 = arith.constant 0.000000e+00 : f32
    %27 = vector.broadcast %cst_24 : f32 to vector<256x16xf32>
    %28 = arith.maximumf %26, %27 : vector<256x16xf32>
    %c0_25 = arith.constant 0 : index
    %c0_26 = arith.constant 0 : index
    %c0_27 = arith.constant 0 : index
    %29 = vector.load %arg8[%c0_25, %c0_26, %c0_27] : memref<1x256x16xf32, #tpu.memory_space<vmem>>, vector<1x256x16xf32>
    %30 = vector.shape_cast %29 : vector<1x256x16xf32> to vector<256x16xf32>
    %31 = vector.shape_cast %28 : vector<256x16xf32> to vector<1x256x16xf32>
    tpu.vector_store %arg8[%c0_25, %c0_26, %c0_27], %31 {strides = array<i32>} : memref<1x256x16xf32, #tpu.memory_space<vmem>>, vector<1x256x16xf32>,
    %cst_28 = arith.constant dense<0.000000e+00> : vector<16xf32>
    %32 = vector.multi_reduction <add>, %28, %cst_28 [0] : vector<256x16xf32> to vector<16xf32>
    %33 = vector.shape_cast %32 : vector<16xf32> to vector<1x16xf32>
    %cst_29 = arith.constant 2.560000e+02 : f32
    %34 = vector.broadcast %cst_29 : f32 to vector<1x16xf32>
    %35 = arith.divf %33, %34 : vector<1x16xf32>
    %c0_30 = arith.constant 0 : index
    %c0_31 = arith.constant 0 : index
    %c0_32 = arith.constant 0 : index
    %36 = vector.load %arg9[%c0_30, %c0_31, %c0_32] : memref<1x1x16xf32, #tpu.memory_space<vmem>>, vector<1x1x16xf32>
    %37 = vector.shape_cast %36 : vector<1x1x16xf32> to vector<1x16xf32>
    %38 = vector.shape_cast %35 : vector<1x16xf32> to vector<1x1x16xf32>
    tpu.vector_store %arg9[%c0_30, %c0_31, %c0_32], %38 {strides = array<i32>} : memref<1x1x16xf32, #tpu.memory_space<vmem>>, vector<1x1x16xf32>,
    return
  }
  func.func @transform_0(%arg0: i32) -> (i32, i32, i32) {
    %c0_i32 = arith.constant 0 : i32
    %c0_i32_0 = arith.constant 0 : i32
    %c0_i32_1 = arith.constant 0 : i32
    return %arg0, %c0_i32, %c0_i32_0 : i32, i32, i32
  }
  func.func @transform_1(%arg0: i32) -> (i32, i32, i32) {
    %c0_i32 = arith.constant 0 : i32
    %c0_i32_0 = arith.constant 0 : i32
    %c0_i32_1 = arith.constant 0 : i32
    return %arg0, %c0_i32, %c0_i32_0 : i32, i32, i32
  }
  func.func @transform_2(%arg0: i32) -> (i32, i32, i32) {
    %c0_i32 = arith.constant 0 : i32
    %c0_i32_0 = arith.constant 0 : i32
    %c0_i32_1 = arith.constant 0 : i32
    return %arg0, %c0_i32, %c0_i32_0 : i32, i32, i32
  }
  func.func @transform_3(%arg0: i32) -> (i32, i32, i32) {
    %c0_i32 = arith.constant 0 : i32
    %c0_i32_0 = arith.constant 0 : i32
    %c0_i32_1 = arith.constant 0 : i32
    return %arg0, %c0_i32, %c0_i32_0 : i32, i32, i32
  }
  func.func @transform_4(%arg0: i32) -> (i32, i32) {
    %c0_i32 = arith.constant 0 : i32
    %c0_i32_0 = arith.constant 0 : i32
    %c0_i32_1 = arith.constant 0 : i32
    return %c0_i32, %c0_i32_0 : i32, i32
  }
  func.func @transform_5(%arg0: i32) -> (i32, i32) {
    %c0_i32 = arith.constant 0 : i32
    %c0_i32_0 = arith.constant 0 : i32
    %c0_i32_1 = arith.constant 0 : i32
    return %c0_i32, %c0_i32_0 : i32, i32
  }
  func.func @transform_6(%arg0: i32) -> (i32, i32) {
    %c0_i32 = arith.constant 0 : i32
    %c0_i32_0 = arith.constant 0 : i32
    %c0_i32_1 = arith.constant 0 : i32
    return %c0_i32, %c0_i32_0 : i32, i32
  }
  func.func @transform_7(%arg0: i32) -> (i32, i32, i32) {
    %c0_i32 = arith.constant 0 : i32
    %c0_i32_0 = arith.constant 0 : i32
    %c0_i32_1 = arith.constant 0 : i32
    return %arg0, %c0_i32, %c0_i32_0 : i32, i32, i32
  }
  func.func @transform_8(%arg0: i32) -> (i32, i32, i32) {
    %c0_i32 = arith.constant 0 : i32
    %c0_i32_0 = arith.constant 0 : i32
    %c0_i32_1 = arith.constant 0 : i32
    return %arg0, %c0_i32, %c0_i32_0 : i32, i32, i32
  }
}

module attributes {stable_mosaic.version = 11 : i64} {
  func.func @_gate_res_kernel(%arg0: i32, %arg1: memref<1x256x16xf32, #tpu.memory_space<vmem>>, %arg2: memref<1x1x16xf32, #tpu.memory_space<vmem>>, %arg3: memref<1x256x16xf32, #tpu.memory_space<vmem>>, %arg4: memref<1x256x16xf32, #tpu.memory_space<vmem>>) attributes {dimension_semantics = [#tpu.dimension_semantics<parallel>], iteration_bounds = array<i64: 2>, scalar_prefetch = 0 : i64, scratch_operands = 0 : i64, tpu.core_type = #tpu.core_type<tc>, window_params = [{transform_indices = @transform_0, window_bounds = array<i64: 1, 256, 16>}, {transform_indices = @transform_1, window_bounds = array<i64: 1, 1, 16>}, {transform_indices = @transform_2, window_bounds = array<i64: 1, 256, 16>}, {transform_indices = @transform_3, window_bounds = array<i64: 1, 256, 16>}]} {
    %c0 = arith.constant 0 : index
    %c0_0 = arith.constant 0 : index
    %c0_1 = arith.constant 0 : index
    %0 = vector.load %arg1[%c0, %c0_0, %c0_1] : memref<1x256x16xf32, #tpu.memory_space<vmem>>, vector<1x256x16xf32>
    %1 = vector.shape_cast %0 : vector<1x256x16xf32> to vector<256x16xf32>
    %c0_2 = arith.constant 0 : index
    %c0_3 = arith.constant 0 : index
    %c0_4 = arith.constant 0 : index
    %2 = vector.load %arg2[%c0_2, %c0_3, %c0_4] : memref<1x1x16xf32, #tpu.memory_space<vmem>>, vector<1x1x16xf32>
    %3 = vector.shape_cast %2 : vector<1x1x16xf32> to vector<1x16xf32>
    %4 = vector.broadcast %3 : vector<1x16xf32> to vector<256x16xf32>
    %5 = arith.mulf %1, %4 : vector<256x16xf32>
    %c0_5 = arith.constant 0 : index
    %c0_6 = arith.constant 0 : index
    %c0_7 = arith.constant 0 : index
    %6 = vector.load %arg3[%c0_5, %c0_6, %c0_7] : memref<1x256x16xf32, #tpu.memory_space<vmem>>, vector<1x256x16xf32>
    %7 = vector.shape_cast %6 : vector<1x256x16xf32> to vector<256x16xf32>
    %8 = arith.addf %5, %7 : vector<256x16xf32>
    %c0_8 = arith.constant 0 : index
    %c0_9 = arith.constant 0 : index
    %c0_10 = arith.constant 0 : index
    %9 = vector.load %arg4[%c0_8, %c0_9, %c0_10] : memref<1x256x16xf32, #tpu.memory_space<vmem>>, vector<1x256x16xf32>
    %10 = vector.shape_cast %9 : vector<1x256x16xf32> to vector<256x16xf32>
    %11 = vector.shape_cast %8 : vector<256x16xf32> to vector<1x256x16xf32>
    tpu.vector_store %arg4[%c0_8, %c0_9, %c0_10], %11 {strides = array<i32>} : memref<1x256x16xf32, #tpu.memory_space<vmem>>, vector<1x256x16xf32>,
    return
  }
  func.func @transform_0(%arg0: i32) -> (i32, i32, i32) {
    %c0_i32 = arith.constant 0 : i32
    %c0_i32_0 = arith.constant 0 : i32
    %c0_i32_1 = arith.constant 0 : i32
    return %arg0, %c0_i32, %c0_i32_0 : i32, i32, i32
  }
  func.func @transform_1(%arg0: i32) -> (i32, i32, i32) {
    %c0_i32 = arith.constant 0 : i32
    %c0_i32_0 = arith.constant 0 : i32
    %c0_i32_1 = arith.constant 0 : i32
    return %arg0, %c0_i32, %c0_i32_0 : i32, i32, i32
  }
  func.func @transform_2(%arg0: i32) -> (i32, i32, i32) {
    %c0_i32 = arith.constant 0 : i32
    %c0_i32_0 = arith.constant 0 : i32
    %c0_i32_1 = arith.constant 0 : i32
    return %arg0, %c0_i32, %c0_i32_0 : i32, i32, i32
  }
  func.func @transform_3(%arg0: i32) -> (i32, i32, i32) {
    %c0_i32 = arith.constant 0 : i32
    %c0_i32_0 = arith.constant 0 : i32
    %c0_i32_1 = arith.constant 0 : i32
    return %arg0, %c0_i32, %c0_i32_0 : i32, i32, i32
  }
}

</mosaic_0001>

<bundles_post_ra>
// kernel: osa_forward.9
= control target key start
LH: loop header
LB: loop body
LE: loop exit
PB: predicated region body
PF: predicated region fallthrough
CT: control target
= control target key end

     0   :  { %s502_s12 = smov 0   ;;  %s693_s0 = inlined_call_operand.vmem [shape: f32[2,256,16], index: 0, kind: input, shape index: {}]   ;;  %s694_s1 = inlined_call_operand.vmem [shape: f32[2,1,16], index: 1, kind: input, shape index: {}]   ;;  %s695_s2 = inlined_call_operand.vmem [shape: f32[2,256,16], index: 2, kind: input, shape index: {}]   ;;  %s696_s3 = inlined_call_operand.vmem [shape: f32[2,256,16], index: 3, kind: output, shape index: {}]  }
   0x1 LB: > { %s449_s13 = sadd.s32 4294967295, %s480_s12   ;;  %p453_p0 = scmp.ge.s32.totalorder %s480_s12, 1  ;;  %s480_s12 = sphi %s502_s12, %s13_s12  }
   0x2   : > { %p155_p1 = scmp.lt.s32.totalorder %s480_s12, 3 }
   0x4   : > { %p156_p2 = pnand %p453_p0, %p155_p1 }
   0x5   : > { %p187_p3 = scmp.lt.s32.totalorder (!%p156_p2), %s449_s13, 1 }
   0x6   : > { %159 = sbr.rel (%p156_p2) target bundleno = 42 (0x2a), region = 32 }
   0xb   : > { %s698_s13 = smov (!%p187_p3, %s449_s13), 1  ;;  %vm340_vm0 = vcmask 130048  }
   0xc   : > { %s463_s14 = sshll.u32 %s698_s13, 8  ;;  %s194_s17 = scalar_lea.vmem %s694_s1, %s698_s13 }
   0xd   : > { %s516_s20 = scalar_lea.vmem %s693_s0, %s463_s14  ;;  %s521_s23 = scalar_lea.vmem %s695_s2, %s463_s14  ;;  %v523_v0 = vld [vmem:[%s194_s17] ss:$0 sm:$0xff] }
   0xe   : > { %v205_v1 = vld [vmem:[%s516_s20] sm:$0xff]  ;;  %v206_v3 = vld [vmem:[%s516_s20 + $0x8] sm:$0xff]  ;;  %v207_v7 = vld [vmem:[%s516_s20 + $0x10] sm:$0xff]  ;;  %s536_s26 = scalar_lea.vmem %s696_s3, %s463_s14 }
   0xf   : > { %v276_v2 = vld [vmem:[%s521_s23] sm:$0xff]  ;;  %v244_v4 = vmul.f32 %v523_v0, %v205_v1  ;;  %v245_v5 = vmul.f32 %v523_v0, %v206_v3  ;;  %v277_v6 = vld [vmem:[%s521_s23 + $0x8] sm:$0xff]  ;;  %v278_v8 = vld [vmem:[%s521_s23 + $0x10] sm:$0xff]  ;;  %v246_v9 = vmul.f32 %v523_v0, %v207_v7 }
  0x10   : > { %v208_v10 = vld [vmem:[%s516_s20 + $0x18] sm:$0xff]  ;;  %v209_v12 = vld [vmem:[%s516_s20 + $0x20] sm:$0xff]  ;;  %v210_v18 = vld [vmem:[%s516_s20 + $0x28] sm:$0xff] }
  0x11   : > { %v279_v11 = vld [vmem:[%s521_s23 + $0x18] sm:$0xff]  ;;  %v308_v13 = vadd.f32 %v276_v2, %v244_v4  ;;  %v309_v14 = vadd.f32 %v277_v6, %v245_v5  ;;  %v247_v15 = vmul.f32 %v523_v0, %v208_v10  ;;  %v248_v16 = vmul.f32 %v523_v0, %v209_v12  ;;  %v280_v17 = vld [vmem:[%s521_s23 + $0x20] sm:$0xff]  ;;  %v281_v19 = vld [vmem:[%s521_s23 + $0x28] sm:$0xff] }
  0x12   : > { %v310_v20 = vadd.f32 %v278_v8, %v246_v9  ;;  %v249_v21 = vmul.f32 %v523_v0, %v210_v18  ;;  %v211_v22 = vld [vmem:[%s516_s20 + $0x30] sm:$0xff]  ;;  %v212_v24 = vld [vmem:[%s516_s20 + $0x38] sm:$0xff]  ;;  %v213_v30 = vld [vmem:[%s516_s20 + $0x40] sm:$0xff] }
  0x13   : > { %v282_v23 = vld [vmem:[%s521_s23 + $0x30] sm:$0xff]  ;;  %341 = vst.msk [vmem:[%s536_s26] sm:$0xff] %vm340_vm0, %v308_v13  ;;  %342 = vst.msk [vmem:[%s536_s26 + $0x8] sm:$0xff] %vm340_vm0, %v309_v14  ;;  %v311_v25 = vadd.f32 %v279_v11, %v247_v15  ;;  %v312_v26 = vadd.f32 %v280_v17, %v248_v16  ;;  %v250_v27 = vmul.f32 %v523_v0, %v211_v22  ;;  %v283_v29 = vld [vmem:[%s521_s23 + $0x38] sm:$0xff] }
  0x14   : > { %v251_v28 = vmul.f32 %v523_v0, %v212_v24  ;;  %v284_v31 = vld [vmem:[%s521_s23 + $0x40] sm:$0xff]  ;;  %343 = vst.msk [vmem:[%s536_s26 + $0x10] sm:$0xff] %vm340_vm0, %v310_v20  ;;  %v313_v32 = vadd.f32 %v281_v19, %v249_v21  ;;  %v252_v33 = vmul.f32 %v523_v0, %v213_v30  ;;  %v214_v34 = vld [vmem:[%s516_s20 + $0x48] sm:$0xff]  ;;  %v215_v36 = vld [vmem:[%s516_s20 + $0x50] sm:$0xff] }
  0x15   : > { %v285_v35 = vld [vmem:[%s521_s23 + $0x48] sm:$0xff]  ;;  %344 = vst.msk [vmem:[%s536_s26 + $0x18] sm:$0xff] %vm340_vm0, %v311_v25  ;;  %345 = vst.msk [vmem:[%s536_s26 + $0x20] sm:$0xff] %vm340_vm0, %v312_v26  ;;  %v314_v37 = vadd.f32 %v282_v23, %v250_v27  ;;  %v253_v39 = vmul.f32 %v523_v0, %v214_v34  ;;  %v254_v40 = vmul.f32 %v523_v0, %v215_v36  ;;  %v286_v41 = vld [vmem:[%s521_s23 + $0x50] sm:$0xff] }
  0x16   : > { %v315_v38 = vadd.f32 %v283_v29, %v251_v28  ;;  %v216_v42 = vld [vmem:[%s516_s20 + $0x58] sm:$0xff]  ;;  %346 = vst.msk [vmem:[%s536_s26 + $0x28] sm:$0xff] %vm340_vm0, %v313_v32  ;;  %v316_v44 = vadd.f32 %v284_v31, %v252_v33  ;;  %v217_v46 = vld [vmem:[%s516_s20 + $0x60] sm:$0xff]  ;;  %v218_v48 = vld [vmem:[%s516_s20 + $0x68] sm:$0xff] }
  0x17   : > { %v287_v43 = vld [vmem:[%s521_s23 + $0x58] sm:$0xff]  ;;  %v255_v45 = vmul.f32 %v523_v0, %v216_v42  ;;  %v288_v47 = vld [vmem:[%s521_s23 + $0x60] sm:$0xff]  ;;  %347 = vst.msk [vmem:[%s536_s26 + $0x30] sm:$0xff] %vm340_vm0, %v314_v37  ;;  %v317_v49 = vadd.f32 %v285_v35, %v253_v39  ;;  %v318_v50 = vadd.f32 %v286_v41, %v254_v40  ;;  %v256_v51 = vmul.f32 %v523_v0, %v217_v46  ;;  %v289_v53 = vld [vmem:[%s521_s23 + $0x68] sm:$0xff] }
  0x18   : > { %348 = vst.msk [vmem:[%s536_s26 + $0x38] sm:$0xff] %vm340_vm0, %v315_v38  ;;  %v257_v52 = vmul.f32 %v523_v0, %v218_v48  ;;  %v219_v54 = vld [vmem:[%s516_s20 + $0x70] sm:$0xff]  ;;  %349 = vst.msk [vmem:[%s536_s26 + $0x40] sm:$0xff] %vm340_vm0, %v316_v44  ;;  %v220_v58 = vld [vmem:[%s516_s20 + $0x78] sm:$0xff] }
  0x19   : > { %v290_v55 = vld [vmem:[%s521_s23 + $0x70] sm:$0xff]  ;;  %v319_v56 = vadd.f32 %v287_v43, %v255_v45  ;;  %v258_v57 = vmul.f32 %v523_v0, %v219_v54  ;;  %v291_v59 = vld [vmem:[%s521_s23 + $0x78] sm:$0xff]  ;;  %v221_v60 = vld [vmem:[%s516_s20 + $0x80] sm:$0xff]  ;;  %350 = vst.msk [vmem:[%s536_s26 + $0x48] sm:$0xff] %vm340_vm0, %v317_v49  ;;  %v320_v61 = vadd.f32 %v288_v47, %v256_v51  ;;  %v259_v63 = vmul.f32 %v523_v0, %v220_v58 }
  0x1a   : > { %351 = vst.msk [vmem:[%s536_s26 + $0x50] sm:$0xff] %vm340_vm0, %v318_v50  ;;  %v321_v62 = vadd.f32 %v289_v53, %v257_v52  ;;  %v260_v1 = vmul.f32 %v523_v0, %v221_v60  ;;  %v292_v2 = vld [vmem:[%s521_s23 + $0x80] sm:$0xff]  ;;  %v222_v3 = vld [vmem:[%s516_s20 + $0x88] sm:$0xff]  ;;  %v223_v7 = vld [vmem:[%s516_s20 + $0x90] sm:$0xff] }
  0x1b   : > { %v293_v4 = vld [vmem:[%s521_s23 + $0x88] sm:$0xff]  ;;  %352 = vst.msk [vmem:[%s536_s26 + $0x58] sm:$0xff] %vm340_vm0, %v319_v56  ;;  %v322_v5 = vadd.f32 %v290_v55, %v258_v57  ;;  %v261_v6 = vmul.f32 %v523_v0, %v222_v3  ;;  %v294_v8 = vld [vmem:[%s521_s23 + $0x90] sm:$0xff]  ;;  %v224_v9 = vld [vmem:[%s516_s20 + $0x98] sm:$0xff]  ;;  %v323_v10 = vadd.f32 %v291_v59, %v259_v63  ;;  %v262_v12 = vmul.f32 %v523_v0, %v223_v7 }
  0x1c   : > { %353 = vst.msk [vmem:[%s536_s26 + $0x60] sm:$0xff] %vm340_vm0, %v320_v61  ;;  %354 = vst.msk [vmem:[%s536_s26 + $0x68] sm:$0xff] %vm340_vm0, %v321_v62  ;;  %v324_v11 = vadd.f32 %v292_v2, %v260_v1  ;;  %v263_v13 = vmul.f32 %v523_v0, %v224_v9  ;;  %v295_v14 = vld [vmem:[%s521_s23 + $0x98] sm:$0xff]  ;;  %v225_v15 = vld [vmem:[%s516_s20 + $0xa0] sm:$0xff] }
  0x1d   : > { %v296_v16 = vld [vmem:[%s521_s23 + $0xa0] sm:$0xff]  ;;  %355 = vst.msk [vmem:[%s536_s26 + $0x70] sm:$0xff] %vm340_vm0, %v322_v5  ;;  %v325_v17 = vadd.f32 %v293_v4, %v261_v6  ;;  %v264_v18 = vmul.f32 %v523_v0, %v225_v15  ;;  %v226_v19 = vld [vmem:[%s516_s20 + $0xa8] sm:$0xff]  ;;  %v227_v21 = vld [vmem:[%s516_s20 + $0xb0] sm:$0xff]  ;;  %v326_v22 = vadd.f32 %v294_v8, %v262_v12 }
  0x1e   : > { %v297_v20 = vld [vmem:[%s521_s23 + $0xa8] sm:$0xff]  ;;  %356 = vst.msk [vmem:[%s536_s26 + $0x78] sm:$0xff] %vm340_vm0, %v323_v10  ;;  %357 = vst.msk [vmem:[%s536_s26 + $0x80] sm:$0xff] %vm340_vm0, %v324_v11  ;;  %v327_v23 = vadd.f32 %v295_v14, %v263_v13  ;;  %v265_v24 = vmul.f32 %v523_v0, %v226_v19  ;;  %v266_v25 = vmul.f32 %v523_v0, %v227_v21  ;;  %v298_v26 = vld [vmem:[%s521_s23 + $0xb0] sm:$0xff] }
  0x1f   : > { %v228_v27 = vld [vmem:[%s516_s20 + $0xb8] sm:$0xff]  ;;  %358 = vst.msk [vmem:[%s536_s26 + $0x88] sm:$0xff] %vm340_vm0, %v325_v17  ;;  %v328_v29 = vadd.f32 %v296_v16, %v264_v18  ;;  %v229_v31 = vld [vmem:[%s516_s20 + $0xc0] sm:$0xff]  ;;  %v230_v33 = vld [vmem:[%s516_s20 + $0xc8] sm:$0xff] }
  0x20   : > { %v299_v28 = vld [vmem:[%s521_s23 + $0xb8] sm:$0xff]  ;;  %v267_v30 = vmul.f32 %v523_v0, %v228_v27  ;;  %v300_v32 = vld [vmem:[%s521_s23 + $0xc0] sm:$0xff]  ;;  %359 = vst.msk [vmem:[%s536_s26 + $0x90] sm:$0xff] %vm340_vm0, %v326_v22  ;;  %360 = vst.msk [vmem:[%s536_s26 + $0x98] sm:$0xff] %vm340_vm0, %v327_v23  ;;  %v329_v34 = vadd.f32 %v297_v20, %v265_v24  ;;  %v330_v35 = vadd.f32 %v298_v26, %v266_v25 }
  0x21   : > { %v268_v36 = vmul.f32 %v523_v0, %v229_v31  ;;  %v269_v37 = vmul.f32 %v523_v0, %v230_v33  ;;  %v301_v38 = vld [vmem:[%s521_s23 + $0xc8] sm:$0xff]  ;;  %v231_v39 = vld [vmem:[%s516_s20 + $0xd0] sm:$0xff]  ;;  %361 = vst.msk [vmem:[%s536_s26 + $0xa0] sm:$0xff] %vm340_vm0, %v328_v29  ;;  %v232_v43 = vld [vmem:[%s516_s20 + $0xd8] sm:$0xff] }
  0x22   : > { %v302_v40 = vld [vmem:[%s521_s23 + $0xd0] sm:$0xff]  ;;  %v331_v41 = vadd.f32 %v299_v28, %v267_v30  ;;  %v270_v42 = vmul.f32 %v523_v0, %v231_v39  ;;  %v303_v44 = vld [vmem:[%s521_s23 + $0xd8] sm:$0xff]  ;;  %v233_v45 = vld [vmem:[%s516_s20 + $0xe0] sm:$0xff]  ;;  %362 = vst.msk [vmem:[%s536_s26 + $0xa8] sm:$0xff] %vm340_vm0, %v329_v34  ;;  %v271_v48 = vmul.f32 %v523_v0, %v232_v43 }
  0x23   : > { %363 = vst.msk [vmem:[%s536_s26 + $0xb0] sm:$0xff] %vm340_vm0, %v330_v35  ;;  %v332_v46 = vadd.f32 %v300_v32, %v268_v36  ;;  %v333_v47 = vadd.f32 %v301_v38, %v269_v37  ;;  %v272_v49 = vmul.f32 %v523_v0, %v233_v45  ;;  %v304_v50 = vld [vmem:[%s521_s23 + $0xe0] sm:$0xff]  ;;  %v234_v51 = vld [vmem:[%s516_s20 + $0xe8] sm:$0xff]  ;;  %v235_v55 = vld [vmem:[%s516_s20 + $0xf0] sm:$0xff] }
  0x24   : > { %v305_v52 = vld [vmem:[%s521_s23 + $0xe8] sm:$0xff]  ;;  %364 = vst.msk [vmem:[%s536_s26 + $0xb8] sm:$0xff] %vm340_vm0, %v331_v41  ;;  %v334_v53 = vadd.f32 %v302_v40, %v270_v42  ;;  %v273_v54 = vmul.f32 %v523_v0, %v234_v51  ;;  %v306_v56 = vld [vmem:[%s521_s23 + $0xf0] sm:$0xff]  ;;  %v236_v57 = vld [vmem:[%s516_s20 + $0xf8] sm:$0xff]  ;;  %v335_v58 = vadd.f32 %v303_v44, %v271_v48  ;;  %v274_v60 = vmul.f32 %v523_v0, %v235_v55 }
  0x25   : > { %365 = vst.msk [vmem:[%s536_s26 + $0xc0] sm:$0xff] %vm340_vm0, %v332_v46  ;;  %366 = vst.msk [vmem:[%s536_s26 + $0xc8] sm:$0xff] %vm340_vm0, %v333_v47  ;;  %v336_v59 = vadd.f32 %v304_v50, %v272_v49  ;;  %v275_v61 = vmul.f32 %v523_v0, %v236_v57  ;;  %v307_v62 = vld [vmem:[%s521_s23 + $0xf8] sm:$0xff] }
  0x26   : > { %367 = vst.msk [vmem:[%s536_s26 + $0xd0] sm:$0xff] %vm340_vm0, %v334_v53  ;;  %v337_v63 = vadd.f32 %v305_v52, %v273_v54  ;;  %368 = vst.msk [vmem:[%s536_s26 + $0xd8] sm:$0xff] %vm340_vm0, %v335_v58  ;;  %v338_v1 = vadd.f32 %v306_v56, %v274_v60 }
  0x27   : > { %369 = vst.msk [vmem:[%s536_s26 + $0xe0] sm:$0xff] %vm340_vm0, %v336_v59  ;;  %v339_v2 = vadd.f32 %v307_v62, %v275_v61 }
  0x28   : > { %370 = vst.msk [vmem:[%s536_s26 + $0xe8] sm:$0xff] %vm340_vm0, %v337_v63  ;;  %371 = vst.msk [vmem:[%s536_s26 + $0xf0] sm:$0xff] %vm340_vm0, %v338_v1 }
  0x29   : > { %372 = vst.msk [vmem:[%s536_s26 + $0xf8] sm:$0xff] %vm340_vm0, %v339_v2 }
  0x2a PF: > { %s13_s12 = sadd.s32 1, %s480_s12  }
  0x2b   : > { %p10_p4 = scmp.ge.s32.totalorder %s13_s12, 4  }
  0x2d   :  { %12 = sbr.rel (!%p10_p4) target bundleno = 1 (0x1), region = 68 }

// kernel: osa_forward.8
= control target key start
LH: loop header
LB: loop body
LE: loop exit
PB: predicated region body
PF: predicated region fallthrough
CT: control target
= control target key end

     0   :  { %s2773_s27 = smov 0   ;;  %s3483_s0 = inlined_call_operand.vmem [shape: f32[2,256,16], index: 0, kind: input, shape index: {}]   ;;  %s3484_s1 = inlined_call_operand.vmem [shape: f32[2,256,32], index: 1, kind: input, shape index: {}]   ;;  %s3485_s2 = inlined_call_operand.vmem [shape: f32[2,256,32], index: 2, kind: input, shape index: {}]   ;;  %s3486_s3 = inlined_call_operand.vmem [shape: f32[2,256,32], index: 3, kind: input, shape index: {}]   ;;  %s3487_s4 = inlined_call_operand.vmem [shape: f32[112,16], index: 4, kind: input, shape index: {}]   ;;  %s3488_s5 = inlined_call_operand.vmem [shape: f32[1,16], index: 5, kind: input, shape index: {}]   ;;  %s3489_s6 = inlined_call_operand.vmem [shape: f32[1,16], index: 6, kind: input, shape index: {}]   ;;  %s3490_s7 = inlined_call_operand.vmem [shape: f32[2,256,16], index: 7, kind: output, shape index: {0}]   ;;  %s3491_s8 = inlined_call_operand.vmem [shape: f32[2,1,16], index: 8, kind: output, shape index: {1}]  }
   0x1 LB: > { %s2198_s28 = sadd.s32 4294967295, %s2726_s27   ;;  %p2202_p0 = scmp.ge.s32.totalorder %s2726_s27, 1  ;;  %s2726_s27 = sphi %s2773_s27, %s19_s27  }
   0x2   : > { %p295_p1 = scmp.lt.s32.totalorder %s2726_s27, 3 }
   0x4   : > { %p296_p2 = pnand %p2202_p0, %p295_p1 }
   0x6   : > { %299 = sbr.rel (%p296_p2) target bundleno = 370 (0x172), region = 48 }
   0xb   : > { %v444_v0 = vld [vmem:[%s3487_s4 + $0x28] sm:$0xff]  ;;  %v443_v1 = vld [vmem:[%s3487_s4 + $0x20] sm:$0xff]  ;;  %p347_p3 = scmp.lt.s32.totalorder %s2198_s28, 1  ;;  %v442_v4 = vld [vmem:[%s3487_s4 + $0x18] sm:$0xff]  ;;  %vm767_vm0 = vcmask 130048   ;;  %vm445_vm1 = vcmask 261120  }
   0xc   : > { %v408_v2 = vld [vmem:[%s3487_s4 + $0x8] sm:$0xff]  ;;  %2492 = vmatprep.subr.mxu0 %v444_v0  ;;  %v407_v3 = vld [vmem:[%s3487_s4] sm:$0xff]  ;;  %v441_v6 = vld [vmem:[%s3487_s4 + $0x10] sm:$0xff]  ;;  %vm2080_vm2 = vcmask 122880  }
   0xd   : > { %2548 = vmatprep.subr.mxu1 %v408_v2  ;;  %2493 = vmatpush3.msra.mxu0 %v444_v0  ;;  %s3521_s28 = smov (!%p347_p3, %s2198_s28), 1  ;;  %v1124_v5 = vld [vmem:[%s3487_s4 + $0x48] sm:$0xff]  ;;  %v1123_v14 = vld [vmem:[%s3487_s4 + $0x40] sm:$0xff]  ;;  %v1122_v20 = vld [vmem:[%s3487_s4 + $0x38] sm:$0xff] }
   0xe   : > { %2549 = vmatpush3.msra.mxu1 %v408_v2  ;;  %2494 = vmatprep.subr.mxu0 %v443_v1  ;;  %s2805_s21 = sshll.u32 %s3521_s28, 8  ;;  %v1513_v11 = vld [vmem:[%s3487_s4 + $0x68] sm:$0xff]  ;;  %v1512_v19 = vld [vmem:[%s3487_s4 + $0x60] sm:$0xff]  ;;  %v1511_v25 = vld [vmem:[%s3487_s4 + $0x58] sm:$0xff]  ;;  %s374_s17 = scalar_lea.vmem %s3491_s8, %s3521_s28 }
   0xf   : > { %2550 = vmatprep.subr.mxu1 %v407_v3  ;;  %2495 = vmatpush3.msra.mxu0 %v443_v1  ;;  %s2811_s24 = scalar_lea.vmem %s3483_s0, %s2805_s21  ;;  %s2817_s29 = scalar_lea.vmem %s3484_s1, %s2805_s21  ;;  %v1121_v26 = vld [vmem:[%s3487_s4 + $0x30] sm:$0xff] }
  0x10   : > { %2551 = vmatpush3.msra.mxu1 %v407_v3  ;;  %2496 = vmatprep.subr.mxu0 %v442_v4  ;;  %v375_v7 = vld [vmem:[%s2811_s24] sm:$0xff]  ;;  %v376_v9 = vld [vmem:[%s2811_s24 + $0x8] sm:$0xff]  ;;  %v377_v12 = vld [vmem:[%s2811_s24 + $0x10] sm:$0xff]  ;;  %s2964_s26 = scalar_lea.vmem %s3485_s2, %s2805_s21  ;;  %s2970_s10 = scalar_lea.vmem %s3486_s3, %s2805_s21 }
  0x11   : > { %2600 = vmatprep.subr.mxu1 %v1124_v5  ;;  %2497 = vmatpush3.msra.mxu0 %v442_v4  ;;  %v409_v8 = vld [vmem:[%s2817_s29] sm:$0xff]  ;;  %v410_v10 = vld [vmem:[%s2817_s29 + $0x8] sm:$0xff]  ;;  %v411_v13 = vld [vmem:[%s2817_s29 + $0x10] sm:$0xff]  ;;  %s3263_s15 = scalar_lea.vmem %s3490_s7, %s2805_s21 }
  0x12   : > { %2498 = vmatprep.subr.mxu0 %v441_v6  ;;  %2552 = vmatprep.mubr.msk.f32.mxu1 %vm767_vm0, %v375_v7  ;;  %v378_v15 = vld [vmem:[%s2811_s24 + $0x18] sm:$0xff]  ;;  %v379_v17 = vld [vmem:[%s2811_s24 + $0x20] sm:$0xff]  ;;  %v380_v21 = vld [vmem:[%s2811_s24 + $0x28] sm:$0xff] }
  0x13   : > { %2499 = vmatpush3.msra.mxu0 %v441_v6  ;;  %2500 = vmatprep.mubr.msk.f32.mxu0 %vm445_vm1, %v409_v8  ;;  %v412_v16 = vld [vmem:[%s2817_s29 + $0x18] sm:$0xff]  ;;  %v413_v18 = vld [vmem:[%s2817_s29 + $0x20] sm:$0xff]  ;;  %v414_v22 = vld [vmem:[%s2817_s29 + $0x28] sm:$0xff] }
  0x14   : > { %2553 = vmatmul.mubr.msk.f32.vlgmr.msra.gmra.mxu1 %vm767_vm0, %v376_v9  ;;  %2501 = vmatmul.mubr.msk.f32.vlgmr.msra.gmra.mxu0 %vm445_vm1, %v410_v10  ;;  %v381_v23 = vld [vmem:[%s2811_s24 + $0x30] sm:$0xff]  ;;  %v382_v27 = vld [vmem:[%s2811_s24 + $0x38] sm:$0xff]  ;;  %v383_v29 = vld [vmem:[%s2811_s24 + $0x40] sm:$0xff] }
  0x15   : > { %2601 = vmatpush3.msra.mxu1 %v1124_v5  ;;  %2656 = vmatprep.subr.mxu0 %v1513_v11  ;;  %v415_v24 = vld [vmem:[%s2817_s29 + $0x30] sm:$0xff]  ;;  %v416_v28 = vld [vmem:[%s2817_s29 + $0x38] sm:$0xff]  ;;  %v417_v30 = vld [vmem:[%s2817_s29 + $0x40] sm:$0xff] }
  0x16   : > { %2657 = vmatpush3.msra.mxu0 %v1513_v11  ;;  %2555 = vmatprep.mubr.msk.f32.mxu1 %vm767_vm0, %v377_v12  ;;  %v1510_v31 = vld [vmem:[%s3487_s4 + $0x50] sm:$0xff]  ;;  %v384_v32 = vld [vmem:[%s2811_s24 + $0x48] sm:$0xff]  ;;  %v386_v36 = vld [vmem:[%s2811_s24 + $0x58] sm:$0xff] }
  0x17   : > { %2503 = vmatprep.mubr.msk.f32.mxu0 %vm445_vm1, %v411_v13  ;;  %2602 = vmatprep.subr.mxu1 %v1123_v14  ;;  %v418_v33 = vld [vmem:[%s2817_s29 + $0x48] sm:$0xff]  ;;  %v385_v34 = vld [vmem:[%s2811_s24 + $0x50] sm:$0xff]  ;;  %v420_v37 = vld [vmem:[%s2817_s29 + $0x58] sm:$0xff] }
  0x18   : > { %2556 = vmatmul.mubr.msk.f32.gmra.mxu1 %vm767_vm0, %v378_v15  ;;  %2504 = vmatmul.mubr.msk.f32.gmra.mxu0 %vm445_vm1, %v412_v16  ;;  %v419_v35 = vld [vmem:[%s2817_s29 + $0x50] sm:$0xff]  ;;  %v387_v38 = vld [vmem:[%s2811_s24 + $0x60] sm:$0xff]  ;;  %v388_v40 = vld [vmem:[%s2811_s24 + $0x68] sm:$0xff] }
  0x19   : > { %2558 = vmatprep.mubr.msk.f32.mxu1 %vm767_vm0, %v379_v17  ;;  %2506 = vmatprep.mubr.msk.f32.mxu0 %vm445_vm1, %v413_v18  ;;  %v421_v39 = vld [vmem:[%s2817_s29 + $0x60] sm:$0xff]  ;;  %v422_v41 = vld [vmem:[%s2817_s29 + $0x68] sm:$0xff]  ;;  %v389_v42 = vld [vmem:[%s2811_s24 + $0x70] sm:$0xff] }
  0x1a   : > { %2603 = vmatpush3.msra.mxu1 %v1123_v14  ;;  %2658 = vmatprep.subr.mxu0 %v1512_v19  ;;  %v423_v43 = vld [vmem:[%s2817_s29 + $0x70] sm:$0xff]  ;;  %v390_v44 = vld [vmem:[%s2811_s24 + $0x78] sm:$0xff]  ;;  %v391_v46 = vld [vmem:[%s2811_s24 + $0x80] sm:$0xff] }
  0x1b   : > { %2659 = vmatpush3.msra.mxu0 %v1512_v19  ;;  %2604 = vmatprep.subr.mxu1 %v1122_v20  ;;  %v424_v45 = vld [vmem:[%s2817_s29 + $0x78] sm:$0xff]  ;;  %v425_v47 = vld [vmem:[%s2817_s29 + $0x80] sm:$0xff]  ;;  %v392_v48 = vld [vmem:[%s2811_s24 + $0x88] sm:$0xff] }
  0x1c   : > { %2559 = vmatmul.mubr.msk.f32.gmra.mxu1 %vm767_vm0, %v380_v21  ;;  %2507 = vmatmul.mubr.msk.f32.gmra.mxu0 %vm445_vm1, %v414_v22  ;;  %v426_v49 = vld [vmem:[%s2817_s29 + $0x88] sm:$0xff]  ;;  %v393_v50 = vld [vmem:[%s2811_s24 + $0x90] sm:$0xff]  ;;  %v394_v52 = vld [vmem:[%s2811_s24 + $0x98] sm:$0xff] }
  0x1d   : > { %2561 = vmatprep.mubr.msk.f32.mxu1 %vm767_vm0, %v381_v23  ;;  %2509 = vmatprep.mubr.msk.f32.mxu0 %vm445_vm1, %v415_v24  ;;  %v427_v51 = vld [vmem:[%s2817_s29 + $0x90] sm:$0xff]  ;;  %v428_v53 = vld [vmem:[%s2817_s29 + $0x98] sm:$0xff]  ;;  %v395_v54 = vld [vmem:[%s2811_s24 + $0xa0] sm:$0xff] }
  0x1e   : > { %2605 = vmatpush3.msra.mxu1 %v1122_v20  ;;  %2660 = vmatprep.subr.mxu0 %v1511_v25  ;;  %v429_v55 = vld [vmem:[%s2817_s29 + $0xa0] sm:$0xff]  ;;  %v396_v56 = vld [vmem:[%s2811_s24 + $0xa8] sm:$0xff]  ;;  %v397_v58 = vld [vmem:[%s2811_s24 + $0xb0] sm:$0xff] }
  0x1f   : > { %2661 = vmatpush3.msra.mxu0 %v1511_v25  ;;  %2606 = vmatprep.subr.mxu1 %v1121_v26  ;;  %v430_v57 = vld [vmem:[%s2817_s29 + $0xa8] sm:$0xff]  ;;  %v431_v59 = vld [vmem:[%s2817_s29 + $0xb0] sm:$0xff]  ;;  %v398_v60 = vld [vmem:[%s2811_s24 + $0xb8] sm:$0xff] }
  0x20   : > { %2562 = vmatmul.mubr.msk.f32.gmra.mxu1 %vm767_vm0, %v382_v27  ;;  %2510 = vmatmul.mubr.msk.f32.gmra.mxu0 %vm445_vm1, %v416_v28  ;;  %v432_v61 = vld [vmem:[%s2817_s29 + $0xb8] sm:$0xff]  ;;  %v399_v62 = vld [vmem:[%s2811_s24 + $0xc0] sm:$0xff]  ;;  %v400_v0 = vld [vmem:[%s2811_s24 + $0xc8] sm:$0xff] }
  0x21   : > { %2564 = vmatprep.mubr.msk.f32.mxu1 %vm767_vm0, %v383_v29  ;;  %2512 = vmatprep.mubr.msk.f32.mxu0 %vm445_vm1, %v417_v30  ;;  %v433_v63 = vld [vmem:[%s2817_s29 + $0xc0] sm:$0xff]  ;;  %v434_v1 = vld [vmem:[%s2817_s29 + $0xc8] sm:$0xff]  ;;  %v401_v2 = vld [vmem:[%s2811_s24 + $0xd0] sm:$0xff] }
  0x22   : > { %2607 = vmatpush3.msra.mxu1 %v1121_v26  ;;  %2662 = vmatprep.subr.mxu0 %v1510_v31  ;;  %v435_v3 = vld [vmem:[%s2817_s29 + $0xd0] sm:$0xff]  ;;  %v402_v4 = vld [vmem:[%s2811_s24 + $0xd8] sm:$0xff]  ;;  %v403_v6 = vld [vmem:[%s2811_s24 + $0xe0] sm:$0xff] }
  0x23   : > { %2663 = vmatpush3.msra.mxu0 %v1510_v31  ;;  %v436_v5 = vld [vmem:[%s2817_s29 + $0xd8] sm:$0xff]  ;;  %v437_v7 = vld [vmem:[%s2817_s29 + $0xe0] sm:$0xff]  ;;  %v404_v8 = vld [vmem:[%s2811_s24 + $0xe8] sm:$0xff] }
  0x24   : > { %2565 = vmatmul.mubr.msk.f32.gmra.mxu1 %vm767_vm0, %v384_v32  ;;  %2513 = vmatmul.mubr.msk.f32.gmra.mxu0 %vm445_vm1, %v418_v33  ;;  %v438_v9 = vld [vmem:[%s2817_s29 + $0xe8] sm:$0xff]  ;;  %v405_v10 = vld [vmem:[%s2811_s24 + $0xf0] sm:$0xff]  ;;  %v406_v12 = vld [vmem:[%s2811_s24 + $0xf8] sm:$0xff] }
  0x25   : > { %2567 = vmatprep.mubr.msk.f32.mxu1 %vm767_vm0, %v385_v34  ;;  %2515 = vmatprep.mubr.msk.f32.mxu0 %vm445_vm1, %v419_v35  ;;  %v439_v11 = vld [vmem:[%s2817_s29 + $0xf0] sm:$0xff]  ;;  %v440_v13 = vld [vmem:[%s2817_s29 + $0xf8] sm:$0xff]  ;;  %v1089_v14 = vld [vmem:[%s2964_s26] sm:$0xff] }
  0x26   : > { %v1478_v15 = vld [vmem:[%s2970_s10] sm:$0xff]  ;;  %v1090_v16 = vld [vmem:[%s2964_s26 + $0x8] sm:$0xff]  ;;  %v1091_v18 = vld [vmem:[%s2964_s26 + $0x10] sm:$0xff] }
  0x27   : > { %v1479_v17 = vld [vmem:[%s2970_s10 + $0x8] sm:$0xff]  ;;  %v1480_v19 = vld [vmem:[%s2970_s10 + $0x10] sm:$0xff]  ;;  %v1092_v20 = vld [vmem:[%s2964_s26 + $0x18] sm:$0xff] }
  0x28   : > { %2568 = vmatmul.mubr.msk.f32.gmra.mxu1 %vm767_vm0, %v386_v36  ;;  %2516 = vmatmul.mubr.msk.f32.gmra.mxu0 %vm445_vm1, %v420_v37  ;;  %v1481_v21 = vld [vmem:[%s2970_s10 + $0x18] sm:$0xff]  ;;  %v1093_v22 = vld [vmem:[%s2964_s26 + $0x20] sm:$0xff]  ;;  %v1094_v24 = vld [vmem:[%s2964_s26 + $0x28] sm:$0xff] }
  0x29   : > { %2570 = vmatprep.mubr.msk.f32.mxu1 %vm767_vm0, %v387_v38  ;;  %2518 = vmatprep.mubr.msk.f32.mxu0 %vm445_vm1, %v421_v39  ;;  %v1482_v23 = vld [vmem:[%s2970_s10 + $0x20] sm:$0xff]  ;;  %v1483_v25 = vld [vmem:[%s2970_s10 + $0x28] sm:$0xff]  ;;  %v1095_v26 = vld [vmem:[%s2964_s26 + $0x30] sm:$0xff] }
  0x2a   : > { %v1484_v27 = vld [vmem:[%s2970_s10 + $0x30] sm:$0xff]  ;;  %v1096_v28 = vld [vmem:[%s2964_s26 + $0x38] sm:$0xff]  ;;  %v1097_v30 = vld [vmem:[%s2964_s26 + $0x40] sm:$0xff] }
  0x2b   : > { %v1485_v29 = vld [vmem:[%s2970_s10 + $0x38] sm:$0xff]  ;;  %v1486_v31 = vld [vmem:[%s2970_s10 + $0x40] sm:$0xff]  ;;  %v1098_v32 = vld [vmem:[%s2964_s26 + $0x48] sm:$0xff] }
  0x2c   : > { %2571 = vmatmul.mubr.msk.f32.gmra.mxu1 %vm767_vm0, %v388_v40  ;;  %2519 = vmatmul.mubr.msk.f32.gmra.mxu0 %vm445_vm1, %v422_v41  ;;  %v1487_v33 = vld [vmem:[%s2970_s10 + $0x48] sm:$0xff]  ;;  %v1099_v34 = vld [vmem:[%s2964_s26 + $0x50] sm:$0xff]  ;;  %v1100_v36 = vld [vmem:[%s2964_s26 + $0x58] sm:$0xff] }
  0x2d   : > { %2573 = vmatprep.mubr.msk.f32.mxu1 %vm767_vm0, %v389_v42  ;;  %2521 = vmatprep.mubr.msk.f32.mxu0 %vm445_vm1, %v423_v43  ;;  %v1488_v35 = vld [vmem:[%s2970_s10 + $0x50] sm:$0xff]  ;;  %v1489_v37 = vld [vmem:[%s2970_s10 + $0x58] sm:$0xff]  ;;  %v1101_v38 = vld [vmem:[%s2964_s26 + $0x60] sm:$0xff] }
  0x2e   : > { %v1490_v39 = vld [vmem:[%s2970_s10 + $0x60] sm:$0xff]  ;;  %v1102_v40 = vld [vmem:[%s2964_s26 + $0x68] sm:$0xff]  ;;  %v1103_v42 = vld [vmem:[%s2964_s26 + $0x70] sm:$0xff] }
  0x2f   : > { %v1491_v41 = vld [vmem:[%s2970_s10 + $0x68] sm:$0xff]  ;;  %v1492_v43 = vld [vmem:[%s2970_s10 + $0x70] sm:$0xff] }
  0x30   : > { %2574 = vmatmul.mubr.msk.f32.gmra.mxu1 %vm767_vm0, %v390_v44  ;;  %2522 = vmatmul.mubr.msk.f32.gmra.mxu0 %vm445_vm1, %v424_v45  ;;  %v1104_v44 = vld [vmem:[%s2964_s26 + $0x78] sm:$0xff] }
  0x31   : > { %2576 = vmatprep.mubr.msk.f32.mxu1 %vm767_vm0, %v391_v46  ;;  %2524 = vmatprep.mubr.msk.f32.mxu0 %vm445_vm1, %v425_v47  ;;  %v1493_v45 = vld [vmem:[%s2970_s10 + $0x78] sm:$0xff]  ;;  %v1105_v46 = vld [vmem:[%s2964_s26 + $0x80] sm:$0xff] }
  0x32   : > { %v1494_v47 = vld [vmem:[%s2970_s10 + $0x80] sm:$0xff] }
  0x34   : > { %2577 = vmatmul.mubr.msk.f32.gmra.mxu1 %vm767_vm0, %v392_v48  ;;  %2525 = vmatmul.mubr.msk.f32.gmra.mxu0 %vm445_vm1, %v426_v49  ;;  %v1106_v48 = vld [vmem:[%s2964_s26 + $0x88] sm:$0xff] }
  0x35   : > { %2579 = vmatprep.mubr.msk.f32.mxu1 %vm767_vm0, %v393_v50  ;;  %2527 = vmatprep.mubr.msk.f32.mxu0 %vm445_vm1, %v427_v51  ;;  %v1495_v49 = vld [vmem:[%s2970_s10 + $0x88] sm:$0xff]  ;;  %v1107_v50 = vld [vmem:[%s2964_s26 + $0x90] sm:$0xff] }
  0x36   : > { %v1496_v51 = vld [vmem:[%s2970_s10 + $0x90] sm:$0xff] }
  0x38   : > { %2580 = vmatmul.mubr.msk.f32.gmra.mxu1 %vm767_vm0, %v394_v52  ;;  %2528 = vmatmul.mubr.msk.f32.gmra.mxu0 %vm445_vm1, %v428_v53  ;;  %v1108_v52 = vld [vmem:[%s2964_s26 + $0x98] sm:$0xff] }
  0x39   : > { %2582 = vmatprep.mubr.msk.f32.mxu1 %vm767_vm0, %v395_v54  ;;  %2530 = vmatprep.mubr.msk.f32.mxu0 %vm445_vm1, %v429_v55  ;;  %v1497_v53 = vld [vmem:[%s2970_s10 + $0x98] sm:$0xff]  ;;  %v1109_v54 = vld [vmem:[%s2964_s26 + $0xa0] sm:$0xff] }
  0x3a   : > { %v1498_v55 = vld [vmem:[%s2970_s10 + $0xa0] sm:$0xff] }
  0x3c   : > { %2583 = vmatmul.mubr.msk.f32.gmra.mxu1 %vm767_vm0, %v396_v56  ;;  %2531 = vmatmul.mubr.msk.f32.gmra.mxu0 %vm445_vm1, %v430_v57  ;;  %v1110_v56 = vld [vmem:[%s2964_s26 + $0xa8] sm:$0xff] }
  0x3d   : > { %2585 = vmatprep.mubr.msk.f32.mxu1 %vm767_vm0, %v397_v58  ;;  %2533 = vmatprep.mubr.msk.f32.mxu0 %vm445_vm1, %v431_v59  ;;  %v1499_v57 = vld [vmem:[%s2970_s10 + $0xa8] sm:$0xff]  ;;  %v1111_v58 = vld [vmem:[%s2964_s26 + $0xb0] sm:$0xff] }
  0x3e   : > { %v1500_v59 = vld [vmem:[%s2970_s10 + $0xb0] sm:$0xff] }
  0x40   : > { %2586 = vmatmul.mubr.msk.f32.gmra.mxu1 %vm767_vm0, %v398_v60  ;;  %2534 = vmatmul.mubr.msk.f32.gmra.mxu0 %vm445_vm1, %v432_v61  ;;  %v1112_v60 = vld [vmem:[%s2964_s26 + $0xb8] sm:$0xff] }
  0x41   : > { %2588 = vmatprep.mubr.msk.f32.mxu1 %vm767_vm0, %v399_v62  ;;  %2536 = vmatprep.mubr.msk.f32.mxu0 %vm445_vm1, %v433_v63  ;;  %v1501_v61 = vld [vmem:[%s2970_s10 + $0xb8] sm:$0xff]  ;;  %v1113_v62 = vld [vmem:[%s2964_s26 + $0xc0] sm:$0xff] }
  0x42   : > { %v1502_v63 = vld [vmem:[%s2970_s10 + $0xc0] sm:$0xff] }
  0x44   : > { %2589 = vmatmul.mubr.msk.f32.gmra.mxu1 %vm767_vm0, %v400_v0  ;;  %2537 = vmatmul.mubr.msk.f32.gmra.mxu0 %vm445_vm1, %v434_v1  ;;  %v1114_v0 = vld [vmem:[%s2964_s26 + $0xc8] sm:$0xff] }
  0x45   : > { %2591 = vmatprep.mubr.msk.f32.mxu1 %vm767_vm0, %v401_v2  ;;  %2539 = vmatprep.mubr.msk.f32.mxu0 %vm445_vm1, %v435_v3  ;;  %v1503_v1 = vld [vmem:[%s2970_s10 + $0xc8] sm:$0xff]  ;;  %v1115_v2 = vld [vmem:[%s2964_s26 + $0xd0] sm:$0xff] }
  0x46   : > { %v1504_v3 = vld [vmem:[%s2970_s10 + $0xd0] sm:$0xff] }
  0x48   : > { %2592 = vmatmul.mubr.msk.f32.gmra.mxu1 %vm767_vm0, %v402_v4  ;;  %2540 = vmatmul.mubr.msk.f32.gmra.mxu0 %vm445_vm1, %v436_v5  ;;  %v1116_v4 = vld [vmem:[%s2964_s26 + $0xd8] sm:$0xff] }
  0x49   : > { %2594 = vmatprep.mubr.msk.f32.mxu1 %vm767_vm0, %v403_v6  ;;  %2542 = vmatprep.mubr.msk.f32.mxu0 %vm445_vm1, %v437_v7  ;;  %v1505_v5 = vld [vmem:[%s2970_s10 + $0xd8] sm:$0xff]  ;;  %v1117_v6 = vld [vmem:[%s2964_s26 + $0xe0] sm:$0xff] }
  0x4a   : > { %v1506_v7 = vld [vmem:[%s2970_s10 + $0xe0] sm:$0xff] }
  0x4c   : > { %2595 = vmatmul.mubr.msk.f32.gmra.mxu1 %vm767_vm0, %v404_v8  ;;  %2543 = vmatmul.mubr.msk.f32.gmra.mxu0 %vm445_vm1, %v438_v9  ;;  %v1118_v8 = vld [vmem:[%s2964_s26 + $0xe8] sm:$0xff] }
  0x4d   : > { %2597 = vmatprep.mubr.msk.f32.mxu1 %vm767_vm0, %v405_v10  ;;  %2545 = vmatprep.mubr.msk.f32.mxu0 %vm445_vm1, %v439_v11  ;;  %v1507_v9 = vld [vmem:[%s2970_s10 + $0xe8] sm:$0xff]  ;;  %v1119_v10 = vld [vmem:[%s2964_s26 + $0xf0] sm:$0xff] }
  0x4e   : > { %v1508_v11 = vld [vmem:[%s2970_s10 + $0xf0] sm:$0xff] }
  0x50   : > { %2598 = vmatmul.mubr.msk.f32.gmra.mxu1 %vm767_vm0, %v406_v12  ;;  %2546 = vmatmul.mubr.msk.f32.gmra.mxu0 %vm445_vm1, %v440_v13  ;;  %v1120_v12 = vld [vmem:[%s2964_s26 + $0xf8] sm:$0xff] }
  0x51   : > { %2608 = vmatprep.mubr.msk.f32.mxu1 %vm445_vm1, %v1089_v14  ;;  %2664 = vmatprep.mubr.msk.f32.mxu0 %vm445_vm1, %v1478_v15  ;;  %v1509_v13 = vld [vmem:[%s2970_s10 + $0xf8] sm:$0xff] }
  0x54   : > { %2609 = vmatmul.mubr.msk.f32.vlgmr.msra.gmra.mxu1 %vm445_vm1, %v1090_v16  ;;  %2665 = vmatmul.mubr.msk.f32.vlgmr.msra.gmra.mxu0 %vm445_vm1, %v1479_v17 }
  0x55   : > { %2611 = vmatprep.mubr.msk.f32.mxu1 %vm445_vm1, %v1091_v18  ;;  %2667 = vmatprep.mubr.msk.f32.mxu0 %vm445_vm1, %v1480_v19 }
  0x58   : > { %2612 = vmatmul.mubr.msk.f32.gmra.mxu1 %vm445_vm1, %v1092_v20  ;;  %2668 = vmatmul.mubr.msk.f32.gmra.mxu0 %vm445_vm1, %v1481_v21 }
  0x59   : > { %2614 = vmatprep.mubr.msk.f32.mxu1 %vm445_vm1, %v1093_v22  ;;  %2670 = vmatprep.mubr.msk.f32.mxu0 %vm445_vm1, %v1482_v23 }
  0x5c   : > { %2615 = vmatmul.mubr.msk.f32.gmra.mxu1 %vm445_vm1, %v1094_v24  ;;  %2671 = vmatmul.mubr.msk.f32.gmra.mxu0 %vm445_vm1, %v1483_v25 }
  0x5d   : > { %2617 = vmatprep.mubr.msk.f32.mxu1 %vm445_vm1, %v1095_v26  ;;  %2673 = vmatprep.mubr.msk.f32.mxu0 %vm445_vm1, %v1484_v27 }
  0x60   : > { %2618 = vmatmul.mubr.msk.f32.gmra.mxu1 %vm445_vm1, %v1096_v28  ;;  %2674 = vmatmul.mubr.msk.f32.gmra.mxu0 %vm445_vm1, %v1485_v29 }
  0x61   : > { %2620 = vmatprep.mubr.msk.f32.mxu1 %vm445_vm1, %v1097_v30  ;;  %2676 = vmatprep.mubr.msk.f32.mxu0 %vm445_vm1, %v1486_v31 }
  0x64   : > { %2621 = vmatmul.mubr.msk.f32.gmra.mxu1 %vm445_vm1, %v1098_v32  ;;  %2677 = vmatmul.mubr.msk.f32.gmra.mxu0 %vm445_vm1, %v1487_v33 }
  0x65   : > { %2623 = vmatprep.mubr.msk.f32.mxu1 %vm445_vm1, %v1099_v34  ;;  %2679 = vmatprep.mubr.msk.f32.mxu0 %vm445_vm1, %v1488_v35 }
  0x68   : > { %2624 = vmatmul.mubr.msk.f32.gmra.mxu1 %vm445_vm1, %v1100_v36  ;;  %2680 = vmatmul.mubr.msk.f32.gmra.mxu0 %vm445_vm1, %v1489_v37 }
  0x69   : > { %2626 = vmatprep.mubr.msk.f32.mxu1 %vm445_vm1, %v1101_v38  ;;  %2682 = vmatprep.mubr.msk.f32.mxu0 %vm445_vm1, %v1490_v39 }
  0x6c   : > { %2627 = vmatmul.mubr.msk.f32.gmra.mxu1 %vm445_vm1, %v1102_v40  ;;  %2683 = vmatmul.mubr.msk.f32.gmra.mxu0 %vm445_vm1, %v1491_v41 }
  0x6d   : > { %2629 = vmatprep.mubr.msk.f32.mxu1 %vm445_vm1, %v1103_v42  ;;  %2685 = vmatprep.mubr.msk.f32.mxu0 %vm445_vm1, %v1492_v43 }
  0x70   : > { %2630 = vmatmul.mubr.msk.f32.gmra.mxu1 %vm445_vm1, %v1104_v44  ;;  %2686 = vmatmul.mubr.msk.f32.gmra.mxu0 %vm445_vm1, %v1493_v45 }
  0x71   : > { %2632 = vmatprep.mubr.msk.f32.mxu1 %vm445_vm1, %v1105_v46  ;;  %2688 = vmatprep.mubr.msk.f32.mxu0 %vm445_vm1, %v1494_v47 }
  0x74   : > { %2633 = vmatmul.mubr.msk.f32.gmra.mxu1 %vm445_vm1, %v1106_v48  ;;  %2689 = vmatmul.mubr.msk.f32.gmra.mxu0 %vm445_vm1, %v1495_v49 }
  0x75   : > { %2635 = vmatprep.mubr.msk.f32.mxu1 %vm445_vm1, %v1107_v50  ;;  %2691 = vmatprep.mubr.msk.f32.mxu0 %vm445_vm1, %v1496_v51 }
  0x78   : > { %2636 = vmatmul.mubr.msk.f32.gmra.mxu1 %vm445_vm1, %v1108_v52  ;;  %2692 = vmatmul.mubr.msk.f32.gmra.mxu0 %vm445_vm1, %v1497_v53 }
  0x79   : > { %2638 = vmatprep.mubr.msk.f32.mxu1 %vm445_vm1, %v1109_v54  ;;  %2694 = vmatprep.mubr.msk.f32.mxu0 %vm445_vm1, %v1498_v55 }
  0x7c   : > { %2639 = vmatmul.mubr.msk.f32.gmra.mxu1 %vm445_vm1, %v1110_v56  ;;  %2695 = vmatmul.mubr.msk.f32.gmra.mxu0 %vm445_vm1, %v1499_v57 }
  0x7d   : > { %2641 = vmatprep.mubr.msk.f32.mxu1 %vm445_vm1, %v1111_v58  ;;  %2697 = vmatprep.mubr.msk.f32.mxu0 %vm445_vm1, %v1500_v59 }
  0x80   : > { %2642 = vmatmul.mubr.msk.f32.gmra.mxu1 %vm445_vm1, %v1112_v60  ;;  %2698 = vmatmul.mubr.msk.f32.gmra.mxu0 %vm445_vm1, %v1501_v61 }
  0x81   : > { %2644 = vmatprep.mubr.msk.f32.mxu1 %vm445_vm1, %v1113_v62  ;;  %2700 = vmatprep.mubr.msk.f32.mxu0 %vm445_vm1, %v1502_v63 }
  0x84   : > { %2645 = vmatmul.mubr.msk.f32.gmra.mxu1 %vm445_vm1, %v1114_v0  ;;  %2701 = vmatmul.mubr.msk.f32.gmra.mxu0 %vm445_vm1, %v1503_v1 }
  0x85   : > { %2647 = vmatprep.mubr.msk.f32.mxu1 %vm445_vm1, %v1115_v2  ;;  %2703 = vmatprep.mubr.msk.f32.mxu0 %vm445_vm1, %v1504_v3 }
  0x88   : > { %2648 = vmatmul.mubr.msk.f32.gmra.mxu1 %vm445_vm1, %v1116_v4  ;;  %2704 = vmatmul.mubr.msk.f32.gmra.mxu0 %vm445_vm1, %v1505_v5 }
  0x89   : > { %2650 = vmatprep.mubr.msk.f32.mxu1 %vm445_vm1, %v1117_v6  ;;  %2706 = vmatprep.mubr.msk.f32.mxu0 %vm445_vm1, %v1506_v7 }
  0x8c   : > { %2651 = vmatmul.mubr.msk.f32.gmra.mxu1 %vm445_vm1, %v1118_v8  ;;  %2707 = vmatmul.mubr.msk.f32.gmra.mxu0 %vm445_vm1, %v1507_v9 }
  0x8d   : > { %2653 = vmatprep.mubr.msk.f32.mxu1 %vm445_vm1, %v1119_v10  ;;  %2709 = vmatprep.mubr.msk.f32.mxu0 %vm445_vm1, %v1508_v11 }
  0x90   : > { %2654 = vmatmul.mubr.msk.f32.gmra.mxu1 %vm445_vm1, %v1120_v12  ;;  %2710 = vmatmul.mubr.msk.f32.gmra.mxu0 %vm445_vm1, %v1509_v13 }
  0xd4   : > { %v3108_v14 = vpop.f32.mrf.mxu1  ;;  %v3110_v15 = vpop.f32.mrf.mxu0 }
  0xd6   : > { %v3112_v16 = vpop.f32.mrf.mxu1  ;;  %v3114_v17 = vpop.f32.mrf.mxu0 }
  0xd8   : > { %v3116_v18 = vpop.f32.mrf.mxu1  ;;  %v3118_v19 = vpop.f32.mrf.mxu0 }
  0xda   : > { %v3120_v20 = vpop.f32.mrf.mxu1  ;;  %v3122_v21 = vpop.f32.mrf.mxu0 }
  0xdc   : > { %v3124_v22 = vpop.f32.mrf.mxu1  ;;  %v3126_v23 = vpop.f32.mrf.mxu0 }
  0xde   : > { %v3128_v24 = vpop.f32.mrf.mxu1  ;;  %v3130_v25 = vpop.f32.mrf.mxu0 }
  0xe0   : > { %v3132_v26 = vpop.f32.mrf.mxu1  ;;  %v3134_v27 = vpop.f32.mrf.mxu0 }
  0xe2   : > { %v3136_v28 = vpop.f32.mrf.mxu1  ;;  %v3138_v29 = vpop.f32.mrf.mxu0 }
  0xe4   : > { %v3140_v30 = vpop.f32.mrf.mxu1  ;;  %v3142_v31 = vpop.f32.mrf.mxu0 }
  0xe6   : > { %v3144_v32 = vpop.f32.mrf.mxu1  ;;  %v3146_v33 = vpop.f32.mrf.mxu0 }
  0xe8   : > { %v3148_v34 = vpop.f32.mrf.mxu1  ;;  %v3150_v35 = vpop.f32.mrf.mxu0 }
  0xea   : > { %v3152_v36 = vpop.f32.mrf.mxu1  ;;  %v3154_v37 = vpop.f32.mrf.mxu0 }
  0xec   : > { %v3156_v38 = vpop.f32.mrf.mxu1  ;;  %v3158_v39 = vpop.f32.mrf.mxu0 }
  0xee   : > { %v3160_v40 = vpop.f32.mrf.mxu1  ;;  %v3162_v41 = vpop.f32.mrf.mxu0 }
  0xf0   : > { %v3164_v42 = vpop.f32.mrf.mxu1  ;;  %v3166_v43 = vpop.f32.mrf.mxu0 }
  0xf2   : > { %v3168_v44 = vpop.f32.mrf.mxu1  ;;  %v3170_v45 = vpop.f32.mrf.mxu0 }
  0xf4   : > { %v3172_v46 = vpop.f32.mrf.mxu1  ;;  %v3174_v47 = vpop.f32.mrf.mxu0 }
  0xf6   : > { %v3176_v48 = vpop.f32.mrf.mxu1  ;;  %v3178_v49 = vpop.f32.mrf.mxu0 }
  0xf8   : > { %v3180_v50 = vpop.f32.mrf.mxu1  ;;  %v3182_v51 = vpop.f32.mrf.mxu0 }
  0xfa   : > { %v3184_v52 = vpop.f32.mrf.mxu1  ;;  %v3186_v53 = vpop.f32.mrf.mxu0 }
  0xfc   : > { %v3188_v54 = vpop.f32.mrf.mxu1  ;;  %v3190_v55 = vpop.f32.mrf.mxu0 }
  0xfe   : > { %v3192_v56 = vpop.f32.mrf.mxu1  ;;  %v3194_v57 = vpop.f32.mrf.mxu0 }
 0x100   : > { %v3196_v58 = vpop.f32.mrf.mxu1  ;;  %v3198_v59 = vpop.f32.mrf.mxu0 }
 0x102   : > { %v3200_v60 = vpop.f32.mrf.mxu1  ;;  %v3202_v61 = vpop.f32.mrf.mxu0 }
 0x104   : > { %v3204_v62 = vpop.f32.mrf.mxu1  ;;  %v3206_v63 = vpop.f32.mrf.mxu0 }
 0x106   : > { %v3208_v0 = vpop.f32.mrf.mxu1  ;;  %v3210_v1 = vpop.f32.mrf.mxu0 }
 0x107   : > { %3492 = vst [vmem:[#allocation2_spill] sm:$0xff] %v3208_v0  ;;  %3493 = vst [vmem:[#allocation3_spill] sm:$0xff] %v3210_v1 }
 0x108   : > { %v3212_v2 = vpop.f32.mrf.mxu1  ;;  %v3214_v3 = vpop.f32.mrf.mxu0 }
 0x109   : > { %3494 = vst [vmem:[#allocation4_spill] sm:$0xff] %v3212_v2  ;;  %3495 = vst [vmem:[#allocation5_spill] sm:$0xff] %v3214_v3 }
 0x10a   : > { %v3216_v4 = vpop.f32.mrf.mxu1  ;;  %v3218_v5 = vpop.f32.mrf.mxu0 }
 0x10b   : > { %3496 = vst [vmem:[#allocation6_spill] sm:$0xff] %v3216_v4  ;;  %3497 = vst [vmem:[#allocation7_spill] sm:$0xff] %v3218_v5  ;;  %v936_v4 = vadd.f32 %v3108_v14, %v3110_v15  ;;  %v3250_v14 = vld [vmem:[%s3489_s6] ss:$0 sm:$0xff] }
 0x10c   : > { %v3220_v6 = vpop.f32.mrf.mxu1  ;;  %v3222_v7 = vpop.f32.mrf.mxu0 }
 0x10d   : > { %3498 = vst [vmem:[#allocation8_spill] sm:$0xff] %v3220_v6  ;;  %3499 = vst [vmem:[#allocation9_spill] sm:$0xff] %v3222_v7  ;;  %v931_v6 = vadd.f32 %v3112_v16, %v3114_v17  ;;  %v941_v17 = vadd.f32 %v3120_v20, %v3122_v21 }
 0x10e   : > { %v3224_v8 = vpop.f32.mrf.mxu1  ;;  %v3226_v9 = vpop.f32.mrf.mxu0 }
 0x10f   : > { %3500 = vst [vmem:[#allocation10_spill] sm:$0xff] %v3224_v8  ;;  %3501 = vst [vmem:[#allocation11_spill] sm:$0xff] %v3226_v9  ;;  %v3243_v8 = vld [vmem:[%s3488_s5] ss:$0 sm:$0xff] }
 0x110   : > { %v3228_v10 = vpop.f32.mrf.mxu1  ;;  %v3230_v11 = vpop.f32.mrf.mxu0 }
 0x111   : > { %3502 = vst [vmem:[#allocation12_spill] sm:$0xff] %v3228_v10  ;;  %3503 = vst [vmem:[#allocation13_spill] sm:$0xff] %v3230_v11 }
 0x112   : > { %v3232_v12 = vpop.f32.mrf.mxu1  ;;  %v3234_v13 = vpop.f32.mrf.mxu0 }
 0x113   : > { %3504 = vst [vmem:[#allocation14_spill] sm:$0xff] %v3232_v12  ;;  %3505 = vst [vmem:[#allocation15_spill] sm:$0xff] %v3234_v13  ;;  %v946_v12 = vadd.f32 %v3116_v18, %v3118_v19 }
 0x114   : > { %v2610_v5 = vpop.f32.mrf.mxu1  ;;  %v2666_v2 = vpop.f32.mrf.mxu0 }
 0x115   : > { %v1447_v7 = vadd.f32 %v2610_v5, %v936_v4 }
 0x116   : > { %v1287_v10 = vpop.f32.mrf.mxu1  ;;  %v1676_v11 = vpop.f32.mrf.mxu0 }
 0x117   : > { %v1836_v13 = vadd.f32 %v2666_v2, %v1447_v7  ;;  %v1446_v9 = vadd.f32 %v1287_v10, %v931_v6  ;;  %v956_v7 = vadd.f32 %v3124_v22, %v3126_v23 }
 0x118   : > { %v2613_v15 = vpop.f32.mrf.mxu1  ;;  %v2669_v16 = vpop.f32.mrf.mxu0 }
 0x119   : > { %v1875_v4 = vmul.f32 %v3243_v8, %v1836_v13  ;;  %v1835_v5 = vadd.f32 %v1676_v11, %v1446_v9  ;;  %v1449_v3 = vadd.f32 %v2613_v15, %v946_v12  ;;  %v966_v13 = vadd.f32 %v3132_v26, %v3134_v27 }
 0x11a   : > { %v1297_v0 = vpop.f32.mrf.mxu1  ;;  %v1686_v1 = vpop.f32.mrf.mxu0 }
 0x11b   : > { %v1914_v18 = vadd.f32 %v3250_v14, %v1875_v4  ;;  %v1874_v19 = vmul.f32 %v3243_v8, %v1835_v5  ;;  %v1838_v2 = vadd.f32 %v2669_v16, %v1449_v3  ;;  %v1448_v6 = vadd.f32 %v1297_v0, %v941_v17 }
 0x11c   : > { %v2616_v20 = vpop.f32.mrf.mxu1  ;;  %v2672_v21 = vpop.f32.mrf.mxu0  ;;  %v951_v0 = vadd.f32 %v3128_v24, %v3130_v25  ;;  %v961_v4 = vadd.f32 %v3136_v28, %v3138_v29 }
 0x11d   : > { %v1946_v9 = vmax.f32 %v1914_v18, 0.0  ;;  %v1913_v10 = vadd.f32 %v3250_v14, %v1874_v19  ;;  %v1877_v11 = vmul.f32 %v3243_v8, %v1838_v2  ;;  %v1837_v12 = vadd.f32 %v1686_v1, %v1448_v6 }
 0x11e   : > { %v1451_v3 = vadd.f32 %v2616_v20, %v956_v7  ;;  %v1307_v22 = vpop.f32.mrf.mxu1  ;;  %v1696_v23 = vpop.f32.mrf.mxu0  ;;  %v976_v2 = vadd.f32 %v3140_v30, %v3142_v31 }
 0x11f   : > { %1978 = vst.msk [vmem:[%s3263_s15 + $0x8] sm:$0xff] %vm767_vm0, %v1946_v9  ;;  %v1945_v15 = vmax.f32 %v1913_v10, 0.0  ;;  %v1916_v16 = vadd.f32 %v3250_v14, %v1877_v11  ;;  %v1876_v17 = vmul.f32 %v3243_v8, %v1837_v12  ;;  %v1450_v5 = vadd.f32 %v1307_v22, %v951_v0 }
 0x120   : > { %v1840_v1 = vadd.f32 %v2672_v21, %v1451_v3  ;;  %v2619_v24 = vpop.f32.mrf.mxu1  ;;  %v2675_v25 = vpop.f32.mrf.mxu0  ;;  %v2010_v20 = vsel %vm767_vm0, %v1946_v9, 0.0  ;;  %v971_v12 = vadd.f32 %v3144_v32, %v3146_v33 }
 0x121   : > { %1977 = vst.msk [vmem:[%s3263_s15] sm:$0xff] %vm767_vm0, %v1945_v15  ;;  %v2009_v18 = vsel %vm767_vm0, %v1945_v15, 0.0  ;;  %v1948_v26 = vmax.f32 %v1916_v16, 0.0  ;;  %v1915_v27 = vadd.f32 %v3250_v14, %v1876_v17  ;;  %v1453_v19 = vadd.f32 %v2619_v24, %v966_v13 }
 0x122   : > { %v1879_v6 = vmul.f32 %v3243_v8, %v1840_v1  ;;  %v1839_v28 = vadd.f32 %v1696_v23, %v1450_v5  ;;  %v1317_v29 = vpop.f32.mrf.mxu1  ;;  %v1706_v7 = vpop.f32.mrf.mxu0  ;;  %v2011_v0 = vadd.f32 %v2010_v20, %v2009_v18 }
 0x123   : > { %1980 = vst.msk [vmem:[%s3263_s15 + $0x18] sm:$0xff] %vm767_vm0, %v1948_v26  ;;  %v1947_v21 = vmax.f32 %v1915_v27, 0.0  ;;  %v1842_v10 = vadd.f32 %v2675_v25, %v1453_v19  ;;  %v1452_v11 = vadd.f32 %v1317_v29, %v961_v4  ;;  %v2014_v16 = vsel %vm767_vm0, %v1948_v26, 0.0 }
 0x124   : > { %v1918_v3 = vadd.f32 %v3250_v14, %v1879_v6  ;;  %v1878_v30 = vmul.f32 %v3243_v8, %v1839_v28  ;;  %v2622_v31 = vpop.f32.mrf.mxu1  ;;  %v2678_v22 = vpop.f32.mrf.mxu0  ;;  %v986_v27 = vadd.f32 %v3148_v34, %v3150_v35 }
 0x125   : > { %1979 = vst.msk [vmem:[%s3263_s15 + $0x10] sm:$0xff] %vm767_vm0, %v1947_v21  ;;  %v2012_v9 = vsel %vm767_vm0, %v1947_v21, 0.0  ;;  %v1881_v23 = vmul.f32 %v3243_v8, %v1842_v10  ;;  %v1841_v13 = vadd.f32 %v1706_v7, %v1452_v11  ;;  %v1455_v15 = vadd.f32 %v2622_v31, %v976_v2 }
 0x126   : > { %v2013_v17 = vadd.f32 %v2012_v9, %v2011_v0  ;;  %v1950_v32 = vmax.f32 %v1918_v3, 0.0  ;;  %v1917_v33 = vadd.f32 %v3250_v14, %v1878_v30  ;;  %v1327_v4 = vpop.f32.mrf.mxu1  ;;  %v1716_v1 = vpop.f32.mrf.mxu0  ;;  %v981_v21 = vadd.f32 %v3152_v36, %v3154_v37 }
 0x127   : > { %v1920_v5 = vadd.f32 %v3250_v14, %v1881_v23  ;;  %v1880_v24 = vmul.f32 %v3243_v8, %v1841_v13  ;;  %v1844_v25 = vadd.f32 %v2678_v22, %v1455_v15  ;;  %v1454_v18 = vadd.f32 %v1327_v4, %v971_v12 }
 0x128   : > { %1982 = vst.msk [vmem:[%s3263_s15 + $0x28] sm:$0xff] %vm767_vm0, %v1950_v32  ;;  %v1949_v19 = vmax.f32 %v1917_v33, 0.0  ;;  %v2015_v26 = vadd.f32 %v2014_v16, %v2013_v17  ;;  %v2625_v2 = vpop.f32.mrf.mxu1  ;;  %v2681_v6 = vpop.f32.mrf.mxu0  ;;  %v996_v10 = vadd.f32 %v3156_v38, %v3158_v39  ;;  %v991_v0 = vadd.f32 %v3160_v40, %v3162_v41 }
 0x129   : > { %v1952_v28 = vmax.f32 %v1920_v5, 0.0  ;;  %v1919_v29 = vadd.f32 %v3250_v14, %v1880_v24  ;;  %v1883_v7 = vmul.f32 %v3243_v8, %v1844_v25  ;;  %v1843_v20 = vadd.f32 %v1716_v1, %v1454_v18 }
 0x12a   : > { %1981 = vst.msk [vmem:[%s3263_s15 + $0x20] sm:$0xff] %vm767_vm0, %v1949_v19  ;;  %v2016_v34 = vsel %vm767_vm0, %v1949_v19, 0.0  ;;  %v1457_v35 = vadd.f32 %v2625_v2, %v986_v27  ;;  %v1337_v11 = vpop.f32.mrf.mxu1  ;;  %v1726_v12 = vpop.f32.mrf.mxu0  ;;  %v2018_v37 = vsel %vm767_vm0, %v1950_v32, 0.0  ;;  %v1006_v15 = vadd.f32 %v3164_v42, %v3166_v43 }
 0x12b   : > { %v2017_v3 = vadd.f32 %v2016_v34, %v2015_v26  ;;  %1984 = vst.msk [vmem:[%s3263_s15 + $0x38] sm:$0xff] %vm767_vm0, %v1952_v28  ;;  %v1951_v30 = vmax.f32 %v1919_v29, 0.0  ;;  %v1922_v36 = vadd.f32 %v3250_v14, %v1883_v7  ;;  %v1882_v38 = vmul.f32 %v3243_v8, %v1843_v20 }
 0x12c   : > { %v1846_v39 = vadd.f32 %v2681_v6, %v1457_v35  ;;  %v1456_v31 = vadd.f32 %v1337_v11, %v981_v21  ;;  %v2628_v22 = vpop.f32.mrf.mxu1  ;;  %v2684_v9 = vpop.f32.mrf.mxu0  ;;  %v1001_v1 = vadd.f32 %v3168_v44, %v3170_v45  ;;  %v2022_v18 = vsel %vm767_vm0, %v1952_v28, 0.0 }
 0x12d   : > { %1983 = vst.msk [vmem:[%s3263_s15 + $0x30] sm:$0xff] %vm767_vm0, %v1951_v30  ;;  %v2019_v23 = vadd.f32 %v2018_v37, %v2017_v3  ;;  %v2020_v40 = vsel %vm767_vm0, %v1951_v30, 0.0  ;;  %v1954_v41 = vmax.f32 %v1922_v36, 0.0  ;;  %v1459_v13 = vadd.f32 %v2628_v22, %v996_v10 }
 0x12e   : > { %v1921_v16 = vadd.f32 %v3250_v14, %v1882_v38  ;;  %v1885_v17 = vmul.f32 %v3243_v8, %v1846_v39  ;;  %v1845_v32 = vadd.f32 %v1726_v12, %v1456_v31  ;;  %v1347_v33 = vpop.f32.mrf.mxu1  ;;  %v1736_v4 = vpop.f32.mrf.mxu0  ;;  %v1016_v29 = vadd.f32 %v3172_v46, %v3174_v47 }
 0x12f   : > { %v2021_v5 = vadd.f32 %v2020_v40, %v2019_v23  ;;  %1986 = vst.msk [vmem:[%s3263_s15 + $0x48] sm:$0xff] %vm767_vm0, %v1954_v41  ;;  %v1848_v24 = vadd.f32 %v2684_v9, %v1459_v13  ;;  %v1458_v25 = vadd.f32 %v1347_v33, %v991_v0  ;;  %v1011_v0 = vadd.f32 %v3176_v48, %v3178_v49 }
 0x130   : > { %v1953_v27 = vmax.f32 %v1921_v16, 0.0  ;;  %v1924_v42 = vadd.f32 %v3250_v14, %v1885_v17  ;;  %v1884_v43 = vmul.f32 %v3243_v8, %v1845_v32  ;;  %v2631_v19 = vpop.f32.mrf.mxu1  ;;  %v2687_v26 = vpop.f32.mrf.mxu0  ;;  %v2026_v46 = vsel %vm767_vm0, %v1954_v41, 0.0 }
 0x131   : > { %v2023_v2 = vadd.f32 %v2022_v18, %v2021_v5  ;;  %v1887_v6 = vmul.f32 %v3243_v8, %v1848_v24  ;;  %v1847_v44 = vadd.f32 %v1736_v4, %v1458_v25  ;;  %v1461_v45 = vadd.f32 %v2631_v19, %v1006_v15 }
 0x132   : > { %1985 = vst.msk [vmem:[%s3263_s15 + $0x40] sm:$0xff] %vm767_vm0, %v1953_v27  ;;  %v2024_v28 = vsel %vm767_vm0, %v1953_v27, 0.0  ;;  %v1956_v7 = vmax.f32 %v1924_v42, 0.0  ;;  %v1923_v20 = vadd.f32 %v3250_v14, %v1884_v43  ;;  %v1357_v21 = vpop.f32.mrf.mxu1  ;;  %v1746_v10 = vpop.f32.mrf.mxu0  ;;  %v1026_v22 = vadd.f32 %v3180_v50, %v3182_v51 }
 0x133   : > { %v2025_v34 = vadd.f32 %v2024_v28, %v2023_v2  ;;  %v1926_v35 = vadd.f32 %v3250_v14, %v1887_v6  ;;  %v1886_v11 = vmul.f32 %v3243_v8, %v1847_v44  ;;  %v1850_v12 = vadd.f32 %v2687_v26, %v1461_v45 }
 0x134   : > { %1988 = vst.msk [vmem:[%s3263_s15 + $0x58] sm:$0xff] %vm767_vm0, %v1956_v7  ;;  %v1955_v47 = vmax.f32 %v1923_v20, 0.0  ;;  %v1460_v3 = vadd.f32 %v1357_v21, %v1001_v1  ;;  %v2634_v30 = vpop.f32.mrf.mxu1  ;;  %v2690_v36 = vpop.f32.mrf.mxu0  ;;  %v1021_v41 = vadd.f32 %v3184_v52, %v3186_v53  ;;  %v2030_v50 = vsel %vm767_vm0, %v1956_v7, 0.0 }
 0x135   : > { %v2027_v37 = vadd.f32 %v2026_v46, %v2025_v34  ;;  %v1958_v38 = vmax.f32 %v1926_v35, 0.0  ;;  %v1925_v39 = vadd.f32 %v3250_v14, %v1886_v11  ;;  %v1889_v31 = vmul.f32 %v3243_v8, %v1850_v12 }
 0x136   : > { %1987 = vst.msk [vmem:[%s3263_s15 + $0x50] sm:$0xff] %vm767_vm0, %v1955_v47  ;;  %v2028_v48 = vsel %vm767_vm0, %v1955_v47, 0.0  ;;  %v1849_v49 = vadd.f32 %v1746_v10, %v1460_v3  ;;  %v1463_v9 = vadd.f32 %v2634_v30, %v1016_v29  ;;  %v1367_v23 = vpop.f32.mrf.mxu1  ;;  %v1756_v40 = vpop.f32.mrf.mxu0  ;;  %v1036_v24 = vadd.f32 %v3188_v54, %v3190_v55 }
 0x137   : > { %v2029_v13 = vadd.f32 %v2028_v48, %v2027_v37  ;;  %1990 = vst.msk [vmem:[%s3263_s15 + $0x68] sm:$0xff] %vm767_vm0, %v1958_v38  ;;  %v1957_v15 = vmax.f32 %v1925_v39, 0.0  ;;  %v1928_v16 = vadd.f32 %v3250_v14, %v1889_v31  ;;  %v1462_v32 = vadd.f32 %v1367_v23, %v1011_v0 }
 0x138   : > { %v1888_v51 = vmul.f32 %v3243_v8, %v1849_v49  ;;  %v1852_v17 = vadd.f32 %v2690_v36, %v1463_v9  ;;  %v2637_v33 = vpop.f32.mrf.mxu1  ;;  %v2693_v4 = vpop.f32.mrf.mxu0  ;;  %v1031_v19 = vadd.f32 %v3192_v56, %v3194_v57  ;;  %v2034_v44 = vsel %vm767_vm0, %v1958_v38, 0.0 }
 0x139   : > { %1989 = vst.msk [vmem:[%s3263_s15 + $0x60] sm:$0xff] %vm767_vm0, %v1957_v15  ;;  %v2031_v1 = vadd.f32 %v2030_v50, %v2029_v13  ;;  %v2032_v52 = vsel %vm767_vm0, %v1957_v15, 0.0  ;;  %v1960_v53 = vmax.f32 %v1928_v16, 0.0  ;;  %v1465_v5 = vadd.f32 %v2637_v33, %v1026_v22  ;;  %v3507_v13 = vld [vmem:[#allocation2_spill] sm:$0xff] }
 0x13a   : > { %v1927_v25 = vadd.f32 %v3250_v14, %v1888_v51  ;;  %v1891_v18 = vmul.f32 %v3243_v8, %v1852_v17  ;;  %v1851_v27 = vadd.f32 %v1756_v40, %v1462_v32  ;;  %v1377_v42 = vpop.f32.mrf.mxu1  ;;  %v1766_v43 = vpop.f32.mrf.mxu0  ;;  %v1046_v21 = vadd.f32 %v3196_v58, %v3198_v59 }
 0x13b   : > { %v2033_v26 = vadd.f32 %v2032_v52, %v2031_v1  ;;  %1992 = vst.msk [vmem:[%s3263_s15 + $0x78] sm:$0xff] %vm767_vm0, %v1960_v53  ;;  %v1854_v2 = vadd.f32 %v2693_v4, %v1465_v5  ;;  %v1464_v6 = vadd.f32 %v1377_v42, %v1021_v41  ;;  %v1041_v30 = vadd.f32 %v3200_v60, %v3202_v61  ;;  %v3506_v41 = vld [vmem:[#allocation3_spill] sm:$0xff] }
 0x13c   : > { %v1959_v45 = vmax.f32 %v1927_v25, 0.0  ;;  %v1930_v54 = vadd.f32 %v3250_v14, %v1891_v18  ;;  %v1890_v55 = vmul.f32 %v3243_v8, %v1851_v27  ;;  %v2640_v29 = vpop.f32.mrf.mxu1  ;;  %v2696_v28 = vpop.f32.mrf.mxu0  ;;  %v2038_v58 = vsel %vm767_vm0, %v1960_v53, 0.0  ;;  %v3509_v25 = vld [vmem:[#allocation4_spill] sm:$0xff] }
 0x13d   : > { %v2035_v7 = vadd.f32 %v2034_v44, %v2033_v26  ;;  %v1893_v20 = vmul.f32 %v3243_v8, %v1854_v2  ;;  %v1853_v56 = vadd.f32 %v1766_v43, %v1464_v6  ;;  %v1467_v57 = vadd.f32 %v2640_v29, %v1036_v24  ;;  %v3508_v24 = vld [vmem:[#allocation5_spill] sm:$0xff]  ;;  %v3510_v2 = vld [vmem:[#allocation7_spill] sm:$0xff]  ;;  %v3511_v6 = vld [vmem:[#allocation6_spill] sm:$0xff] }
 0x13e   : > { %1991 = vst.msk [vmem:[%s3263_s15 + $0x70] sm:$0xff] %vm767_vm0, %v1959_v45  ;;  %v2036_v10 = vsel %vm767_vm0, %v1959_v45, 0.0  ;;  %v1962_v34 = vmax.f32 %v1930_v54, 0.0  ;;  %v1929_v35 = vadd.f32 %v3250_v14, %v1890_v55  ;;  %v1387_v11 = vpop.f32.mrf.mxu1  ;;  %v1776_v12 = vpop.f32.mrf.mxu0  ;;  %v1056_v49 = vadd.f32 %v3204_v62, %v3206_v63 }
 0x13f   : > { %v2037_v0 = vadd.f32 %v2036_v10, %v2035_v7  ;;  %v1932_v46 = vadd.f32 %v3250_v14, %v1893_v20  ;;  %v1892_v47 = vmul.f32 %v3243_v8, %v1853_v56  ;;  %v1856_v3 = vadd.f32 %v2696_v28, %v1467_v57 }
 0x140   : > { %1994 = vst.msk [vmem:[%s3263_s15 + $0x88] sm:$0xff] %vm767_vm0, %v1962_v34  ;;  %v1961_v59 = vmax.f32 %v1929_v35, 0.0  ;;  %v1466_v36 = vadd.f32 %v1387_v11, %v1031_v19  ;;  %v2643_v37 = vpop.f32.mrf.mxu1  ;;  %v2699_v38 = vpop.f32.mrf.mxu0  ;;  %v1051_v15 = vadd.f32 %v3507_v13, %v3506_v41  ;;  %v2042_v62 = vsel %vm767_vm0, %v1962_v34, 0.0  ;;  %v3512_v11 = vld [vmem:[#allocation9_spill] sm:$0xff] }
 0x141   : > { %v2039_v39 = vadd.f32 %v2038_v58, %v2037_v0  ;;  %v1964_v31 = vmax.f32 %v1932_v46, 0.0  ;;  %v1931_v22 = vadd.f32 %v3250_v14, %v1892_v47  ;;  %v1895_v48 = vmul.f32 %v3243_v8, %v1856_v3 }
 0x142   : > { %1993 = vst.msk [vmem:[%s3263_s15 + $0x80] sm:$0xff] %vm767_vm0, %v1961_v59  ;;  %v2040_v60 = vsel %vm767_vm0, %v1961_v59, 0.0  ;;  %v1855_v61 = vadd.f32 %v1776_v12, %v1466_v36  ;;  %v1469_v9 = vadd.f32 %v2643_v37, %v1046_v21  ;;  %v1397_v23 = vpop.f32.mrf.mxu1  ;;  %v1786_v40 = vpop.f32.mrf.mxu0  ;;  %v1066_v18 = vadd.f32 %v3509_v25, %v3508_v24  ;;  %v3513_v12 = vld [vmem:[#allocation8_spill] sm:$0xff] }
 0x143   : > { %v2041_v16 = vadd.f32 %v2040_v60, %v2039_v39  ;;  %1996 = vst.msk [vmem:[%s3263_s15 + $0x98] sm:$0xff] %vm767_vm0, %v1964_v31  ;;  %v1963_v50 = vmax.f32 %v1931_v22, 0.0  ;;  %v1934_v51 = vadd.f32 %v3250_v14, %v1895_v48  ;;  %v1468_v32 = vadd.f32 %v1397_v23, %v1041_v30  ;;  %v3514_v39 = vld [vmem:[#allocation11_spill] sm:$0xff] }
 0x144   : > { %v1894_v63 = vmul.f32 %v3243_v8, %v1855_v61  ;;  %v1858_v17 = vadd.f32 %v2699_v38, %v1469_v9  ;;  %v2646_v33 = vpop.f32.mrf.mxu1  ;;  %v2702_v4 = vpop.f32.mrf.mxu0  ;;  %v1061_v44 = vadd.f32 %v3511_v6, %v3510_v2  ;;  %v2046_v29 = vsel %vm767_vm0, %v1964_v31, 0.0  ;;  %v3515_v31 = vld [vmem:[#allocation10_spill] sm:$0xff] }
 0x145   : > { %1995 = vst.msk [vmem:[%s3263_s15 + $0x90] sm:$0xff] %vm767_vm0, %v1963_v50  ;;  %v2043_v1 = vadd.f32 %v2042_v62, %v2041_v16  ;;  %v2044_v52 = vsel %vm767_vm0, %v1963_v50, 0.0  ;;  %v1966_v53 = vmax.f32 %v1934_v51, 0.0  ;;  %v1471_v5 = vadd.f32 %v2646_v33, %v1056_v49  ;;  %v3517_v16 = vld [vmem:[#allocation12_spill] sm:$0xff]  ;;  %v3518_v33 = vld [vmem:[#allocation15_spill] sm:$0xff] }
 0x146   : > { %v1933_v27 = vadd.f32 %v3250_v14, %v1894_v63  ;;  %v1897_v42 = vmul.f32 %v3243_v8, %v1858_v17  ;;  %v1857_v43 = vadd.f32 %v1786_v40, %v1468_v32  ;;  %v1407_v19 = vpop.f32.mrf.mxu1  ;;  %v1796_v26 = vpop.f32.mrf.mxu0  ;;  %v1076_v0 = vadd.f32 %v3513_v12, %v3512_v11 }
 0x147   : > { %v2045_v45 = vadd.f32 %v2044_v52, %v2043_v1  ;;  %1998 = vst.msk [vmem:[%s3263_s15 + $0xa8] sm:$0xff] %vm767_vm0, %v1966_v53  ;;  %v1860_v54 = vadd.f32 %v2702_v4, %v1471_v5  ;;  %v1470_v55 = vadd.f32 %v1407_v19, %v1051_v15  ;;  %v1071_v22 = vadd.f32 %v3515_v31, %v3514_v39  ;;  %v3516_v15 = vld [vmem:[#allocation13_spill] sm:$0xff]  ;;  %v3519_v4 = vld [vmem:[#allocation14_spill] sm:$0xff] }
 0x148   : > { %v1965_v28 = vmax.f32 %v1933_v27, 0.0  ;;  %v1936_v7 = vadd.f32 %v3250_v14, %v1897_v42  ;;  %v1896_v20 = vmul.f32 %v3243_v8, %v1857_v43  ;;  %v2649_v56 = vpop.f32.mrf.mxu1  ;;  %v2705_v57 = vpop.f32.mrf.mxu0  ;;  %v2050_v48 = vsel %vm767_vm0, %v1966_v53, 0.0 }
 0x149   : > { %v2047_v21 = vadd.f32 %v2046_v29, %v2045_v45  ;;  %v1899_v10 = vmul.f32 %v3243_v8, %v1860_v54  ;;  %v1859_v34 = vadd.f32 %v1796_v26, %v1470_v55  ;;  %v1473_v35 = vadd.f32 %v2649_v56, %v1066_v18 }
 0x14a   : > { %1997 = vst.msk [vmem:[%s3263_s15 + $0xa0] sm:$0xff] %vm767_vm0, %v1965_v28  ;;  %v2048_v46 = vsel %vm767_vm0, %v1965_v28, 0.0  ;;  %v1968_v47 = vmax.f32 %v1936_v7, 0.0  ;;  %v1935_v3 = vadd.f32 %v3250_v14, %v1896_v20  ;;  %v1417_v30 = vpop.f32.mrf.mxu1  ;;  %v1806_v58 = vpop.f32.mrf.mxu0  ;;  %v1086_v50 = vadd.f32 %v3517_v16, %v3516_v15 }
 0x14b   : > { %v2049_v59 = vadd.f32 %v2048_v46, %v2047_v21  ;;  %v1938_v36 = vadd.f32 %v3250_v14, %v1899_v10  ;;  %v1898_v37 = vmul.f32 %v3243_v8, %v1859_v34  ;;  %v1862_v38 = vadd.f32 %v2705_v57, %v1473_v35 }
 0x14c   : > { %2000 = vst.msk [vmem:[%s3263_s15 + $0xb8] sm:$0xff] %vm767_vm0, %v1968_v47  ;;  %v1967_v49 = vmax.f32 %v1935_v3, 0.0  ;;  %v1472_v60 = vadd.f32 %v1417_v30, %v1061_v44  ;;  %v2652_v61 = vpop.f32.mrf.mxu1  ;;  %v2708_v9 = vpop.f32.mrf.mxu0  ;;  %v1081_v1 = vadd.f32 %v3519_v4, %v3518_v33  ;;  %v2054_v24 = vsel %vm767_vm0, %v1968_v47, 0.0 }
 0x14d   : > { %v2051_v23 = vadd.f32 %v2050_v48, %v2049_v59  ;;  %v1970_v40 = vmax.f32 %v1938_v36, 0.0  ;;  %v1937_v41 = vadd.f32 %v3250_v14, %v1898_v37  ;;  %v1901_v13 = vmul.f32 %v3243_v8, %v1862_v38 }
 0x14e   : > { %1999 = vst.msk [vmem:[%s3263_s15 + $0xb0] sm:$0xff] %vm767_vm0, %v1967_v49  ;;  %v2052_v51 = vsel %vm767_vm0, %v1967_v49, 0.0  ;;  %v1861_v62 = vadd.f32 %v1806_v58, %v1472_v60  ;;  %v1475_v63 = vadd.f32 %v2652_v61, %v1076_v0  ;;  %v1427_v17 = vpop.f32.mrf.mxu1  ;;  %v1816_v32 = vpop.f32.mrf.mxu0 }
 0x14f   : > { %v2053_v52 = vadd.f32 %v2052_v51, %v2051_v23  ;;  %2002 = vst.msk [vmem:[%s3263_s15 + $0xc8] sm:$0xff] %vm767_vm0, %v1970_v40  ;;  %v1969_v53 = vmax.f32 %v1937_v41, 0.0  ;;  %v1940_v5 = vadd.f32 %v3250_v14, %v1901_v13  ;;  %v1474_v27 = vadd.f32 %v1427_v17, %v1071_v22 }
 0x150   : > { %v1900_v25 = vmul.f32 %v3243_v8, %v1861_v62  ;;  %v1864_v18 = vadd.f32 %v2708_v9, %v1475_v63  ;;  %v2655_v42 = vpop.f32.mrf.mxu1  ;;  %v2711_v43 = vpop.f32.mrf.mxu0  ;;  %v2058_v56 = vsel %vm767_vm0, %v1970_v40, 0.0 }
 0x151   : > { %2001 = vst.msk [vmem:[%s3263_s15 + $0xc0] sm:$0xff] %vm767_vm0, %v1969_v53  ;;  %v2055_v19 = vadd.f32 %v2054_v24, %v2053_v52  ;;  %v2056_v26 = vsel %vm767_vm0, %v1969_v53, 0.0  ;;  %v1972_v2 = vmax.f32 %v1940_v5, 0.0  ;;  %v1477_v6 = vadd.f32 %v2655_v42, %v1086_v50 }
 0x152   : > { %v1939_v44 = vadd.f32 %v3250_v14, %v1900_v25  ;;  %v1903_v45 = vmul.f32 %v3243_v8, %v1864_v18  ;;  %v1863_v54 = vadd.f32 %v1816_v32, %v1474_v27  ;;  %v1437_v55 = vpop.f32.mrf.mxu1  ;;  %v1826_v29 = vpop.f32.mrf.mxu0 }
 0x153   : > { %v2057_v28 = vadd.f32 %v2056_v26, %v2055_v19  ;;  %2004 = vst.msk [vmem:[%s3263_s15 + $0xd8] sm:$0xff] %vm767_vm0, %v1972_v2  ;;  %v1866_v7 = vadd.f32 %v2711_v43, %v1477_v6  ;;  %v1476_v20 = vadd.f32 %v1437_v55, %v1081_v1  ;;  %v2062_v58 = vsel %vm767_vm0, %v1972_v2, 0.0 }
 0x154   : > { %v1971_v57 = vmax.f32 %v1939_v44, 0.0  ;;  %v1942_v21 = vadd.f32 %v3250_v14, %v1903_v45  ;;  %v1902_v10 = vmul.f32 %v3243_v8, %v1863_v54 }
 0x155   : > { %v2059_v34 = vadd.f32 %v2058_v56, %v2057_v28  ;;  %v1905_v35 = vmul.f32 %v3243_v8, %v1866_v7  ;;  %v1865_v11 = vadd.f32 %v1826_v29, %v1476_v20 }
 0x156   : > { %2003 = vst.msk [vmem:[%s3263_s15 + $0xd0] sm:$0xff] %vm767_vm0, %v1971_v57  ;;  %v2060_v12 = vsel %vm767_vm0, %v1971_v57, 0.0  ;;  %v1974_v0 = vmax.f32 %v1942_v21, 0.0  ;;  %v1941_v46 = vadd.f32 %v3250_v14, %v1902_v10 }
 0x157   : > { %v2061_v47 = vadd.f32 %v2060_v12, %v2059_v34  ;;  %v1944_v3 = vadd.f32 %v3250_v14, %v1905_v35  ;;  %v1904_v30 = vmul.f32 %v3243_v8, %v1865_v11 }
 0x158   : > { %2006 = vst.msk [vmem:[%s3263_s15 + $0xe8] sm:$0xff] %vm767_vm0, %v1974_v0  ;;  %v1973_v59 = vmax.f32 %v1941_v46, 0.0  ;;  %v2066_v8 = vsel %vm767_vm0, %v1974_v0, 0.0 }
 0x159   : > { %v2063_v36 = vadd.f32 %v2062_v58, %v2061_v47  ;;  %v1976_v37 = vmax.f32 %v1944_v3, 0.0  ;;  %v1943_v38 = vadd.f32 %v3250_v14, %v1904_v30 }
 0x15a   : > { %2005 = vst.msk [vmem:[%s3263_s15 + $0xe0] sm:$0xff] %vm767_vm0, %v1973_v59  ;;  %v2064_v39 = vsel %vm767_vm0, %v1973_v59, 0.0 }
 0x15b   : > { %v2065_v31 = vadd.f32 %v2064_v39, %v2063_v36  ;;  %2008 = vst.msk [vmem:[%s3263_s15 + $0xf8] sm:$0xff] %vm767_vm0, %v1976_v37  ;;  %v1975_v22 = vmax.f32 %v1943_v38, 0.0  ;;  %v2070_v61 = vsel %vm767_vm0, %v1976_v37, 0.0 }
 0x15d   : > { %2007 = vst.msk [vmem:[%s3263_s15 + $0xf0] sm:$0xff] %vm767_vm0, %v1975_v22  ;;  %v2067_v48 = vadd.f32 %v2066_v8, %v2065_v31  ;;  %v2068_v49 = vsel %vm767_vm0, %v1975_v22, 0.0 }
 0x15f   : > { %v2069_v60 = vadd.f32 %v2068_v49, %v2067_v48 }
 0x161   : > { %v2071_v14 = vadd.f32 %v2070_v61, %v2069_v60 }
 0x163   : > { %v2072_v9 = vrot.slane %v2071_v14, 4 }
 0x165   : > { %v2073_v23 = vadd.f32 %v2072_v9, %v2071_v14 }
 0x167   : > { %v2074_v40 = vrot.slane %v2073_v23, 2 }
 0x169   : > { %v2075_v41 = vadd.f32 %v2074_v40, %v2073_v23 }
 0x16b   : > { %v2076_v13 = vrot.slane %v2075_v41, 1 }
 0x16d   : > { %v2077_v15 = vadd.f32 %v2076_v13, %v2075_v41 }
 0x16f   : > { %v2079_v16 = vmul.f32 0.00390625, %v2077_v15 }
 0x171   : > { %2081 = vst.msk [vmem:[%s374_s17] sm:$0x1] %vm2080_vm2, %v2079_v16 }
 0x172 PF: > { %s19_s27 = sadd.s32 1, %s2726_s27  }
 0x173   : > { %p16_p4 = scmp.ge.s32.totalorder %s19_s27, 4  }
 0x175   :  { %18 = sbr.rel (!%p16_p4) target bundleno = 1 (0x1), region = 99 }

// kernel: osa_forward.5
= control target key start
LH: loop header
LB: loop body
LE: loop exit
PB: predicated region body
PF: predicated region fallthrough
CT: control target
= control target key end

     0   :  { %s5155_s15 = smov 0   ;;  %s6734_s0 = inlined_call_operand.vmem [shape: f32[2,18,18,16], index: 0, kind: input, shape index: {}]   ;;  %s6735_s1 = inlined_call_operand.vmem [shape: f32[9,16,32], index: 1, kind: input, shape index: {}]   ;;  %s6736_s2 = inlined_call_operand.vmem [shape: f32[1,32], index: 2, kind: input, shape index: {}]   ;;  %s6737_s3 = inlined_call_operand.vmem [shape: f32[1,32], index: 3, kind: input, shape index: {}]   ;;  %s6738_s4 = inlined_call_operand.vmem [shape: f32[2,256,32], index: 4, kind: output, shape index: {}]  }
   0x1 LB: > { %s3826_s16 = sadd.s32 4294967295, %s5128_s15   ;;  %p3830_p0 = scmp.ge.s32.totalorder %s5128_s15, 1  ;;  %s5128_s15 = sphi %s5155_s15, %s14_s15  }
   0x2   : > { %p162_p1 = scmp.lt.s32.totalorder %s5128_s15, 3 }
   0x4   : > { %p163_p2 = pnand %p3830_p0, %p162_p1 }
   0x6   : > { %166 = sbr.rel (%p163_p2) target bundleno = 510 (0x1fe), region = 36 }
   0xb   : > { %v3835_v0 = vld [vmem:[%s6735_s1 + $0x18] sm:$0xff]  ;;  %v3834_v1 = vld [vmem:[%s6735_s1 + $0x10] sm:$0xff]  ;;  %p188_p3 = scmp.lt.s32.totalorder %s3826_s16, 1  ;;  %v231_v2 = vld [vmem:[%s6735_s1 + $0x8] sm:$0xff]  ;;  %vm267_vm0 = vcmask 130048   ;;  %vm3738_vm1 = vcmask 261120  }
   0xc   : > { %5109 = vmatprep.subr.mxu1 %v3835_v0  ;;  %4641 = vmatprep.subr.mxu0 %v3835_v0  ;;  %v3901_v3 = vld [vmem:[%s6735_s1 + $0x28] sm:$0xff]  ;;  %v230_v10 = vld [vmem:[%s6735_s1] sm:$0xff]  ;;  %v5232_v16 = vld [vmem:[%s6735_s1 + $0x38] sm:$0xff] }
   0xd   : > { %5111 = vmatpush3.msra.mxu1 %v3835_v0  ;;  %4642 = vmatpush3.msra.mxu0 %v3835_v0  ;;  %s6947_s16 = smov (!%p188_p3, %s3826_s16), 1  ;;  %v3900_v11 = vld [vmem:[%s6735_s1 + $0x20] sm:$0xff]  ;;  %v5237_v17 = vld [vmem:[%s6735_s1 + $0x48] sm:$0xff]  ;;  %v3966_v46 = vld [vmem:[%s6735_s1 + $0x30] sm:$0xff] }
   0xe   : > { %5110 = vmatprep.subr.mxu1 %v3834_v1  ;;  %4643 = vmatprep.subr.mxu0 %v3834_v1  ;;  %s5113_s25 = smul.u32 432, %s6947_s16  ;;  %v4032_v47 = vld [vmem:[%s6735_s1 + $0x40] sm:$0xff]  ;;  %v5400_v52 = vld [vmem:[%s6735_s1 + $0x58] sm:$0xff]  ;;  %v5405_v53 = vld [vmem:[%s6735_s1 + $0x68] sm:$0xff]  ;;  %s4334_s11 = sshll.u32 %s6947_s16, 8 }
   0xf   : > { %5112 = vmatpush3.msra.mxu1 %v3834_v1  ;;  %4644 = vmatpush3.msra.mxu0 %v3834_v1  ;;  %s6530_s13 = scalar_lea.vmem %s6738_s4, %s4334_s11 }
  0x10   : > { %4693 = vmatprep.subr.mxu1 %v231_v2  ;;  %4745 = vmatprep.subr.mxu0 %v3901_v3  ;;  %s5181_s28 = scalar_lea.vmem %s6734_s0, %s5113_s25 }
  0x11   : > { %v232_v4 = vld [vmem:[%s5181_s28 + $0x1] sm:$0xff]  ;;  %v233_v6 = vld [vmem:[%s5181_s28 + $0x9] sm:$0xff]  ;;  %v5195_v8 = vld [vmem:[%s5181_s28 + $0x19] sm:$0xff] }
  0x12   : > { %v5185_v5 = vld [vmem:[%s5181_s28 + $0xc1] sm:$0xff]  ;;  %4645 = vmatprep.mubr.msk.f32.mxu0 %vm267_vm0, %v232_v4  ;;  %v5192_v7 = vld [vmem:[%s5181_s28 + $0xc9] sm:$0xff]  ;;  %v5198_v9 = vld [vmem:[%s5181_s28 + $0xd9] sm:$0xff] }
  0x13   : > { %4669 = vmatprep.mubr.msk.f32.mxu1 %vm267_vm0, %v5185_v5  ;;  %4646 = vmatmul.mubr.msk.f32.vlgmr.msra.gmra.mxu0 %vm267_vm0, %v233_v6  ;;  %v5210_v12 = vld [vmem:[%s5181_s28 + $0x21] sm:$0xff]  ;;  %v5220_v14 = vld [vmem:[%s5181_s28 + $0x31] sm:$0xff]  ;;  %v5244_v18 = vld [vmem:[%s5181_s28 + $0x39] sm:$0xff] }
  0x14   : > { %4670 = vmatmul.mubr.msk.f32.vlgmr.msra.gmra.mxu1 %vm267_vm0, %v5192_v7  ;;  %4746 = vmatpush3.msra.mxu0 %v3901_v3  ;;  %v5213_v13 = vld [vmem:[%s5181_s28 + $0xe1] sm:$0xff]  ;;  %v5223_v15 = vld [vmem:[%s5181_s28 + $0xf1] sm:$0xff]  ;;  %v5247_v19 = vld [vmem:[%s5181_s28 + $0xf9] sm:$0xff] }
  0x15   : > { %4694 = vmatpush3.msra.mxu1 %v231_v2  ;;  %4648 = vmatprep.mubr.msk.f32.mxu0 %vm267_vm0, %v5195_v8  ;;  %v5250_v20 = vld [vmem:[%s5181_s28 + $0x49] sm:$0xff]  ;;  %v5266_v22 = vld [vmem:[%s5181_s28 + $0x51] sm:$0xff]  ;;  %v5272_v24 = vld [vmem:[%s5181_s28 + $0x61] sm:$0xff] }
  0x16   : > { %4672 = vmatprep.mubr.msk.f32.mxu1 %vm267_vm0, %v5198_v9  ;;  %4695 = vmatprep.subr.mxu1 %v230_v10  ;;  %v5253_v21 = vld [vmem:[%s5181_s28 + $0x109] sm:$0xff]  ;;  %v5269_v23 = vld [vmem:[%s5181_s28 + $0x111] sm:$0xff]  ;;  %v5275_v25 = vld [vmem:[%s5181_s28 + $0x121] sm:$0xff] }
  0x17   : > { %4747 = vmatprep.subr.mxu0 %v3900_v11  ;;  %4649 = vmatmul.mubr.msk.f32.gmra.mxu0 %vm267_vm0, %v5210_v12  ;;  %v5286_v26 = vld [vmem:[%s5181_s28 + $0x69] sm:$0xff]  ;;  %v5292_v28 = vld [vmem:[%s5181_s28 + $0x79] sm:$0xff]  ;;  %v5306_v30 = vld [vmem:[%s5181_s28 + $0x81] sm:$0xff] }
  0x18   : > { %4673 = vmatmul.mubr.msk.f32.gmra.mxu1 %vm267_vm0, %v5213_v13  ;;  %4651 = vmatprep.mubr.msk.f32.mxu0 %vm267_vm0, %v5220_v14  ;;  %v5289_v27 = vld [vmem:[%s5181_s28 + $0x129] sm:$0xff]  ;;  %v5295_v29 = vld [vmem:[%s5181_s28 + $0x139] sm:$0xff]  ;;  %v5309_v31 = vld [vmem:[%s5181_s28 + $0x141] sm:$0xff] }
  0x19   : > { %4675 = vmatprep.mubr.msk.f32.mxu1 %vm267_vm0, %v5223_v15  ;;  %4696 = vmatpush3.msra.mxu1 %v230_v10  ;;  %v5312_v32 = vld [vmem:[%s5181_s28 + $0x91] sm:$0xff]  ;;  %v5326_v34 = vld [vmem:[%s5181_s28 + $0x99] sm:$0xff]  ;;  %v5332_v36 = vld [vmem:[%s5181_s28 + $0xa9] sm:$0xff] }
  0x1a   : > { %4748 = vmatpush3.msra.mxu0 %v3900_v11  ;;  %4797 = vmatprep.subr.mxu1 %v5232_v16  ;;  %v5315_v33 = vld [vmem:[%s5181_s28 + $0x151] sm:$0xff]  ;;  %v5329_v35 = vld [vmem:[%s5181_s28 + $0x159] sm:$0xff]  ;;  %v5335_v37 = vld [vmem:[%s5181_s28 + $0x169] sm:$0xff] }
  0x1b   : > { %4849 = vmatprep.subr.mxu0 %v5237_v17  ;;  %4652 = vmatmul.mubr.msk.f32.gmra.mxu0 %vm267_vm0, %v5244_v18  ;;  %v5346_v38 = vld [vmem:[%s5181_s28 + $0xb1] sm:$0xff]  ;;  %v198_v40 = vld [vmem:[%s5181_s28] sm:$0xff]  ;;  %v199_v42 = vld [vmem:[%s5181_s28 + $0x8] sm:$0xff] }
  0x1c   : > { %4676 = vmatmul.mubr.msk.f32.gmra.mxu1 %vm267_vm0, %v5247_v19  ;;  %4654 = vmatprep.mubr.msk.f32.mxu0 %vm267_vm0, %v5250_v20  ;;  %v5349_v39 = vld [vmem:[%s5181_s28 + $0x171] sm:$0xff]  ;;  %v910_v41 = vld [vmem:[%s5181_s28 + $0x2] sm:$0xff]  ;;  %v5365_v45 = vld [vmem:[%s5181_s28 + $0x1a] sm:$0xff] }
  0x1d   : > { %4678 = vmatprep.mubr.msk.f32.mxu1 %vm267_vm0, %v5253_v21  ;;  %6794 = vst [vmem:[#allocation2_spill] sm:$0xff] %v5349_v39  ;;  %v911_v43 = vld [vmem:[%s5181_s28 + $0xa] sm:$0xff]  ;;  %v5362_v44 = vld [vmem:[%s5181_s28 + $0x18] sm:$0xff]  ;;  %6795 = vst [vmem:[#allocation3_spill] sm:$0xff] %v5365_v45 }
  0x1e   : > { %v5378_v48 = vld [vmem:[%s5181_s28 + $0x20] sm:$0xff]  ;;  %v5388_v50 = vld [vmem:[%s5181_s28 + $0x30] sm:$0xff]  ;;  %v5412_v54 = vld [vmem:[%s5181_s28 + $0x38] sm:$0xff] }
  0x1f   : > { %4655 = vmatmul.mubr.msk.f32.gmra.mxu0 %vm267_vm0, %v5266_v22  ;;  %v5381_v49 = vld [vmem:[%s5181_s28 + $0x22] sm:$0xff]  ;;  %v5391_v51 = vld [vmem:[%s5181_s28 + $0x32] sm:$0xff]  ;;  %v5415_v55 = vld [vmem:[%s5181_s28 + $0x3a] sm:$0xff] }
  0x20   : > { %4679 = vmatmul.mubr.msk.f32.gmra.mxu1 %vm267_vm0, %v5269_v23  ;;  %4657 = vmatprep.mubr.msk.f32.mxu0 %vm267_vm0, %v5272_v24  ;;  %6796 = vst [vmem:[#allocation4_spill] sm:$0xff] %v5381_v49  ;;  %6797 = vst [vmem:[#allocation5_spill] sm:$0xff] %v5391_v51  ;;  %v5418_v56 = vld [vmem:[%s5181_s28 + $0x48] sm:$0xff]  ;;  %v5434_v58 = vld [vmem:[%s5181_s28 + $0x50] sm:$0xff] }
  0x21   : > { %4681 = vmatprep.mubr.msk.f32.mxu1 %vm267_vm0, %v5275_v25  ;;  %6798 = vst [vmem:[#allocation6_spill] sm:$0xff] %v5415_v55  ;;  %v5421_v57 = vld [vmem:[%s5181_s28 + $0x4a] sm:$0xff]  ;;  %v5437_v59 = vld [vmem:[%s5181_s28 + $0x52] sm:$0xff]  ;;  %v5440_v60 = vld [vmem:[%s5181_s28 + $0x60] sm:$0xff] }
  0x22   : > { %6799 = vst [vmem:[#allocation7_spill] sm:$0xff] %v5421_v57  ;;  %6800 = vst [vmem:[#allocation8_spill] sm:$0xff] %v5437_v59  ;;  %v5443_v61 = vld [vmem:[%s5181_s28 + $0x62] sm:$0xff]  ;;  %v5457_v63 = vld [vmem:[%s5181_s28 + $0x6a] sm:$0xff] }
  0x23   : > { %4658 = vmatmul.mubr.msk.f32.gmra.mxu0 %vm267_vm0, %v5286_v26  ;;  %6801 = vst [vmem:[#allocation9_spill] sm:$0xff] %v5443_v61  ;;  %v5454_v62 = vld [vmem:[%s5181_s28 + $0x68] sm:$0xff]  ;;  %6802 = vst [vmem:[#allocation10_spill] sm:$0xff] %v5457_v63  ;;  %v5460_v0 = vld [vmem:[%s5181_s28 + $0x78] sm:$0xff] }
  0x24   : > { %4682 = vmatmul.mubr.msk.f32.gmra.mxu1 %vm267_vm0, %v5289_v27  ;;  %4660 = vmatprep.mubr.msk.f32.mxu0 %vm267_vm0, %v5292_v28  ;;  %v5463_v1 = vld [vmem:[%s5181_s28 + $0x7a] sm:$0xff]  ;;  %v5477_v3 = vld [vmem:[%s5181_s28 + $0x82] sm:$0xff]  ;;  %v5480_v4 = vld [vmem:[%s5181_s28 + $0x90] sm:$0xff] }
  0x25   : > { %4684 = vmatprep.mubr.msk.f32.mxu1 %vm267_vm0, %v5295_v29  ;;  %6803 = vst [vmem:[#allocation11_spill] sm:$0xff] %v5463_v1  ;;  %v5474_v2 = vld [vmem:[%s5181_s28 + $0x80] sm:$0xff]  ;;  %6804 = vst [vmem:[#allocation12_spill] sm:$0xff] %v5477_v3  ;;  %v5483_v6 = vld [vmem:[%s5181_s28 + $0x92] sm:$0xff] }
  0x26   : > { %6805 = vst [vmem:[#allocation13_spill] sm:$0xff] %v5483_v6  ;;  %v5494_v10 = vld [vmem:[%s5181_s28 + $0x98] sm:$0xff] }
  0x27   : > { %4661 = vmatmul.mubr.msk.f32.gmra.mxu0 %vm267_vm0, %v5306_v30  ;;  %v5497_v11 = vld [vmem:[%s5181_s28 + $0x9a] sm:$0xff] }
  0x28   : > { %4685 = vmatmul.mubr.msk.f32.gmra.mxu1 %vm267_vm0, %v5309_v31  ;;  %4663 = vmatprep.mubr.msk.f32.mxu0 %vm267_vm0, %v5312_v32  ;;  %6806 = vst [vmem:[#allocation14_spill] sm:$0xff] %v5497_v11 }
  0x29   : > { %4687 = vmatprep.mubr.msk.f32.mxu1 %vm267_vm0, %v5315_v33 }
  0x2b   : > { %4664 = vmatmul.mubr.msk.f32.gmra.mxu0 %vm267_vm0, %v5326_v34 }
  0x2c   : > { %4688 = vmatmul.mubr.msk.f32.gmra.mxu1 %vm267_vm0, %v5329_v35  ;;  %4666 = vmatprep.mubr.msk.f32.mxu0 %vm267_vm0, %v5332_v36 }
  0x2d   : > { %4690 = vmatprep.mubr.msk.f32.mxu1 %vm267_vm0, %v5335_v37 }
  0x2f   : > { %4667 = vmatmul.mubr.msk.f32.gmra.mxu0 %vm267_vm0, %v5346_v38 }
  0x30   : > { %4691 = vmatmul.mubr.msk.f32.gmra.mxu1 %vm267_vm0, %v5349_v39  ;;  %4749 = vmatprep.mubr.msk.f32.mxu0 %vm267_vm0, %v910_v41  ;;  %v5517_v41 = vld [vmem:[%s5181_s28 + $0xb2] sm:$0xff]  ;;  %v5663_v39 = vld [vmem:[%s5181_s28 + $0x16a] sm:$0xff] }
  0x31   : > { %4697 = vmatprep.mubr.msk.f32.mxu1 %vm267_vm0, %v198_v40  ;;  %v5514_v40 = vld [vmem:[%s5181_s28 + $0xb0] sm:$0xff]  ;;  %6808 = vst [vmem:[#allocation16_spill] sm:$0xff] %v5517_v41  ;;  %6822 = vst [vmem:[#allocation30_spill] sm:$0xff] %v5663_v39 }
  0x33   : > { %4750 = vmatmul.mubr.msk.f32.vlgmr.msra.gmra.mxu0 %vm267_vm0, %v911_v43  ;;  %v5523_v43 = vld [vmem:[%s5181_s28 + $0xc2] sm:$0xff] }
  0x34   : > { %4698 = vmatmul.mubr.msk.f32.vlgmr.msra.gmra.mxu1 %vm267_vm0, %v199_v42  ;;  %4850 = vmatpush3.msra.mxu0 %v5237_v17  ;;  %v5503_v17 = vld [vmem:[%s5181_s28 + $0xaa] sm:$0xff]  ;;  %v5520_v42 = vld [vmem:[%s5181_s28 + $0xc0] sm:$0xff]  ;;  %6809 = vst [vmem:[#allocation17_spill] sm:$0xff] %v5523_v43 }
  0x35   : > { %4798 = vmatpush3.msra.mxu1 %v5232_v16  ;;  %4700 = vmatprep.mubr.msk.f32.mxu1 %vm267_vm0, %v5362_v44  ;;  %v5500_v16 = vld [vmem:[%s5181_s28 + $0xa8] sm:$0xff]  ;;  %6807 = vst [vmem:[#allocation15_spill] sm:$0xff] %v5503_v17 }
  0x36   : > { %4752 = vmatprep.mubr.msk.f32.mxu0 %vm267_vm0, %v5365_v45  ;;  %4799 = vmatprep.subr.mxu1 %v3966_v46  ;;  %v5660_v45 = vld [vmem:[%s5181_s28 + $0x168] sm:$0xff] }
  0x37   : > { %4851 = vmatprep.subr.mxu0 %v4032_v47  ;;  %4753 = vmatmul.mubr.msk.f32.gmra.mxu0 %vm267_vm0, %v5381_v49  ;;  %v5643_v49 = vld [vmem:[%s5181_s28 + $0x152] sm:$0xff] }
  0x38   : > { %4701 = vmatmul.mubr.msk.f32.gmra.mxu1 %vm267_vm0, %v5378_v48  ;;  %4755 = vmatprep.mubr.msk.f32.mxu0 %vm267_vm0, %v5391_v51  ;;  %v5640_v51 = vld [vmem:[%s5181_s28 + $0x150] sm:$0xff]  ;;  %6821 = vst [vmem:[#allocation29_spill] sm:$0xff] %v5643_v49 }
  0x39   : > { %4703 = vmatprep.mubr.msk.f32.mxu1 %vm267_vm0, %v5388_v50  ;;  %4800 = vmatpush3.msra.mxu1 %v3966_v46  ;;  %v5534_v46 = vld [vmem:[%s5181_s28 + $0xc8] sm:$0xff] }
  0x3a   : > { %4852 = vmatpush3.msra.mxu0 %v4032_v47  ;;  %4901 = vmatprep.subr.mxu1 %v5400_v52  ;;  %v5537_v47 = vld [vmem:[%s5181_s28 + $0xca] sm:$0xff] }
  0x3b   : > { %4953 = vmatprep.subr.mxu0 %v5405_v53  ;;  %4756 = vmatmul.mubr.msk.f32.gmra.mxu0 %vm267_vm0, %v5415_v55  ;;  %6810 = vst [vmem:[#allocation18_spill] sm:$0xff] %v5537_v47  ;;  %v5623_v55 = vld [vmem:[%s5181_s28 + $0x13a] sm:$0xff] }
  0x3c   : > { %4704 = vmatmul.mubr.msk.f32.gmra.mxu1 %vm267_vm0, %v5412_v54  ;;  %4758 = vmatprep.mubr.msk.f32.mxu0 %vm267_vm0, %v5421_v57  ;;  %v5620_v57 = vld [vmem:[%s5181_s28 + $0x138] sm:$0xff]  ;;  %6819 = vst [vmem:[#allocation27_spill] sm:$0xff] %v5623_v55 }
  0x3d   : > { %4706 = vmatprep.mubr.msk.f32.mxu1 %vm267_vm0, %v5418_v56 }
  0x3f   : > { %4759 = vmatmul.mubr.msk.f32.gmra.mxu0 %vm267_vm0, %v5437_v59  ;;  %v5603_v59 = vld [vmem:[%s5181_s28 + $0x122] sm:$0xff] }
  0x40   : > { %4707 = vmatmul.mubr.msk.f32.gmra.mxu1 %vm267_vm0, %v5434_v58  ;;  %4761 = vmatprep.mubr.msk.f32.mxu0 %vm267_vm0, %v5443_v61  ;;  %v5600_v61 = vld [vmem:[%s5181_s28 + $0x120] sm:$0xff]  ;;  %6817 = vst [vmem:[#allocation25_spill] sm:$0xff] %v5603_v59 }
  0x41   : > { %4709 = vmatprep.mubr.msk.f32.mxu1 %vm267_vm0, %v5440_v60 }
  0x43   : > { %4762 = vmatmul.mubr.msk.f32.gmra.mxu0 %vm267_vm0, %v5457_v63  ;;  %v5583_v63 = vld [vmem:[%s5181_s28 + $0x10a] sm:$0xff] }
  0x44   : > { %4710 = vmatmul.mubr.msk.f32.gmra.mxu1 %vm267_vm0, %v5454_v62  ;;  %4764 = vmatprep.mubr.msk.f32.mxu0 %vm267_vm0, %v5463_v1  ;;  %v5580_v1 = vld [vmem:[%s5181_s28 + $0x108] sm:$0xff]  ;;  %6815 = vst [vmem:[#allocation23_spill] sm:$0xff] %v5583_v63 }
  0x45   : > { %4712 = vmatprep.mubr.msk.f32.mxu1 %vm267_vm0, %v5460_v0 }
  0x47   : > { %4765 = vmatmul.mubr.msk.f32.gmra.mxu0 %vm267_vm0, %v5477_v3  ;;  %v5563_v3 = vld [vmem:[%s5181_s28 + $0xf2] sm:$0xff] }
  0x48   : > { %4713 = vmatmul.mubr.msk.f32.gmra.mxu1 %vm267_vm0, %v5474_v2  ;;  %4767 = vmatprep.mubr.msk.f32.mxu0 %vm267_vm0, %v5483_v6  ;;  %v5560_v6 = vld [vmem:[%s5181_s28 + $0xf0] sm:$0xff]  ;;  %6813 = vst [vmem:[#allocation21_spill] sm:$0xff] %v5563_v3 }
  0x49   : > { %4715 = vmatprep.mubr.msk.f32.mxu1 %vm267_vm0, %v5480_v4 }
  0x4b   : > { %4768 = vmatmul.mubr.msk.f32.gmra.mxu0 %vm267_vm0, %v5497_v11  ;;  %v5543_v11 = vld [vmem:[%s5181_s28 + $0xda] sm:$0xff] }
  0x4c   : > { %4716 = vmatmul.mubr.msk.f32.gmra.mxu1 %vm267_vm0, %v5494_v10  ;;  %4770 = vmatprep.mubr.msk.f32.mxu0 %vm267_vm0, %v5503_v17  ;;  %v5540_v17 = vld [vmem:[%s5181_s28 + $0xd8] sm:$0xff]  ;;  %6811 = vst [vmem:[#allocation19_spill] sm:$0xff] %v5543_v11 }
  0x4d   : > { %4718 = vmatprep.mubr.msk.f32.mxu1 %vm267_vm0, %v5500_v16 }
  0x4f   : > { %4771 = vmatmul.mubr.msk.f32.gmra.mxu0 %vm267_vm0, %v5517_v41  ;;  %v5557_v41 = vld [vmem:[%s5181_s28 + $0xe2] sm:$0xff] }
  0x50   : > { %4719 = vmatmul.mubr.msk.f32.gmra.mxu1 %vm267_vm0, %v5514_v40  ;;  %4773 = vmatprep.mubr.msk.f32.mxu0 %vm267_vm0, %v5523_v43  ;;  %v5554_v43 = vld [vmem:[%s5181_s28 + $0xe0] sm:$0xff]  ;;  %6812 = vst [vmem:[#allocation20_spill] sm:$0xff] %v5557_v41 }
  0x51   : > { %4721 = vmatprep.mubr.msk.f32.mxu1 %vm267_vm0, %v5520_v42 }
  0x53   : > { %4774 = vmatmul.mubr.msk.f32.gmra.mxu0 %vm267_vm0, %v5537_v47  ;;  %v5577_v47 = vld [vmem:[%s5181_s28 + $0xfa] sm:$0xff] }
  0x54   : > { %4722 = vmatmul.mubr.msk.f32.gmra.mxu1 %vm267_vm0, %v5534_v46  ;;  %4776 = vmatprep.mubr.msk.f32.mxu0 %vm267_vm0, %v5543_v11  ;;  %v5574_v11 = vld [vmem:[%s5181_s28 + $0xf8] sm:$0xff]  ;;  %6814 = vst [vmem:[#allocation22_spill] sm:$0xff] %v5577_v47 }
  0x55   : > { %4724 = vmatprep.mubr.msk.f32.mxu1 %vm267_vm0, %v5540_v17 }
  0x57   : > { %4777 = vmatmul.mubr.msk.f32.gmra.mxu0 %vm267_vm0, %v5557_v41  ;;  %v5597_v41 = vld [vmem:[%s5181_s28 + $0x112] sm:$0xff] }
  0x58   : > { %4725 = vmatmul.mubr.msk.f32.gmra.mxu1 %vm267_vm0, %v5554_v43  ;;  %4779 = vmatprep.mubr.msk.f32.mxu0 %vm267_vm0, %v5563_v3  ;;  %v5594_v3 = vld [vmem:[%s5181_s28 + $0x110] sm:$0xff]  ;;  %6816 = vst [vmem:[#allocation24_spill] sm:$0xff] %v5597_v41 }
  0x59   : > { %4727 = vmatprep.mubr.msk.f32.mxu1 %vm267_vm0, %v5560_v6 }
  0x5b   : > { %4780 = vmatmul.mubr.msk.f32.gmra.mxu0 %vm267_vm0, %v5577_v47  ;;  %v5617_v47 = vld [vmem:[%s5181_s28 + $0x12a] sm:$0xff] }
  0x5c   : > { %4728 = vmatmul.mubr.msk.f32.gmra.mxu1 %vm267_vm0, %v5574_v11  ;;  %4782 = vmatprep.mubr.msk.f32.mxu0 %vm267_vm0, %v5583_v63  ;;  %v5614_v63 = vld [vmem:[%s5181_s28 + $0x128] sm:$0xff]  ;;  %6818 = vst [vmem:[#allocation26_spill] sm:$0xff] %v5617_v47 }
  0x5d   : > { %4730 = vmatprep.mubr.msk.f32.mxu1 %vm267_vm0, %v5580_v1 }
  0x5f   : > { %4783 = vmatmul.mubr.msk.f32.gmra.mxu0 %vm267_vm0, %v5597_v41  ;;  %v5637_v41 = vld [vmem:[%s5181_s28 + $0x142] sm:$0xff] }
  0x60   : > { %4731 = vmatmul.mubr.msk.f32.gmra.mxu1 %vm267_vm0, %v5594_v3  ;;  %4785 = vmatprep.mubr.msk.f32.mxu0 %vm267_vm0, %v5603_v59  ;;  %v5634_v59 = vld [vmem:[%s5181_s28 + $0x140] sm:$0xff]  ;;  %6820 = vst [vmem:[#allocation28_spill] sm:$0xff] %v5637_v41 }
  0x61   : > { %4733 = vmatprep.mubr.msk.f32.mxu1 %vm267_vm0, %v5600_v61 }
  0x63   : > { %4786 = vmatmul.mubr.msk.f32.gmra.mxu0 %vm267_vm0, %v5617_v47  ;;  %v5657_v47 = vld [vmem:[%s5181_s28 + $0x15a] sm:$0xff] }
  0x64   : > { %4734 = vmatmul.mubr.msk.f32.gmra.mxu1 %vm267_vm0, %v5614_v63  ;;  %4788 = vmatprep.mubr.msk.f32.mxu0 %vm267_vm0, %v5623_v55  ;;  %v5654_v55 = vld [vmem:[%s5181_s28 + $0x158] sm:$0xff] }
  0x65   : > { %4736 = vmatprep.mubr.msk.f32.mxu1 %vm267_vm0, %v5620_v57 }
  0x67   : > { %4789 = vmatmul.mubr.msk.f32.gmra.mxu0 %vm267_vm0, %v5637_v41  ;;  %v5677_v41 = vld [vmem:[%s5181_s28 + $0x172] sm:$0xff] }
  0x68   : > { %4737 = vmatmul.mubr.msk.f32.gmra.mxu1 %vm267_vm0, %v5634_v59  ;;  %4791 = vmatprep.mubr.msk.f32.mxu0 %vm267_vm0, %v5643_v49  ;;  %v5674_v49 = vld [vmem:[%s5181_s28 + $0x170] sm:$0xff]  ;;  %6823 = vst [vmem:[#allocation31_spill] sm:$0xff] %v5677_v41 }
  0x69   : > { %4739 = vmatprep.mubr.msk.f32.mxu1 %vm267_vm0, %v5640_v51 }
  0x6b   : > { %4792 = vmatmul.mubr.msk.f32.gmra.mxu0 %vm267_vm0, %v5657_v47 }
  0x6c   : > { %4740 = vmatmul.mubr.msk.f32.gmra.mxu1 %vm267_vm0, %v5654_v55  ;;  %4794 = vmatprep.mubr.msk.f32.mxu0 %vm267_vm0, %v5663_v39  ;;  %v4098_v39 = vld [vmem:[%s6735_s1 + $0x50] sm:$0xff] }
  0x6d   : > { %4742 = vmatprep.mubr.msk.f32.mxu1 %vm267_vm0, %v5660_v45 }
  0x6f   : > { %4795 = vmatmul.mubr.msk.f32.gmra.mxu0 %vm267_vm0, %v5677_v41  ;;  %v4164_v41 = vld [vmem:[%s6735_s1 + $0x60] sm:$0xff] }
  0x70   : > { %4743 = vmatmul.mubr.msk.f32.gmra.mxu1 %vm267_vm0, %v5674_v49  ;;  %4853 = vmatprep.mubr.msk.f32.mxu0 %vm267_vm0, %v5195_v8  ;;  %v5710_v8 = vld [vmem:[%s6735_s1 + $0x78] sm:$0xff] }
  0x71   : > { %4801 = vmatprep.mubr.msk.f32.mxu1 %vm267_vm0, %v5362_v44  ;;  %v6843_v44 = vld [vmem:[#allocation20_spill] sm:$0xff] }
  0x73   : > { %4854 = vmatmul.mubr.msk.f32.vlgmr.msra.gmra.mxu0 %vm267_vm0, %v5210_v12  ;;  %v5715_v12 = vld [vmem:[%s6735_s1 + $0x88] sm:$0xff] }
  0x74   : > { %4802 = vmatmul.mubr.msk.f32.vlgmr.msra.gmra.mxu1 %vm267_vm0, %v5378_v48  ;;  %4954 = vmatpush3.msra.mxu0 %v5405_v53  ;;  %v6844_v48 = vld [vmem:[#allocation21_spill] sm:$0xff] }
  0x75   : > { %4902 = vmatpush3.msra.mxu1 %v5400_v52  ;;  %4804 = vmatprep.mubr.msk.f32.mxu1 %vm267_vm0, %v5388_v50 }
  0x76   : > { %4856 = vmatprep.mubr.msk.f32.mxu0 %vm267_vm0, %v5220_v14  ;;  %4903 = vmatprep.subr.mxu1 %v4098_v39 }
  0x77   : > { %4955 = vmatprep.subr.mxu0 %v4164_v41  ;;  %4857 = vmatmul.mubr.msk.f32.gmra.mxu0 %vm267_vm0, %v5244_v18 }
  0x78   : > { %4805 = vmatmul.mubr.msk.f32.gmra.mxu1 %vm267_vm0, %v5412_v54  ;;  %4859 = vmatprep.mubr.msk.f32.mxu0 %vm267_vm0, %v5250_v20  ;;  %v6827_v20 = vld [vmem:[#allocation4_spill] sm:$0xff] }
  0x79   : > { %4807 = vmatprep.mubr.msk.f32.mxu1 %vm267_vm0, %v5418_v56  ;;  %4904 = vmatpush3.msra.mxu1 %v4098_v39 }
  0x7a   : > { %4956 = vmatpush3.msra.mxu0 %v4164_v41  ;;  %5005 = vmatprep.subr.mxu1 %v5710_v8  ;;  %v6851_v41 = vld [vmem:[#allocation28_spill] sm:$0xff] }
  0x7b   : > { %5057 = vmatprep.subr.mxu0 %v5715_v12  ;;  %4860 = vmatmul.mubr.msk.f32.gmra.mxu0 %vm267_vm0, %v5266_v22  ;;  %v4296_v22 = vld [vmem:[%s6735_s1 + $0x80] sm:$0xff] }
  0x7c   : > { %4808 = vmatmul.mubr.msk.f32.gmra.mxu1 %vm267_vm0, %v5434_v58  ;;  %4862 = vmatprep.mubr.msk.f32.mxu0 %vm267_vm0, %v5272_v24  ;;  %v6829_v24 = vld [vmem:[#allocation6_spill] sm:$0xff] }
  0x7d   : > { %4810 = vmatprep.mubr.msk.f32.mxu1 %vm267_vm0, %v5440_v60 }
  0x7f   : > { %4863 = vmatmul.mubr.msk.f32.gmra.mxu0 %vm267_vm0, %v5286_v26  ;;  %v6831_v26 = vld [vmem:[#allocation8_spill] sm:$0xff] }
  0x80   : > { %4811 = vmatmul.mubr.msk.f32.gmra.mxu1 %vm267_vm0, %v5454_v62  ;;  %4865 = vmatprep.mubr.msk.f32.mxu0 %vm267_vm0, %v5292_v28  ;;  %v6833_v28 = vld [vmem:[#allocation10_spill] sm:$0xff] }
  0x81   : > { %4813 = vmatprep.mubr.msk.f32.mxu1 %vm267_vm0, %v5460_v0 }
  0x83   : > { %4866 = vmatmul.mubr.msk.f32.gmra.mxu0 %vm267_vm0, %v5306_v30  ;;  %v6835_v30 = vld [vmem:[#allocation12_spill] sm:$0xff] }
  0x84   : > { %4814 = vmatmul.mubr.msk.f32.gmra.mxu1 %vm267_vm0, %v5474_v2  ;;  %4868 = vmatprep.mubr.msk.f32.mxu0 %vm267_vm0, %v5312_v32  ;;  %v6837_v32 = vld [vmem:[#allocation14_spill] sm:$0xff] }
  0x85   : > { %4816 = vmatprep.mubr.msk.f32.mxu1 %vm267_vm0, %v5480_v4 }
  0x87   : > { %4869 = vmatmul.mubr.msk.f32.gmra.mxu0 %vm267_vm0, %v5326_v34  ;;  %v6839_v34 = vld [vmem:[#allocation16_spill] sm:$0xff] }
  0x88   : > { %4817 = vmatmul.mubr.msk.f32.gmra.mxu1 %vm267_vm0, %v5494_v10  ;;  %4871 = vmatprep.mubr.msk.f32.mxu0 %vm267_vm0, %v5332_v36  ;;  %v6841_v36 = vld [vmem:[#allocation18_spill] sm:$0xff] }
  0x89   : > { %4819 = vmatprep.mubr.msk.f32.mxu1 %vm267_vm0, %v5500_v16 }
  0x8b   : > { %4872 = vmatmul.mubr.msk.f32.gmra.mxu0 %vm267_vm0, %v5346_v38 }
  0x8c   : > { %4820 = vmatmul.mubr.msk.f32.gmra.mxu1 %vm267_vm0, %v5514_v40  ;;  %4874 = vmatprep.mubr.msk.f32.mxu0 %vm267_vm0, %v5185_v5  ;;  %v5820_v5 = vld [vmem:[%s5181_s28 + $0x180] sm:$0xff] }
  0x8d   : > { %4822 = vmatprep.mubr.msk.f32.mxu1 %vm267_vm0, %v5520_v42 }
  0x8f   : > { %4875 = vmatmul.mubr.msk.f32.gmra.mxu0 %vm267_vm0, %v5192_v7  ;;  %v5823_v7 = vld [vmem:[%s5181_s28 + $0x181] sm:$0xff] }
  0x90   : > { %4823 = vmatmul.mubr.msk.f32.gmra.mxu1 %vm267_vm0, %v5534_v46  ;;  %4877 = vmatprep.mubr.msk.f32.mxu0 %vm267_vm0, %v5198_v9  ;;  %v6824_v9 = vld [vmem:[#allocation2_spill] sm:$0xff] }
  0x91   : > { %4825 = vmatprep.mubr.msk.f32.mxu1 %vm267_vm0, %v5540_v17 }
  0x93   : > { %4878 = vmatmul.mubr.msk.f32.gmra.mxu0 %vm267_vm0, %v5213_v13  ;;  %v5834_v13 = vld [vmem:[%s5181_s28 + $0x188] sm:$0xff] }
  0x94   : > { %4826 = vmatmul.mubr.msk.f32.gmra.mxu1 %vm267_vm0, %v5554_v43  ;;  %4880 = vmatprep.mubr.msk.f32.mxu0 %vm267_vm0, %v5223_v15  ;;  %v5837_v15 = vld [vmem:[%s5181_s28 + $0x189] sm:$0xff] }
  0x95   : > { %4828 = vmatprep.mubr.msk.f32.mxu1 %vm267_vm0, %v5560_v6  ;;  %6825 = vst [vmem:[#allocation2_spill] sm:$0xff] %v5837_v15 }
  0x97   : > { %4881 = vmatmul.mubr.msk.f32.gmra.mxu0 %vm267_vm0, %v5247_v19  ;;  %v6826_v19 = vld [vmem:[#allocation3_spill] sm:$0xff] }
  0x98   : > { %4829 = vmatmul.mubr.msk.f32.gmra.mxu1 %vm267_vm0, %v5574_v11  ;;  %4883 = vmatprep.mubr.msk.f32.mxu0 %vm267_vm0, %v5253_v21  ;;  %v4230_v21 = vld [vmem:[%s6735_s1 + $0x70] sm:$0xff] }
  0x99   : > { %4831 = vmatprep.mubr.msk.f32.mxu1 %vm267_vm0, %v5580_v1 }
  0x9b   : > { %4884 = vmatmul.mubr.msk.f32.gmra.mxu0 %vm267_vm0, %v5269_v23  ;;  %v6828_v23 = vld [vmem:[#allocation5_spill] sm:$0xff] }
  0x9c   : > { %4832 = vmatmul.mubr.msk.f32.gmra.mxu1 %vm267_vm0, %v5594_v3  ;;  %4886 = vmatprep.mubr.msk.f32.mxu0 %vm267_vm0, %v5275_v25  ;;  %v6830_v25 = vld [vmem:[#allocation7_spill] sm:$0xff] }
  0x9d   : > { %4834 = vmatprep.mubr.msk.f32.mxu1 %vm267_vm0, %v5600_v61 }
  0x9f   : > { %4887 = vmatmul.mubr.msk.f32.gmra.mxu0 %vm267_vm0, %v5289_v27  ;;  %v6832_v27 = vld [vmem:[#allocation9_spill] sm:$0xff] }
  0xa0   : > { %4835 = vmatmul.mubr.msk.f32.gmra.mxu1 %vm267_vm0, %v5614_v63  ;;  %4889 = vmatprep.mubr.msk.f32.mxu0 %vm267_vm0, %v5295_v29  ;;  %v6834_v29 = vld [vmem:[#allocation11_spill] sm:$0xff] }
  0xa1   : > { %4837 = vmatprep.mubr.msk.f32.mxu1 %vm267_vm0, %v5620_v57 }
  0xa3   : > { %4890 = vmatmul.mubr.msk.f32.gmra.mxu0 %vm267_vm0, %v5309_v31  ;;  %v6836_v31 = vld [vmem:[#allocation13_spill] sm:$0xff] }
  0xa4   : > { %4838 = vmatmul.mubr.msk.f32.gmra.mxu1 %vm267_vm0, %v5634_v59  ;;  %4892 = vmatprep.mubr.msk.f32.mxu0 %vm267_vm0, %v5315_v33  ;;  %v6838_v33 = vld [vmem:[#allocation15_spill] sm:$0xff] }
  0xa5   : > { %4840 = vmatprep.mubr.msk.f32.mxu1 %vm267_vm0, %v5640_v51 }
  0xa7   : > { %4893 = vmatmul.mubr.msk.f32.gmra.mxu0 %vm267_vm0, %v5329_v35  ;;  %v6840_v35 = vld [vmem:[#allocation17_spill] sm:$0xff] }
  0xa8   : > { %4841 = vmatmul.mubr.msk.f32.gmra.mxu1 %vm267_vm0, %v5654_v55  ;;  %4895 = vmatprep.mubr.msk.f32.mxu0 %vm267_vm0, %v5335_v37  ;;  %v6842_v37 = vld [vmem:[#allocation19_spill] sm:$0xff] }
  0xa9   : > { %4843 = vmatprep.mubr.msk.f32.mxu1 %vm267_vm0, %v5660_v45 }
  0xab   : > { %4896 = vmatmul.mubr.msk.f32.gmra.mxu0 %vm267_vm0, %v6824_v9  ;;  %v4162_v9 = vld [vmem:[%s5181_s28 + $0x198] sm:$0xff] }
  0xac   : > { %4844 = vmatmul.mubr.msk.f32.gmra.mxu1 %vm267_vm0, %v5674_v49  ;;  %4898 = vmatprep.mubr.msk.f32.mxu0 %vm267_vm0, %v5823_v7 }
  0xad   : > { %4846 = vmatprep.mubr.msk.f32.mxu1 %vm267_vm0, %v5820_v5 }
  0xaf   : > { %4899 = vmatmul.mubr.msk.f32.gmra.mxu0 %vm267_vm0, %v5837_v15 }
  0xb0   : > { %4847 = vmatmul.mubr.msk.f32.gmra.mxu1 %vm267_vm0, %v5834_v13  ;;  %4957 = vmatprep.mubr.msk.f32.mxu0 %vm267_vm0, %v5388_v50 }
  0xb1   : > { %4905 = vmatprep.mubr.msk.f32.mxu1 %vm267_vm0, %v6826_v19 }
  0xb3   : > { %4958 = vmatmul.mubr.msk.f32.vlgmr.msra.gmra.mxu0 %vm267_vm0, %v5412_v54 }
  0xb4   : > { %4906 = vmatmul.mubr.msk.f32.vlgmr.msra.gmra.mxu1 %vm267_vm0, %v6827_v20  ;;  %5058 = vmatpush3.msra.mxu0 %v5715_v12  ;;  %v6016_v12 = vld [vmem:[%s5181_s28 + $0x182] sm:$0xff] }
  0xb5   : > { %5006 = vmatpush3.msra.mxu1 %v5710_v8  ;;  %4908 = vmatprep.mubr.msk.f32.mxu1 %vm267_vm0, %v6828_v23 }
  0xb6   : > { %4960 = vmatprep.mubr.msk.f32.mxu0 %vm267_vm0, %v5418_v56  ;;  %5007 = vmatprep.subr.mxu1 %v4230_v21  ;;  %v6845_v56 = vld [vmem:[#allocation22_spill] sm:$0xff] }
  0xb7   : > { %5059 = vmatprep.subr.mxu0 %v4296_v22  ;;  %4961 = vmatmul.mubr.msk.f32.gmra.mxu0 %vm267_vm0, %v5434_v58  ;;  %v6846_v58 = vld [vmem:[#allocation23_spill] sm:$0xff] }
  0xb8   : > { %4909 = vmatmul.mubr.msk.f32.gmra.mxu1 %vm267_vm0, %v6829_v24  ;;  %4963 = vmatprep.mubr.msk.f32.mxu0 %vm267_vm0, %v5440_v60 }
  0xb9   : > { %4911 = vmatprep.mubr.msk.f32.mxu1 %vm267_vm0, %v6830_v25  ;;  %5008 = vmatpush3.msra.mxu1 %v4230_v21 }
  0xba   : > { %5060 = vmatpush3.msra.mxu0 %v4296_v22 }
  0xbb   : > { %4964 = vmatmul.mubr.msk.f32.gmra.mxu0 %vm267_vm0, %v5454_v62 }
  0xbc   : > { %4912 = vmatmul.mubr.msk.f32.gmra.mxu1 %vm267_vm0, %v6831_v26  ;;  %4966 = vmatprep.mubr.msk.f32.mxu0 %vm267_vm0, %v5460_v0 }
  0xbd   : > { %4914 = vmatprep.mubr.msk.f32.mxu1 %vm267_vm0, %v6832_v27 }
  0xbf   : > { %4967 = vmatmul.mubr.msk.f32.gmra.mxu0 %vm267_vm0, %v5474_v2  ;;  %v6847_v2 = vld [vmem:[#allocation24_spill] sm:$0xff] }
  0xc0   : > { %4915 = vmatmul.mubr.msk.f32.gmra.mxu1 %vm267_vm0, %v6833_v28  ;;  %4969 = vmatprep.mubr.msk.f32.mxu0 %vm267_vm0, %v5480_v4 }
  0xc1   : > { %4917 = vmatprep.mubr.msk.f32.mxu1 %vm267_vm0, %v6834_v29 }
  0xc3   : > { %4970 = vmatmul.mubr.msk.f32.gmra.mxu0 %vm267_vm0, %v5494_v10 }
  0xc4   : > { %4918 = vmatmul.mubr.msk.f32.gmra.mxu1 %vm267_vm0, %v6835_v30  ;;  %4972 = vmatprep.mubr.msk.f32.mxu0 %vm267_vm0, %v5500_v16 }
  0xc5   : > { %4920 = vmatprep.mubr.msk.f32.mxu1 %vm267_vm0, %v6836_v31 }
  0xc7   : > { %4973 = vmatmul.mubr.msk.f32.gmra.mxu0 %vm267_vm0, %v5514_v40 }
  0xc8   : > { %4921 = vmatmul.mubr.msk.f32.gmra.mxu1 %vm267_vm0, %v6837_v32  ;;  %4975 = vmatprep.mubr.msk.f32.mxu0 %vm267_vm0, %v5520_v42 }
  0xc9   : > { %4923 = vmatprep.mubr.msk.f32.mxu1 %vm267_vm0, %v6838_v33 }
  0xcb   : > { %4976 = vmatmul.mubr.msk.f32.gmra.mxu0 %vm267_vm0, %v5534_v46 }
  0xcc   : > { %4924 = vmatmul.mubr.msk.f32.gmra.mxu1 %vm267_vm0, %v6839_v34  ;;  %4978 = vmatprep.mubr.msk.f32.mxu0 %vm267_vm0, %v5540_v17 }
  0xcd   : > { %4926 = vmatprep.mubr.msk.f32.mxu1 %vm267_vm0, %v6840_v35 }
  0xcf   : > { %4979 = vmatmul.mubr.msk.f32.gmra.mxu0 %vm267_vm0, %v5554_v43 }
  0xd0   : > { %4927 = vmatmul.mubr.msk.f32.gmra.mxu1 %vm267_vm0, %v6841_v36  ;;  %4981 = vmatprep.mubr.msk.f32.mxu0 %vm267_vm0, %v5560_v6 }
  0xd1   : > { %4929 = vmatprep.mubr.msk.f32.mxu1 %vm267_vm0, %v6842_v37 }
  0xd3   : > { %v5919_v38 = vpop.f32.mrf.mxu0  ;;  %4982 = vmatmul.mubr.msk.f32.gmra.mxu0 %vm267_vm0, %v5574_v11  ;;  %v6849_v11 = vld [vmem:[#allocation26_spill] sm:$0xff] }
  0xd4   : > { %v5921_v39 = vpop.f32.mrf.mxu1  ;;  %4930 = vmatmul.mubr.msk.f32.gmra.mxu1 %vm267_vm0, %v6843_v44  ;;  %4984 = vmatprep.mubr.msk.f32.mxu0 %vm267_vm0, %v5580_v1 }
  0xd5   : > { %4932 = vmatprep.mubr.msk.f32.mxu1 %vm267_vm0, %v6844_v48  ;;  %v5931_v50 = vpop.f32.mrf.mxu0 }
  0xd6   : > { %v5933_v52 = vpop.f32.mrf.mxu1 }
  0xd7   : > { %v5935_v53 = vpop.f32.mrf.mxu0  ;;  %4985 = vmatmul.mubr.msk.f32.gmra.mxu0 %vm267_vm0, %v5594_v3  ;;  %v6848_v3 = vld [vmem:[#allocation25_spill] sm:$0xff] }
  0xd8   : > { %v5937_v54 = vpop.f32.mrf.mxu1  ;;  %4933 = vmatmul.mubr.msk.f32.gmra.mxu1 %vm267_vm0, %v6845_v56  ;;  %4987 = vmatprep.mubr.msk.f32.mxu0 %vm267_vm0, %v5600_v61 }
  0xd9   : > { %4935 = vmatprep.mubr.msk.f32.mxu1 %vm267_vm0, %v6846_v58  ;;  %v5947_v60 = vpop.f32.mrf.mxu0 }
  0xda   : > { %v5949_v62 = vpop.f32.mrf.mxu1 }
  0xdb   : > { %v5951_v0 = vpop.f32.mrf.mxu0  ;;  %4988 = vmatmul.mubr.msk.f32.gmra.mxu0 %vm267_vm0, %v5614_v63  ;;  %v6850_v63 = vld [vmem:[#allocation27_spill] sm:$0xff] }
  0xdc   : > { %v5953_v1 = vpop.f32.mrf.mxu1  ;;  %4936 = vmatmul.mubr.msk.f32.gmra.mxu1 %vm267_vm0, %v6847_v2  ;;  %4990 = vmatprep.mubr.msk.f32.mxu0 %vm267_vm0, %v5620_v57 }
  0xdd   : > { %4938 = vmatprep.mubr.msk.f32.mxu1 %vm267_vm0, %v6848_v3  ;;  %v5963_v61 = vpop.f32.mrf.mxu0 }
  0xde   : > { %v5965_v4 = vpop.f32.mrf.mxu1 }
  0xdf   : > { %v5967_v6 = vpop.f32.mrf.mxu0  ;;  %4991 = vmatmul.mubr.msk.f32.gmra.mxu0 %vm267_vm0, %v5634_v59  ;;  %v6852_v59 = vld [vmem:[#allocation29_spill] sm:$0xff] }
  0xe0   : > { %v5969_v10 = vpop.f32.mrf.mxu1  ;;  %4939 = vmatmul.mubr.msk.f32.gmra.mxu1 %vm267_vm0, %v6849_v11  ;;  %4993 = vmatprep.mubr.msk.f32.mxu0 %vm267_vm0, %v5640_v51 }
  0xe1   : > { %4941 = vmatprep.mubr.msk.f32.mxu1 %vm267_vm0, %v6850_v63  ;;  %v5979_v57 = vpop.f32.mrf.mxu0 }
  0xe2   : > { %v5981_v16 = vpop.f32.mrf.mxu1 }
  0xe3   : > { %v5983_v17 = vpop.f32.mrf.mxu0  ;;  %4994 = vmatmul.mubr.msk.f32.gmra.mxu0 %vm267_vm0, %v5654_v55  ;;  %v6853_v55 = vld [vmem:[#allocation30_spill] sm:$0xff] }
  0xe4   : > { %v5985_v40 = vpop.f32.mrf.mxu1  ;;  %4942 = vmatmul.mubr.msk.f32.gmra.mxu1 %vm267_vm0, %v6851_v41  ;;  %4996 = vmatprep.mubr.msk.f32.mxu0 %vm267_vm0, %v5660_v45 }
  0xe5   : > { %4944 = vmatprep.mubr.msk.f32.mxu1 %vm267_vm0, %v6852_v59  ;;  %v5995_v51 = vpop.f32.mrf.mxu0 }
  0xe6   : > { %v5997_v42 = vpop.f32.mrf.mxu1 }
  0xe7   : > { %v5999_v43 = vpop.f32.mrf.mxu0  ;;  %4997 = vmatmul.mubr.msk.f32.gmra.mxu0 %vm267_vm0, %v5674_v49  ;;  %v6031_v49 = vld [vmem:[%s5181_s28 + $0x18a] sm:$0xff] }
  0xe8   : > { %v6001_v46 = vpop.f32.mrf.mxu1  ;;  %4945 = vmatmul.mubr.msk.f32.gmra.mxu1 %vm267_vm0, %v5657_v47  ;;  %4999 = vmatprep.mubr.msk.f32.mxu0 %vm267_vm0, %v5820_v5  ;;  %v6855_v47 = vld [vmem:[#allocation31_spill] sm:$0xff]  ;;  %6856 = vst [vmem:[#allocation4_spill] sm:$0xff] %v6031_v49  ;;  %v4163_v5 = vld [vmem:[%s5181_s28 + $0x1a0] sm:$0xff] }
  0xe9   : > { %4947 = vmatprep.mubr.msk.f32.mxu1 %vm267_vm0, %v6853_v55  ;;  %v6011_v45 = vpop.f32.mrf.mxu0 }
  0xea   : > { %v6013_v8 = vpop.f32.mrf.mxu1 }
  0xeb   : > { %v6019_v19 = vpop.f32.mrf.mxu0  ;;  %5000 = vmatmul.mubr.msk.f32.gmra.mxu0 %vm267_vm0, %v5834_v13 }
  0xec   : > { %v6021_v20 = vpop.f32.mrf.mxu1  ;;  %4948 = vmatmul.mubr.msk.f32.gmra.mxu1 %vm267_vm0, %v6855_v47  ;;  %5002 = vmatprep.mubr.msk.f32.mxu0 %vm267_vm0, %v4162_v9  ;;  %v4200_v9 = vld [vmem:[%s5181_s28 + $0x49] sm:$0xff] }
  0xed   : > { %6854 = vst [vmem:[#allocation3_spill] sm:$0xff] %v6021_v20  ;;  %4950 = vmatprep.mubr.msk.f32.mxu1 %vm267_vm0, %v6016_v12  ;;  %v6034_v21 = vpop.f32.mrf.mxu0 }
  0xee   : > { %v6036_v22 = vpop.f32.mrf.mxu1 }
  0xef   : > { %6857 = vst [vmem:[#allocation5_spill] sm:$0xff] %v6036_v22  ;;  %v6038_v41 = vpop.f32.mrf.mxu0  ;;  %5003 = vmatmul.mubr.msk.f32.gmra.mxu0 %vm267_vm0, %v4163_v5 }
  0xf0   : > { %v6040_v59 = vpop.f32.mrf.mxu1  ;;  %4951 = vmatmul.mubr.msk.f32.gmra.mxu1 %vm267_vm0, %v6031_v49  ;;  %5061 = vmatprep.mubr.msk.f32.mxu0 %vm267_vm0, %v6828_v23 }
  0xf1   : > { %6858 = vst [vmem:[#allocation6_spill] sm:$0xff] %v6040_v59  ;;  %5009 = vmatprep.mubr.msk.f32.mxu1 %vm267_vm0, %v5220_v14  ;;  %v6049_v13 = vpop.f32.mrf.mxu0  ;;  %v4201_v14 = vld [vmem:[%s5181_s28 + $0x51] sm:$0xff]  ;;  %v4202_v59 = vld [vmem:[%s5181_s28 + $0x61] sm:$0xff] }
  0xf2   : > { %v6051_v55 = vpop.f32.mrf.mxu1 }
  0xf3   : > { %6859 = vst [vmem:[#allocation7_spill] sm:$0xff] %v6051_v55  ;;  %v4751_v22 = vpop.f32.mrf.mxu0  ;;  %5062 = vmatmul.mubr.msk.f32.vlgmr.msra.gmra.mxu0 %vm267_vm0, %v6829_v24 }
  0xf4   : > { %v4699_v47 = vpop.f32.mrf.mxu1  ;;  %5010 = vmatmul.mubr.msk.f32.vlgmr.msra.gmra.mxu1 %vm267_vm0, %v5244_v18  ;;  %5064 = vmatprep.mubr.msk.f32.mxu0 %vm267_vm0, %v6830_v25 }
  0xf5   : > { %v757_v5 = vadd.f32 %v4699_v47, %v5919_v38  ;;  %5012 = vmatprep.mubr.msk.f32.mxu1 %vm267_vm0, %v4200_v9  ;;  %v1107_v55 = vpop.f32.mrf.mxu0  ;;  %v4203_v38 = vld [vmem:[%s5181_s28 + $0x69] sm:$0xff]  ;;  %v4204_v9 = vld [vmem:[%s5181_s28 + $0x79] sm:$0xff] }
  0xf6   : > { %v751_v23 = vpop.f32.mrf.mxu1 }
  0xf7   : > { %v6064_v20 = vadd.f32 %v4751_v22, %v757_v5  ;;  %v752_v18 = vadd.f32 %v751_v23, %v5931_v50  ;;  %v4754_v15 = vpop.f32.mrf.mxu0  ;;  %5065 = vmatmul.mubr.msk.f32.gmra.mxu0 %vm267_vm0, %v6831_v26 }
  0xf8   : > { %v4702_v49 = vpop.f32.mrf.mxu1  ;;  %5013 = vmatmul.mubr.msk.f32.gmra.mxu1 %vm267_vm0, %v4201_v14  ;;  %5067 = vmatprep.mubr.msk.f32.mxu0 %vm267_vm0, %v6832_v27 }
  0xf9   : > { %v6070_v24 = vadd.f32 %v1107_v55, %v752_v18  ;;  %v767_v25 = vadd.f32 %v4702_v49, %v5935_v53  ;;  %5015 = vmatprep.mubr.msk.f32.mxu1 %vm267_vm0, %v4202_v59  ;;  %v1117_v50 = vpop.f32.mrf.mxu0  ;;  %v4206_v59 = vld [vmem:[%s5181_s28 + $0x91] sm:$0xff] }
  0xfa   : > { %v761_v22 = vpop.f32.mrf.mxu1 }
  0xfb   : > { %v6078_v47 = vadd.f32 %v4754_v15, %v767_v25  ;;  %v762_v5 = vadd.f32 %v761_v22, %v5947_v60  ;;  %v4757_v55 = vpop.f32.mrf.mxu0  ;;  %5068 = vmatmul.mubr.msk.f32.gmra.mxu0 %vm267_vm0, %v6833_v28  ;;  %v4205_v15 = vld [vmem:[%s5181_s28 + $0x81] sm:$0xff]  ;;  %v4207_v25 = vld [vmem:[%s5181_s28 + $0x99] sm:$0xff]  ;;  %v4208_v22 = vld [vmem:[%s5181_s28 + $0xa9] sm:$0xff] }
  0xfc   : > { %v4705_v26 = vpop.f32.mrf.mxu1  ;;  %5016 = vmatmul.mubr.msk.f32.gmra.mxu1 %vm267_vm0, %v4203_v38  ;;  %5070 = vmatprep.mubr.msk.f32.mxu0 %vm267_vm0, %v6834_v29 }
  0xfd   : > { %v6084_v53 = vadd.f32 %v1117_v50, %v762_v5  ;;  %v777_v27 = vadd.f32 %v4705_v26, %v5951_v0  ;;  %5018 = vmatprep.mubr.msk.f32.mxu1 %vm267_vm0, %v4204_v9  ;;  %v1127_v60 = vpop.f32.mrf.mxu0  ;;  %v4209_v26 = vld [vmem:[%s5181_s28 + $0xb1] sm:$0xff] }
  0xfe   : > { %v771_v49 = vpop.f32.mrf.mxu1 }
  0xff   : > { %v6092_v14 = vadd.f32 %v4757_v55, %v777_v27  ;;  %v772_v23 = vadd.f32 %v771_v49, %v5963_v61  ;;  %v4760_v18 = vpop.f32.mrf.mxu0  ;;  %5071 = vmatmul.mubr.msk.f32.gmra.mxu0 %vm267_vm0, %v6835_v30  ;;  %v4210_v27 = vld [vmem:[%s5181_s28 + $0xc1] sm:$0xff] }
 0x100   : > { %v4708_v28 = vpop.f32.mrf.mxu1  ;;  %5019 = vmatmul.mubr.msk.f32.gmra.mxu1 %vm267_vm0, %v4205_v15  ;;  %5073 = vmatprep.mubr.msk.f32.mxu0 %vm267_vm0, %v6836_v31 }
 0x101   : > { %v6098_v0 = vadd.f32 %v1127_v60, %v772_v23  ;;  %v787_v29 = vadd.f32 %v4708_v28, %v5967_v6  ;;  %5021 = vmatprep.mubr.msk.f32.mxu1 %vm267_vm0, %v4206_v59  ;;  %v1137_v61 = vpop.f32.mrf.mxu0  ;;  %v4211_v59 = vld [vmem:[%s5181_s28 + $0xc9] sm:$0xff]  ;;  %v4212_v28 = vld [vmem:[%s5181_s28 + $0xd9] sm:$0xff] }
 0x102   : > { %v781_v38 = vpop.f32.mrf.mxu1 }
 0x103   : > { %v6106_v50 = vadd.f32 %v4760_v18, %v787_v29  ;;  %v782_v9 = vadd.f32 %v781_v38, %v5979_v57  ;;  %v4763_v5 = vpop.f32.mrf.mxu0  ;;  %5074 = vmatmul.mubr.msk.f32.gmra.mxu0 %vm267_vm0, %v6837_v32  ;;  %v4213_v38 = vld [vmem:[%s5181_s28 + $0xe1] sm:$0xff] }
 0x104   : > { %v4711_v30 = vpop.f32.mrf.mxu1  ;;  %5022 = vmatmul.mubr.msk.f32.gmra.mxu1 %vm267_vm0, %v4207_v25  ;;  %5076 = vmatprep.mubr.msk.f32.mxu0 %vm267_vm0, %v6838_v33 }
 0x105   : > { %v6112_v6 = vadd.f32 %v1137_v61, %v782_v9  ;;  %v797_v31 = vadd.f32 %v4711_v30, %v5983_v17  ;;  %5024 = vmatprep.mubr.msk.f32.mxu1 %vm267_vm0, %v4208_v22  ;;  %v1147_v57 = vpop.f32.mrf.mxu0  ;;  %v4214_v22 = vld [vmem:[%s5181_s28 + $0xf1] sm:$0xff] }
 0x106   : > { %v791_v55 = vpop.f32.mrf.mxu1 }
 0x107   : > { %v6120_v15 = vadd.f32 %v4763_v5, %v797_v31  ;;  %v792_v49 = vadd.f32 %v791_v55, %v5995_v51  ;;  %v4766_v60 = vpop.f32.mrf.mxu0  ;;  %5077 = vmatmul.mubr.msk.f32.gmra.mxu0 %vm267_vm0, %v6839_v34  ;;  %v4215_v31 = vld [vmem:[%s5181_s28 + $0xf9] sm:$0xff]  ;;  %v4216_v55 = vld [vmem:[%s5181_s28 + $0x109] sm:$0xff] }
 0x108   : > { %v4714_v32 = vpop.f32.mrf.mxu1  ;;  %5025 = vmatmul.mubr.msk.f32.gmra.mxu1 %vm267_vm0, %v4209_v26  ;;  %5079 = vmatprep.mubr.msk.f32.mxu0 %vm267_vm0, %v6840_v35 }
 0x109   : > { %v6126_v17 = vadd.f32 %v1147_v57, %v792_v49  ;;  %v807_v33 = vadd.f32 %v4714_v32, %v5999_v43  ;;  %5027 = vmatprep.mubr.msk.f32.mxu1 %vm267_vm0, %v4210_v27  ;;  %v1157_v51 = vpop.f32.mrf.mxu0  ;;  %v4217_v32 = vld [vmem:[%s5181_s28 + $0x111] sm:$0xff] }
 0x10a   : > { %v801_v23 = vpop.f32.mrf.mxu1 }
 0x10b   : > { %v6134_v18 = vadd.f32 %v4766_v60, %v807_v33  ;;  %v802_v29 = vadd.f32 %v801_v23, %v6011_v45  ;;  %v4769_v25 = vpop.f32.mrf.mxu0  ;;  %5080 = vmatmul.mubr.msk.f32.gmra.mxu0 %vm267_vm0, %v6841_v36  ;;  %v4218_v33 = vld [vmem:[%s5181_s28 + $0x121] sm:$0xff] }
 0x10c   : > { %v4717_v34 = vpop.f32.mrf.mxu1  ;;  %5028 = vmatmul.mubr.msk.f32.gmra.mxu1 %vm267_vm0, %v4211_v59  ;;  %5082 = vmatprep.mubr.msk.f32.mxu0 %vm267_vm0, %v6842_v37 }
 0x10d   : > { %v6140_v43 = vadd.f32 %v1157_v51, %v802_v29  ;;  %v817_v35 = vadd.f32 %v4717_v34, %v6019_v19  ;;  %5030 = vmatprep.mubr.msk.f32.mxu1 %vm267_vm0, %v4212_v28  ;;  %v1167_v45 = vpop.f32.mrf.mxu0  ;;  %v4219_v28 = vld [vmem:[%s5181_s28 + $0x129] sm:$0xff]  ;;  %v4220_v34 = vld [vmem:[%s5181_s28 + $0x139] sm:$0xff] }
 0x10e   : > { %v811_v61 = vpop.f32.mrf.mxu1 }
 0x10f   : > { %v6148_v9 = vadd.f32 %v4769_v25, %v817_v35  ;;  %v812_v30 = vadd.f32 %v811_v61, %v6034_v21  ;;  %v4772_v5 = vpop.f32.mrf.mxu0  ;;  %5083 = vmatmul.mubr.msk.f32.gmra.mxu0 %vm267_vm0, %v6843_v44  ;;  %v4221_v61 = vld [vmem:[%s5181_s28 + $0x141] sm:$0xff] }
 0x110   : > { %v4720_v36 = vpop.f32.mrf.mxu1  ;;  %5031 = vmatmul.mubr.msk.f32.gmra.mxu1 %vm267_vm0, %v4213_v38  ;;  %5085 = vmatprep.mubr.msk.f32.mxu0 %vm267_vm0, %v6844_v48 }
 0x111   : > { %v6154_v19 = vadd.f32 %v1167_v45, %v812_v30  ;;  %v827_v37 = vadd.f32 %v4720_v36, %v6038_v41  ;;  %5033 = vmatprep.mubr.msk.f32.mxu1 %vm267_vm0, %v4214_v22  ;;  %v1177_v21 = vpop.f32.mrf.mxu0  ;;  %v4287_v45 = vld [vmem:[%s5181_s28 + $0x142] sm:$0xff]  ;;  %v4222_v30 = vld [vmem:[%s5181_s28 + $0x151] sm:$0xff] }
 0x112   : > { %v821_v26 = vpop.f32.mrf.mxu1  ;;  %v4288_v36 = vld [vmem:[%s5181_s28 + $0x152] sm:$0xff] }
 0x113   : > { %v6162_v57 = vadd.f32 %v4772_v5, %v827_v37  ;;  %v822_v27 = vadd.f32 %v821_v26, %v6049_v13  ;;  %v4775_v49 = vpop.f32.mrf.mxu0  ;;  %5086 = vmatmul.mubr.msk.f32.gmra.mxu0 %vm267_vm0, %v6845_v56  ;;  %v4223_v26 = vld [vmem:[%s5181_s28 + $0x159] sm:$0xff] }
 0x114   : > { %v4723_v44 = vpop.f32.mrf.mxu1  ;;  %5034 = vmatmul.mubr.msk.f32.gmra.mxu1 %vm267_vm0, %v4215_v31  ;;  %5088 = vmatprep.mubr.msk.f32.mxu0 %vm267_vm0, %v6846_v58 }
 0x115   : > { %v6168_v41 = vadd.f32 %v1177_v21, %v822_v27  ;;  %v837_v48 = vadd.f32 %v4723_v44, %v5921_v39  ;;  %5036 = vmatprep.mubr.msk.f32.mxu1 %vm267_vm0, %v4216_v55  ;;  %v1187_v13 = vpop.f32.mrf.mxu0  ;;  %v4289_v21 = vld [vmem:[%s5181_s28 + $0x15a] sm:$0xff]  ;;  %v4224_v27 = vld [vmem:[%s5181_s28 + $0x169] sm:$0xff] }
 0x116   : > { %v831_v60 = vpop.f32.mrf.mxu1  ;;  %v4290_v44 = vld [vmem:[%s5181_s28 + $0x16a] sm:$0xff] }
 0x117   : > { %v6176_v59 = vadd.f32 %v4775_v49, %v837_v48  ;;  %v832_v23 = vadd.f32 %v831_v60, %v5933_v52  ;;  %v4778_v51 = vpop.f32.mrf.mxu0  ;;  %5089 = vmatmul.mubr.msk.f32.gmra.mxu0 %vm267_vm0, %v6847_v2 }
 0x118   : > { %v4726_v56 = vpop.f32.mrf.mxu1  ;;  %5037 = vmatmul.mubr.msk.f32.gmra.mxu1 %vm267_vm0, %v4217_v32  ;;  %5091 = vmatprep.mubr.msk.f32.mxu0 %vm267_vm0, %v6848_v3 }
 0x119   : > { %v6182_v39 = vadd.f32 %v1187_v13, %v832_v23  ;;  %v847_v58 = vadd.f32 %v4726_v56, %v5937_v54  ;;  %5039 = vmatprep.mubr.msk.f32.mxu1 %vm267_vm0, %v4218_v33  ;;  %v1197_v29 = vpop.f32.mrf.mxu0  ;;  %v4225_v33 = vld [vmem:[%s5181_s28 + $0x171] sm:$0xff] }
 0x11a   : > { %v841_v52 = vpop.f32.mrf.mxu1  ;;  %v4291_v23 = vld [vmem:[%s5181_s28 + $0x172] sm:$0xff] }
 0x11b   : > { %v6190_v25 = vadd.f32 %v4778_v51, %v847_v58  ;;  %v842_v2 = vadd.f32 %v841_v52, %v5949_v62  ;;  %v4781_v38 = vpop.f32.mrf.mxu0  ;;  %5092 = vmatmul.mubr.msk.f32.gmra.mxu0 %vm267_vm0, %v6849_v11 }
 0x11c   : > { %v4729_v35 = vpop.f32.mrf.mxu1  ;;  %5040 = vmatmul.mubr.msk.f32.gmra.mxu1 %vm267_vm0, %v4219_v28  ;;  %5094 = vmatprep.mubr.msk.f32.mxu0 %vm267_vm0, %v6850_v63 }
 0x11d   : > { %v6196_v54 = vadd.f32 %v1197_v29, %v842_v2  ;;  %v857_v3 = vadd.f32 %v4729_v35, %v5953_v1  ;;  %5042 = vmatprep.mubr.msk.f32.mxu1 %vm267_vm0, %v4220_v34  ;;  %v1207_v22 = vpop.f32.mrf.mxu0  ;;  %v4228_v2 = vld [vmem:[%s5181_s28 + $0x199] sm:$0xff] }
 0x11e   : > { %v851_v62 = vpop.f32.mrf.mxu1  ;;  %v4294_v35 = vld [vmem:[%s5181_s28 + $0x19a] sm:$0xff] }
 0x11f   : > { %v6206_v11 = vadd.f32 %v4781_v38, %v857_v3  ;;  %v852_v5 = vadd.f32 %v851_v62, %v5965_v4  ;;  %v4784_v37 = vpop.f32.mrf.mxu0  ;;  %5095 = vmatmul.mubr.msk.f32.gmra.mxu0 %vm267_vm0, %v4287_v45  ;;  %v6860_v62 = vld [vmem:[#allocation2_spill] sm:$0xff] }
 0x120   : > { %v4732_v1 = vpop.f32.mrf.mxu1  ;;  %5043 = vmatmul.mubr.msk.f32.gmra.mxu1 %vm267_vm0, %v4221_v61  ;;  %5097 = vmatprep.mubr.msk.f32.mxu0 %vm267_vm0, %v4288_v36  ;;  %v4295_v36 = vld [vmem:[%s5181_s28 + $0x1a2] sm:$0xff] }
 0x121   : > { %v6211_v63 = vadd.f32 %v1207_v22, %v852_v5  ;;  %v867_v31 = vadd.f32 %v4732_v1, %v5969_v10  ;;  %5045 = vmatprep.mubr.msk.f32.mxu1 %vm267_vm0, %v4222_v30  ;;  %v1217_v4 = vpop.f32.mrf.mxu0  ;;  %v4229_v30 = vld [vmem:[%s5181_s28 + $0x1a1] sm:$0xff] }
 0x122   : > { %v861_v55 = vpop.f32.mrf.mxu1 }
 0x123   : > { %v6220_v49 = vadd.f32 %v4784_v37, %v867_v31  ;;  %v862_v48 = vadd.f32 %v861_v55, %v5981_v16  ;;  %v4787_v60 = vpop.f32.mrf.mxu0  ;;  %5098 = vmatmul.mubr.msk.f32.gmra.mxu0 %vm267_vm0, %v4289_v21  ;;  %v6863_v37 = vld [vmem:[#allocation5_spill] sm:$0xff] }
 0x124   : > { %v4735_v32 = vpop.f32.mrf.mxu1  ;;  %5046 = vmatmul.mubr.msk.f32.gmra.mxu1 %vm267_vm0, %v4223_v26  ;;  %5100 = vmatprep.mubr.msk.f32.mxu0 %vm267_vm0, %v4290_v44 }
 0x125   : > { %v6225_v10 = vadd.f32 %v1217_v4, %v862_v48  ;;  %v877_v13 = vadd.f32 %v4735_v32, %v5985_v40  ;;  %5048 = vmatprep.mubr.msk.f32.mxu1 %vm267_vm0, %v4224_v27  ;;  %v1227_v16 = vpop.f32.mrf.mxu0  ;;  %v6864_v4 = vld [vmem:[#allocation6_spill] sm:$0xff] }
 0x126   : > { %v871_v56 = vpop.f32.mrf.mxu1 }
 0x127   : > { %v6232_v51 = vadd.f32 %v4787_v60, %v877_v13  ;;  %v872_v58 = vadd.f32 %v871_v56, %v5997_v42  ;;  %v4790_v52 = vpop.f32.mrf.mxu0  ;;  %5101 = vmatmul.mubr.msk.f32.gmra.mxu0 %vm267_vm0, %v4291_v23  ;;  %v6865_v60 = vld [vmem:[#allocation7_spill] sm:$0xff] }
 0x128   : > { %v4738_v28 = vpop.f32.mrf.mxu1  ;;  %5049 = vmatmul.mubr.msk.f32.gmra.mxu1 %vm267_vm0, %v4225_v33  ;;  %5103 = vmatprep.mubr.msk.f32.mxu0 %vm267_vm0, %v6016_v12  ;;  %v6862_v12 = vld [vmem:[#allocation3_spill] sm:$0xff] }
 0x129   : > { %v6237_v40 = vadd.f32 %v1227_v16, %v872_v58  ;;  %v887_v29 = vadd.f32 %v4738_v28, %v6001_v46  ;;  %5051 = vmatprep.mubr.msk.f32.mxu1 %vm267_vm0, %v5823_v7  ;;  %v1237_v42 = vpop.f32.mrf.mxu0  ;;  %v6861_v46 = vld [vmem:[#allocation4_spill] sm:$0xff] }
 0x12a   : > { %v881_v34 = vpop.f32.mrf.mxu1 }
 0x12b   : > { %v6246_v38 = vadd.f32 %v4790_v52, %v887_v29  ;;  %v882_v3 = vadd.f32 %v881_v34, %v6013_v8  ;;  %v4793_v45 = vpop.f32.mrf.mxu0  ;;  %5104 = vmatmul.mubr.msk.f32.gmra.mxu0 %vm267_vm0, %v6861_v46 }
 0x12c   : > { %v4741_v61 = vpop.f32.mrf.mxu1  ;;  %5052 = vmatmul.mubr.msk.f32.gmra.mxu1 %vm267_vm0, %v6860_v62  ;;  %5106 = vmatprep.mubr.msk.f32.mxu0 %vm267_vm0, %v4294_v35 }
 0x12d   : > { %v6253_v7 = vadd.f32 %v1237_v42, %v882_v3  ;;  %v897_v22 = vadd.f32 %v4741_v61, %v6862_v12  ;;  %5054 = vmatprep.mubr.msk.f32.mxu1 %vm267_vm0, %v4228_v2  ;;  %v1247_v8 = vpop.f32.mrf.mxu0 }
 0x12e   : > { %v891_v5 = vpop.f32.mrf.mxu1 }
 0x12f   : > { %v6260_v1 = vadd.f32 %v4793_v45, %v897_v22  ;;  %v892_v31 = vadd.f32 %v891_v5, %v6863_v37  ;;  %v4796_v21 = vpop.f32.mrf.mxu0  ;;  %5107 = vmatmul.mubr.msk.f32.gmra.mxu0 %vm267_vm0, %v4295_v36 }
 0x130   : > { %v4744_v26 = vpop.f32.mrf.mxu1  ;;  %5055 = vmatmul.mubr.msk.f32.gmra.mxu1 %vm267_vm0, %v4229_v30 }
 0x131   : > { %v6265_v55 = vadd.f32 %v1247_v8, %v892_v31  ;;  %v907_v27 = vadd.f32 %v4744_v26, %v6864_v4  ;;  %v1257_v48 = vpop.f32.mrf.mxu0 }
 0x132   : > { %v901_v44 = vpop.f32.mrf.mxu1 }
 0x133   : > { %v6268_v32 = vadd.f32 %v4796_v21, %v907_v27  ;;  %v902_v13 = vadd.f32 %v901_v44, %v6865_v60  ;;  %v4855_v23 = vpop.f32.mrf.mxu0 }
 0x134   : > { %v4803_v33 = vpop.f32.mrf.mxu1 }
 0x135   : > { %v6271_v56 = vadd.f32 %v1257_v48, %v902_v13  ;;  %v1656_v16 = vadd.f32 %v4803_v33, %v6064_v20  ;;  %v1884_v28 = vpop.f32.mrf.mxu0 }
 0x136   : > { %v1496_v58 = vpop.f32.mrf.mxu1 }
 0x137   : > { %v6274_v52 = vadd.f32 %v4855_v23, %v1656_v16  ;;  %v1655_v29 = vadd.f32 %v1496_v58, %v6070_v24  ;;  %v4858_v42 = vpop.f32.mrf.mxu0 }
 0x138   : > { %v4806_v34 = vpop.f32.mrf.mxu1 }
 0x139   : > { %v6277_v2 = vadd.f32 %v1884_v28, %v1655_v29  ;;  %v1658_v35 = vadd.f32 %v4806_v34, %v6078_v47  ;;  %v1894_v61 = vpop.f32.mrf.mxu0 }
 0x13a   : > { %v1506_v3 = vpop.f32.mrf.mxu1 }
 0x13b   : > { %v6280_v45 = vadd.f32 %v4858_v42, %v1658_v35  ;;  %v1657_v62 = vadd.f32 %v1506_v3, %v6084_v53  ;;  %v4861_v20 = vpop.f32.mrf.mxu0 }
 0x13c   : > { %v4809_v46 = vpop.f32.mrf.mxu1 }
 0x13d   : > { %v6283_v12 = vadd.f32 %v1894_v61, %v1657_v62  ;;  %v1660_v22 = vadd.f32 %v4809_v46, %v6092_v14  ;;  %v1904_v24 = vpop.f32.mrf.mxu0 }
 0x13e   : > { %v1516_v30 = vpop.f32.mrf.mxu1 }
 0x13f   : > { %v6286_v36 = vadd.f32 %v4861_v20, %v1660_v22  ;;  %v1659_v5 = vadd.f32 %v1516_v30, %v6098_v0  ;;  %v4864_v47 = vpop.f32.mrf.mxu0 }
 0x140   : > { %v4812_v8 = vpop.f32.mrf.mxu1 }
 0x141   : > { %v6289_v37 = vadd.f32 %v1904_v24, %v1659_v5  ;;  %v1662_v31 = vadd.f32 %v4812_v8, %v6106_v50  ;;  %v1914_v53 = vpop.f32.mrf.mxu0 }
 0x142   : > { %v1526_v26 = vpop.f32.mrf.mxu1 }
 0x143   : > { %v6292_v21 = vadd.f32 %v4864_v47, %v1662_v31  ;;  %v1661_v4 = vadd.f32 %v1526_v26, %v6112_v6  ;;  %v4867_v14 = vpop.f32.mrf.mxu0 }
 0x144   : > { %v4815_v27 = vpop.f32.mrf.mxu1 }
 0x145   : > { %v6295_v44 = vadd.f32 %v1914_v53, %v1661_v4  ;;  %v1664_v48 = vadd.f32 %v4815_v27, %v6120_v15  ;;  %v1924_v0 = vpop.f32.mrf.mxu0 }
 0x146   : > { %v1536_v60 = vpop.f32.mrf.mxu1 }
 0x147   : > { %v6298_v13 = vadd.f32 %v4867_v14, %v1664_v48  ;;  %v1663_v33 = vadd.f32 %v1536_v60, %v6126_v17  ;;  %v4870_v50 = vpop.f32.mrf.mxu0 }
 0x148   : > { %v4818_v23 = vpop.f32.mrf.mxu1 }
 0x149   : > { %v6301_v16 = vadd.f32 %v1924_v0, %v1663_v33  ;;  %v1666_v58 = vadd.f32 %v4818_v23, %v6134_v18  ;;  %v1934_v6 = vpop.f32.mrf.mxu0 }
 0x14a   : > { %v1546_v28 = vpop.f32.mrf.mxu1 }
 0x14b   : > { %v6304_v29 = vadd.f32 %v4870_v50, %v1666_v58  ;;  %v1665_v34 = vadd.f32 %v1546_v28, %v6140_v43  ;;  %v4873_v15 = vpop.f32.mrf.mxu0 }
 0x14c   : > { %v4821_v42 = vpop.f32.mrf.mxu1 }
 0x14d   : > { %v6307_v35 = vadd.f32 %v1934_v6, %v1665_v34  ;;  %v1668_v3 = vadd.f32 %v4821_v42, %v6148_v9  ;;  %v1944_v17 = vpop.f32.mrf.mxu0 }
 0x14e   : > { %v1556_v61 = vpop.f32.mrf.mxu1 }
 0x14f   : > { %v6310_v62 = vadd.f32 %v4873_v15, %v1668_v3  ;;  %v1667_v46 = vadd.f32 %v1556_v61, %v6154_v19  ;;  %v4876_v18 = vpop.f32.mrf.mxu0 }
 0x150   : > { %v4824_v20 = vpop.f32.mrf.mxu1 }
 0x151   : > { %v6313_v22 = vadd.f32 %v1944_v17, %v1667_v46  ;;  %v1670_v30 = vadd.f32 %v4824_v20, %v6162_v57  ;;  %v1954_v43 = vpop.f32.mrf.mxu0 }
 0x152   : > { %v1566_v24 = vpop.f32.mrf.mxu1 }
 0x153   : > { %v6316_v5 = vadd.f32 %v4876_v18, %v1670_v30  ;;  %v1669_v8 = vadd.f32 %v1566_v24, %v6168_v41  ;;  %v4879_v9 = vpop.f32.mrf.mxu0 }
 0x154   : > { %v4827_v47 = vpop.f32.mrf.mxu1 }
 0x155   : > { %v6319_v31 = vadd.f32 %v1954_v43, %v1669_v8  ;;  %v1672_v26 = vadd.f32 %v4827_v47, %v6176_v59  ;;  %v1964_v19 = vpop.f32.mrf.mxu0 }
 0x156   : > { %v1576_v53 = vpop.f32.mrf.mxu1 }
 0x157   : > { %v6322_v4 = vadd.f32 %v4879_v9, %v1672_v26  ;;  %v1671_v27 = vadd.f32 %v1576_v53, %v6182_v39  ;;  %v4882_v57 = vpop.f32.mrf.mxu0 }
 0x158   : > { %v4830_v14 = vpop.f32.mrf.mxu1 }
 0x159   : > { %v6325_v48 = vadd.f32 %v1964_v19, %v1671_v27  ;;  %v1674_v60 = vadd.f32 %v4830_v14, %v6190_v25  ;;  %v1974_v41 = vpop.f32.mrf.mxu0 }
 0x15a   : > { %v1586_v0 = vpop.f32.mrf.mxu1 }
 0x15b   : > { %v6328_v33 = vadd.f32 %v4882_v57, %v1674_v60  ;;  %v1673_v23 = vadd.f32 %v1586_v0, %v6196_v54  ;;  %v4885_v59 = vpop.f32.mrf.mxu0 }
 0x15c   : > { %v4833_v50 = vpop.f32.mrf.mxu1 }
 0x15d   : > { %6866 = vst [vmem:[#allocation8_spill] sm:$0xff] %v6328_v33  ;;  %v6331_v58 = vadd.f32 %v1974_v41, %v1673_v23  ;;  %v1676_v28 = vadd.f32 %v4833_v50, %v6206_v11  ;;  %v1984_v39 = vpop.f32.mrf.mxu0 }
 0x15e   : > { %v1596_v6 = vpop.f32.mrf.mxu1 }
 0x15f   : > { %6867 = vst [vmem:[#allocation9_spill] sm:$0xff] %v6331_v58  ;;  %v6334_v34 = vadd.f32 %v4885_v59, %v1676_v28  ;;  %v1675_v42 = vadd.f32 %v1596_v6, %v6211_v63  ;;  %v4888_v25 = vpop.f32.mrf.mxu0 }
 0x160   : > { %v4836_v15 = vpop.f32.mrf.mxu1 }
 0x161   : > { %6868 = vst [vmem:[#allocation10_spill] sm:$0xff] %v6334_v34  ;;  %v6337_v3 = vadd.f32 %v1984_v39, %v1675_v42  ;;  %v1678_v61 = vadd.f32 %v4836_v15, %v6220_v49  ;;  %v1994_v54 = vpop.f32.mrf.mxu0 }
 0x162   : > { %v1606_v17 = vpop.f32.mrf.mxu1 }
 0x163   : > { %6869 = vst [vmem:[#allocation11_spill] sm:$0xff] %v6337_v3  ;;  %v6340_v46 = vadd.f32 %v4888_v25, %v1678_v61  ;;  %v1677_v20 = vadd.f32 %v1606_v17, %v6225_v10  ;;  %v4891_v11 = vpop.f32.mrf.mxu0 }
 0x164   : > { %v4839_v18 = vpop.f32.mrf.mxu1 }
 0x165   : > { %6870 = vst [vmem:[#allocation12_spill] sm:$0xff] %v6340_v46  ;;  %v6343_v30 = vadd.f32 %v1994_v54, %v1677_v20  ;;  %v1680_v24 = vadd.f32 %v4839_v18, %v6232_v51  ;;  %v2004_v63 = vpop.f32.mrf.mxu0 }
 0x166   : > { %v1616_v43 = vpop.f32.mrf.mxu1 }
 0x167   : > { %6871 = vst [vmem:[#allocation13_spill] sm:$0xff] %v6343_v30  ;;  %v6346_v8 = vadd.f32 %v4891_v11, %v1680_v24  ;;  %v1679_v47 = vadd.f32 %v1616_v43, %v6237_v40  ;;  %v4894_v49 = vpop.f32.mrf.mxu0 }
 0x168   : > { %v4842_v9 = vpop.f32.mrf.mxu1 }
 0x169   : > { %6872 = vst [vmem:[#allocation14_spill] sm:$0xff] %v6346_v8  ;;  %v6349_v26 = vadd.f32 %v2004_v63, %v1679_v47  ;;  %v1682_v53 = vadd.f32 %v4842_v9, %v6246_v38  ;;  %v2014_v10 = vpop.f32.mrf.mxu0 }
 0x16a   : > { %v1626_v19 = vpop.f32.mrf.mxu1 }
 0x16b   : > { %6873 = vst [vmem:[#allocation15_spill] sm:$0xff] %v6349_v26  ;;  %v6352_v27 = vadd.f32 %v4894_v49, %v1682_v53  ;;  %v1681_v14 = vadd.f32 %v1626_v19, %v6253_v7  ;;  %v4897_v51 = vpop.f32.mrf.mxu0 }
 0x16c   : > { %v4845_v57 = vpop.f32.mrf.mxu1 }
 0x16d   : > { %6874 = vst [vmem:[#allocation16_spill] sm:$0xff] %v6352_v27  ;;  %v6355_v60 = vadd.f32 %v2014_v10, %v1681_v14  ;;  %v1684_v0 = vadd.f32 %v4845_v57, %v6260_v1  ;;  %v2024_v40 = vpop.f32.mrf.mxu0 }
 0x16e   : > { %v1636_v41 = vpop.f32.mrf.mxu1 }
 0x16f   : > { %6875 = vst [vmem:[#allocation17_spill] sm:$0xff] %v6355_v60  ;;  %v6358_v23 = vadd.f32 %v4897_v51, %v1684_v0  ;;  %v1683_v50 = vadd.f32 %v1636_v41, %v6265_v55  ;;  %v4900_v38 = vpop.f32.mrf.mxu0 }
 0x170   : > { %v4848_v59 = vpop.f32.mrf.mxu1 }
 0x171   : > { %6876 = vst [vmem:[#allocation18_spill] sm:$0xff] %v6358_v23  ;;  %v6361_v28 = vadd.f32 %v2024_v40, %v1683_v50  ;;  %v1686_v6 = vadd.f32 %v4848_v59, %v6268_v32  ;;  %v2034_v7 = vpop.f32.mrf.mxu0 }
 0x172   : > { %v1646_v39 = vpop.f32.mrf.mxu1 }
 0x173   : > { %6877 = vst [vmem:[#allocation19_spill] sm:$0xff] %v6361_v28  ;;  %v6364_v42 = vadd.f32 %v4900_v38, %v1686_v6  ;;  %v1685_v15 = vadd.f32 %v1646_v39, %v6271_v56  ;;  %v6367_v1 = vpop.f32.mrf.mxu0 }
 0x174   : > { %v4907_v25 = vpop.f32.mrf.mxu1 }
 0x175   : > { %6878 = vst [vmem:[#allocation20_spill] sm:$0xff] %v6364_v42  ;;  %v6369_v61 = vadd.f32 %v2034_v7, %v1685_v15  ;;  %v6371_v54 = vpop.f32.mrf.mxu0 }
 0x176   : > { %v2272_v17 = vpop.f32.mrf.mxu1 }
 0x177   : > { %6879 = vst [vmem:[#allocation21_spill] sm:$0xff] %v6369_v61  ;;  %v6375_v20 = vpop.f32.mrf.mxu0 }
 0x178   : > { %v6373_v55 = vpop.f32.mrf.mxu1 }
 0x179   : > { %v6379_v32 = vpop.f32.mrf.mxu0 }
 0x17a   : > { %v6377_v18 = vpop.f32.mrf.mxu1 }
 0x17b   : > { %v6383_v24 = vpop.f32.mrf.mxu0 }
 0x17c   : > { %v6381_v11 = vpop.f32.mrf.mxu1 }
 0x17d   : > { %v6387_v43 = vpop.f32.mrf.mxu0 }
 0x17e   : > { %v6385_v56 = vpop.f32.mrf.mxu1 }
 0x17f   : > { %v6391_v47 = vpop.f32.mrf.mxu0 }
 0x180   : > { %v6389_v63 = vpop.f32.mrf.mxu1 }
 0x181   : > { %v6395_v49 = vpop.f32.mrf.mxu0 }
 0x182   : > { %v6393_v9 = vpop.f32.mrf.mxu1 }
 0x183   : > { %v6399_v19 = vpop.f32.mrf.mxu0 }
 0x184   : > { %v6397_v53 = vpop.f32.mrf.mxu1 }
 0x185   : > { %v6403_v14 = vpop.f32.mrf.mxu0 }
 0x186   : > { %v6401_v10 = vpop.f32.mrf.mxu1 }
 0x187   : > { %v6407_v51 = vpop.f32.mrf.mxu0 }
 0x188   : > { %v6405_v57 = vpop.f32.mrf.mxu1 }
 0x189   : > { %v6411_v41 = vpop.f32.mrf.mxu0 }
 0x18a   : > { %v6409_v0 = vpop.f32.mrf.mxu1 }
 0x18b   : > { %v6415_v50 = vpop.f32.mrf.mxu0 }
 0x18c   : > { %v6413_v40 = vpop.f32.mrf.mxu1 }
 0x18d   : > { %v6419_v38 = vpop.f32.mrf.mxu0 }
 0x18e   : > { %v6417_v59 = vpop.f32.mrf.mxu1 }
 0x18f   : > { %v6423_v39 = vpop.f32.mrf.mxu0 }
 0x190   : > { %v6421_v6 = vpop.f32.mrf.mxu1 }
 0x191   : > { %v6427_v15 = vpop.f32.mrf.mxu0 }
 0x192   : > { %v6425_v7 = vpop.f32.mrf.mxu1 }
 0x193   : > { %v6431_v42 = vpop.f32.mrf.mxu0 }
 0x194   : > { %v6429_v61 = vpop.f32.mrf.mxu1 }
 0x195   : > { %v6435_v23 = vpop.f32.mrf.mxu0 }
 0x196   : > { %v6433_v28 = vpop.f32.mrf.mxu1  ;;  %6880 = vst [vmem:[#allocation22_spill] sm:$0xff] %v6435_v23 }
 0x197   : > { %v6439_v27 = vpop.f32.mrf.mxu0 }
 0x198   : > { %v6437_v60 = vpop.f32.mrf.mxu1  ;;  %6882 = vst [vmem:[#allocation24_spill] sm:$0xff] %v6439_v27 }
 0x199   : > { %6881 = vst [vmem:[#allocation23_spill] sm:$0xff] %v6437_v60  ;;  %v6443_v8 = vpop.f32.mrf.mxu0 }
 0x19a   : > { %v6441_v26 = vpop.f32.mrf.mxu1  ;;  %6884 = vst [vmem:[#allocation26_spill] sm:$0xff] %v6443_v8 }
 0x19b   : > { %6883 = vst [vmem:[#allocation25_spill] sm:$0xff] %v6441_v26  ;;  %v6447_v46 = vpop.f32.mrf.mxu0 }
 0x19c   : > { %v6445_v30 = vpop.f32.mrf.mxu1  ;;  %6886 = vst [vmem:[#allocation28_spill] sm:$0xff] %v6447_v46 }
 0x19d   : > { %6885 = vst [vmem:[#allocation27_spill] sm:$0xff] %v6445_v30  ;;  %v6451_v34 = vpop.f32.mrf.mxu0 }
 0x19e   : > { %v6449_v3 = vpop.f32.mrf.mxu1  ;;  %6888 = vst [vmem:[#allocation30_spill] sm:$0xff] %v6451_v34 }
 0x19f   : > { %6887 = vst [vmem:[#allocation29_spill] sm:$0xff] %v6449_v3  ;;  %v6455_v33 = vpop.f32.mrf.mxu0 }
 0x1a0   : > { %v6453_v58 = vpop.f32.mrf.mxu1  ;;  %6890 = vst [vmem:[#allocation2_spill] sm:$0xff] %v6455_v33 }
 0x1a1   : > { %6889 = vst [vmem:[#allocation31_spill] sm:$0xff] %v6453_v58  ;;  %v6459_v60 = vpop.f32.mrf.mxu0 }
 0x1a2   : > { %v6457_v23 = vpop.f32.mrf.mxu1  ;;  %6892 = vst [vmem:[#allocation3_spill] sm:$0xff] %v6459_v60 }
 0x1a3   : > { %6891 = vst [vmem:[#allocation4_spill] sm:$0xff] %v6457_v23  ;;  %v6463_v26 = vpop.f32.mrf.mxu0 }
 0x1a4   : > { %v6461_v27 = vpop.f32.mrf.mxu1  ;;  %6894 = vst [vmem:[#allocation6_spill] sm:$0xff] %v6463_v26  ;;  %v2432_v26 = vadd.f32 %v4907_v25, %v6274_v52  ;;  %v2433_v25 = vadd.f32 %v6377_v18, %v6283_v12  ;;  %v6514_v12 = vld [vmem:[%s6737_s3] ss:$0 sm:$0xff] }
 0x1a5   : > { %6893 = vst [vmem:[#allocation5_spill] sm:$0xff] %v6461_v27  ;;  %v6467_v30 = vpop.f32.mrf.mxu0 }
 0x1a6   : > { %v6465_v8 = vpop.f32.mrf.mxu1  ;;  %6896 = vst [vmem:[#allocation32_spill] sm:$0xff] %v6467_v30 }
 0x1a7   : > { %6895 = vst [vmem:[#allocation7_spill] sm:$0xff] %v6465_v8  ;;  %v6471_v3 = vpop.f32.mrf.mxu0 }
 0x1a8   : > { %v6469_v46 = vpop.f32.mrf.mxu1  ;;  %6898 = vst [vmem:[#allocation34_spill] sm:$0xff] %v6471_v3  ;;  %v2431_v3 = vadd.f32 %v2272_v17, %v6277_v2  ;;  %v6504_v2 = vld [vmem:[%s6736_s2] ss:$0 sm:$0xff] }
 0x1a9   : > { %6897 = vst [vmem:[#allocation33_spill] sm:$0xff] %v6469_v46  ;;  %v6475_v58 = vpop.f32.mrf.mxu0 }
 0x1aa   : > { %v6473_v34 = vpop.f32.mrf.mxu1  ;;  %6900 = vst [vmem:[#allocation36_spill] sm:$0xff] %v6475_v58  ;;  %v2821_v58 = vadd.f32 %v6367_v1, %v2432_v26  ;;  %v2820_v52 = vadd.f32 %v6371_v54, %v2431_v3  ;;  %v2435_v3 = vadd.f32 %v6385_v56, %v6289_v37  ;;  %v2822_v54 = vadd.f32 %v6379_v32, %v2433_v25 }
 0x1ab   : > { %6899 = vst [vmem:[#allocation35_spill] sm:$0xff] %v6473_v34  ;;  %v6479_v23 = vpop.f32.mrf.mxu0  ;;  %v2437_v25 = vadd.f32 %v6393_v9, %v6295_v44  ;;  %v2440_v44 = vadd.f32 %v6397_v53, %v6298_v13 }
 0x1ac   : > { %v6477_v33 = vpop.f32.mrf.mxu1  ;;  %6902 = vst [vmem:[#allocation38_spill] sm:$0xff] %v6479_v23  ;;  %v2434_v23 = vadd.f32 %v6373_v55, %v6280_v45  ;;  %v2436_v55 = vadd.f32 %v6381_v11, %v6286_v36  ;;  %v2438_v36 = vadd.f32 %v6389_v63, %v6292_v21  ;;  %v2824_v32 = vadd.f32 %v6387_v43, %v2435_v3 }
 0x1ad   : > { %6901 = vst [vmem:[#allocation37_spill] sm:$0xff] %v6477_v33  ;;  %v6483_v27 = vpop.f32.mrf.mxu0 }
 0x1ae   : > { %v6481_v60 = vpop.f32.mrf.mxu1  ;;  %v2823_v26 = vadd.f32 %v6375_v20, %v2434_v23  ;;  %v2827_v43 = vadd.f32 %v6391_v47, %v2438_v36 }
 0x1af   : > { %6903 = vst [vmem:[#allocation39_spill] sm:$0xff] %v6481_v60  ;;  %v6488_v30 = vpop.f32.mrf.mxu0 }
 0x1b0   : > { %v6486_v8 = vpop.f32.mrf.mxu1  ;;  %6904 = vst [vmem:[#allocation40_spill] sm:$0xff] %v6488_v30 }
 0x1b1   : > { %v6493_v34 = vpop.f32.mrf.mxu0 }
 0x1b2   : > { %v6491_v46 = vpop.f32.mrf.mxu1  ;;  %6905 = vst [vmem:[#allocation41_spill] sm:$0xff] %v6493_v34 }
 0x1b3   : > { %v5063_v33 = vpop.f32.mrf.mxu0 }
 0x1b4   : > { %v5011_v60 = vpop.f32.mrf.mxu1 }
 0x1b5   : > { %v3209_v30 = vadd.f32 %v5011_v60, %v2821_v58  ;;  %v3437_v34 = vpop.f32.mrf.mxu0 }
 0x1b6   : > { %v3049_v17 = vpop.f32.mrf.mxu1 }
 0x1b7   : > { %v3597_v1 = vadd.f32 %v5063_v33, %v3209_v30  ;;  %v3208_v45 = vadd.f32 %v3049_v17, %v2820_v52  ;;  %v5066_v60 = vpop.f32.mrf.mxu0  ;;  %v2825_v17 = vadd.f32 %v6383_v24, %v2436_v55 }
 0x1b8   : > { %v5014_v58 = vpop.f32.mrf.mxu1 }
 0x1b9   : > { %v3636_v23 = vmul.f32 %v6504_v2, %v3597_v1  ;;  %v3596_v33 = vadd.f32 %v3437_v34, %v3208_v45  ;;  %v3211_v30 = vadd.f32 %v5014_v58, %v2823_v26  ;;  %v3447_v18 = vpop.f32.mrf.mxu0 }
 0x1ba   : > { %v3059_v20 = vpop.f32.mrf.mxu1 }
 0x1bb   : > { %v3675_v37 = vadd.f32 %v6514_v12, %v3636_v23  ;;  %v3635_v11 = vmul.f32 %v6504_v2, %v3596_v33  ;;  %v3599_v56 = vadd.f32 %v5066_v60, %v3211_v30  ;;  %v3210_v52 = vadd.f32 %v3059_v20, %v2822_v54  ;;  %v5069_v34 = vpop.f32.mrf.mxu0 }
 0x1bc   : > { %v5017_v21 = vpop.f32.mrf.mxu1  ;;  %v2826_v23 = vadd.f32 %v6395_v49, %v2437_v25 }
 0x1bd   : > { %v3707_v63 = vmax.f32 %v3675_v37, 0.0  ;;  %v3674_v26 = vadd.f32 %v6514_v12, %v3635_v11  ;;  %v3638_v1 = vmul.f32 %v6504_v2, %v3599_v56  ;;  %v3598_v24 = vadd.f32 %v3447_v18, %v3210_v52  ;;  %v3457_v55 = vpop.f32.mrf.mxu0 }
 0x1be   : > { %v3213_v9 = vadd.f32 %v5017_v21, %v2825_v17  ;;  %v3069_v45 = vpop.f32.mrf.mxu1  ;;  %v2829_v18 = vadd.f32 %v6399_v19, %v2440_v44  ;;  %v2439_v37 = vadd.f32 %v6401_v10, %v6301_v16  ;;  %v2442_v11 = vadd.f32 %v6405_v57, %v6304_v29 }
 0x1bf   : > { %3740 = vst.msk [vmem:[%s6530_s13 + $0x8] sm:$0xff] %vm3738_vm1, %v3707_v63  ;;  %v3706_v3 = vmax.f32 %v3674_v26, 0.0  ;;  %v3677_v58 = vadd.f32 %v6514_v12, %v3638_v1  ;;  %v3637_v60 = vmul.f32 %v6504_v2, %v3598_v24  ;;  %v3212_v54 = vadd.f32 %v3069_v45, %v2824_v32  ;;  %v5072_v47 = vpop.f32.mrf.mxu0 }
 0x1c0   : > { %v3601_v33 = vadd.f32 %v5069_v34, %v3213_v9  ;;  %v5020_v30 = vpop.f32.mrf.mxu1  ;;  %v2441_v19 = vadd.f32 %v6409_v0, %v6307_v35  ;;  %v2828_v1 = vadd.f32 %v6403_v14, %v2439_v37  ;;  %v2831_v24 = vadd.f32 %v6407_v51, %v2442_v11 }
 0x1c1   : > { %3739 = vst.msk [vmem:[%s6530_s13] sm:$0xff] %vm3738_vm1, %v3706_v3  ;;  %v3709_v13 = vmax.f32 %v3677_v58, 0.0  ;;  %v3676_v53 = vadd.f32 %v6514_v12, %v3637_v60  ;;  %v3600_v36 = vadd.f32 %v3457_v55, %v3212_v54  ;;  %v3215_v20 = vadd.f32 %v5020_v30, %v2827_v43  ;;  %v3467_v52 = vpop.f32.mrf.mxu0 }
 0x1c2   : > { %v3640_v49 = vmul.f32 %v6504_v2, %v3601_v33  ;;  %v3079_v56 = vpop.f32.mrf.mxu1  ;;  %v2444_v35 = vadd.f32 %v6413_v40, %v6310_v62  ;;  %v2830_v58 = vadd.f32 %v6411_v41, %v2441_v19  ;;  %v2443_v14 = vadd.f32 %v6417_v59, %v6313_v22 }
 0x1c3   : > { %3742 = vst.msk [vmem:[%s6530_s13 + $0x18] sm:$0xff] %vm3738_vm1, %v3709_v13  ;;  %v3708_v17 = vmax.f32 %v3676_v53, 0.0  ;;  %v3639_v32 = vmul.f32 %v6504_v2, %v3600_v36  ;;  %v3603_v25 = vadd.f32 %v5072_v47, %v3215_v20  ;;  %v3214_v21 = vadd.f32 %v3079_v56, %v2826_v23  ;;  %v5075_v10 = vpop.f32.mrf.mxu0 }
 0x1c4   : > { %v3679_v34 = vadd.f32 %v6514_v12, %v3640_v49  ;;  %v5023_v16 = vpop.f32.mrf.mxu1  ;;  %v2833_v30 = vadd.f32 %v6415_v50, %v2444_v35  ;;  %v2832_v20 = vadd.f32 %v6419_v38, %v2443_v14  ;;  %v2445_v37 = vadd.f32 %v6425_v7, %v6319_v31  ;;  %v6906_v35 = vld [vmem:[#allocation8_spill] sm:$0xff] }
 0x1c5   : > { %3741 = vst.msk [vmem:[%s6530_s13 + $0x10] sm:$0xff] %vm3738_vm1, %v3708_v17  ;;  %v3678_v29 = vadd.f32 %v6514_v12, %v3639_v32  ;;  %v3642_v57 = vmul.f32 %v6504_v2, %v3603_v25  ;;  %v3602_v63 = vadd.f32 %v3467_v52, %v3214_v21  ;;  %v3217_v26 = vadd.f32 %v5023_v16, %v2829_v18  ;;  %v3477_v44 = vpop.f32.mrf.mxu0 }
 0x1c6   : > { %v3711_v0 = vmax.f32 %v3679_v34, 0.0  ;;  %v3089_v43 = vpop.f32.mrf.mxu1  ;;  %v2446_v18 = vadd.f32 %v6421_v6, %v6316_v5  ;;  %v2448_v38 = vadd.f32 %v6429_v61, %v6322_v4  ;;  %v2834_v16 = vadd.f32 %v6427_v15, %v2445_v37 }
 0x1c7   : > { %v3710_v9 = vmax.f32 %v3678_v29, 0.0  ;;  %v3681_v45 = vadd.f32 %v6514_v12, %v3642_v57  ;;  %v3641_v55 = vmul.f32 %v6504_v2, %v3602_v63  ;;  %v3605_v3 = vadd.f32 %v5075_v10, %v3217_v26  ;;  %v5078_v62 = vpop.f32.mrf.mxu0 }
 0x1c8   : > { %3744 = vst.msk [vmem:[%s6530_s13 + $0x28] sm:$0xff] %vm3738_vm1, %v3711_v0  ;;  %v3216_v51 = vadd.f32 %v3089_v43, %v2828_v1  ;;  %v5026_v60 = vpop.f32.mrf.mxu1  ;;  %v2835_v34 = vadd.f32 %v6423_v39, %v2446_v18  ;;  %v2447_v4 = vadd.f32 %v6433_v28, %v6325_v48  ;;  %v6907_v39 = vld [vmem:[#allocation23_spill] sm:$0xff] }
 0x1c9   : > { %3743 = vst.msk [vmem:[%s6530_s13 + $0x20] sm:$0xff] %vm3738_vm1, %v3710_v9  ;;  %v3713_v40 = vmax.f32 %v3681_v45, 0.0  ;;  %v3680_v54 = vadd.f32 %v6514_v12, %v3641_v55  ;;  %v3644_v23 = vmul.f32 %v6504_v2, %v3605_v3  ;;  %v3219_v33 = vadd.f32 %v5026_v60, %v2831_v24  ;;  %v3487_v13 = vpop.f32.mrf.mxu0  ;;  %v6908_v55 = vld [vmem:[#allocation22_spill] sm:$0xff] }
 0x1ca   : > { %v3604_v41 = vadd.f32 %v3477_v44, %v3216_v51  ;;  %v3099_v47 = vpop.f32.mrf.mxu1  ;;  %v2837_v24 = vadd.f32 %v6431_v42, %v2448_v38  ;;  %v2450_v0 = vadd.f32 %v6907_v39, %v6906_v35  ;;  %v2836_v3 = vadd.f32 %v6908_v55, %v2447_v4  ;;  %v6921_v39 = vld [vmem:[#allocation13_spill] sm:$0xff] }
 0x1cb   : > { %3746 = vst.msk [vmem:[%s6530_s13 + $0x38] sm:$0xff] %vm3738_vm1, %v3713_v40  ;;  %v3712_v22 = vmax.f32 %v3680_v54, 0.0  ;;  %v3683_v59 = vadd.f32 %v6514_v12, %v3644_v23  ;;  %v3607_v53 = vadd.f32 %v5078_v62, %v3219_v33  ;;  %v3218_v36 = vadd.f32 %v3099_v47, %v2830_v58  ;;  %v5081_v49 = vpop.f32.mrf.mxu0  ;;  %v6909_v54 = vld [vmem:[#allocation24_spill] sm:$0xff]  ;;  %v6910_v33 = vld [vmem:[#allocation9_spill] sm:$0xff]  ;;  %v6912_v47 = vld [vmem:[#allocation10_spill] sm:$0xff] }
 0x1cc   : > { %v3643_v50 = vmul.f32 %v6504_v2, %v3604_v41  ;;  %v5029_v11 = vpop.f32.mrf.mxu1  ;;  %v2839_v23 = vadd.f32 %v6909_v54, %v2450_v0  ;;  %v6922_v0 = vld [vmem:[#allocation4_spill] sm:$0xff] }
 0x1cd   : > { %3745 = vst.msk [vmem:[%s6530_s13 + $0x30] sm:$0xff] %vm3738_vm1, %v3712_v22  ;;  %v3715_v56 = vmax.f32 %v3683_v59, 0.0  ;;  %v3646_v52 = vmul.f32 %v6504_v2, %v3607_v53  ;;  %v3606_v17 = vadd.f32 %v3487_v13, %v3218_v36  ;;  %v3221_v32 = vadd.f32 %v5029_v11, %v2833_v30  ;;  %v3497_v6 = vpop.f32.mrf.mxu0  ;;  %v6911_v30 = vld [vmem:[#allocation25_spill] sm:$0xff]  ;;  %v6913_v13 = vld [vmem:[#allocation27_spill] sm:$0xff] }
 0x1ce   : > { %v3682_v25 = vadd.f32 %v6514_v12, %v3643_v50  ;;  %v3109_v5 = vpop.f32.mrf.mxu1  ;;  %v2449_v41 = vadd.f32 %v6911_v30, %v6910_v33  ;;  %v2452_v22 = vadd.f32 %v6913_v13, %v6912_v47  ;;  %v6914_v11 = vld [vmem:[#allocation11_spill] sm:$0xff]  ;;  %v6925_v30 = vld [vmem:[#allocation14_spill] sm:$0xff] }
 0x1cf   : > { %3748 = vst.msk [vmem:[%s6530_s13 + $0x48] sm:$0xff] %vm3738_vm1, %v3715_v56  ;;  %v3685_v31 = vadd.f32 %v6514_v12, %v3646_v52  ;;  %v3645_v7 = vmul.f32 %v6504_v2, %v3606_v17  ;;  %v3609_v21 = vadd.f32 %v5081_v49, %v3221_v32  ;;  %v3220_v19 = vadd.f32 %v3109_v5, %v2832_v20  ;;  %v5084_v29 = vpop.f32.mrf.mxu0  ;;  %v6915_v49 = vld [vmem:[#allocation29_spill] sm:$0xff]  ;;  %v6927_v13 = vld [vmem:[#allocation15_spill] sm:$0xff] }
 0x1d0   : > { %v3714_v61 = vmax.f32 %v3682_v25, 0.0  ;;  %v5032_v10 = vpop.f32.mrf.mxu1  ;;  %v2451_v56 = vadd.f32 %v6915_v49, %v6914_v11  ;;  %v6929_v49 = vld [vmem:[#allocation16_spill] sm:$0xff] }
 0x1d1   : > { %v3717_v57 = vmax.f32 %v3685_v31, 0.0  ;;  %v3684_v63 = vadd.f32 %v6514_v12, %v3645_v7  ;;  %v3648_v26 = vmul.f32 %v6504_v2, %v3609_v21  ;;  %v3608_v1 = vadd.f32 %v3497_v6, %v3220_v19  ;;  %v3507_v48 = vpop.f32.mrf.mxu0  ;;  %v6916_v31 = vld [vmem:[#allocation26_spill] sm:$0xff]  ;;  %v6917_v21 = vld [vmem:[#allocation28_spill] sm:$0xff] }
 0x1d2   : > { %3747 = vst.msk [vmem:[%s6530_s13 + $0x40] sm:$0xff] %vm3738_vm1, %v3714_v61  ;;  %v3223_v15 = vadd.f32 %v5032_v10, %v2835_v34  ;;  %v3119_v43 = vpop.f32.mrf.mxu1  ;;  %v2838_v7 = vadd.f32 %v6916_v31, %v2449_v41  ;;  %v2841_v19 = vadd.f32 %v6917_v21, %v2452_v22  ;;  %v6918_v34 = vld [vmem:[#allocation12_spill] sm:$0xff]  ;;  %v6926_v41 = vld [vmem:[#allocation5_spill] sm:$0xff]  ;;  %v6928_v22 = vld [vmem:[#allocation7_spill] sm:$0xff] }
 0x1d3   : > { %3750 = vst.msk [vmem:[%s6530_s13 + $0x58] sm:$0xff] %vm3738_vm1, %v3717_v57  ;;  %v3716_v28 = vmax.f32 %v3684_v63, 0.0  ;;  %v3687_v44 = vadd.f32 %v6514_v12, %v3648_v26  ;;  %v3647_v9 = vmul.f32 %v6504_v2, %v3608_v1  ;;  %v3222_v45 = vadd.f32 %v3119_v43, %v2834_v16  ;;  %v5087_v14 = vpop.f32.mrf.mxu0  ;;  %v6919_v16 = vld [vmem:[#allocation31_spill] sm:$0xff] }
 0x1d4   : > { %v3611_v42 = vadd.f32 %v5084_v29, %v3223_v15  ;;  %v5035_v58 = vpop.f32.mrf.mxu1  ;;  %v2454_v4 = vadd.f32 %v6919_v16, %v6918_v34  ;;  %v2453_v15 = vadd.f32 %v6922_v0, %v6921_v39  ;;  %v2456_v47 = vadd.f32 %v6926_v41, %v6925_v30  ;;  %v6933_v16 = vld [vmem:[#allocation17_spill] sm:$0xff]  ;;  %v6936_v0 = vld [vmem:[#allocation18_spill] sm:$0xff]  ;;  %v6940_v41 = vld [vmem:[#allocation19_spill] sm:$0xff] }
 0x1d5   : > { %3749 = vst.msk [vmem:[%s6530_s13 + $0x50] sm:$0xff] %vm3738_vm1, %v3716_v28  ;;  %v3719_v51 = vmax.f32 %v3687_v44, 0.0  ;;  %v3686_v60 = vadd.f32 %v6514_v12, %v3647_v9  ;;  %v3610_v62 = vadd.f32 %v3507_v48, %v3222_v45  ;;  %v3225_v40 = vadd.f32 %v5035_v58, %v2837_v24  ;;  %v3517_v36 = vpop.f32.mrf.mxu0  ;;  %v6920_v24 = vld [vmem:[#allocation30_spill] sm:$0xff] }
 0x1d6   : > { %v3650_v59 = vmul.f32 %v6504_v2, %v3611_v42  ;;  %v3129_v53 = vpop.f32.mrf.mxu1  ;;  %v2840_v35 = vadd.f32 %v6920_v24, %v2451_v56  ;;  %v6930_v56 = vld [vmem:[#allocation33_spill] sm:$0xff] }
 0x1d7   : > { %3752 = vst.msk [vmem:[%s6530_s13 + $0x68] sm:$0xff] %vm3738_vm1, %v3719_v51  ;;  %v3718_v20 = vmax.f32 %v3686_v60, 0.0  ;;  %v3649_v18 = vmul.f32 %v6504_v2, %v3610_v62  ;;  %v3613_v37 = vadd.f32 %v5087_v14, %v3225_v40  ;;  %v3224_v50 = vadd.f32 %v3129_v53, %v2836_v3  ;;  %v5090_v32 = vpop.f32.mrf.mxu0  ;;  %v6923_v3 = vld [vmem:[#allocation2_spill] sm:$0xff] }
 0x1d8   : > { %v3689_v52 = vadd.f32 %v6514_v12, %v3650_v59  ;;  %v5038_v17 = vpop.f32.mrf.mxu1  ;;  %v2843_v42 = vadd.f32 %v6923_v3, %v2454_v4  ;;  %v2455_v59 = vadd.f32 %v6928_v22, %v6927_v13  ;;  %v6934_v4 = vld [vmem:[#allocation35_spill] sm:$0xff]  ;;  %v6942_v22 = vld [vmem:[#allocation20_spill] sm:$0xff] }
 0x1d9   : > { %3751 = vst.msk [vmem:[%s6530_s13 + $0x60] sm:$0xff] %vm3738_vm1, %v3718_v20  ;;  %v3688_v38 = vadd.f32 %v6514_v12, %v3649_v18  ;;  %v3652_v25 = vmul.f32 %v6504_v2, %v3613_v37  ;;  %v3612_v5 = vadd.f32 %v3517_v36, %v3224_v50  ;;  %v3227_v6 = vadd.f32 %v5038_v17, %v2839_v23  ;;  %v3527_v29 = vpop.f32.mrf.mxu0  ;;  %v6924_v23 = vld [vmem:[#allocation3_spill] sm:$0xff] }
 0x1da   : > { %v3721_v61 = vmax.f32 %v3689_v52, 0.0  ;;  %v3139_v10 = vpop.f32.mrf.mxu1  ;;  %v2842_v33 = vadd.f32 %v6924_v23, %v2453_v15  ;;  %v2458_v52 = vadd.f32 %v6930_v56, %v6929_v49  ;;  %v6937_v15 = vld [vmem:[#allocation37_spill] sm:$0xff] }
 0x1db   : > { %v3720_v57 = vmax.f32 %v3688_v38, 0.0  ;;  %v3691_v63 = vadd.f32 %v6514_v12, %v3652_v25  ;;  %v3651_v26 = vmul.f32 %v6504_v2, %v3612_v5  ;;  %v3615_v1 = vadd.f32 %v5090_v32, %v3227_v6  ;;  %v5093_v28 = vpop.f32.mrf.mxu0  ;;  %v6943_v49 = vld [vmem:[#allocation21_spill] sm:$0xff] }
 0x1dc   : > { %3754 = vst.msk [vmem:[%s6530_s13 + $0x78] sm:$0xff] %vm3738_vm1, %v3721_v61  ;;  %v3226_v43 = vadd.f32 %v3139_v10, %v2838_v7  ;;  %v5041_v48 = vpop.f32.mrf.mxu1  ;;  %v6931_v7 = vld [vmem:[#allocation6_spill] sm:$0xff]  ;;  %v2457_v61 = vadd.f32 %v6934_v4, %v6933_v16  ;;  %v2461_v56 = vadd.f32 %v6491_v46, %v6943_v49 }
 0x1dd   : > { %3753 = vst.msk [vmem:[%s6530_s13 + $0x70] sm:$0xff] %vm3738_vm1, %v3720_v57  ;;  %v3723_v44 = vmax.f32 %v3691_v63, 0.0  ;;  %v3690_v9 = vadd.f32 %v6514_v12, %v3651_v26  ;;  %v3654_v45 = vmul.f32 %v6504_v2, %v3615_v1  ;;  %v3229_v55 = vadd.f32 %v5041_v48, %v2841_v19  ;;  %v3537_v51 = vpop.f32.mrf.mxu0  ;;  %v6932_v19 = vld [vmem:[#allocation32_spill] sm:$0xff] }
 0x1de   : > { %v3614_v58 = vadd.f32 %v3527_v29, %v3226_v43  ;;  %v3149_v14 = vpop.f32.mrf.mxu1  ;;  %v2845_v21 = vadd.f32 %v6931_v7, %v2456_v47  ;;  %v2844_v34 = vadd.f32 %v6932_v19, %v2455_v59  ;;  %v2460_v43 = vadd.f32 %v6937_v15, %v6936_v0  ;;  %v6941_v47 = vld [vmem:[#allocation39_spill] sm:$0xff] }
 0x1df   : > { %3756 = vst.msk [vmem:[%s6530_s13 + $0x88] sm:$0xff] %vm3738_vm1, %v3723_v44  ;;  %v3722_v60 = vmax.f32 %v3690_v9, 0.0  ;;  %v3693_v62 = vadd.f32 %v6514_v12, %v3654_v45  ;;  %v3617_v40 = vadd.f32 %v5093_v28, %v3229_v55  ;;  %v3228_v54 = vadd.f32 %v3149_v14, %v2840_v35  ;;  %v5096_v20 = vpop.f32.mrf.mxu0  ;;  %v6935_v35 = vld [vmem:[#allocation34_spill] sm:$0xff] }
 0x1e0   : > { %v3653_v53 = vmul.f32 %v6504_v2, %v3614_v58  ;;  %v5044_v36 = vpop.f32.mrf.mxu1  ;;  %v2847_v39 = vadd.f32 %v6935_v35, %v2458_v52  ;;  %v2459_v13 = vadd.f32 %v6941_v47, %v6940_v41  ;;  %v2462_v59 = vadd.f32 %v6486_v8, %v6942_v22 }
 0x1e1   : > { %3755 = vst.msk [vmem:[%s6530_s13 + $0x80] sm:$0xff] %vm3738_vm1, %v3722_v60  ;;  %v3725_v18 = vmax.f32 %v3693_v62, 0.0  ;;  %v3656_v37 = vmul.f32 %v6504_v2, %v3617_v40  ;;  %v3616_v50 = vadd.f32 %v3537_v51, %v3228_v54  ;;  %v3231_v11 = vadd.f32 %v5044_v36, %v2843_v42  ;;  %v3547_v38 = vpop.f32.mrf.mxu0  ;;  %v6938_v42 = vld [vmem:[#allocation36_spill] sm:$0xff] }
 0x1e2   : > { %v3692_v17 = vadd.f32 %v6514_v12, %v3653_v53  ;;  %v3159_v32 = vpop.f32.mrf.mxu1  ;;  %v2846_v58 = vadd.f32 %v6938_v42, %v2457_v61 }
 0x1e3   : > { %3758 = vst.msk [vmem:[%s6530_s13 + $0x98] sm:$0xff] %vm3738_vm1, %v3725_v18  ;;  %v3695_v25 = vadd.f32 %v6514_v12, %v3656_v37  ;;  %v3655_v5 = vmul.f32 %v6504_v2, %v3616_v50  ;;  %v3619_v6 = vadd.f32 %v5096_v20, %v3231_v11  ;;  %v3230_v31 = vadd.f32 %v3159_v32, %v2842_v33  ;;  %v5099_v57 = vpop.f32.mrf.mxu0  ;;  %v6939_v33 = vld [vmem:[#allocation38_spill] sm:$0xff] }
 0x1e4   : > { %v3724_v10 = vmax.f32 %v3692_v17, 0.0  ;;  %v5047_v29 = vpop.f32.mrf.mxu1  ;;  %v2849_v30 = vadd.f32 %v6939_v33, %v2460_v43 }
 0x1e5   : > { %v3727_v63 = vmax.f32 %v3695_v25, 0.0  ;;  %v3694_v26 = vadd.f32 %v6514_v12, %v3655_v5  ;;  %v3658_v1 = vmul.f32 %v6504_v2, %v3619_v6  ;;  %v3618_v24 = vadd.f32 %v3547_v38, %v3230_v31  ;;  %v3557_v44 = vpop.f32.mrf.mxu0  ;;  %v6944_v31 = vld [vmem:[#allocation40_spill] sm:$0xff] }
 0x1e6   : > { %3757 = vst.msk [vmem:[%s6530_s13 + $0x90] sm:$0xff] %vm3738_vm1, %v3724_v10  ;;  %v3233_v48 = vadd.f32 %v5047_v29, %v2845_v21  ;;  %v3169_v28 = vpop.f32.mrf.mxu1  ;;  %v2848_v6 = vadd.f32 %v6483_v27, %v2459_v13  ;;  %v2851_v7 = vadd.f32 %v6944_v31, %v2462_v59  ;;  %v6945_v10 = vld [vmem:[#allocation41_spill] sm:$0xff] }
 0x1e7   : > { %3760 = vst.msk [vmem:[%s6530_s13 + $0xa8] sm:$0xff] %vm3738_vm1, %v3727_v63  ;;  %v3726_v9 = vmax.f32 %v3694_v26, 0.0  ;;  %v3697_v45 = vadd.f32 %v6514_v12, %v3658_v1  ;;  %v3657_v55 = vmul.f32 %v6504_v2, %v3618_v24  ;;  %v3232_v3 = vadd.f32 %v3169_v28, %v2844_v34  ;;  %v5102_v60 = vpop.f32.mrf.mxu0 }
 0x1e8   : > { %v3621_v14 = vadd.f32 %v5099_v57, %v3233_v48  ;;  %v5050_v51 = vpop.f32.mrf.mxu1  ;;  %v2850_v29 = vadd.f32 %v6945_v10, %v2461_v56 }
 0x1e9   : > { %3759 = vst.msk [vmem:[%s6530_s13 + $0xa0] sm:$0xff] %vm3738_vm1, %v3726_v9  ;;  %v3729_v62 = vmax.f32 %v3697_v45, 0.0  ;;  %v3696_v40 = vadd.f32 %v6514_v12, %v3657_v55  ;;  %v3620_v54 = vadd.f32 %v3557_v44, %v3232_v3  ;;  %v3235_v23 = vadd.f32 %v5050_v51, %v2847_v39  ;;  %v3567_v20 = vpop.f32.mrf.mxu0 }
 0x1ea   : > { %v3660_v53 = vmul.f32 %v6504_v2, %v3621_v14  ;;  %v3179_v36 = vpop.f32.mrf.mxu1 }
 0x1eb   : > { %3762 = vst.msk [vmem:[%s6530_s13 + $0xb8] sm:$0xff] %vm3738_vm1, %v3729_v62  ;;  %v3728_v18 = vmax.f32 %v3696_v40, 0.0  ;;  %v3659_v37 = vmul.f32 %v6504_v2, %v3620_v54  ;;  %v3623_v50 = vadd.f32 %v5102_v60, %v3235_v23  ;;  %v3234_v11 = vadd.f32 %v3179_v36, %v2846_v58  ;;  %v5105_v32 = vpop.f32.mrf.mxu0 }
 0x1ec   : > { %v3699_v52 = vadd.f32 %v6514_v12, %v3660_v53  ;;  %v5053_v17 = vpop.f32.mrf.mxu1 }
 0x1ed   : > { %3761 = vst.msk [vmem:[%s6530_s13 + $0xb0] sm:$0xff] %vm3738_vm1, %v3728_v18  ;;  %v3698_v8 = vadd.f32 %v6514_v12, %v3659_v37  ;;  %v3662_v38 = vmul.f32 %v6504_v2, %v3623_v50  ;;  %v3622_v25 = vadd.f32 %v3567_v20, %v3234_v11  ;;  %v3237_v5 = vadd.f32 %v5053_v17, %v2849_v30  ;;  %v3577_v19 = vpop.f32.mrf.mxu0 }
 0x1ee   : > { %v3731_v21 = vmax.f32 %v3699_v52, 0.0  ;;  %v3189_v46 = vpop.f32.mrf.mxu1 }
 0x1ef   : > { %v3730_v34 = vmax.f32 %v3698_v8, 0.0  ;;  %v3701_v16 = vadd.f32 %v6514_v12, %v3662_v38  ;;  %v3661_v4 = vmul.f32 %v6504_v2, %v3622_v25  ;;  %v3625_v61 = vadd.f32 %v5105_v32, %v3237_v5  ;;  %v5108_v27 = vpop.f32.mrf.mxu0 }
 0x1f0   : > { %3764 = vst.msk [vmem:[%s6530_s13 + $0xc8] sm:$0xff] %vm3738_vm1, %v3731_v21  ;;  %v3236_v57 = vadd.f32 %v3189_v46, %v2848_v6  ;;  %v5056_v63 = vpop.f32.mrf.mxu1 }
 0x1f1   : > { %3763 = vst.msk [vmem:[%s6530_s13 + $0xc0] sm:$0xff] %vm3738_vm1, %v3730_v34  ;;  %v3733_v26 = vmax.f32 %v3701_v16, 0.0  ;;  %v3700_v1 = vadd.f32 %v6514_v12, %v3661_v4  ;;  %v3664_v24 = vmul.f32 %v6504_v2, %v3625_v61  ;;  %v3239_v35 = vadd.f32 %v5056_v63, %v2851_v7  ;;  %v3587_v9 = vpop.f32.mrf.mxu0 }
 0x1f2   : > { %v3624_v39 = vadd.f32 %v3577_v19, %v3236_v57  ;;  %v3199_v0 = vpop.f32.mrf.mxu1 }
 0x1f3   : > { %3766 = vst.msk [vmem:[%s6530_s13 + $0xd8] sm:$0xff] %vm3738_vm1, %v3733_v26  ;;  %v3732_v15 = vmax.f32 %v3700_v1, 0.0  ;;  %v3703_v43 = vadd.f32 %v6514_v12, %v3664_v24  ;;  %v3627_v48 = vadd.f32 %v5108_v27, %v3239_v35  ;;  %v3238_v28 = vadd.f32 %v3199_v0, %v2850_v29 }
 0x1f4   : > { %v3663_v44 = vmul.f32 %v6504_v2, %v3624_v39 }
 0x1f5   : > { %3765 = vst.msk [vmem:[%s6530_s13 + $0xd0] sm:$0xff] %vm3738_vm1, %v3732_v15  ;;  %v3735_v45 = vmax.f32 %v3703_v43, 0.0  ;;  %v3666_v55 = vmul.f32 %v6504_v2, %v3627_v48  ;;  %v3626_v3 = vadd.f32 %v3587_v9, %v3238_v28 }
 0x1f6   : > { %v3702_v42 = vadd.f32 %v6514_v12, %v3663_v44 }
 0x1f7   : > { %3768 = vst.msk [vmem:[%s6530_s13 + $0xe8] sm:$0xff] %vm3738_vm1, %v3735_v45  ;;  %v3705_v58 = vadd.f32 %v6514_v12, %v3666_v55  ;;  %v3665_v14 = vmul.f32 %v6504_v2, %v3626_v3 }
 0x1f8   : > { %v3734_v51 = vmax.f32 %v3702_v42, 0.0 }
 0x1f9   : > { %v3737_v60 = vmax.f32 %v3705_v58, 0.0  ;;  %v3704_v62 = vadd.f32 %v6514_v12, %v3665_v14 }
 0x1fa   : > { %3767 = vst.msk [vmem:[%s6530_s13 + $0xe0] sm:$0xff] %vm3738_vm1, %v3734_v51 }
 0x1fb   : > { %3770 = vst.msk [vmem:[%s6530_s13 + $0xf8] sm:$0xff] %vm3738_vm1, %v3737_v60  ;;  %v3736_v40 = vmax.f32 %v3704_v62, 0.0 }
 0x1fd   : > { %3769 = vst.msk [vmem:[%s6530_s13 + $0xf0] sm:$0xff] %vm3738_vm1, %v3736_v40 }
 0x1fe PF: > { %s14_s15 = sadd.s32 1, %s5128_s15  }
 0x1ff   : > { %p11_p4 = scmp.ge.s32.totalorder %s14_s15, 4  }
 0x201   :  { %13 = sbr.rel (!%p11_p4) target bundleno = 1 (0x1), region = 76 }

// kernel: osa_forward.6
= control target key start
LH: loop header
LB: loop body
LE: loop exit
PB: predicated region body
PF: predicated region fallthrough
CT: control target
= control target key end

     0   :  { %s5246_s15 = smov 0   ;;  %s6868_s0 = inlined_call_operand.vmem [shape: f32[2,18,18,32], index: 0, kind: input, shape index: {}]   ;;  %s6869_s1 = inlined_call_operand.vmem [shape: f32[9,32,32], index: 1, kind: input, shape index: {}]   ;;  %s6870_s2 = inlined_call_operand.vmem [shape: f32[1,32], index: 2, kind: input, shape index: {}]   ;;  %s6871_s3 = inlined_call_operand.vmem [shape: f32[1,32], index: 3, kind: input, shape index: {}]   ;;  %s6872_s4 = inlined_call_operand.vmem [shape: f32[2,256,32], index: 4, kind: output, shape index: {}]  }
   0x1 LB: > { %s3843_s16 = sadd.s32 4294967295, %s5219_s15   ;;  %p3847_p0 = scmp.ge.s32.totalorder %s5219_s15, 1  ;;  %s5219_s15 = sphi %s5246_s15, %s14_s15  }
   0x2   : > { %p162_p1 = scmp.lt.s32.totalorder %s5219_s15, 3 }
   0x4   : > { %p163_p2 = pnand %p3847_p0, %p162_p1 }
   0x6   : > { %166 = sbr.rel (%p163_p2) target bundleno = 511 (0x1ff), region = 36 }
   0xb   : > { %v3854_v0 = vld [vmem:[%s6869_s1 + $0x38] sm:$0xff]  ;;  %v3853_v1 = vld [vmem:[%s6869_s1 + $0x30] sm:$0xff]  ;;  %p188_p3 = scmp.lt.s32.totalorder %s3843_s16, 1  ;;  %v3852_v2 = vld [vmem:[%s6869_s1 + $0x28] sm:$0xff]  ;;  %vm271_vm0 = vcmask 261120  }
   0xc   : > { %5196 = vmatprep.subr.mxu1 %v3854_v0  ;;  %4692 = vmatprep.subr.mxu0 %v3854_v0  ;;  %v3851_v3 = vld [vmem:[%s6869_s1 + $0x20] sm:$0xff]  ;;  %v233_v4 = vld [vmem:[%s6869_s1 + $0x18] sm:$0xff]  ;;  %v232_v13 = vld [vmem:[%s6869_s1 + $0x10] sm:$0xff] }
   0xd   : > { %5200 = vmatpush3.msra.mxu1 %v3854_v0  ;;  %4693 = vmatpush3.msra.mxu0 %v3854_v0  ;;  %s7059_s16 = smov (!%p188_p3, %s3843_s16), 1  ;;  %v3922_v9 = vld [vmem:[%s6869_s1 + $0x58] sm:$0xff]  ;;  %v3921_v17 = vld [vmem:[%s6869_s1 + $0x50] sm:$0xff]  ;;  %v231_v18 = vld [vmem:[%s6869_s1 + $0x8] sm:$0xff] }
   0xe   : > { %5197 = vmatprep.subr.mxu1 %v3853_v1  ;;  %4694 = vmatprep.subr.mxu0 %v3853_v1  ;;  %s5204_s25 = smul.u32 432, %s7059_s16  ;;  %v3920_v23 = vld [vmem:[%s6869_s1 + $0x48] sm:$0xff]  ;;  %v230_v24 = vld [vmem:[%s6869_s1] sm:$0xff]  ;;  %v3990_v30 = vld [vmem:[%s6869_s1 + $0x78] sm:$0xff]  ;;  %s4367_s26 = sshll.u32 %s7059_s16, 8 }
   0xf   : > { %5201 = vmatpush3.msra.mxu1 %v3853_v1  ;;  %4695 = vmatpush3.msra.mxu0 %v3853_v1  ;;  %v3919_v29 = vld [vmem:[%s6869_s1 + $0x40] sm:$0xff]  ;;  %v4058_v35 = vld [vmem:[%s6869_s1 + $0x98] sm:$0xff]  ;;  %v3989_v52 = vld [vmem:[%s6869_s1 + $0x70] sm:$0xff]  ;;  %s6664_s29 = scalar_lea.vmem %s6872_s4, %s4367_s26 }
  0x10   : > { %5198 = vmatprep.subr.mxu1 %v3852_v2  ;;  %4696 = vmatprep.subr.mxu0 %v3852_v2  ;;  %s5272_s28 = scalar_lea.vmem %s6868_s0, %s5204_s25  ;;  %v4057_v54 = vld [vmem:[%s6869_s1 + $0x90] sm:$0xff]  ;;  %v3988_v58 = vld [vmem:[%s6869_s1 + $0x68] sm:$0xff]  ;;  %v3987_v0 = vld [vmem:[%s6869_s1 + $0x60] sm:$0xff] }
  0x11   : > { %5202 = vmatpush3.msra.mxu1 %v3852_v2  ;;  %4697 = vmatpush3.msra.mxu0 %v3852_v2  ;;  %v5278_v5 = vld [vmem:[%s5272_s28 + $0xc1] sm:$0xff]  ;;  %v5282_v7 = vld [vmem:[%s5272_s28 + $0xc9] sm:$0xff]  ;;  %v5292_v10 = vld [vmem:[%s5272_s28 + $0xd9] sm:$0xff] }
  0x12   : > { %5199 = vmatprep.subr.mxu1 %v3851_v3  ;;  %4698 = vmatprep.subr.mxu0 %v3851_v3  ;;  %v234_v6 = vld [vmem:[%s5272_s28 + $0x1] sm:$0xff]  ;;  %v235_v8 = vld [vmem:[%s5272_s28 + $0x9] sm:$0xff]  ;;  %v5297_v11 = vld [vmem:[%s5272_s28 + $0x19] sm:$0xff] }
  0x13   : > { %5203 = vmatpush3.msra.mxu1 %v3851_v3  ;;  %4724 = vmatprep.mubr.msk.f32.mxu1 %vm271_vm0, %v5278_v5  ;;  %v5301_v12 = vld [vmem:[%s5272_s28 + $0xe1] sm:$0xff]  ;;  %v5312_v15 = vld [vmem:[%s5272_s28 + $0xf1] sm:$0xff]  ;;  %v5332_v19 = vld [vmem:[%s5272_s28 + $0xf9] sm:$0xff] }
  0x14   : > { %4699 = vmatpush3.msra.mxu0 %v3851_v3  ;;  %4700 = vmatprep.mubr.msk.f32.mxu0 %vm271_vm0, %v234_v6  ;;  %v5309_v14 = vld [vmem:[%s5272_s28 + $0x21] sm:$0xff]  ;;  %v5317_v16 = vld [vmem:[%s5272_s28 + $0x31] sm:$0xff]  ;;  %v5337_v20 = vld [vmem:[%s5272_s28 + $0x39] sm:$0xff] }
  0x15   : > { %4725 = vmatmul.mubr.msk.f32.vlgmr.msra.gmra.mxu1 %vm271_vm0, %v5282_v7  ;;  %4748 = vmatprep.subr.mxu1 %v233_v4  ;;  %v5340_v21 = vld [vmem:[%s5272_s28 + $0x109] sm:$0xff]  ;;  %v5358_v25 = vld [vmem:[%s5272_s28 + $0x111] sm:$0xff]  ;;  %v5366_v27 = vld [vmem:[%s5272_s28 + $0x121] sm:$0xff] }
  0x16   : > { %4701 = vmatmul.mubr.msk.f32.vlgmr.msra.gmra.mxu0 %vm271_vm0, %v235_v8  ;;  %4749 = vmatpush3.msra.mxu1 %v233_v4  ;;  %v5343_v22 = vld [vmem:[%s5272_s28 + $0x49] sm:$0xff]  ;;  %v5363_v26 = vld [vmem:[%s5272_s28 + $0x51] sm:$0xff]  ;;  %v5369_v28 = vld [vmem:[%s5272_s28 + $0x61] sm:$0xff] }
  0x17   : > { %4804 = vmatprep.subr.mxu0 %v3922_v9  ;;  %4727 = vmatprep.mubr.msk.f32.mxu1 %vm271_vm0, %v5292_v10  ;;  %v5384_v31 = vld [vmem:[%s5272_s28 + $0x129] sm:$0xff]  ;;  %v5392_v33 = vld [vmem:[%s5272_s28 + $0x139] sm:$0xff]  ;;  %v5407_v36 = vld [vmem:[%s5272_s28 + $0x141] sm:$0xff] }
  0x18   : > { %4805 = vmatpush3.msra.mxu0 %v3922_v9  ;;  %4703 = vmatprep.mubr.msk.f32.mxu0 %vm271_vm0, %v5297_v11  ;;  %v5389_v32 = vld [vmem:[%s5272_s28 + $0x69] sm:$0xff]  ;;  %v5395_v34 = vld [vmem:[%s5272_s28 + $0x79] sm:$0xff]  ;;  %v5412_v37 = vld [vmem:[%s5272_s28 + $0x81] sm:$0xff] }
  0x19   : > { %4728 = vmatmul.mubr.msk.f32.gmra.mxu1 %vm271_vm0, %v5301_v12  ;;  %4750 = vmatprep.subr.mxu1 %v232_v13  ;;  %v5415_v38 = vld [vmem:[%s5272_s28 + $0x151] sm:$0xff]  ;;  %v5427_v40 = vld [vmem:[%s5272_s28 + $0x159] sm:$0xff]  ;;  %v5435_v42 = vld [vmem:[%s5272_s28 + $0x169] sm:$0xff] }
  0x1a   : > { %4704 = vmatmul.mubr.msk.f32.gmra.mxu0 %vm271_vm0, %v5309_v14  ;;  %4730 = vmatprep.mubr.msk.f32.mxu1 %vm271_vm0, %v5312_v15  ;;  %v5418_v39 = vld [vmem:[%s5272_s28 + $0x91] sm:$0xff]  ;;  %v5432_v41 = vld [vmem:[%s5272_s28 + $0x99] sm:$0xff]  ;;  %v5438_v43 = vld [vmem:[%s5272_s28 + $0xa9] sm:$0xff] }
  0x1b   : > { %4706 = vmatprep.mubr.msk.f32.mxu0 %vm271_vm0, %v5317_v16  ;;  %4751 = vmatpush3.msra.mxu1 %v232_v13  ;;  %v5447_v44 = vld [vmem:[%s5272_s28 + $0x171] sm:$0xff]  ;;  %v198_v46 = vld [vmem:[%s5272_s28] sm:$0xff]  ;;  %v199_v48 = vld [vmem:[%s5272_s28 + $0x8] sm:$0xff] }
  0x1c   : > { %4806 = vmatprep.subr.mxu0 %v3921_v17  ;;  %4752 = vmatprep.subr.mxu1 %v231_v18  ;;  %6918 = vst [vmem:[#allocation2_spill] sm:$0xff] %v5447_v44  ;;  %v5452_v45 = vld [vmem:[%s5272_s28 + $0xb1] sm:$0xff]  ;;  %v914_v47 = vld [vmem:[%s5272_s28 + $0x2] sm:$0xff]  ;;  %v5469_v51 = vld [vmem:[%s5272_s28 + $0x1a] sm:$0xff] }
  0x1d   : > { %4731 = vmatmul.mubr.msk.f32.gmra.mxu1 %vm271_vm0, %v5332_v19  ;;  %4807 = vmatpush3.msra.mxu0 %v3921_v17  ;;  %v915_v49 = vld [vmem:[%s5272_s28 + $0xa] sm:$0xff]  ;;  %v5465_v50 = vld [vmem:[%s5272_s28 + $0x18] sm:$0xff]  ;;  %6919 = vst [vmem:[#allocation3_spill] sm:$0xff] %v5469_v51  ;;  %v5476_v53 = vld [vmem:[%s5272_s28 + $0x20] sm:$0xff] }
  0x1e   : > { %4707 = vmatmul.mubr.msk.f32.gmra.mxu0 %vm271_vm0, %v5337_v20  ;;  %4733 = vmatprep.mubr.msk.f32.mxu1 %vm271_vm0, %v5340_v21  ;;  %v5484_v55 = vld [vmem:[%s5272_s28 + $0x22] sm:$0xff]  ;;  %v5487_v56 = vld [vmem:[%s5272_s28 + $0x30] sm:$0xff]  ;;  %v5504_v59 = vld [vmem:[%s5272_s28 + $0x38] sm:$0xff] }
  0x1f   : > { %4709 = vmatprep.mubr.msk.f32.mxu0 %vm271_vm0, %v5343_v22  ;;  %4753 = vmatpush3.msra.mxu1 %v231_v18  ;;  %6920 = vst [vmem:[#allocation4_spill] sm:$0xff] %v5484_v55  ;;  %v5492_v57 = vld [vmem:[%s5272_s28 + $0x32] sm:$0xff]  ;;  %v4056_v60 = vld [vmem:[%s6869_s1 + $0x88] sm:$0xff]  ;;  %v5512_v61 = vld [vmem:[%s5272_s28 + $0x3a] sm:$0xff] }
  0x20   : > { %4808 = vmatprep.subr.mxu0 %v3920_v23  ;;  %4754 = vmatprep.subr.mxu1 %v230_v24  ;;  %6921 = vst [vmem:[#allocation5_spill] sm:$0xff] %v5492_v57  ;;  %6922 = vst [vmem:[#allocation6_spill] sm:$0xff] %v5512_v61  ;;  %v5515_v62 = vld [vmem:[%s5272_s28 + $0x48] sm:$0xff]  ;;  %v5530_v1 = vld [vmem:[%s5272_s28 + $0x50] sm:$0xff] }
  0x21   : > { %4734 = vmatmul.mubr.msk.f32.gmra.mxu1 %vm271_vm0, %v5358_v25  ;;  %4809 = vmatpush3.msra.mxu0 %v3920_v23  ;;  %v5518_v63 = vld [vmem:[%s5272_s28 + $0x4a] sm:$0xff]  ;;  %v4055_v2 = vld [vmem:[%s6869_s1 + $0x80] sm:$0xff]  ;;  %v5538_v3 = vld [vmem:[%s5272_s28 + $0x52] sm:$0xff] }
  0x22   : > { %4710 = vmatmul.mubr.msk.f32.gmra.mxu0 %vm271_vm0, %v5363_v26  ;;  %4736 = vmatprep.mubr.msk.f32.mxu1 %vm271_vm0, %v5366_v27  ;;  %6923 = vst [vmem:[#allocation7_spill] sm:$0xff] %v5518_v63  ;;  %6924 = vst [vmem:[#allocation8_spill] sm:$0xff] %v5538_v3  ;;  %v5541_v4 = vld [vmem:[%s5272_s28 + $0x60] sm:$0xff]  ;;  %v5551_v8 = vld [vmem:[%s6869_s1 + $0xb8] sm:$0xff] }
  0x23   : > { %4712 = vmatprep.mubr.msk.f32.mxu0 %vm271_vm0, %v5369_v28  ;;  %4755 = vmatpush3.msra.mxu1 %v230_v24  ;;  %v5544_v6 = vld [vmem:[%s5272_s28 + $0x62] sm:$0xff]  ;;  %v5563_v13 = vld [vmem:[%s6869_s1 + $0xd8] sm:$0xff]  ;;  %v5568_v17 = vld [vmem:[%s5272_s28 + $0x6a] sm:$0xff] }
  0x24   : > { %4810 = vmatprep.subr.mxu0 %v3919_v29  ;;  %4860 = vmatprep.subr.mxu1 %v3990_v30  ;;  %6925 = vst [vmem:[#allocation9_spill] sm:$0xff] %v5544_v6  ;;  %v5558_v9 = vld [vmem:[%s5272_s28 + $0x68] sm:$0xff]  ;;  %6926 = vst [vmem:[#allocation10_spill] sm:$0xff] %v5568_v17  ;;  %v5571_v18 = vld [vmem:[%s5272_s28 + $0x78] sm:$0xff] }
  0x25   : > { %4737 = vmatmul.mubr.msk.f32.gmra.mxu1 %vm271_vm0, %v5384_v31  ;;  %4811 = vmatpush3.msra.mxu0 %v3919_v29  ;;  %v5574_v23 = vld [vmem:[%s5272_s28 + $0x7a] sm:$0xff]  ;;  %v5590_v29 = vld [vmem:[%s5272_s28 + $0x82] sm:$0xff] }
  0x26   : > { %4713 = vmatmul.mubr.msk.f32.gmra.mxu0 %vm271_vm0, %v5389_v32  ;;  %4739 = vmatprep.mubr.msk.f32.mxu1 %vm271_vm0, %v5392_v33  ;;  %6927 = vst [vmem:[#allocation11_spill] sm:$0xff] %v5574_v23  ;;  %v5585_v24 = vld [vmem:[%s5272_s28 + $0x80] sm:$0xff]  ;;  %6928 = vst [vmem:[#allocation12_spill] sm:$0xff] %v5590_v29 }
  0x27   : > { %4715 = vmatprep.mubr.msk.f32.mxu0 %vm271_vm0, %v5395_v34  ;;  %4916 = vmatprep.subr.mxu0 %v4058_v35 }
  0x29   : > { %4740 = vmatmul.mubr.msk.f32.gmra.mxu1 %vm271_vm0, %v5407_v36 }
  0x2a   : > { %4716 = vmatmul.mubr.msk.f32.gmra.mxu0 %vm271_vm0, %v5412_v37  ;;  %4742 = vmatprep.mubr.msk.f32.mxu1 %vm271_vm0, %v5415_v38 }
  0x2b   : > { %4718 = vmatprep.mubr.msk.f32.mxu0 %vm271_vm0, %v5418_v39 }
  0x2d   : > { %4743 = vmatmul.mubr.msk.f32.gmra.mxu1 %vm271_vm0, %v5427_v40 }
  0x2e   : > { %4719 = vmatmul.mubr.msk.f32.gmra.mxu0 %vm271_vm0, %v5432_v41  ;;  %4745 = vmatprep.mubr.msk.f32.mxu1 %vm271_vm0, %v5435_v42 }
  0x2f   : > { %4721 = vmatprep.mubr.msk.f32.mxu0 %vm271_vm0, %v5438_v43 }
  0x31   : > { %4746 = vmatmul.mubr.msk.f32.gmra.mxu1 %vm271_vm0, %v5447_v44  ;;  %v5776_v44 = vld [vmem:[%s5272_s28 + $0x16a] sm:$0xff] }
  0x32   : > { %4722 = vmatmul.mubr.msk.f32.gmra.mxu0 %vm271_vm0, %v5452_v45  ;;  %4756 = vmatprep.mubr.msk.f32.mxu1 %vm271_vm0, %v198_v46  ;;  %v5605_v46 = vld [vmem:[%s5272_s28 + $0x98] sm:$0xff]  ;;  %6946 = vst [vmem:[#allocation30_spill] sm:$0xff] %v5776_v44 }
  0x33   : > { %4812 = vmatprep.mubr.msk.f32.mxu0 %vm271_vm0, %v914_v47  ;;  %v5610_v47 = vld [vmem:[%s5272_s28 + $0x9a] sm:$0xff] }
  0x34   : > { %6930 = vst [vmem:[#allocation14_spill] sm:$0xff] %v5610_v47 }
  0x35   : > { %4757 = vmatmul.mubr.msk.f32.vlgmr.msra.gmra.mxu1 %vm271_vm0, %v199_v48  ;;  %v5613_v48 = vld [vmem:[%s5272_s28 + $0xa8] sm:$0xff] }
  0x36   : > { %4813 = vmatmul.mubr.msk.f32.vlgmr.msra.gmra.mxu0 %vm271_vm0, %v915_v49  ;;  %4861 = vmatpush3.msra.mxu1 %v3990_v30  ;;  %v5593_v30 = vld [vmem:[%s5272_s28 + $0x90] sm:$0xff] }
  0x37   : > { %4759 = vmatprep.mubr.msk.f32.mxu1 %vm271_vm0, %v5465_v50  ;;  %4917 = vmatpush3.msra.mxu0 %v4058_v35  ;;  %v5596_v35 = vld [vmem:[%s5272_s28 + $0x92] sm:$0xff]  ;;  %v5616_v49 = vld [vmem:[%s5272_s28 + $0xaa] sm:$0xff] }
  0x38   : > { %4815 = vmatprep.mubr.msk.f32.mxu0 %vm271_vm0, %v5469_v51  ;;  %4862 = vmatprep.subr.mxu1 %v3989_v52  ;;  %6929 = vst [vmem:[#allocation13_spill] sm:$0xff] %v5596_v35  ;;  %6931 = vst [vmem:[#allocation15_spill] sm:$0xff] %v5616_v49  ;;  %v5773_v51 = vld [vmem:[%s5272_s28 + $0x168] sm:$0xff] }
  0x39   : > { %4760 = vmatmul.mubr.msk.f32.gmra.mxu1 %vm271_vm0, %v5476_v53  ;;  %4918 = vmatprep.subr.mxu0 %v4057_v54 }
  0x3a   : > { %4816 = vmatmul.mubr.msk.f32.gmra.mxu0 %vm271_vm0, %v5484_v55  ;;  %4762 = vmatprep.mubr.msk.f32.mxu1 %vm271_vm0, %v5487_v56  ;;  %v5756_v55 = vld [vmem:[%s5272_s28 + $0x152] sm:$0xff] }
  0x3b   : > { %4818 = vmatprep.mubr.msk.f32.mxu0 %vm271_vm0, %v5492_v57  ;;  %4863 = vmatpush3.msra.mxu1 %v3989_v52  ;;  %v5625_v52 = vld [vmem:[%s5272_s28 + $0xb0] sm:$0xff]  ;;  %6945 = vst [vmem:[#allocation29_spill] sm:$0xff] %v5756_v55 }
  0x3c   : > { %4919 = vmatpush3.msra.mxu0 %v4057_v54  ;;  %4864 = vmatprep.subr.mxu1 %v3988_v58  ;;  %v5630_v54 = vld [vmem:[%s5272_s28 + $0xb2] sm:$0xff] }
  0x3d   : > { %4763 = vmatmul.mubr.msk.f32.gmra.mxu1 %vm271_vm0, %v5504_v59  ;;  %4920 = vmatprep.subr.mxu0 %v4056_v60  ;;  %6932 = vst [vmem:[#allocation16_spill] sm:$0xff] %v5630_v54  ;;  %v5753_v57 = vld [vmem:[%s5272_s28 + $0x150] sm:$0xff] }
  0x3e   : > { %4819 = vmatmul.mubr.msk.f32.gmra.mxu0 %vm271_vm0, %v5512_v61  ;;  %4765 = vmatprep.mubr.msk.f32.mxu1 %vm271_vm0, %v5515_v62  ;;  %v5736_v61 = vld [vmem:[%s5272_s28 + $0x13a] sm:$0xff] }
  0x3f   : > { %4821 = vmatprep.mubr.msk.f32.mxu0 %vm271_vm0, %v5518_v63  ;;  %4865 = vmatpush3.msra.mxu1 %v3988_v58  ;;  %v5633_v58 = vld [vmem:[%s5272_s28 + $0xc0] sm:$0xff]  ;;  %v5733_v63 = vld [vmem:[%s5272_s28 + $0x138] sm:$0xff]  ;;  %6943 = vst [vmem:[#allocation27_spill] sm:$0xff] %v5736_v61 }
  0x40   : > { %4921 = vmatpush3.msra.mxu0 %v4056_v60  ;;  %4866 = vmatprep.subr.mxu1 %v3987_v0  ;;  %v5636_v60 = vld [vmem:[%s5272_s28 + $0xc2] sm:$0xff] }
  0x41   : > { %4766 = vmatmul.mubr.msk.f32.gmra.mxu1 %vm271_vm0, %v5530_v1  ;;  %4922 = vmatprep.subr.mxu0 %v4055_v2  ;;  %6933 = vst [vmem:[#allocation17_spill] sm:$0xff] %v5636_v60 }
  0x42   : > { %4822 = vmatmul.mubr.msk.f32.gmra.mxu0 %vm271_vm0, %v5538_v3  ;;  %4768 = vmatprep.mubr.msk.f32.mxu1 %vm271_vm0, %v5541_v4  ;;  %v5716_v3 = vld [vmem:[%s5272_s28 + $0x122] sm:$0xff] }
  0x43   : > { %4824 = vmatprep.mubr.msk.f32.mxu0 %vm271_vm0, %v5544_v6  ;;  %4867 = vmatpush3.msra.mxu1 %v3987_v0  ;;  %v5645_v0 = vld [vmem:[%s5272_s28 + $0xc8] sm:$0xff]  ;;  %v5713_v6 = vld [vmem:[%s5272_s28 + $0x120] sm:$0xff]  ;;  %6941 = vst [vmem:[#allocation25_spill] sm:$0xff] %v5716_v3 }
  0x44   : > { %4923 = vmatpush3.msra.mxu0 %v4055_v2  ;;  %4972 = vmatprep.subr.mxu1 %v5551_v8  ;;  %v5650_v2 = vld [vmem:[%s5272_s28 + $0xca] sm:$0xff] }
  0x45   : > { %4769 = vmatmul.mubr.msk.f32.gmra.mxu1 %vm271_vm0, %v5558_v9  ;;  %5028 = vmatprep.subr.mxu0 %v5563_v13  ;;  %6934 = vst [vmem:[#allocation18_spill] sm:$0xff] %v5650_v2 }
  0x46   : > { %4825 = vmatmul.mubr.msk.f32.gmra.mxu0 %vm271_vm0, %v5568_v17  ;;  %4771 = vmatprep.mubr.msk.f32.mxu1 %vm271_vm0, %v5571_v18  ;;  %v5696_v17 = vld [vmem:[%s5272_s28 + $0x10a] sm:$0xff] }
  0x47   : > { %4827 = vmatprep.mubr.msk.f32.mxu0 %vm271_vm0, %v5574_v23  ;;  %v5693_v23 = vld [vmem:[%s5272_s28 + $0x108] sm:$0xff]  ;;  %6939 = vst [vmem:[#allocation23_spill] sm:$0xff] %v5696_v17 }
  0x49   : > { %4772 = vmatmul.mubr.msk.f32.gmra.mxu1 %vm271_vm0, %v5585_v24 }
  0x4a   : > { %4828 = vmatmul.mubr.msk.f32.gmra.mxu0 %vm271_vm0, %v5590_v29  ;;  %4774 = vmatprep.mubr.msk.f32.mxu1 %vm271_vm0, %v5593_v30  ;;  %v5676_v29 = vld [vmem:[%s5272_s28 + $0xf2] sm:$0xff] }
  0x4b   : > { %4830 = vmatprep.mubr.msk.f32.mxu0 %vm271_vm0, %v5596_v35  ;;  %v5673_v35 = vld [vmem:[%s5272_s28 + $0xf0] sm:$0xff]  ;;  %6937 = vst [vmem:[#allocation21_spill] sm:$0xff] %v5676_v29 }
  0x4d   : > { %4775 = vmatmul.mubr.msk.f32.gmra.mxu1 %vm271_vm0, %v5605_v46 }
  0x4e   : > { %4831 = vmatmul.mubr.msk.f32.gmra.mxu0 %vm271_vm0, %v5610_v47  ;;  %4777 = vmatprep.mubr.msk.f32.mxu1 %vm271_vm0, %v5613_v48  ;;  %v5656_v47 = vld [vmem:[%s5272_s28 + $0xda] sm:$0xff] }
  0x4f   : > { %4833 = vmatprep.mubr.msk.f32.mxu0 %vm271_vm0, %v5616_v49  ;;  %v5653_v49 = vld [vmem:[%s5272_s28 + $0xd8] sm:$0xff]  ;;  %6935 = vst [vmem:[#allocation19_spill] sm:$0xff] %v5656_v47 }
  0x51   : > { %4778 = vmatmul.mubr.msk.f32.gmra.mxu1 %vm271_vm0, %v5625_v52 }
  0x52   : > { %4834 = vmatmul.mubr.msk.f32.gmra.mxu0 %vm271_vm0, %v5630_v54  ;;  %4780 = vmatprep.mubr.msk.f32.mxu1 %vm271_vm0, %v5633_v58  ;;  %v5665_v54 = vld [vmem:[%s5272_s28 + $0xe0] sm:$0xff] }
  0x53   : > { %4836 = vmatprep.mubr.msk.f32.mxu0 %vm271_vm0, %v5636_v60  ;;  %v5670_v60 = vld [vmem:[%s5272_s28 + $0xe2] sm:$0xff] }
  0x54   : > { %6936 = vst [vmem:[#allocation20_spill] sm:$0xff] %v5670_v60 }
  0x55   : > { %4781 = vmatmul.mubr.msk.f32.gmra.mxu1 %vm271_vm0, %v5645_v0 }
  0x56   : > { %4837 = vmatmul.mubr.msk.f32.gmra.mxu0 %vm271_vm0, %v5650_v2  ;;  %4783 = vmatprep.mubr.msk.f32.mxu1 %vm271_vm0, %v5653_v49  ;;  %v5685_v2 = vld [vmem:[%s5272_s28 + $0xf8] sm:$0xff] }
  0x57   : > { %4839 = vmatprep.mubr.msk.f32.mxu0 %vm271_vm0, %v5656_v47  ;;  %v5690_v47 = vld [vmem:[%s5272_s28 + $0xfa] sm:$0xff] }
  0x58   : > { %6938 = vst [vmem:[#allocation22_spill] sm:$0xff] %v5690_v47 }
  0x59   : > { %4784 = vmatmul.mubr.msk.f32.gmra.mxu1 %vm271_vm0, %v5665_v54 }
  0x5a   : > { %4840 = vmatmul.mubr.msk.f32.gmra.mxu0 %vm271_vm0, %v5670_v60  ;;  %4786 = vmatprep.mubr.msk.f32.mxu1 %vm271_vm0, %v5673_v35  ;;  %v5705_v60 = vld [vmem:[%s5272_s28 + $0x110] sm:$0xff] }
  0x5b   : > { %4842 = vmatprep.mubr.msk.f32.mxu0 %vm271_vm0, %v5676_v29  ;;  %v5710_v29 = vld [vmem:[%s5272_s28 + $0x112] sm:$0xff] }
  0x5c   : > { %6940 = vst [vmem:[#allocation24_spill] sm:$0xff] %v5710_v29 }
  0x5d   : > { %4787 = vmatmul.mubr.msk.f32.gmra.mxu1 %vm271_vm0, %v5685_v2 }
  0x5e   : > { %4843 = vmatmul.mubr.msk.f32.gmra.mxu0 %vm271_vm0, %v5690_v47  ;;  %4789 = vmatprep.mubr.msk.f32.mxu1 %vm271_vm0, %v5693_v23  ;;  %v5725_v47 = vld [vmem:[%s5272_s28 + $0x128] sm:$0xff] }
  0x5f   : > { %4845 = vmatprep.mubr.msk.f32.mxu0 %vm271_vm0, %v5696_v17  ;;  %v5730_v17 = vld [vmem:[%s5272_s28 + $0x12a] sm:$0xff] }
  0x60   : > { %6942 = vst [vmem:[#allocation26_spill] sm:$0xff] %v5730_v17 }
  0x61   : > { %4790 = vmatmul.mubr.msk.f32.gmra.mxu1 %vm271_vm0, %v5705_v60 }
  0x62   : > { %4846 = vmatmul.mubr.msk.f32.gmra.mxu0 %vm271_vm0, %v5710_v29  ;;  %4792 = vmatprep.mubr.msk.f32.mxu1 %vm271_vm0, %v5713_v6  ;;  %v5745_v29 = vld [vmem:[%s5272_s28 + $0x140] sm:$0xff] }
  0x63   : > { %4848 = vmatprep.mubr.msk.f32.mxu0 %vm271_vm0, %v5716_v3  ;;  %v5750_v3 = vld [vmem:[%s5272_s28 + $0x142] sm:$0xff] }
  0x64   : > { %6944 = vst [vmem:[#allocation28_spill] sm:$0xff] %v5750_v3 }
  0x65   : > { %4793 = vmatmul.mubr.msk.f32.gmra.mxu1 %vm271_vm0, %v5725_v47 }
  0x66   : > { %4849 = vmatmul.mubr.msk.f32.gmra.mxu0 %vm271_vm0, %v5730_v17  ;;  %4795 = vmatprep.mubr.msk.f32.mxu1 %vm271_vm0, %v5733_v63  ;;  %v5765_v17 = vld [vmem:[%s5272_s28 + $0x158] sm:$0xff] }
  0x67   : > { %4851 = vmatprep.mubr.msk.f32.mxu0 %vm271_vm0, %v5736_v61  ;;  %v5770_v61 = vld [vmem:[%s5272_s28 + $0x15a] sm:$0xff] }
  0x69   : > { %4796 = vmatmul.mubr.msk.f32.gmra.mxu1 %vm271_vm0, %v5745_v29 }
  0x6a   : > { %4852 = vmatmul.mubr.msk.f32.gmra.mxu0 %vm271_vm0, %v5750_v3  ;;  %4798 = vmatprep.mubr.msk.f32.mxu1 %vm271_vm0, %v5753_v57  ;;  %v5785_v3 = vld [vmem:[%s5272_s28 + $0x170] sm:$0xff] }
  0x6b   : > { %4854 = vmatprep.mubr.msk.f32.mxu0 %vm271_vm0, %v5756_v55  ;;  %v5790_v55 = vld [vmem:[%s5272_s28 + $0x172] sm:$0xff] }
  0x6c   : > { %6947 = vst [vmem:[#allocation31_spill] sm:$0xff] %v5790_v55 }
  0x6d   : > { %4799 = vmatmul.mubr.msk.f32.gmra.mxu1 %vm271_vm0, %v5765_v17 }
  0x6e   : > { %4855 = vmatmul.mubr.msk.f32.gmra.mxu0 %vm271_vm0, %v5770_v61  ;;  %4801 = vmatprep.mubr.msk.f32.mxu1 %vm271_vm0, %v5773_v51 }
  0x6f   : > { %4857 = vmatprep.mubr.msk.f32.mxu0 %vm271_vm0, %v5776_v44  ;;  %v4125_v44 = vld [vmem:[%s6869_s1 + $0xb0] sm:$0xff] }
  0x71   : > { %4802 = vmatmul.mubr.msk.f32.gmra.mxu1 %vm271_vm0, %v5785_v3 }
  0x72   : > { %4858 = vmatmul.mubr.msk.f32.gmra.mxu0 %vm271_vm0, %v5790_v55  ;;  %4868 = vmatprep.mubr.msk.f32.mxu1 %vm271_vm0, %v5465_v50  ;;  %v4193_v55 = vld [vmem:[%s6869_s1 + $0xd0] sm:$0xff] }
  0x73   : > { %4924 = vmatprep.mubr.msk.f32.mxu0 %vm271_vm0, %v5297_v11  ;;  %v4124_v11 = vld [vmem:[%s6869_s1 + $0xa8] sm:$0xff]  ;;  %v6962_v50 = vld [vmem:[#allocation16_spill] sm:$0xff] }
  0x75   : > { %4869 = vmatmul.mubr.msk.f32.vlgmr.msra.gmra.mxu1 %vm271_vm0, %v5476_v53  ;;  %v6963_v53 = vld [vmem:[#allocation17_spill] sm:$0xff] }
  0x76   : > { %4925 = vmatmul.mubr.msk.f32.vlgmr.msra.gmra.mxu0 %vm271_vm0, %v5309_v14  ;;  %4973 = vmatpush3.msra.mxu1 %v5551_v8  ;;  %v4192_v14 = vld [vmem:[%s6869_s1 + $0xc8] sm:$0xff] }
  0x77   : > { %4871 = vmatprep.mubr.msk.f32.mxu1 %vm271_vm0, %v5487_v56  ;;  %5029 = vmatpush3.msra.mxu0 %v5563_v13 }
  0x78   : > { %4927 = vmatprep.mubr.msk.f32.mxu0 %vm271_vm0, %v5317_v16  ;;  %4974 = vmatprep.subr.mxu1 %v4125_v44  ;;  %v4123_v16 = vld [vmem:[%s6869_s1 + $0xa0] sm:$0xff] }
  0x79   : > { %4872 = vmatmul.mubr.msk.f32.gmra.mxu1 %vm271_vm0, %v5504_v59  ;;  %5030 = vmatprep.subr.mxu0 %v4193_v55 }
  0x7a   : > { %4928 = vmatmul.mubr.msk.f32.gmra.mxu0 %vm271_vm0, %v5337_v20  ;;  %4874 = vmatprep.mubr.msk.f32.mxu1 %vm271_vm0, %v5515_v62  ;;  %v4191_v20 = vld [vmem:[%s6869_s1 + $0xc0] sm:$0xff] }
  0x7b   : > { %4930 = vmatprep.mubr.msk.f32.mxu0 %vm271_vm0, %v5343_v22  ;;  %4975 = vmatpush3.msra.mxu1 %v4125_v44  ;;  %v5849_v22 = vld [vmem:[%s6869_s1 + $0xf8] sm:$0xff]  ;;  %v6960_v44 = vld [vmem:[#allocation14_spill] sm:$0xff] }
  0x7c   : > { %5031 = vmatpush3.msra.mxu0 %v4193_v55  ;;  %4976 = vmatprep.subr.mxu1 %v4124_v11  ;;  %v6964_v55 = vld [vmem:[#allocation18_spill] sm:$0xff] }
  0x7d   : > { %4875 = vmatmul.mubr.msk.f32.gmra.mxu1 %vm271_vm0, %v5530_v1  ;;  %5032 = vmatprep.subr.mxu0 %v4192_v14 }
  0x7e   : > { %4931 = vmatmul.mubr.msk.f32.gmra.mxu0 %vm271_vm0, %v5363_v26  ;;  %4877 = vmatprep.mubr.msk.f32.mxu1 %vm271_vm0, %v5541_v4  ;;  %v5858_v26 = vld [vmem:[%s6869_s1 + $0x118] sm:$0xff] }
  0x7f   : > { %4933 = vmatprep.mubr.msk.f32.mxu0 %vm271_vm0, %v5369_v28  ;;  %4977 = vmatpush3.msra.mxu1 %v4124_v11  ;;  %v6951_v28 = vld [vmem:[#allocation5_spill] sm:$0xff] }
  0x80   : > { %5033 = vmatpush3.msra.mxu0 %v4192_v14  ;;  %4978 = vmatprep.subr.mxu1 %v4123_v16  ;;  %v6974_v14 = vld [vmem:[#allocation28_spill] sm:$0xff] }
  0x81   : > { %4878 = vmatmul.mubr.msk.f32.gmra.mxu1 %vm271_vm0, %v5558_v9  ;;  %5034 = vmatprep.subr.mxu0 %v4191_v20 }
  0x82   : > { %4934 = vmatmul.mubr.msk.f32.gmra.mxu0 %vm271_vm0, %v5389_v32  ;;  %4880 = vmatprep.mubr.msk.f32.mxu1 %vm271_vm0, %v5571_v18  ;;  %v4260_v32 = vld [vmem:[%s6869_s1 + $0xe8] sm:$0xff] }
  0x83   : > { %4936 = vmatprep.mubr.msk.f32.mxu0 %vm271_vm0, %v5395_v34  ;;  %4979 = vmatpush3.msra.mxu1 %v4123_v16  ;;  %v4328_v34 = vld [vmem:[%s6869_s1 + $0x108] sm:$0xff] }
  0x84   : > { %5035 = vmatpush3.msra.mxu0 %v4191_v20  ;;  %5084 = vmatprep.subr.mxu1 %v5849_v22 }
  0x85   : > { %4881 = vmatmul.mubr.msk.f32.gmra.mxu1 %vm271_vm0, %v5585_v24  ;;  %5140 = vmatprep.subr.mxu0 %v5858_v26 }
  0x86   : > { %4937 = vmatmul.mubr.msk.f32.gmra.mxu0 %vm271_vm0, %v5412_v37  ;;  %4883 = vmatprep.mubr.msk.f32.mxu1 %vm271_vm0, %v5593_v30  ;;  %v4259_v37 = vld [vmem:[%s6869_s1 + $0xe0] sm:$0xff] }
  0x87   : > { %4939 = vmatprep.mubr.msk.f32.mxu0 %vm271_vm0, %v5418_v39  ;;  %v4327_v39 = vld [vmem:[%s6869_s1 + $0x100] sm:$0xff] }
  0x89   : > { %4884 = vmatmul.mubr.msk.f32.gmra.mxu1 %vm271_vm0, %v5605_v46 }
  0x8a   : > { %4940 = vmatmul.mubr.msk.f32.gmra.mxu0 %vm271_vm0, %v5432_v41  ;;  %4886 = vmatprep.mubr.msk.f32.mxu1 %vm271_vm0, %v5613_v48  ;;  %v6957_v41 = vld [vmem:[#allocation11_spill] sm:$0xff] }
  0x8b   : > { %4942 = vmatprep.mubr.msk.f32.mxu0 %vm271_vm0, %v5438_v43  ;;  %v6959_v43 = vld [vmem:[#allocation13_spill] sm:$0xff] }
  0x8d   : > { %4887 = vmatmul.mubr.msk.f32.gmra.mxu1 %vm271_vm0, %v5625_v52 }
  0x8e   : > { %4943 = vmatmul.mubr.msk.f32.gmra.mxu0 %vm271_vm0, %v5452_v45  ;;  %4889 = vmatprep.mubr.msk.f32.mxu1 %vm271_vm0, %v5633_v58  ;;  %v6961_v45 = vld [vmem:[#allocation15_spill] sm:$0xff] }
  0x8f   : > { %4945 = vmatprep.mubr.msk.f32.mxu0 %vm271_vm0, %v5278_v5  ;;  %v5945_v5 = vld [vmem:[%s5272_s28 + $0x180] sm:$0xff] }
  0x91   : > { %4890 = vmatmul.mubr.msk.f32.gmra.mxu1 %vm271_vm0, %v5645_v0 }
  0x92   : > { %4946 = vmatmul.mubr.msk.f32.gmra.mxu0 %vm271_vm0, %v5282_v7  ;;  %4892 = vmatprep.mubr.msk.f32.mxu1 %vm271_vm0, %v5653_v49  ;;  %v5948_v7 = vld [vmem:[%s5272_s28 + $0x181] sm:$0xff] }
  0x93   : > { %4948 = vmatprep.mubr.msk.f32.mxu0 %vm271_vm0, %v5292_v10  ;;  %v6948_v10 = vld [vmem:[#allocation2_spill] sm:$0xff] }
  0x95   : > { %4893 = vmatmul.mubr.msk.f32.gmra.mxu1 %vm271_vm0, %v5665_v54 }
  0x96   : > { %4949 = vmatmul.mubr.msk.f32.gmra.mxu0 %vm271_vm0, %v5301_v12  ;;  %4895 = vmatprep.mubr.msk.f32.mxu1 %vm271_vm0, %v5673_v35  ;;  %v5957_v12 = vld [vmem:[%s5272_s28 + $0x188] sm:$0xff] }
  0x97   : > { %4951 = vmatprep.mubr.msk.f32.mxu0 %vm271_vm0, %v5312_v15  ;;  %v5962_v15 = vld [vmem:[%s5272_s28 + $0x189] sm:$0xff] }
  0x99   : > { %4896 = vmatmul.mubr.msk.f32.gmra.mxu1 %vm271_vm0, %v5685_v2 }
  0x9a   : > { %4952 = vmatmul.mubr.msk.f32.gmra.mxu0 %vm271_vm0, %v5332_v19  ;;  %4898 = vmatprep.mubr.msk.f32.mxu1 %vm271_vm0, %v5693_v23  ;;  %v6949_v19 = vld [vmem:[#allocation3_spill] sm:$0xff] }
  0x9b   : > { %4954 = vmatprep.mubr.msk.f32.mxu0 %vm271_vm0, %v5340_v21  ;;  %v6950_v21 = vld [vmem:[#allocation4_spill] sm:$0xff] }
  0x9d   : > { %4899 = vmatmul.mubr.msk.f32.gmra.mxu1 %vm271_vm0, %v5705_v60 }
  0x9e   : > { %4955 = vmatmul.mubr.msk.f32.gmra.mxu0 %vm271_vm0, %v5358_v25  ;;  %4901 = vmatprep.mubr.msk.f32.mxu1 %vm271_vm0, %v5713_v6  ;;  %v4261_v25 = vld [vmem:[%s6869_s1 + $0xf0] sm:$0xff] }
  0x9f   : > { %4957 = vmatprep.mubr.msk.f32.mxu0 %vm271_vm0, %v5366_v27  ;;  %v4329_v27 = vld [vmem:[%s6869_s1 + $0x110] sm:$0xff] }
  0xa1   : > { %4902 = vmatmul.mubr.msk.f32.gmra.mxu1 %vm271_vm0, %v5725_v47 }
  0xa2   : > { %4958 = vmatmul.mubr.msk.f32.gmra.mxu0 %vm271_vm0, %v5384_v31  ;;  %4904 = vmatprep.mubr.msk.f32.mxu1 %vm271_vm0, %v5733_v63  ;;  %v6952_v31 = vld [vmem:[#allocation6_spill] sm:$0xff] }
  0xa3   : > { %4960 = vmatprep.mubr.msk.f32.mxu0 %vm271_vm0, %v5392_v33  ;;  %v6953_v33 = vld [vmem:[#allocation7_spill] sm:$0xff] }
  0xa5   : > { %4905 = vmatmul.mubr.msk.f32.gmra.mxu1 %vm271_vm0, %v5745_v29 }
  0xa6   : > { %4961 = vmatmul.mubr.msk.f32.gmra.mxu0 %vm271_vm0, %v5407_v36  ;;  %4907 = vmatprep.mubr.msk.f32.mxu1 %vm271_vm0, %v5753_v57  ;;  %v6954_v36 = vld [vmem:[#allocation8_spill] sm:$0xff] }
  0xa7   : > { %4963 = vmatprep.mubr.msk.f32.mxu0 %vm271_vm0, %v5415_v38  ;;  %v6955_v38 = vld [vmem:[#allocation9_spill] sm:$0xff] }
  0xa9   : > { %4908 = vmatmul.mubr.msk.f32.gmra.mxu1 %vm271_vm0, %v5765_v17 }
  0xaa   : > { %4964 = vmatmul.mubr.msk.f32.gmra.mxu0 %vm271_vm0, %v5427_v40  ;;  %4910 = vmatprep.mubr.msk.f32.mxu1 %vm271_vm0, %v5773_v51  ;;  %v6956_v40 = vld [vmem:[#allocation10_spill] sm:$0xff] }
  0xab   : > { %4966 = vmatprep.mubr.msk.f32.mxu0 %vm271_vm0, %v5435_v42  ;;  %v6958_v42 = vld [vmem:[#allocation12_spill] sm:$0xff] }
  0xad   : > { %4911 = vmatmul.mubr.msk.f32.gmra.mxu1 %vm271_vm0, %v5785_v3 }
  0xae   : > { %4967 = vmatmul.mubr.msk.f32.gmra.mxu0 %vm271_vm0, %v6948_v10  ;;  %4913 = vmatprep.mubr.msk.f32.mxu1 %vm271_vm0, %v5945_v5 }
  0xaf   : > { %4969 = vmatprep.mubr.msk.f32.mxu0 %vm271_vm0, %v5948_v7 }
  0xb1   : > { %4914 = vmatmul.mubr.msk.f32.gmra.mxu1 %vm271_vm0, %v5957_v12 }
  0xb2   : > { %4970 = vmatmul.mubr.msk.f32.gmra.mxu0 %vm271_vm0, %v5962_v15  ;;  %4980 = vmatprep.mubr.msk.f32.mxu1 %vm271_vm0, %v6949_v19 }
  0xb3   : > { %5036 = vmatprep.mubr.msk.f32.mxu0 %vm271_vm0, %v5487_v56  ;;  %v6965_v56 = vld [vmem:[#allocation19_spill] sm:$0xff] }
  0xb5   : > { %4981 = vmatmul.mubr.msk.f32.vlgmr.msra.gmra.mxu1 %vm271_vm0, %v6950_v21 }
  0xb6   : > { %5037 = vmatmul.mubr.msk.f32.vlgmr.msra.gmra.mxu0 %vm271_vm0, %v5504_v59  ;;  %5085 = vmatpush3.msra.mxu1 %v5849_v22 }
  0xb7   : > { %4983 = vmatprep.mubr.msk.f32.mxu1 %vm271_vm0, %v6951_v28  ;;  %5141 = vmatpush3.msra.mxu0 %v5858_v26 }
  0xb8   : > { %5039 = vmatprep.mubr.msk.f32.mxu0 %vm271_vm0, %v5515_v62  ;;  %5086 = vmatprep.subr.mxu1 %v4261_v25  ;;  %v6966_v62 = vld [vmem:[#allocation20_spill] sm:$0xff] }
  0xb9   : > { %4984 = vmatmul.mubr.msk.f32.gmra.mxu1 %vm271_vm0, %v6952_v31  ;;  %5142 = vmatprep.subr.mxu0 %v4329_v27 }
  0xba   : > { %5040 = vmatmul.mubr.msk.f32.gmra.mxu0 %vm271_vm0, %v5530_v1  ;;  %4986 = vmatprep.mubr.msk.f32.mxu1 %vm271_vm0, %v6953_v33 }
  0xbb   : > { %5042 = vmatprep.mubr.msk.f32.mxu0 %vm271_vm0, %v5541_v4  ;;  %5087 = vmatpush3.msra.mxu1 %v4261_v25  ;;  %v6967_v4 = vld [vmem:[#allocation21_spill] sm:$0xff]  ;;  %v6977_v25 = vld [vmem:[#allocation31_spill] sm:$0xff] }
  0xbc   : > { %5143 = vmatpush3.msra.mxu0 %v4329_v27  ;;  %5088 = vmatprep.subr.mxu1 %v4260_v32 }
  0xbd   : > { %4987 = vmatmul.mubr.msk.f32.gmra.mxu1 %vm271_vm0, %v6954_v36  ;;  %5144 = vmatprep.subr.mxu0 %v4328_v34 }
  0xbe   : > { %5043 = vmatmul.mubr.msk.f32.gmra.mxu0 %vm271_vm0, %v5558_v9  ;;  %4989 = vmatprep.mubr.msk.f32.mxu1 %vm271_vm0, %v6955_v38 }
  0xbf   : > { %5045 = vmatprep.mubr.msk.f32.mxu0 %vm271_vm0, %v5571_v18  ;;  %5089 = vmatpush3.msra.mxu1 %v4260_v32  ;;  %v6968_v18 = vld [vmem:[#allocation22_spill] sm:$0xff] }
  0xc0   : > { %5145 = vmatpush3.msra.mxu0 %v4328_v34  ;;  %5090 = vmatprep.subr.mxu1 %v4259_v37  ;;  %v4190_v32 = vld [vmem:[%s5272_s28 + $0x1a0] sm:$0xff]  ;;  %v4227_v34 = vld [vmem:[%s5272_s28 + $0x31] sm:$0xff] }
  0xc1   : > { %4990 = vmatmul.mubr.msk.f32.gmra.mxu1 %vm271_vm0, %v6956_v40  ;;  %5146 = vmatprep.subr.mxu0 %v4327_v39 }
  0xc2   : > { %5046 = vmatmul.mubr.msk.f32.gmra.mxu0 %vm271_vm0, %v5585_v24  ;;  %4992 = vmatprep.mubr.msk.f32.mxu1 %vm271_vm0, %v6957_v41 }
  0xc3   : > { %5048 = vmatprep.mubr.msk.f32.mxu0 %vm271_vm0, %v5593_v30  ;;  %5091 = vmatpush3.msra.mxu1 %v4259_v37  ;;  %v6969_v30 = vld [vmem:[#allocation23_spill] sm:$0xff] }
  0xc4   : > { %5147 = vmatpush3.msra.mxu0 %v4327_v39 }
  0xc5   : > { %4993 = vmatmul.mubr.msk.f32.gmra.mxu1 %vm271_vm0, %v6958_v42 }
  0xc6   : > { %5049 = vmatmul.mubr.msk.f32.gmra.mxu0 %vm271_vm0, %v5605_v46  ;;  %4995 = vmatprep.mubr.msk.f32.mxu1 %vm271_vm0, %v6959_v43 }
  0xc7   : > { %5051 = vmatprep.mubr.msk.f32.mxu0 %vm271_vm0, %v5613_v48  ;;  %v6970_v48 = vld [vmem:[#allocation24_spill] sm:$0xff] }
  0xc9   : > { %4996 = vmatmul.mubr.msk.f32.gmra.mxu1 %vm271_vm0, %v6960_v44 }
  0xca   : > { %5052 = vmatmul.mubr.msk.f32.gmra.mxu0 %vm271_vm0, %v5625_v52  ;;  %4998 = vmatprep.mubr.msk.f32.mxu1 %vm271_vm0, %v6961_v45  ;;  %v6971_v52 = vld [vmem:[#allocation25_spill] sm:$0xff] }
  0xcb   : > { %5054 = vmatprep.mubr.msk.f32.mxu0 %vm271_vm0, %v5633_v58 }
  0xcd   : > { %4999 = vmatmul.mubr.msk.f32.gmra.mxu1 %vm271_vm0, %v6962_v50 }
  0xce   : > { %5055 = vmatmul.mubr.msk.f32.gmra.mxu0 %vm271_vm0, %v5645_v0  ;;  %5001 = vmatprep.mubr.msk.f32.mxu1 %vm271_vm0, %v6963_v53 }
  0xcf   : > { %5057 = vmatprep.mubr.msk.f32.mxu0 %vm271_vm0, %v5653_v49 }
  0xd1   : > { %5002 = vmatmul.mubr.msk.f32.gmra.mxu1 %vm271_vm0, %v6964_v55 }
  0xd2   : > { %5058 = vmatmul.mubr.msk.f32.gmra.mxu0 %vm271_vm0, %v5665_v54  ;;  %5004 = vmatprep.mubr.msk.f32.mxu1 %vm271_vm0, %v6965_v56 }
  0xd3   : > { %5060 = vmatprep.mubr.msk.f32.mxu0 %vm271_vm0, %v5673_v35 }
  0xd5   : > { %v6056_v59 = vpop.f32.mrf.mxu1  ;;  %5005 = vmatmul.mubr.msk.f32.gmra.mxu1 %vm271_vm0, %v6966_v62  ;;  %v4228_v62 = vld [vmem:[%s5272_s28 + $0x39] sm:$0xff] }
  0xd6   : > { %v6060_v1 = vpop.f32.mrf.mxu0  ;;  %5061 = vmatmul.mubr.msk.f32.gmra.mxu0 %vm271_vm0, %v5685_v2  ;;  %5007 = vmatprep.mubr.msk.f32.mxu1 %vm271_vm0, %v6967_v4 }
  0xd7   : > { %v6066_v8 = vpop.f32.mrf.mxu1  ;;  %5063 = vmatprep.mubr.msk.f32.mxu0 %vm271_vm0, %v5693_v23 }
  0xd8   : > { %v6070_v9 = vpop.f32.mrf.mxu0 }
  0xd9   : > { %v6072_v13 = vpop.f32.mrf.mxu1  ;;  %5008 = vmatmul.mubr.msk.f32.gmra.mxu1 %vm271_vm0, %v6968_v18  ;;  %v4229_v18 = vld [vmem:[%s5272_s28 + $0x49] sm:$0xff] }
  0xda   : > { %v6076_v24 = vpop.f32.mrf.mxu0  ;;  %5064 = vmatmul.mubr.msk.f32.gmra.mxu0 %vm271_vm0, %v5705_v60  ;;  %5010 = vmatprep.mubr.msk.f32.mxu1 %vm271_vm0, %v6969_v30  ;;  %v6972_v60 = vld [vmem:[#allocation26_spill] sm:$0xff] }
  0xdb   : > { %v6082_v35 = vpop.f32.mrf.mxu1  ;;  %5066 = vmatprep.mubr.msk.f32.mxu0 %vm271_vm0, %v5713_v6 }
  0xdc   : > { %v6086_v23 = vpop.f32.mrf.mxu0 }
  0xdd   : > { %v6088_v46 = vpop.f32.mrf.mxu1  ;;  %5011 = vmatmul.mubr.msk.f32.gmra.mxu1 %vm271_vm0, %v6970_v48 }
  0xde   : > { %v6092_v49 = vpop.f32.mrf.mxu0  ;;  %5067 = vmatmul.mubr.msk.f32.gmra.mxu0 %vm271_vm0, %v5725_v47  ;;  %5013 = vmatprep.mubr.msk.f32.mxu1 %vm271_vm0, %v6971_v52  ;;  %v6973_v47 = vld [vmem:[#allocation27_spill] sm:$0xff] }
  0xdf   : > { %v6098_v54 = vpop.f32.mrf.mxu1  ;;  %5069 = vmatprep.mubr.msk.f32.mxu0 %vm271_vm0, %v5733_v63 }
  0xe0   : > { %v6102_v6 = vpop.f32.mrf.mxu0 }
  0xe1   : > { %v6104_v58 = vpop.f32.mrf.mxu1  ;;  %5014 = vmatmul.mubr.msk.f32.gmra.mxu1 %vm271_vm0, %v6972_v60 }
  0xe2   : > { %v6108_v0 = vpop.f32.mrf.mxu0  ;;  %5070 = vmatmul.mubr.msk.f32.gmra.mxu0 %vm271_vm0, %v5745_v29  ;;  %5016 = vmatprep.mubr.msk.f32.mxu1 %vm271_vm0, %v6973_v47  ;;  %v6975_v29 = vld [vmem:[#allocation29_spill] sm:$0xff] }
  0xe3   : > { %v6114_v2 = vpop.f32.mrf.mxu1  ;;  %5072 = vmatprep.mubr.msk.f32.mxu0 %vm271_vm0, %v5753_v57  ;;  %v4230_v47 = vld [vmem:[%s5272_s28 + $0x51] sm:$0xff] }
  0xe4   : > { %v6118_v63 = vpop.f32.mrf.mxu0 }
  0xe5   : > { %v6120_v11 = vpop.f32.mrf.mxu1  ;;  %5017 = vmatmul.mubr.msk.f32.gmra.mxu1 %vm271_vm0, %v6974_v14 }
  0xe6   : > { %v6124_v16 = vpop.f32.mrf.mxu0  ;;  %5073 = vmatmul.mubr.msk.f32.gmra.mxu0 %vm271_vm0, %v5765_v17  ;;  %5019 = vmatprep.mubr.msk.f32.mxu1 %vm271_vm0, %v6975_v29  ;;  %v6976_v17 = vld [vmem:[#allocation30_spill] sm:$0xff] }
  0xe7   : > { %v6130_v20 = vpop.f32.mrf.mxu1  ;;  %5075 = vmatprep.mubr.msk.f32.mxu0 %vm271_vm0, %v5773_v51  ;;  %v6151_v51 = vld [vmem:[%s5272_s28 + $0x182] sm:$0xff] }
  0xe8   : > { %v6134_v57 = vpop.f32.mrf.mxu0 }
  0xe9   : > { %v6136_v22 = vpop.f32.mrf.mxu1  ;;  %5020 = vmatmul.mubr.msk.f32.gmra.mxu1 %vm271_vm0, %v5770_v61  ;;  %v4189_v61 = vld [vmem:[%s5272_s28 + $0x198] sm:$0xff] }
  0xea   : > { %v6140_v26 = vpop.f32.mrf.mxu0  ;;  %5076 = vmatmul.mubr.msk.f32.gmra.mxu0 %vm271_vm0, %v5785_v3  ;;  %5022 = vmatprep.mubr.msk.f32.mxu1 %vm271_vm0, %v6976_v17 }
  0xeb   : > { %v6146_v10 = vpop.f32.mrf.mxu1  ;;  %5078 = vmatprep.mubr.msk.f32.mxu0 %vm271_vm0, %v5945_v5  ;;  %v6167_v5 = vld [vmem:[%s5272_s28 + $0x18a] sm:$0xff] }
  0xec   : > { %v6153_v19 = vpop.f32.mrf.mxu0 }
  0xed   : > { %v6156_v21 = vpop.f32.mrf.mxu1  ;;  %5023 = vmatmul.mubr.msk.f32.gmra.mxu1 %vm271_vm0, %v6977_v25 }
  0xee   : > { %v6160_v3 = vpop.f32.mrf.mxu0  ;;  %5079 = vmatmul.mubr.msk.f32.gmra.mxu0 %vm271_vm0, %v5957_v12  ;;  %5025 = vmatprep.mubr.msk.f32.mxu1 %vm271_vm0, %v6151_v51 }
  0xef   : > { %v6169_v27 = vpop.f32.mrf.mxu1  ;;  %5081 = vmatprep.mubr.msk.f32.mxu0 %vm271_vm0, %v4189_v61 }
  0xf0   : > { %v6174_v37 = vpop.f32.mrf.mxu0 }
  0xf1   : > { %v6176_v39 = vpop.f32.mrf.mxu1  ;;  %5026 = vmatmul.mubr.msk.f32.gmra.mxu1 %vm271_vm0, %v6167_v5 }
  0xf2   : > { %v6180_v12 = vpop.f32.mrf.mxu0  ;;  %5082 = vmatmul.mubr.msk.f32.gmra.mxu0 %vm271_vm0, %v4190_v32  ;;  %5092 = vmatprep.mubr.msk.f32.mxu1 %vm271_vm0, %v4227_v34 }
  0xf3   : > { %v6185_v4 = vpop.f32.mrf.mxu1  ;;  %5148 = vmatprep.mubr.msk.f32.mxu0 %vm271_vm0, %v6951_v28  ;;  %v4231_v28 = vld [vmem:[%s5272_s28 + $0x61] sm:$0xff] }
  0xf4   : > { %v6190_v30 = vpop.f32.mrf.mxu0 }
  0xf5   : > { %v4758_v48 = vpop.f32.mrf.mxu1  ;;  %5093 = vmatmul.mubr.msk.f32.vlgmr.msra.gmra.mxu1 %vm271_vm0, %v4228_v62 }
  0xf6   : > { %v761_v52 = vadd.f32 %v4758_v48, %v6060_v1  ;;  %v4814_v60 = vpop.f32.mrf.mxu0  ;;  %5149 = vmatmul.mubr.msk.f32.vlgmr.msra.gmra.mxu0 %vm271_vm0, %v6952_v31  ;;  %5095 = vmatprep.mubr.msk.f32.mxu1 %vm271_vm0, %v4229_v18 }
  0xf7   : > { %v755_v14 = vpop.f32.mrf.mxu1  ;;  %5151 = vmatprep.mubr.msk.f32.mxu0 %vm271_vm0, %v6953_v33  ;;  %v4232_v33 = vld [vmem:[%s5272_s28 + $0x69] sm:$0xff] }
  0xf8   : > { %v6201_v29 = vadd.f32 %v4814_v60, %v761_v52  ;;  %v756_v17 = vadd.f32 %v755_v14, %v6070_v9  ;;  %v1113_v61 = vpop.f32.mrf.mxu0  ;;  %v4233_v9 = vld [vmem:[%s5272_s28 + $0x79] sm:$0xff] }
  0xf9   : > { %v4761_v1 = vpop.f32.mrf.mxu1  ;;  %5096 = vmatmul.mubr.msk.f32.gmra.mxu1 %vm271_vm0, %v4230_v47 }
  0xfa   : > { %v6205_v25 = vadd.f32 %v1113_v61, %v756_v17  ;;  %v771_v31 = vadd.f32 %v4761_v1, %v6076_v24  ;;  %v4817_v32 = vpop.f32.mrf.mxu0  ;;  %5152 = vmatmul.mubr.msk.f32.gmra.mxu0 %vm271_vm0, %v6954_v36  ;;  %5098 = vmatprep.mubr.msk.f32.mxu1 %vm271_vm0, %v4231_v28 }
  0xfb   : > { %v765_v34 = vpop.f32.mrf.mxu1  ;;  %5154 = vmatprep.mubr.msk.f32.mxu0 %vm271_vm0, %v6955_v38  ;;  %v4234_v38 = vld [vmem:[%s5272_s28 + $0x81] sm:$0xff] }
  0xfc   : > { %v6215_v62 = vadd.f32 %v4817_v32, %v771_v31  ;;  %v766_v18 = vadd.f32 %v765_v34, %v6086_v23  ;;  %v1123_v48 = vpop.f32.mrf.mxu0  ;;  %v4235_v23 = vld [vmem:[%s5272_s28 + $0x91] sm:$0xff] }
  0xfd   : > { %v4764_v24 = vpop.f32.mrf.mxu1  ;;  %5099 = vmatmul.mubr.msk.f32.gmra.mxu1 %vm271_vm0, %v4232_v33 }
  0xfe   : > { %v6219_v52 = vadd.f32 %v1123_v48, %v766_v18  ;;  %v781_v36 = vadd.f32 %v4764_v24, %v6092_v49  ;;  %v4820_v60 = vpop.f32.mrf.mxu0  ;;  %5155 = vmatmul.mubr.msk.f32.gmra.mxu0 %vm271_vm0, %v6956_v40  ;;  %5101 = vmatprep.mubr.msk.f32.mxu1 %vm271_vm0, %v4233_v9 }
  0xff   : > { %v775_v47 = vpop.f32.mrf.mxu1  ;;  %5157 = vmatprep.mubr.msk.f32.mxu0 %vm271_vm0, %v6957_v41  ;;  %v4236_v41 = vld [vmem:[%s5272_s28 + $0x99] sm:$0xff] }
 0x100   : > { %v6229_v14 = vadd.f32 %v4820_v60, %v781_v36  ;;  %v776_v28 = vadd.f32 %v775_v47, %v6102_v6  ;;  %v1133_v17 = vpop.f32.mrf.mxu0  ;;  %v4237_v6 = vld [vmem:[%s5272_s28 + $0xa9] sm:$0xff] }
 0x101   : > { %v4767_v49 = vpop.f32.mrf.mxu1  ;;  %5102 = vmatmul.mubr.msk.f32.gmra.mxu1 %vm271_vm0, %v4234_v38 }
 0x102   : > { %v6233_v61 = vadd.f32 %v1133_v17, %v776_v28  ;;  %v791_v40 = vadd.f32 %v4767_v49, %v6108_v0  ;;  %v4823_v1 = vpop.f32.mrf.mxu0  ;;  %5158 = vmatmul.mubr.msk.f32.gmra.mxu0 %vm271_vm0, %v6958_v42  ;;  %5104 = vmatprep.mubr.msk.f32.mxu1 %vm271_vm0, %v4235_v23 }
 0x103   : > { %v785_v31 = vpop.f32.mrf.mxu1  ;;  %5160 = vmatprep.mubr.msk.f32.mxu0 %vm271_vm0, %v6959_v43  ;;  %v4238_v43 = vld [vmem:[%s5272_s28 + $0xb1] sm:$0xff] }
 0x104   : > { %v6243_v32 = vadd.f32 %v4823_v1, %v791_v40  ;;  %v786_v33 = vadd.f32 %v785_v31, %v6118_v63  ;;  %v1143_v34 = vpop.f32.mrf.mxu0  ;;  %v4239_v63 = vld [vmem:[%s5272_s28 + $0xc1] sm:$0xff]  ;;  %v4243_v31 = vld [vmem:[%s5272_s28 + $0xf1] sm:$0xff] }
 0x105   : > { %v4770_v0 = vpop.f32.mrf.mxu1  ;;  %5105 = vmatmul.mubr.msk.f32.gmra.mxu1 %vm271_vm0, %v4236_v41 }
 0x106   : > { %v6247_v9 = vadd.f32 %v1143_v34, %v786_v33  ;;  %v801_v42 = vadd.f32 %v4770_v0, %v6124_v16  ;;  %v4826_v18 = vpop.f32.mrf.mxu0  ;;  %5161 = vmatmul.mubr.msk.f32.gmra.mxu0 %vm271_vm0, %v6960_v44  ;;  %5107 = vmatprep.mubr.msk.f32.mxu1 %vm271_vm0, %v4237_v6  ;;  %v4311_v34 = vld [vmem:[%s5272_s28 + $0xf2] sm:$0xff] }
 0x107   : > { %v795_v48 = vpop.f32.mrf.mxu1  ;;  %5163 = vmatprep.mubr.msk.f32.mxu0 %vm271_vm0, %v6961_v45  ;;  %v4240_v45 = vld [vmem:[%s5272_s28 + $0xc9] sm:$0xff] }
 0x108   : > { %v6257_v24 = vadd.f32 %v4826_v18, %v801_v42  ;;  %v796_v36 = vadd.f32 %v795_v48, %v6134_v57  ;;  %v1153_v60 = vpop.f32.mrf.mxu0  ;;  %v4241_v57 = vld [vmem:[%s5272_s28 + $0xd9] sm:$0xff]  ;;  %v4245_v48 = vld [vmem:[%s5272_s28 + $0x109] sm:$0xff] }
 0x109   : > { %v4773_v16 = vpop.f32.mrf.mxu1  ;;  %5108 = vmatmul.mubr.msk.f32.gmra.mxu1 %vm271_vm0, %v4238_v43 }
 0x10a   : > { %v6261_v38 = vadd.f32 %v1153_v60, %v796_v36  ;;  %v811_v44 = vadd.f32 %v4773_v16, %v6140_v26  ;;  %v4829_v47 = vpop.f32.mrf.mxu0  ;;  %5164 = vmatmul.mubr.msk.f32.gmra.mxu0 %vm271_vm0, %v6962_v50  ;;  %5110 = vmatprep.mubr.msk.f32.mxu1 %vm271_vm0, %v4239_v63 }
 0x10b   : > { %v805_v23 = vpop.f32.mrf.mxu1  ;;  %5166 = vmatprep.mubr.msk.f32.mxu0 %vm271_vm0, %v6963_v53  ;;  %v4242_v53 = vld [vmem:[%s5272_s28 + $0xe1] sm:$0xff] }
 0x10c   : > { %v6271_v28 = vadd.f32 %v4829_v47, %v811_v44  ;;  %v806_v17 = vadd.f32 %v805_v23, %v6153_v19  ;;  %v1163_v26 = vpop.f32.mrf.mxu0  ;;  %v4310_v19 = vld [vmem:[%s5272_s28 + $0xe2] sm:$0xff]  ;;  %v4246_v23 = vld [vmem:[%s5272_s28 + $0x111] sm:$0xff] }
 0x10d   : > { %v4776_v49 = vpop.f32.mrf.mxu1  ;;  %5111 = vmatmul.mubr.msk.f32.gmra.mxu1 %vm271_vm0, %v4240_v45 }
 0x10e   : > { %v6275_v50 = vadd.f32 %v1163_v26, %v806_v17  ;;  %v821_v40 = vadd.f32 %v4776_v49, %v6160_v3  ;;  %v4832_v1 = vpop.f32.mrf.mxu0  ;;  %5167 = vmatmul.mubr.msk.f32.gmra.mxu0 %vm271_vm0, %v6964_v55  ;;  %5113 = vmatprep.mubr.msk.f32.mxu1 %vm271_vm0, %v4241_v57  ;;  %v4247_v17 = vld [vmem:[%s5272_s28 + $0x121] sm:$0xff] }
 0x10f   : > { %v815_v41 = vpop.f32.mrf.mxu1  ;;  %5169 = vmatprep.mubr.msk.f32.mxu0 %vm271_vm0, %v6965_v56  ;;  %v4244_v56 = vld [vmem:[%s5272_s28 + $0xf9] sm:$0xff] }
 0x110   : > { %v6286_v6 = vadd.f32 %v4832_v1, %v821_v40  ;;  %v816_v3 = vadd.f32 %v815_v41, %v6174_v37  ;;  %v1173_v33 = vpop.f32.mrf.mxu0  ;;  %v4312_v37 = vld [vmem:[%s5272_s28 + $0xfa] sm:$0xff] }
 0x111   : > { %v4779_v55 = vpop.f32.mrf.mxu1  ;;  %5114 = vmatmul.mubr.msk.f32.gmra.mxu1 %vm271_vm0, %v4242_v53 }
 0x112   : > { %v6291_v0 = vadd.f32 %v1173_v33, %v816_v3  ;;  %v831_v42 = vadd.f32 %v4779_v55, %v6180_v12  ;;  %v4835_v18 = vpop.f32.mrf.mxu0  ;;  %5170 = vmatmul.mubr.msk.f32.gmra.mxu0 %vm271_vm0, %v4310_v19  ;;  %5116 = vmatprep.mubr.msk.f32.mxu1 %vm271_vm0, %v4243_v31  ;;  %v4313_v12 = vld [vmem:[%s5272_s28 + $0x10a] sm:$0xff]  ;;  %v4249_v33 = vld [vmem:[%s5272_s28 + $0x139] sm:$0xff] }
 0x113   : > { %v825_v43 = vpop.f32.mrf.mxu1  ;;  %5172 = vmatprep.mubr.msk.f32.mxu0 %vm271_vm0, %v4311_v34  ;;  %v4248_v31 = vld [vmem:[%s5272_s28 + $0x129] sm:$0xff] }
 0x114   : > { %v6300_v63 = vadd.f32 %v4835_v18, %v831_v42  ;;  %v826_v36 = vadd.f32 %v825_v43, %v6190_v30  ;;  %v1183_v60 = vpop.f32.mrf.mxu0  ;;  %v4314_v30 = vld [vmem:[%s5272_s28 + $0x112] sm:$0xff] }
 0x115   : > { %v4782_v16 = vpop.f32.mrf.mxu1  ;;  %5117 = vmatmul.mubr.msk.f32.gmra.mxu1 %vm271_vm0, %v4244_v56 }
 0x116   : > { %v6305_v44 = vadd.f32 %v1183_v60, %v826_v36  ;;  %v841_v47 = vadd.f32 %v4782_v16, %v6056_v59  ;;  %v4838_v45 = vpop.f32.mrf.mxu0  ;;  %5173 = vmatmul.mubr.msk.f32.gmra.mxu0 %vm271_vm0, %v4312_v37  ;;  %5119 = vmatprep.mubr.msk.f32.mxu1 %vm271_vm0, %v4245_v48  ;;  %v4315_v59 = vld [vmem:[%s5272_s28 + $0x122] sm:$0xff]  ;;  %v4251_v60 = vld [vmem:[%s5272_s28 + $0x151] sm:$0xff] }
 0x117   : > { %v835_v57 = vpop.f32.mrf.mxu1  ;;  %5175 = vmatprep.mubr.msk.f32.mxu0 %vm271_vm0, %v4313_v12  ;;  %v4250_v48 = vld [vmem:[%s5272_s28 + $0x141] sm:$0xff] }
 0x118   : > { %v6314_v26 = vadd.f32 %v4838_v45, %v841_v47  ;;  %v836_v49 = vadd.f32 %v835_v57, %v6066_v8  ;;  %v1193_v40 = vpop.f32.mrf.mxu0  ;;  %v4316_v8 = vld [vmem:[%s5272_s28 + $0x12a] sm:$0xff] }
 0x119   : > { %v4785_v1 = vpop.f32.mrf.mxu1  ;;  %5120 = vmatmul.mubr.msk.f32.gmra.mxu1 %vm271_vm0, %v4246_v23 }
 0x11a   : > { %v6319_v53 = vadd.f32 %v1193_v40, %v836_v49  ;;  %v851_v41 = vadd.f32 %v4785_v1, %v6072_v13  ;;  %v4841_v19 = vpop.f32.mrf.mxu0  ;;  %5176 = vmatmul.mubr.msk.f32.gmra.mxu0 %vm271_vm0, %v4314_v30  ;;  %5122 = vmatprep.mubr.msk.f32.mxu1 %vm271_vm0, %v4247_v17  ;;  %v4317_v13 = vld [vmem:[%s5272_s28 + $0x13a] sm:$0xff]  ;;  %v4253_v40 = vld [vmem:[%s5272_s28 + $0x169] sm:$0xff] }
 0x11b   : > { %v845_v3 = vpop.f32.mrf.mxu1  ;;  %5178 = vmatprep.mubr.msk.f32.mxu0 %vm271_vm0, %v4315_v59  ;;  %v4252_v17 = vld [vmem:[%s5272_s28 + $0x159] sm:$0xff] }
 0x11c   : > { %v6328_v34 = vadd.f32 %v4841_v19, %v851_v41  ;;  %v846_v55 = vadd.f32 %v845_v3, %v6082_v35  ;;  %v1203_v42 = vpop.f32.mrf.mxu0  ;;  %v4318_v35 = vld [vmem:[%s5272_s28 + $0x142] sm:$0xff]  ;;  %v4321_v19 = vld [vmem:[%s5272_s28 + $0x16a] sm:$0xff] }
 0x11d   : > { %v4788_v18 = vpop.f32.mrf.mxu1  ;;  %5123 = vmatmul.mubr.msk.f32.gmra.mxu1 %vm271_vm0, %v4248_v31 }
 0x11e   : > { %v6333_v56 = vadd.f32 %v1203_v42, %v846_v55  ;;  %v861_v43 = vadd.f32 %v4788_v18, %v6088_v46  ;;  %v4844_v37 = vpop.f32.mrf.mxu0  ;;  %5179 = vmatmul.mubr.msk.f32.gmra.mxu0 %vm271_vm0, %v4316_v8  ;;  %5125 = vmatprep.mubr.msk.f32.mxu1 %vm271_vm0, %v4249_v33  ;;  %v4319_v46 = vld [vmem:[%s5272_s28 + $0x152] sm:$0xff] }
 0x11f   : > { %v855_v36 = vpop.f32.mrf.mxu1  ;;  %5181 = vmatprep.mubr.msk.f32.mxu0 %vm271_vm0, %v4317_v13  ;;  %v4254_v33 = vld [vmem:[%s5272_s28 + $0x171] sm:$0xff] }
 0x120   : > { %v6342_v12 = vadd.f32 %v4844_v37, %v861_v43  ;;  %v856_v16 = vadd.f32 %v855_v36, %v6098_v54  ;;  %v1213_v47 = vpop.f32.mrf.mxu0  ;;  %v4320_v54 = vld [vmem:[%s5272_s28 + $0x15a] sm:$0xff] }
 0x121   : > { %v4791_v45 = vpop.f32.mrf.mxu1  ;;  %5126 = vmatmul.mubr.msk.f32.gmra.mxu1 %vm271_vm0, %v4250_v48 }
 0x122   : > { %v6347_v23 = vadd.f32 %v1213_v47, %v856_v16  ;;  %v871_v57 = vadd.f32 %v4791_v45, %v6104_v58  ;;  %v4847_v30 = vpop.f32.mrf.mxu0  ;;  %5182 = vmatmul.mubr.msk.f32.gmra.mxu0 %vm271_vm0, %v4318_v35  ;;  %5128 = vmatprep.mubr.msk.f32.mxu1 %vm271_vm0, %v4251_v60  ;;  %v4325_v47 = vld [vmem:[%s5272_s28 + $0x19a] sm:$0xff] }
 0x123   : > { %v865_v49 = vpop.f32.mrf.mxu1  ;;  %5184 = vmatprep.mubr.msk.f32.mxu0 %vm271_vm0, %v4319_v46 }
 0x124   : > { %v6356_v59 = vadd.f32 %v4847_v30, %v871_v57  ;;  %v866_v1 = vadd.f32 %v865_v49, %v6114_v2  ;;  %v1223_v41 = vpop.f32.mrf.mxu0  ;;  %v4322_v2 = vld [vmem:[%s5272_s28 + $0x172] sm:$0xff] }
 0x125   : > { %v4794_v58 = vpop.f32.mrf.mxu1  ;;  %5129 = vmatmul.mubr.msk.f32.gmra.mxu1 %vm271_vm0, %v4252_v17 }
 0x126   : > { %v6361_v31 = vadd.f32 %v1223_v41, %v866_v1  ;;  %v881_v3 = vadd.f32 %v4794_v58, %v6120_v11  ;;  %v4850_v8 = vpop.f32.mrf.mxu0  ;;  %5185 = vmatmul.mubr.msk.f32.gmra.mxu0 %vm271_vm0, %v4320_v54  ;;  %5131 = vmatprep.mubr.msk.f32.mxu1 %vm271_vm0, %v4253_v40 }
 0x127   : > { %v875_v55 = vpop.f32.mrf.mxu1  ;;  %5187 = vmatprep.mubr.msk.f32.mxu0 %vm271_vm0, %v4321_v19 }
 0x128   : > { %v6369_v42 = vadd.f32 %v4850_v8, %v881_v3  ;;  %v876_v13 = vadd.f32 %v875_v55, %v6130_v20  ;;  %v1233_v18 = vpop.f32.mrf.mxu0  ;;  %v4257_v20 = vld [vmem:[%s5272_s28 + $0x199] sm:$0xff] }
 0x129   : > { %v4797_v43 = vpop.f32.mrf.mxu1  ;;  %5132 = vmatmul.mubr.msk.f32.gmra.mxu1 %vm271_vm0, %v4254_v33 }
 0x12a   : > { %v6373_v11 = vadd.f32 %v1233_v18, %v876_v13  ;;  %v891_v37 = vadd.f32 %v4797_v43, %v6136_v22  ;;  %v4853_v48 = vpop.f32.mrf.mxu0  ;;  %5188 = vmatmul.mubr.msk.f32.gmra.mxu0 %vm271_vm0, %v4322_v2  ;;  %5134 = vmatprep.mubr.msk.f32.mxu1 %vm271_vm0, %v5948_v7 }
 0x12b   : > { %v885_v36 = vpop.f32.mrf.mxu1  ;;  %5190 = vmatprep.mubr.msk.f32.mxu0 %vm271_vm0, %v6151_v51  ;;  %v4258_v51 = vld [vmem:[%s5272_s28 + $0x1a1] sm:$0xff] }
 0x12c   : > { %v6382_v35 = vadd.f32 %v4853_v48, %v891_v37  ;;  %v886_v60 = vadd.f32 %v885_v36, %v6146_v10  ;;  %v1243_v16 = vpop.f32.mrf.mxu0  ;;  %v4326_v10 = vld [vmem:[%s5272_s28 + $0x1a2] sm:$0xff] }
 0x12d   : > { %v4800_v22 = vpop.f32.mrf.mxu1  ;;  %5135 = vmatmul.mubr.msk.f32.gmra.mxu1 %vm271_vm0, %v5962_v15 }
 0x12e   : > { %v6388_v46 = vadd.f32 %v1243_v16, %v886_v60  ;;  %v901_v7 = vadd.f32 %v4800_v22, %v6156_v21  ;;  %v4856_v45 = vpop.f32.mrf.mxu0  ;;  %5191 = vmatmul.mubr.msk.f32.gmra.mxu0 %vm271_vm0, %v6167_v5  ;;  %5137 = vmatprep.mubr.msk.f32.mxu1 %vm271_vm0, %v4257_v20 }
 0x12f   : > { %v895_v57 = vpop.f32.mrf.mxu1  ;;  %5193 = vmatprep.mubr.msk.f32.mxu0 %vm271_vm0, %v4325_v47 }
 0x130   : > { %v6397_v30 = vadd.f32 %v4856_v45, %v901_v7  ;;  %v896_v17 = vadd.f32 %v895_v57, %v6169_v27  ;;  %v1253_v15 = vpop.f32.mrf.mxu0 }
 0x131   : > { %v4803_v49 = vpop.f32.mrf.mxu1  ;;  %5138 = vmatmul.mubr.msk.f32.gmra.mxu1 %vm271_vm0, %v4258_v51 }
 0x132   : > { %v6401_v21 = vadd.f32 %v1253_v15, %v896_v17  ;;  %v911_v54 = vadd.f32 %v4803_v49, %v6176_v39  ;;  %v4859_v5 = vpop.f32.mrf.mxu0  ;;  %5194 = vmatmul.mubr.msk.f32.gmra.mxu0 %vm271_vm0, %v4326_v10 }
 0x133   : > { %v905_v40 = vpop.f32.mrf.mxu1 }
 0x134   : > { %v6405_v1 = vadd.f32 %v4859_v5, %v911_v54  ;;  %v906_v41 = vadd.f32 %v905_v40, %v6185_v4  ;;  %v1263_v19 = vpop.f32.mrf.mxu0 }
 0x135   : > { %v4870_v58 = vpop.f32.mrf.mxu1 }
 0x136   : > { %v6408_v3 = vadd.f32 %v1263_v19, %v906_v41  ;;  %v1664_v27 = vadd.f32 %v4870_v58, %v6201_v29  ;;  %v4926_v8 = vpop.f32.mrf.mxu0 }
 0x137   : > { %v1504_v33 = vpop.f32.mrf.mxu1 }
 0x138   : > { %v6411_v55 = vadd.f32 %v4926_v8, %v1664_v27  ;;  %v1663_v39 = vadd.f32 %v1504_v33, %v6205_v25  ;;  %v1894_v2 = vpop.f32.mrf.mxu0 }
 0x139   : > { %v4873_v13 = vpop.f32.mrf.mxu1 }
 0x13a   : > { %v6414_v18 = vadd.f32 %v1894_v2, %v1663_v39  ;;  %v1666_v43 = vadd.f32 %v4873_v13, %v6215_v62  ;;  %v4929_v37 = vpop.f32.mrf.mxu0 }
 0x13b   : > { %v1514_v4 = vpop.f32.mrf.mxu1 }
 0x13c   : > { %v6417_v48 = vadd.f32 %v4929_v37, %v1666_v43  ;;  %v1665_v36 = vadd.f32 %v1514_v4, %v6219_v52  ;;  %v1904_v20 = vpop.f32.mrf.mxu0 }
 0x13d   : > { %v4876_v29 = vpop.f32.mrf.mxu1 }
 0x13e   : > { %v6420_v60 = vadd.f32 %v1904_v20, %v1665_v36  ;;  %v1668_v16 = vadd.f32 %v4876_v29, %v6229_v14  ;;  %v4932_v47 = vpop.f32.mrf.mxu0 }
 0x13f   : > { %v1524_v25 = vpop.f32.mrf.mxu1 }
 0x140   : > { %v6423_v22 = vadd.f32 %v4932_v47, %v1668_v16  ;;  %v1667_v7 = vadd.f32 %v1524_v25, %v6233_v61  ;;  %v1914_v45 = vpop.f32.mrf.mxu0 }
 0x141   : > { %v4879_v62 = vpop.f32.mrf.mxu1 }
 0x142   : > { %v6426_v51 = vadd.f32 %v1914_v45, %v1667_v7  ;;  %v1670_v57 = vadd.f32 %v4879_v62, %v6243_v32  ;;  %v4935_v10 = vpop.f32.mrf.mxu0 }
 0x143   : > { %v1534_v52 = vpop.f32.mrf.mxu1 }
 0x144   : > { %v6429_v17 = vadd.f32 %v4935_v10, %v1670_v57  ;;  %v1669_v15 = vadd.f32 %v1534_v52, %v6247_v9  ;;  %v1924_v49 = vpop.f32.mrf.mxu0 }
 0x145   : > { %v4882_v14 = vpop.f32.mrf.mxu1 }
 0x146   : > { %v6432_v54 = vadd.f32 %v1924_v49, %v1669_v15  ;;  %v1672_v5 = vadd.f32 %v4882_v14, %v6257_v24  ;;  %v4938_v40 = vpop.f32.mrf.mxu0 }
 0x147   : > { %v1544_v61 = vpop.f32.mrf.mxu1 }
 0x148   : > { %v6435_v41 = vadd.f32 %v4938_v40, %v1672_v5  ;;  %v1671_v19 = vadd.f32 %v1544_v61, %v6261_v38  ;;  %v1934_v58 = vpop.f32.mrf.mxu0 }
 0x149   : > { %v4885_v32 = vpop.f32.mrf.mxu1 }
 0x14a   : > { %v6438_v27 = vadd.f32 %v1934_v58, %v1671_v19  ;;  %v1674_v8 = vadd.f32 %v4885_v32, %v6271_v28  ;;  %v4941_v33 = vpop.f32.mrf.mxu0 }
 0x14b   : > { %v1554_v9 = vpop.f32.mrf.mxu1 }
 0x14c   : > { %v6441_v39 = vadd.f32 %v4941_v33, %v1674_v8  ;;  %v1673_v2 = vadd.f32 %v1554_v9, %v6275_v50  ;;  %v1944_v13 = vpop.f32.mrf.mxu0 }
 0x14d   : > { %v4888_v24 = vpop.f32.mrf.mxu1 }
 0x14e   : > { %v6444_v43 = vadd.f32 %v1944_v13, %v1673_v2  ;;  %v1676_v37 = vadd.f32 %v4888_v24, %v6286_v6  ;;  %v4944_v4 = vpop.f32.mrf.mxu0 }
 0x14f   : > { %v1564_v38 = vpop.f32.mrf.mxu1 }
 0x150   : > { %v6447_v36 = vadd.f32 %v4944_v4, %v1676_v37  ;;  %v1675_v20 = vadd.f32 %v1564_v38, %v6291_v0  ;;  %v1954_v29 = vpop.f32.mrf.mxu0 }
 0x151   : > { %v4891_v28 = vpop.f32.mrf.mxu1 }
 0x152   : > { %v6450_v16 = vadd.f32 %v1954_v29, %v1675_v20  ;;  %v1678_v47 = vadd.f32 %v4891_v28, %v6300_v63  ;;  %v4947_v25 = vpop.f32.mrf.mxu0 }
 0x153   : > { %v1574_v50 = vpop.f32.mrf.mxu1 }
 0x154   : > { %v6453_v7 = vadd.f32 %v4947_v25, %v1678_v47  ;;  %v1677_v45 = vadd.f32 %v1574_v50, %v6305_v44  ;;  %v1964_v62 = vpop.f32.mrf.mxu0 }
 0x155   : > { %v4894_v6 = vpop.f32.mrf.mxu1 }
 0x156   : > { %v6456_v57 = vadd.f32 %v1964_v62, %v1677_v45  ;;  %v1680_v10 = vadd.f32 %v4894_v6, %v6314_v26  ;;  %v4950_v52 = vpop.f32.mrf.mxu0 }
 0x157   : > { %v1584_v0 = vpop.f32.mrf.mxu1 }
 0x158   : > { %v6459_v15 = vadd.f32 %v4950_v52, %v1680_v10  ;;  %v1679_v49 = vadd.f32 %v1584_v0, %v6319_v53  ;;  %v1974_v14 = vpop.f32.mrf.mxu0 }
 0x159   : > { %v4897_v63 = vpop.f32.mrf.mxu1 }
 0x15a   : > { %v6462_v5 = vadd.f32 %v1974_v14, %v1679_v49  ;;  %v1682_v40 = vadd.f32 %v4897_v63, %v6328_v34  ;;  %v4953_v61 = vpop.f32.mrf.mxu0 }
 0x15b   : > { %v1594_v44 = vpop.f32.mrf.mxu1 }
 0x15c   : > { %v6465_v19 = vadd.f32 %v4953_v61, %v1682_v40  ;;  %v1681_v58 = vadd.f32 %v1594_v44, %v6333_v56  ;;  %v1984_v32 = vpop.f32.mrf.mxu0 }
 0x15d   : > { %v4900_v26 = vpop.f32.mrf.mxu1 }
 0x15e   : > { %6978 = vst [vmem:[#allocation2_spill] sm:$0xff] %v6465_v19  ;;  %v6468_v8 = vadd.f32 %v1984_v32, %v1681_v58  ;;  %v1684_v33 = vadd.f32 %v4900_v26, %v6342_v12  ;;  %v4956_v9 = vpop.f32.mrf.mxu0 }
 0x15f   : > { %v1604_v53 = vpop.f32.mrf.mxu1 }
 0x160   : > { %6979 = vst [vmem:[#allocation3_spill] sm:$0xff] %v6468_v8  ;;  %v6471_v2 = vadd.f32 %v4956_v9, %v1684_v33  ;;  %v1683_v13 = vadd.f32 %v1604_v53, %v6347_v23  ;;  %v1994_v24 = vpop.f32.mrf.mxu0 }
 0x161   : > { %v4903_v34 = vpop.f32.mrf.mxu1 }
 0x162   : > { %6980 = vst [vmem:[#allocation4_spill] sm:$0xff] %v6471_v2  ;;  %v6474_v37 = vadd.f32 %v1994_v24, %v1683_v13  ;;  %v1686_v4 = vadd.f32 %v4903_v34, %v6356_v59  ;;  %v4959_v38 = vpop.f32.mrf.mxu0 }
 0x163   : > { %v1614_v56 = vpop.f32.mrf.mxu1 }
 0x164   : > { %6981 = vst [vmem:[#allocation5_spill] sm:$0xff] %v6474_v37  ;;  %v6477_v20 = vadd.f32 %v4959_v38, %v1686_v4  ;;  %v1685_v29 = vadd.f32 %v1614_v56, %v6361_v31  ;;  %v2004_v28 = vpop.f32.mrf.mxu0 }
 0x165   : > { %v4906_v12 = vpop.f32.mrf.mxu1 }
 0x166   : > { %6982 = vst [vmem:[#allocation6_spill] sm:$0xff] %v6477_v20  ;;  %v6480_v47 = vadd.f32 %v2004_v28, %v1685_v29  ;;  %v1688_v25 = vadd.f32 %v4906_v12, %v6369_v42  ;;  %v4962_v50 = vpop.f32.mrf.mxu0 }
 0x167   : > { %v1624_v23 = vpop.f32.mrf.mxu1 }
 0x168   : > { %6983 = vst [vmem:[#allocation7_spill] sm:$0xff] %v6480_v47  ;;  %v6483_v45 = vadd.f32 %v4962_v50, %v1688_v25  ;;  %v1687_v62 = vadd.f32 %v1624_v23, %v6373_v11  ;;  %v2014_v6 = vpop.f32.mrf.mxu0 }
 0x169   : > { %v4909_v59 = vpop.f32.mrf.mxu1 }
 0x16a   : > { %6984 = vst [vmem:[#allocation8_spill] sm:$0xff] %v6483_v45  ;;  %v6486_v10 = vadd.f32 %v2014_v6, %v1687_v62  ;;  %v1690_v52 = vadd.f32 %v4909_v59, %v6382_v35  ;;  %v4965_v0 = vpop.f32.mrf.mxu0 }
 0x16b   : > { %v1634_v31 = vpop.f32.mrf.mxu1 }
 0x16c   : > { %6985 = vst [vmem:[#allocation9_spill] sm:$0xff] %v6486_v10  ;;  %v6489_v49 = vadd.f32 %v4965_v0, %v1690_v52  ;;  %v1689_v14 = vadd.f32 %v1634_v31, %v6388_v46  ;;  %v2024_v63 = vpop.f32.mrf.mxu0 }
 0x16d   : > { %v4912_v42 = vpop.f32.mrf.mxu1 }
 0x16e   : > { %6986 = vst [vmem:[#allocation10_spill] sm:$0xff] %v6489_v49  ;;  %v6492_v40 = vadd.f32 %v2024_v63, %v1689_v14  ;;  %v1692_v61 = vadd.f32 %v4912_v42, %v6397_v30  ;;  %v4968_v44 = vpop.f32.mrf.mxu0 }
 0x16f   : > { %v1644_v11 = vpop.f32.mrf.mxu1 }
 0x170   : > { %6987 = vst [vmem:[#allocation11_spill] sm:$0xff] %v6492_v40  ;;  %v6495_v58 = vadd.f32 %v4968_v44, %v1692_v61  ;;  %v1691_v32 = vadd.f32 %v1644_v11, %v6401_v21  ;;  %v2034_v26 = vpop.f32.mrf.mxu0 }
 0x171   : > { %v4915_v35 = vpop.f32.mrf.mxu1 }
 0x172   : > { %6988 = vst [vmem:[#allocation12_spill] sm:$0xff] %v6495_v58  ;;  %v6498_v33 = vadd.f32 %v2034_v26, %v1691_v32  ;;  %v1694_v9 = vadd.f32 %v4915_v35, %v6405_v1  ;;  %v4971_v53 = vpop.f32.mrf.mxu0 }
 0x173   : > { %v1654_v46 = vpop.f32.mrf.mxu1 }
 0x174   : > { %6989 = vst [vmem:[#allocation13_spill] sm:$0xff] %v6498_v33  ;;  %v6501_v13 = vadd.f32 %v4971_v53, %v1694_v9  ;;  %v1693_v24 = vadd.f32 %v1654_v46, %v6408_v3  ;;  %v2044_v34 = vpop.f32.mrf.mxu0 }
 0x175   : > { %v4982_v30 = vpop.f32.mrf.mxu1 }
 0x176   : > { %6990 = vst [vmem:[#allocation14_spill] sm:$0xff] %v6501_v13  ;;  %v6504_v4 = vadd.f32 %v2044_v34, %v1693_v24  ;;  %v6506_v38 = vpop.f32.mrf.mxu0 }
 0x177   : > { %v2284_v56 = vpop.f32.mrf.mxu1 }
 0x178   : > { %6991 = vst [vmem:[#allocation15_spill] sm:$0xff] %v6504_v4  ;;  %v6508_v21 = vpop.f32.mrf.mxu0 }
 0x179   : > { %v4985_v29 = vpop.f32.mrf.mxu1 }
 0x17a   : > { %v6510_v28 = vpop.f32.mrf.mxu0 }
 0x17b   : > { %v6512_v12 = vpop.f32.mrf.mxu1 }
 0x17c   : > { %v6514_v1 = vpop.f32.mrf.mxu0 }
 0x17d   : > { %v6516_v25 = vpop.f32.mrf.mxu1 }
 0x17e   : > { %v6518_v50 = vpop.f32.mrf.mxu0 }
 0x17f   : > { %v6520_v3 = vpop.f32.mrf.mxu1 }
 0x180   : > { %v6522_v23 = vpop.f32.mrf.mxu0 }
 0x181   : > { %v6524_v62 = vpop.f32.mrf.mxu1 }
 0x182   : > { %v6526_v6 = vpop.f32.mrf.mxu0 }
 0x183   : > { %v6528_v59 = vpop.f32.mrf.mxu1 }
 0x184   : > { %v6530_v52 = vpop.f32.mrf.mxu0 }
 0x185   : > { %v6532_v0 = vpop.f32.mrf.mxu1 }
 0x186   : > { %v6534_v31 = vpop.f32.mrf.mxu0 }
 0x187   : > { %v6536_v14 = vpop.f32.mrf.mxu1 }
 0x188   : > { %v6538_v63 = vpop.f32.mrf.mxu0 }
 0x189   : > { %v6540_v42 = vpop.f32.mrf.mxu1 }
 0x18a   : > { %v6542_v61 = vpop.f32.mrf.mxu0 }
 0x18b   : > { %v6544_v44 = vpop.f32.mrf.mxu1 }
 0x18c   : > { %v6546_v11 = vpop.f32.mrf.mxu0 }
 0x18d   : > { %v6548_v32 = vpop.f32.mrf.mxu1 }
 0x18e   : > { %v6550_v26 = vpop.f32.mrf.mxu0 }
 0x18f   : > { %v6552_v35 = vpop.f32.mrf.mxu1 }
 0x190   : > { %v6554_v9 = vpop.f32.mrf.mxu0 }
 0x191   : > { %v6556_v53 = vpop.f32.mrf.mxu1 }
 0x192   : > { %v6558_v46 = vpop.f32.mrf.mxu0 }
 0x193   : > { %v6560_v24 = vpop.f32.mrf.mxu1 }
 0x194   : > { %v6562_v34 = vpop.f32.mrf.mxu0 }
 0x195   : > { %v6564_v4 = vpop.f32.mrf.mxu1 }
 0x196   : > { %v6566_v13 = vpop.f32.mrf.mxu0 }
 0x197   : > { %v6568_v33 = vpop.f32.mrf.mxu1 }
 0x198   : > { %v6570_v58 = vpop.f32.mrf.mxu0 }
 0x199   : > { %6992 = vst [vmem:[#allocation16_spill] sm:$0xff] %v6570_v58  ;;  %v6572_v40 = vpop.f32.mrf.mxu1 }
 0x19a   : > { %6993 = vst [vmem:[#allocation17_spill] sm:$0xff] %v6572_v40  ;;  %v6574_v49 = vpop.f32.mrf.mxu0 }
 0x19b   : > { %6994 = vst [vmem:[#allocation18_spill] sm:$0xff] %v6574_v49  ;;  %v6576_v10 = vpop.f32.mrf.mxu1 }
 0x19c   : > { %6995 = vst [vmem:[#allocation19_spill] sm:$0xff] %v6576_v10  ;;  %v6578_v45 = vpop.f32.mrf.mxu0 }
 0x19d   : > { %6996 = vst [vmem:[#allocation20_spill] sm:$0xff] %v6578_v45  ;;  %v6580_v47 = vpop.f32.mrf.mxu1 }
 0x19e   : > { %6997 = vst [vmem:[#allocation21_spill] sm:$0xff] %v6580_v47  ;;  %v6582_v20 = vpop.f32.mrf.mxu0 }
 0x19f   : > { %6998 = vst [vmem:[#allocation22_spill] sm:$0xff] %v6582_v20  ;;  %v6584_v37 = vpop.f32.mrf.mxu1 }
 0x1a0   : > { %6999 = vst [vmem:[#allocation23_spill] sm:$0xff] %v6584_v37  ;;  %v6586_v2 = vpop.f32.mrf.mxu0 }
 0x1a1   : > { %7000 = vst [vmem:[#allocation24_spill] sm:$0xff] %v6586_v2  ;;  %v6588_v8 = vpop.f32.mrf.mxu1 }
 0x1a2   : > { %7001 = vst [vmem:[#allocation25_spill] sm:$0xff] %v6588_v8  ;;  %v6590_v19 = vpop.f32.mrf.mxu0 }
 0x1a3   : > { %7002 = vst [vmem:[#allocation26_spill] sm:$0xff] %v6590_v19  ;;  %v6592_v58 = vpop.f32.mrf.mxu1 }
 0x1a4   : > { %7003 = vst [vmem:[#allocation27_spill] sm:$0xff] %v6592_v58  ;;  %v6594_v40 = vpop.f32.mrf.mxu0 }
 0x1a5   : > { %7004 = vst [vmem:[#allocation28_spill] sm:$0xff] %v6594_v40  ;;  %v6596_v49 = vpop.f32.mrf.mxu1 }
 0x1a6   : > { %7005 = vst [vmem:[#allocation29_spill] sm:$0xff] %v6596_v49  ;;  %v6598_v10 = vpop.f32.mrf.mxu0 }
 0x1a7   : > { %7006 = vst [vmem:[#allocation30_spill] sm:$0xff] %v6598_v10  ;;  %v6600_v45 = vpop.f32.mrf.mxu1  ;;  %v2444_v10 = vadd.f32 %v4982_v30, %v6411_v55  ;;  %v2445_v30 = vadd.f32 %v6512_v12, %v6420_v60  ;;  %v6648_v60 = vld [vmem:[%s6871_s3] ss:$0 sm:$0xff] }
 0x1a8   : > { %7007 = vst [vmem:[#allocation31_spill] sm:$0xff] %v6600_v45  ;;  %v6602_v47 = vpop.f32.mrf.mxu0 }
 0x1a9   : > { %7008 = vst [vmem:[#allocation32_spill] sm:$0xff] %v6602_v47  ;;  %v6604_v20 = vpop.f32.mrf.mxu1  ;;  %v2443_v47 = vadd.f32 %v2284_v56, %v6414_v18  ;;  %v6638_v18 = vld [vmem:[%s6870_s2] ss:$0 sm:$0xff] }
 0x1aa   : > { %7009 = vst [vmem:[#allocation33_spill] sm:$0xff] %v6604_v20  ;;  %v6606_v37 = vpop.f32.mrf.mxu0 }
 0x1ab   : > { %7010 = vst [vmem:[#allocation34_spill] sm:$0xff] %v6606_v37  ;;  %v6608_v2 = vpop.f32.mrf.mxu1  ;;  %v2834_v55 = vadd.f32 %v6508_v21, %v2443_v47  ;;  %v2447_v47 = vadd.f32 %v6520_v3, %v6426_v51 }
 0x1ac   : > { %7011 = vst [vmem:[#allocation35_spill] sm:$0xff] %v6608_v2  ;;  %v6610_v8 = vpop.f32.mrf.mxu0 }
 0x1ad   : > { %7012 = vst [vmem:[#allocation36_spill] sm:$0xff] %v6610_v8  ;;  %v6612_v19 = vpop.f32.mrf.mxu1  ;;  %v2835_v8 = vadd.f32 %v6506_v38, %v2444_v10 }
 0x1ae   : > { %7013 = vst [vmem:[#allocation37_spill] sm:$0xff] %v6612_v19  ;;  %v6614_v58 = vpop.f32.mrf.mxu0  ;;  %v2446_v19 = vadd.f32 %v4985_v29, %v6417_v48 }
 0x1af   : > { %7014 = vst [vmem:[#allocation38_spill] sm:$0xff] %v6614_v58  ;;  %v6616_v40 = vpop.f32.mrf.mxu1 }
 0x1b0   : > { %v6619_v49 = vpop.f32.mrf.mxu0  ;;  %v2837_v10 = vadd.f32 %v6510_v28, %v2446_v19 }
 0x1b1   : > { %7015 = vst [vmem:[#allocation39_spill] sm:$0xff] %v6619_v49  ;;  %v6621_v45 = vpop.f32.mrf.mxu1 }
 0x1b2   : > { %7016 = vst [vmem:[#allocation40_spill] sm:$0xff] %v6621_v45  ;;  %v6624_v20 = vpop.f32.mrf.mxu0 }
 0x1b3   : > { %v6626_v37 = vpop.f32.mrf.mxu1 }
 0x1b4   : > { %v6630_v2 = vpop.f32.mrf.mxu0 }
 0x1b5   : > { %7017 = vst [vmem:[#allocation41_spill] sm:$0xff] %v6630_v2  ;;  %v5094_v58 = vpop.f32.mrf.mxu1  ;;  %v2448_v2 = vadd.f32 %v6516_v25, %v6423_v22  ;;  %v2450_v22 = vadd.f32 %v6524_v62, %v6429_v17 }
 0x1b6   : > { %v3225_v49 = vadd.f32 %v5094_v58, %v2835_v8  ;;  %v5150_v45 = vpop.f32.mrf.mxu0  ;;  %v2836_v58 = vadd.f32 %v6514_v1, %v2445_v30  ;;  %v2838_v1 = vadd.f32 %v6522_v23, %v2447_v47  ;;  %v2449_v30 = vadd.f32 %v6528_v59, %v6432_v54 }
 0x1b7   : > { %v3065_v56 = vpop.f32.mrf.mxu1  ;;  %v2452_v54 = vadd.f32 %v6532_v0, %v6435_v41 }
 0x1b8   : > { %v3615_v48 = vadd.f32 %v5150_v45, %v3225_v49  ;;  %v3224_v38 = vadd.f32 %v3065_v56, %v2834_v55  ;;  %v3455_v29 = vpop.f32.mrf.mxu0  ;;  %v2839_v56 = vadd.f32 %v6518_v50, %v2448_v2  ;;  %v2841_v50 = vadd.f32 %v6526_v6, %v2450_v22 }
 0x1b9   : > { %v5097_v8 = vpop.f32.mrf.mxu1 }
 0x1ba   : > { %v3654_v19 = vmul.f32 %v6638_v18, %v3615_v48  ;;  %v3614_v45 = vadd.f32 %v3455_v29, %v3224_v38  ;;  %v3227_v49 = vadd.f32 %v5097_v8, %v2837_v10  ;;  %v5153_v21 = vpop.f32.mrf.mxu0 }
 0x1bb   : > { %v3075_v28 = vpop.f32.mrf.mxu1 }
 0x1bc   : > { %v3693_v51 = vadd.f32 %v6648_v60, %v3654_v19  ;;  %v3653_v12 = vmul.f32 %v6638_v18, %v3614_v45  ;;  %v3617_v25 = vadd.f32 %v5153_v21, %v3227_v49  ;;  %v3226_v3 = vadd.f32 %v3075_v28, %v2836_v58  ;;  %v3465_v55 = vpop.f32.mrf.mxu0 }
 0x1bd   : > { %v5100_v17 = vpop.f32.mrf.mxu1  ;;  %v2840_v45 = vadd.f32 %v6530_v52, %v2449_v30 }
 0x1be   : > { %v3725_v62 = vmax.f32 %v3693_v51, 0.0  ;;  %v3692_v10 = vadd.f32 %v6648_v60, %v3653_v12  ;;  %v3656_v48 = vmul.f32 %v6638_v18, %v3617_v25  ;;  %v3616_v38 = vadd.f32 %v3465_v55, %v3226_v3  ;;  %v5156_v2 = vpop.f32.mrf.mxu0 }
 0x1bf   : > { %v3229_v23 = vadd.f32 %v5100_v17, %v2839_v56  ;;  %v3085_v59 = vpop.f32.mrf.mxu1  ;;  %v2843_v51 = vadd.f32 %v6534_v31, %v2452_v54  ;;  %v2451_v12 = vadd.f32 %v6536_v14, %v6438_v27  ;;  %v2454_v25 = vadd.f32 %v6540_v42, %v6441_v39 }
 0x1c0   : > { %3757 = vst.msk [vmem:[%s6664_s29 + $0x8] sm:$0xff] %vm271_vm0, %v3725_v62  ;;  %v3724_v29 = vmax.f32 %v3692_v10, 0.0  ;;  %v3695_v47 = vadd.f32 %v6648_v60, %v3656_v48  ;;  %v3655_v8 = vmul.f32 %v6638_v18, %v3616_v38  ;;  %v3228_v58 = vadd.f32 %v3085_v59, %v2838_v1  ;;  %v3475_v19 = vpop.f32.mrf.mxu0 }
 0x1c1   : > { %v3619_v49 = vadd.f32 %v5156_v2, %v3229_v23  ;;  %v5103_v21 = vpop.f32.mrf.mxu1  ;;  %v2453_v31 = vadd.f32 %v6544_v44, %v6444_v43  ;;  %v2842_v38 = vadd.f32 %v6538_v63, %v2451_v12  ;;  %v2845_v2 = vadd.f32 %v6542_v61, %v2454_v25 }
 0x1c2   : > { %3756 = vst.msk [vmem:[%s6664_s29] sm:$0xff] %vm271_vm0, %v3724_v29  ;;  %v3727_v6 = vmax.f32 %v3695_v47, 0.0  ;;  %v3694_v41 = vadd.f32 %v6648_v60, %v3655_v8  ;;  %v3618_v0 = vadd.f32 %v3475_v19, %v3228_v58  ;;  %v3231_v22 = vadd.f32 %v5103_v21, %v2841_v50  ;;  %v5159_v28 = vpop.f32.mrf.mxu0 }
 0x1c3   : > { %v3658_v52 = vmul.f32 %v6638_v18, %v3619_v49  ;;  %v3095_v3 = vpop.f32.mrf.mxu1  ;;  %v2456_v43 = vadd.f32 %v6548_v32, %v6447_v36  ;;  %v2844_v8 = vadd.f32 %v6546_v11, %v2453_v31  ;;  %v2455_v63 = vadd.f32 %v6552_v35, %v6450_v16 }
 0x1c4   : > { %3759 = vst.msk [vmem:[%s6664_s29 + $0x18] sm:$0xff] %vm271_vm0, %v3727_v6  ;;  %v3726_v55 = vmax.f32 %v3694_v41, 0.0  ;;  %v3657_v56 = vmul.f32 %v6638_v18, %v3618_v0  ;;  %v3621_v1 = vadd.f32 %v5159_v28, %v3231_v22  ;;  %v3230_v30 = vadd.f32 %v3095_v3, %v2840_v45  ;;  %v3485_v17 = vpop.f32.mrf.mxu0 }
 0x1c5   : > { %v3697_v62 = vadd.f32 %v6648_v60, %v3658_v52  ;;  %v5106_v27 = vpop.f32.mrf.mxu1  ;;  %v2847_v21 = vadd.f32 %v6550_v26, %v2456_v43  ;;  %v2846_v28 = vadd.f32 %v6554_v9, %v2455_v63  ;;  %v2457_v12 = vadd.f32 %v6560_v24, %v6456_v57  ;;  %v7018_v43 = vld [vmem:[#allocation2_spill] sm:$0xff] }
 0x1c6   : > { %3758 = vst.msk [vmem:[%s6664_s29 + $0x10] sm:$0xff] %vm271_vm0, %v3726_v55  ;;  %v3696_v39 = vadd.f32 %v6648_v60, %v3657_v56  ;;  %v3660_v14 = vmul.f32 %v6638_v18, %v3621_v1  ;;  %v3620_v42 = vadd.f32 %v3485_v17, %v3230_v30  ;;  %v3233_v10 = vadd.f32 %v5106_v27, %v2843_v51  ;;  %v5162_v48 = vpop.f32.mrf.mxu0 }
 0x1c7   : > { %v3729_v44 = vmax.f32 %v3697_v62, 0.0  ;;  %v3105_v50 = vpop.f32.mrf.mxu1  ;;  %v2458_v51 = vadd.f32 %v6556_v53, %v6453_v7  ;;  %v2460_v9 = vadd.f32 %v6564_v4, %v6459_v15  ;;  %v2848_v27 = vadd.f32 %v6562_v34, %v2457_v12 }
 0x1c8   : > { %v3728_v54 = vmax.f32 %v3696_v39, 0.0  ;;  %v3699_v23 = vadd.f32 %v6648_v60, %v3660_v14  ;;  %v3659_v59 = vmul.f32 %v6638_v18, %v3620_v42  ;;  %v3623_v29 = vadd.f32 %v5162_v48, %v3233_v10  ;;  %v3495_v47 = vpop.f32.mrf.mxu0 }
 0x1c9   : > { %3761 = vst.msk [vmem:[%s6664_s29 + $0x28] sm:$0xff] %vm271_vm0, %v3729_v44  ;;  %v3232_v61 = vadd.f32 %v3105_v50, %v2842_v38  ;;  %v5109_v58 = vpop.f32.mrf.mxu1  ;;  %v2849_v62 = vadd.f32 %v6558_v46, %v2458_v51  ;;  %v2459_v15 = vadd.f32 %v6568_v33, %v6462_v5  ;;  %v7019_v44 = vld [vmem:[#allocation17_spill] sm:$0xff] }
 0x1ca   : > { %3760 = vst.msk [vmem:[%s6664_s29 + $0x20] sm:$0xff] %vm271_vm0, %v3728_v54  ;;  %v3731_v36 = vmax.f32 %v3699_v23, 0.0  ;;  %v3698_v32 = vadd.f32 %v6648_v60, %v3659_v59  ;;  %v3662_v19 = vmul.f32 %v6638_v18, %v3623_v29  ;;  %v3235_v45 = vadd.f32 %v5109_v58, %v2845_v2  ;;  %v5165_v49 = vpop.f32.mrf.mxu0  ;;  %v7020_v29 = vld [vmem:[#allocation16_spill] sm:$0xff] }
 0x1cb   : > { %v3622_v11 = vadd.f32 %v3495_v47, %v3232_v61  ;;  %v3115_v6 = vpop.f32.mrf.mxu1  ;;  %v2851_v2 = vadd.f32 %v6566_v13, %v2460_v9  ;;  %v2462_v46 = vadd.f32 %v7019_v44, %v7018_v43  ;;  %v2850_v47 = vadd.f32 %v7020_v29, %v2459_v15  ;;  %v7033_v44 = vld [vmem:[#allocation7_spill] sm:$0xff] }
 0x1cc   : > { %3763 = vst.msk [vmem:[%s6664_s29 + $0x38] sm:$0xff] %vm271_vm0, %v3731_v36  ;;  %v3730_v16 = vmax.f32 %v3698_v32, 0.0  ;;  %v3701_v35 = vadd.f32 %v6648_v60, %v3662_v19  ;;  %v3625_v41 = vadd.f32 %v5165_v49, %v3235_v45  ;;  %v3234_v0 = vadd.f32 %v3115_v6, %v2844_v8  ;;  %v3505_v22 = vpop.f32.mrf.mxu0  ;;  %v7021_v19 = vld [vmem:[#allocation18_spill] sm:$0xff]  ;;  %v7022_v49 = vld [vmem:[#allocation3_spill] sm:$0xff]  ;;  %v7024_v6 = vld [vmem:[#allocation4_spill] sm:$0xff] }
 0x1cd   : > { %v3661_v26 = vmul.f32 %v6638_v18, %v3622_v11  ;;  %v5112_v25 = vpop.f32.mrf.mxu1  ;;  %v2853_v45 = vadd.f32 %v7021_v19, %v2462_v46  ;;  %v7034_v46 = vld [vmem:[#allocation27_spill] sm:$0xff] }
 0x1ce   : > { %3762 = vst.msk [vmem:[%s6664_s29 + $0x30] sm:$0xff] %vm271_vm0, %v3730_v16  ;;  %v3733_v52 = vmax.f32 %v3701_v35, 0.0  ;;  %v3664_v3 = vmul.f32 %v6638_v18, %v3625_v41  ;;  %v3624_v55 = vadd.f32 %v3505_v22, %v3234_v0  ;;  %v3237_v56 = vadd.f32 %v5112_v25, %v2847_v21  ;;  %v5168_v1 = vpop.f32.mrf.mxu0  ;;  %v7023_v21 = vld [vmem:[#allocation19_spill] sm:$0xff]  ;;  %v7025_v16 = vld [vmem:[#allocation21_spill] sm:$0xff] }
 0x1cf   : > { %v3700_v30 = vadd.f32 %v6648_v60, %v3661_v26  ;;  %v3125_v7 = vpop.f32.mrf.mxu1  ;;  %v2461_v11 = vadd.f32 %v7023_v21, %v7022_v49  ;;  %v2464_v35 = vadd.f32 %v7025_v16, %v7024_v6  ;;  %v7026_v25 = vld [vmem:[#allocation5_spill] sm:$0xff]  ;;  %v7037_v21 = vld [vmem:[#allocation8_spill] sm:$0xff] }
 0x1d0   : > { %3765 = vst.msk [vmem:[%s6664_s29 + $0x48] sm:$0xff] %vm271_vm0, %v3733_v52  ;;  %v3703_v57 = vadd.f32 %v6648_v60, %v3664_v3  ;;  %v3663_v53 = vmul.f32 %v6638_v18, %v3624_v55  ;;  %v3627_v24 = vadd.f32 %v5168_v1, %v3237_v56  ;;  %v3236_v17 = vadd.f32 %v3125_v7, %v2846_v28  ;;  %v3515_v31 = vpop.f32.mrf.mxu0  ;;  %v7027_v52 = vld [vmem:[#allocation23_spill] sm:$0xff]  ;;  %v7039_v16 = vld [vmem:[#allocation9_spill] sm:$0xff] }
 0x1d1   : > { %v3732_v4 = vmax.f32 %v3700_v30, 0.0  ;;  %v5115_v39 = vpop.f32.mrf.mxu1  ;;  %v2463_v3 = vadd.f32 %v7027_v52, %v7026_v25  ;;  %v7041_v52 = vld [vmem:[#allocation10_spill] sm:$0xff] }
 0x1d2   : > { %v3735_v14 = vmax.f32 %v3703_v57, 0.0  ;;  %v3702_v42 = vadd.f32 %v6648_v60, %v3663_v53  ;;  %v3666_v10 = vmul.f32 %v6638_v18, %v3627_v24  ;;  %v3626_v48 = vadd.f32 %v3515_v31, %v3236_v17  ;;  %v5171_v38 = vpop.f32.mrf.mxu0  ;;  %v7028_v53 = vld [vmem:[#allocation20_spill] sm:$0xff]  ;;  %v7029_v17 = vld [vmem:[#allocation22_spill] sm:$0xff] }
 0x1d3   : > { %3764 = vst.msk [vmem:[%s6664_s29 + $0x40] sm:$0xff] %vm271_vm0, %v3732_v4  ;;  %v3239_v34 = vadd.f32 %v5115_v39, %v2849_v62  ;;  %v3135_v50 = vpop.f32.mrf.mxu1  ;;  %v2852_v24 = vadd.f32 %v7028_v53, %v2461_v11  ;;  %v2855_v31 = vadd.f32 %v7029_v17, %v2464_v35  ;;  %v7030_v62 = vld [vmem:[#allocation6_spill] sm:$0xff]  ;;  %v7038_v11 = vld [vmem:[#allocation29_spill] sm:$0xff]  ;;  %v7040_v35 = vld [vmem:[#allocation31_spill] sm:$0xff] }
 0x1d4   : > { %3767 = vst.msk [vmem:[%s6664_s29 + $0x58] sm:$0xff] %vm271_vm0, %v3735_v14  ;;  %v3734_v5 = vmax.f32 %v3702_v42, 0.0  ;;  %v3705_v33 = vadd.f32 %v6648_v60, %v3666_v10  ;;  %v3665_v54 = vmul.f32 %v6638_v18, %v3626_v48  ;;  %v3238_v23 = vadd.f32 %v3135_v50, %v2848_v27  ;;  %v3525_v59 = vpop.f32.mrf.mxu0  ;;  %v7031_v27 = vld [vmem:[#allocation25_spill] sm:$0xff] }
 0x1d5   : > { %v3629_v13 = vadd.f32 %v5171_v38, %v3239_v34  ;;  %v5118_v8 = vpop.f32.mrf.mxu1  ;;  %v2466_v15 = vadd.f32 %v7031_v27, %v7030_v62  ;;  %v2465_v34 = vadd.f32 %v7034_v46, %v7033_v44  ;;  %v2468_v6 = vadd.f32 %v7038_v11, %v7037_v21  ;;  %v7045_v27 = vld [vmem:[#allocation11_spill] sm:$0xff]  ;;  %v7048_v46 = vld [vmem:[#allocation12_spill] sm:$0xff]  ;;  %v7052_v11 = vld [vmem:[#allocation13_spill] sm:$0xff] }
 0x1d6   : > { %3766 = vst.msk [vmem:[%s6664_s29 + $0x50] sm:$0xff] %vm271_vm0, %v3734_v5  ;;  %v3737_v63 = vmax.f32 %v3705_v33, 0.0  ;;  %v3704_v61 = vadd.f32 %v6648_v60, %v3665_v54  ;;  %v3628_v58 = vadd.f32 %v3525_v59, %v3238_v23  ;;  %v3241_v36 = vadd.f32 %v5118_v8, %v2851_v2  ;;  %v5174_v32 = vpop.f32.mrf.mxu0  ;;  %v7032_v2 = vld [vmem:[#allocation24_spill] sm:$0xff] }
 0x1d7   : > { %v3668_v41 = vmul.f32 %v6638_v18, %v3629_v13  ;;  %v3145_v0 = vpop.f32.mrf.mxu1  ;;  %v2854_v43 = vadd.f32 %v7032_v2, %v2463_v3  ;;  %v7042_v3 = vld [vmem:[#allocation33_spill] sm:$0xff] }
 0x1d8   : > { %3769 = vst.msk [vmem:[%s6664_s29 + $0x68] sm:$0xff] %vm271_vm0, %v3737_v63  ;;  %v3736_v22 = vmax.f32 %v3704_v61, 0.0  ;;  %v3667_v28 = vmul.f32 %v6638_v18, %v3628_v58  ;;  %v3631_v51 = vadd.f32 %v5174_v32, %v3241_v36  ;;  %v3240_v12 = vadd.f32 %v3145_v0, %v2850_v47  ;;  %v3535_v26 = vpop.f32.mrf.mxu0  ;;  %v7035_v47 = vld [vmem:[#allocation26_spill] sm:$0xff] }
 0x1d9   : > { %v3707_v55 = vadd.f32 %v6648_v60, %v3668_v41  ;;  %v5121_v56 = vpop.f32.mrf.mxu1  ;;  %v2857_v13 = vadd.f32 %v7035_v47, %v2466_v15  ;;  %v2467_v41 = vadd.f32 %v7040_v35, %v7039_v16  ;;  %v7046_v15 = vld [vmem:[#allocation35_spill] sm:$0xff]  ;;  %v7053_v16 = vld [vmem:[#allocation14_spill] sm:$0xff]  ;;  %v7054_v35 = vld [vmem:[#allocation40_spill] sm:$0xff] }
 0x1da   : > { %3768 = vst.msk [vmem:[%s6664_s29 + $0x60] sm:$0xff] %vm271_vm0, %v3736_v22  ;;  %v3706_v1 = vadd.f32 %v6648_v60, %v3667_v28  ;;  %v3670_v9 = vmul.f32 %v6638_v18, %v3631_v51  ;;  %v3630_v30 = vadd.f32 %v3535_v26, %v3240_v12  ;;  %v3243_v7 = vadd.f32 %v5121_v56, %v2853_v45  ;;  %v5177_v57 = vpop.f32.mrf.mxu0  ;;  %v7036_v45 = vld [vmem:[#allocation28_spill] sm:$0xff] }
 0x1db   : > { %v3739_v4 = vmax.f32 %v3707_v55, 0.0  ;;  %v3155_v39 = vpop.f32.mrf.mxu1  ;;  %v2856_v49 = vadd.f32 %v7036_v45, %v2465_v34  ;;  %v2470_v55 = vadd.f32 %v7042_v3, %v7041_v52  ;;  %v7049_v34 = vld [vmem:[#allocation37_spill] sm:$0xff]  ;;  %v7055_v52 = vld [vmem:[#allocation15_spill] sm:$0xff] }
 0x1dc   : > { %v3738_v14 = vmax.f32 %v3706_v1, 0.0  ;;  %v3709_v42 = vadd.f32 %v6648_v60, %v3670_v9  ;;  %v3669_v10 = vmul.f32 %v6638_v18, %v3630_v30  ;;  %v3633_v48 = vadd.f32 %v5177_v57, %v3243_v7  ;;  %v3545_v38 = vpop.f32.mrf.mxu0 }
 0x1dd   : > { %3771 = vst.msk [vmem:[%s6664_s29 + $0x78] sm:$0xff] %vm271_vm0, %v3739_v4  ;;  %v3242_v50 = vadd.f32 %v3155_v39, %v2852_v24  ;;  %v5124_v5 = vpop.f32.mrf.mxu1  ;;  %v7043_v24 = vld [vmem:[#allocation30_spill] sm:$0xff]  ;;  %v2469_v4 = vadd.f32 %v7046_v15, %v7045_v27  ;;  %v2473_v3 = vadd.f32 %v6626_v37, %v7055_v52 }
 0x1de   : > { %3770 = vst.msk [vmem:[%s6664_s29 + $0x70] sm:$0xff] %vm271_vm0, %v3738_v14  ;;  %v3741_v33 = vmax.f32 %v3709_v42, 0.0  ;;  %v3708_v54 = vadd.f32 %v6648_v60, %v3669_v10  ;;  %v3672_v23 = vmul.f32 %v6638_v18, %v3633_v48  ;;  %v3245_v59 = vadd.f32 %v5124_v5, %v2855_v31  ;;  %v5180_v29 = vpop.f32.mrf.mxu0  ;;  %v7044_v31 = vld [vmem:[#allocation32_spill] sm:$0xff] }
 0x1df   : > { %v3632_v8 = vadd.f32 %v3545_v38, %v3242_v50  ;;  %v3165_v63 = vpop.f32.mrf.mxu1  ;;  %v2859_v17 = vadd.f32 %v7043_v24, %v2468_v6  ;;  %v2858_v62 = vadd.f32 %v7044_v31, %v2467_v41  ;;  %v2472_v50 = vadd.f32 %v7049_v34, %v7048_v46 }
 0x1e0   : > { %3773 = vst.msk [vmem:[%s6664_s29 + $0x88] sm:$0xff] %vm271_vm0, %v3741_v33  ;;  %v3740_v61 = vmax.f32 %v3708_v54, 0.0  ;;  %v3711_v58 = vadd.f32 %v6648_v60, %v3672_v23  ;;  %v3635_v36 = vadd.f32 %v5180_v29, %v3245_v59  ;;  %v3244_v32 = vadd.f32 %v3165_v63, %v2854_v43  ;;  %v3555_v19 = vpop.f32.mrf.mxu0  ;;  %v7047_v43 = vld [vmem:[#allocation34_spill] sm:$0xff] }
 0x1e1   : > { %v3671_v0 = vmul.f32 %v6638_v18, %v3632_v8  ;;  %v5127_v22 = vpop.f32.mrf.mxu1  ;;  %v2861_v44 = vadd.f32 %v7047_v43, %v2470_v55  ;;  %v2471_v6 = vadd.f32 %v6616_v40, %v7052_v11  ;;  %v2474_v41 = vadd.f32 %v7054_v35, %v7053_v16 }
 0x1e2   : > { %3772 = vst.msk [vmem:[%s6664_s29 + $0x80] sm:$0xff] %vm271_vm0, %v3740_v61  ;;  %v3743_v28 = vmax.f32 %v3711_v58, 0.0  ;;  %v3674_v51 = vmul.f32 %v6638_v18, %v3635_v36  ;;  %v3634_v12 = vadd.f32 %v3555_v19, %v3244_v32  ;;  %v3247_v26 = vadd.f32 %v5127_v22, %v2857_v13  ;;  %v5183_v25 = vpop.f32.mrf.mxu0  ;;  %v7050_v13 = vld [vmem:[#allocation36_spill] sm:$0xff] }
 0x1e3   : > { %v3710_v56 = vadd.f32 %v6648_v60, %v3671_v0  ;;  %v3175_v1 = vpop.f32.mrf.mxu1  ;;  %v2860_v8 = vadd.f32 %v7050_v13, %v2469_v4  ;;  %v2865_v24 = vadd.f32 %v6624_v20, %v2474_v41 }
 0x1e4   : > { %3775 = vst.msk [vmem:[%s6664_s29 + $0x98] sm:$0xff] %vm271_vm0, %v3743_v28  ;;  %v3713_v9 = vadd.f32 %v6648_v60, %v3674_v51  ;;  %v3673_v30 = vmul.f32 %v6638_v18, %v3634_v12  ;;  %v3637_v7 = vadd.f32 %v5183_v25, %v3247_v26  ;;  %v3246_v57 = vadd.f32 %v3175_v1, %v2856_v49  ;;  %v3565_v53 = vpop.f32.mrf.mxu0  ;;  %v7051_v49 = vld [vmem:[#allocation38_spill] sm:$0xff] }
 0x1e5   : > { %v3742_v39 = vmax.f32 %v3710_v56, 0.0  ;;  %v5130_v14 = vpop.f32.mrf.mxu1  ;;  %v2863_v21 = vadd.f32 %v7051_v49, %v2472_v50 }
 0x1e6   : > { %v3745_v42 = vmax.f32 %v3713_v9, 0.0  ;;  %v3712_v10 = vadd.f32 %v6648_v60, %v3673_v30  ;;  %v3676_v48 = vmul.f32 %v6638_v18, %v3637_v7  ;;  %v3636_v38 = vadd.f32 %v3565_v53, %v3246_v57  ;;  %v5186_v2 = vpop.f32.mrf.mxu0  ;;  %v7056_v57 = vld [vmem:[#allocation39_spill] sm:$0xff] }
 0x1e7   : > { %3774 = vst.msk [vmem:[%s6664_s29 + $0x90] sm:$0xff] %vm271_vm0, %v3742_v39  ;;  %v3249_v5 = vadd.f32 %v5130_v14, %v2859_v17  ;;  %v3185_v33 = vpop.f32.mrf.mxu1  ;;  %v2862_v53 = vadd.f32 %v7056_v57, %v2471_v6  ;;  %v7057_v39 = vld [vmem:[#allocation41_spill] sm:$0xff] }
 0x1e8   : > { %3777 = vst.msk [vmem:[%s6664_s29 + $0xa8] sm:$0xff] %vm271_vm0, %v3745_v42  ;;  %v3744_v54 = vmax.f32 %v3712_v10, 0.0  ;;  %v3715_v23 = vadd.f32 %v6648_v60, %v3676_v48  ;;  %v3675_v59 = vmul.f32 %v6638_v18, %v3636_v38  ;;  %v3248_v29 = vadd.f32 %v3185_v33, %v2858_v62  ;;  %v3575_v47 = vpop.f32.mrf.mxu0 }
 0x1e9   : > { %v3639_v63 = vadd.f32 %v5186_v2, %v3249_v5  ;;  %v5133_v61 = vpop.f32.mrf.mxu1  ;;  %v2864_v14 = vadd.f32 %v7057_v39, %v2473_v3 }
 0x1ea   : > { %3776 = vst.msk [vmem:[%s6664_s29 + $0xa0] sm:$0xff] %vm271_vm0, %v3744_v54  ;;  %v3747_v58 = vmax.f32 %v3715_v23, 0.0  ;;  %v3714_v36 = vadd.f32 %v6648_v60, %v3675_v59  ;;  %v3638_v32 = vadd.f32 %v3575_v47, %v3248_v29  ;;  %v3251_v19 = vadd.f32 %v5133_v61, %v2861_v44  ;;  %v5189_v45 = vpop.f32.mrf.mxu0 }
 0x1eb   : > { %v3678_v0 = vmul.f32 %v6638_v18, %v3639_v63  ;;  %v3195_v22 = vpop.f32.mrf.mxu1 }
 0x1ec   : > { %3779 = vst.msk [vmem:[%s6664_s29 + $0xb8] sm:$0xff] %vm271_vm0, %v3747_v58  ;;  %v3746_v28 = vmax.f32 %v3714_v36, 0.0  ;;  %v3677_v51 = vmul.f32 %v6638_v18, %v3638_v32  ;;  %v3641_v12 = vadd.f32 %v5189_v45, %v3251_v19  ;;  %v3250_v26 = vadd.f32 %v3195_v22, %v2860_v8  ;;  %v3585_v25 = vpop.f32.mrf.mxu0 }
 0x1ed   : > { %v3717_v55 = vadd.f32 %v6648_v60, %v3678_v0  ;;  %v5136_v40 = vpop.f32.mrf.mxu1 }
 0x1ee   : > { %3778 = vst.msk [vmem:[%s6664_s29 + $0xb0] sm:$0xff] %vm271_vm0, %v3746_v28  ;;  %v3716_v56 = vadd.f32 %v6648_v60, %v3677_v51  ;;  %v3680_v1 = vmul.f32 %v6638_v18, %v3641_v12  ;;  %v3640_v9 = vadd.f32 %v3585_v25, %v3250_v26  ;;  %v3253_v30 = vadd.f32 %v5136_v40, %v2863_v21  ;;  %v5192_v7 = vpop.f32.mrf.mxu0 }
 0x1ef   : > { %v3749_v17 = vmax.f32 %v3717_v55, 0.0  ;;  %v3205_v37 = vpop.f32.mrf.mxu1 }
 0x1f0   : > { %v3748_v31 = vmax.f32 %v3716_v56, 0.0  ;;  %v3719_v62 = vadd.f32 %v6648_v60, %v3680_v1  ;;  %v3679_v27 = vmul.f32 %v6638_v18, %v3640_v9  ;;  %v3643_v15 = vadd.f32 %v5192_v7, %v3253_v30  ;;  %v3595_v4 = vpop.f32.mrf.mxu0 }
 0x1f1   : > { %3781 = vst.msk [vmem:[%s6664_s29 + $0xc8] sm:$0xff] %vm271_vm0, %v3749_v17  ;;  %v3252_v42 = vadd.f32 %v3205_v37, %v2862_v53  ;;  %v5139_v10 = vpop.f32.mrf.mxu1 }
 0x1f2   : > { %3780 = vst.msk [vmem:[%s6664_s29 + $0xc0] sm:$0xff] %vm271_vm0, %v3748_v31  ;;  %v3751_v20 = vmax.f32 %v3719_v62, 0.0  ;;  %v3718_v48 = vadd.f32 %v6648_v60, %v3679_v27  ;;  %v3682_v38 = vmul.f32 %v6638_v18, %v3643_v15  ;;  %v3255_v2 = vadd.f32 %v5139_v10, %v2865_v24  ;;  %v5195_v43 = vpop.f32.mrf.mxu0 }
 0x1f3   : > { %v3642_v44 = vadd.f32 %v3595_v4, %v3252_v42  ;;  %v3215_v46 = vpop.f32.mrf.mxu1 }
 0x1f4   : > { %3783 = vst.msk [vmem:[%s6664_s29 + $0xd8] sm:$0xff] %vm271_vm0, %v3751_v20  ;;  %v3750_v34 = vmax.f32 %v3718_v48, 0.0  ;;  %v3721_v50 = vadd.f32 %v6648_v60, %v3682_v38  ;;  %v3645_v5 = vadd.f32 %v5195_v43, %v3255_v2  ;;  %v3254_v33 = vadd.f32 %v3215_v46, %v2864_v14  ;;  %v3605_v23 = vpop.f32.mrf.mxu0 }
 0x1f5   : > { %v3681_v54 = vmul.f32 %v6638_v18, %v3642_v44 }
 0x1f6   : > { %3782 = vst.msk [vmem:[%s6664_s29 + $0xd0] sm:$0xff] %vm271_vm0, %v3750_v34  ;;  %v3753_v59 = vmax.f32 %v3721_v50, 0.0  ;;  %v3684_v29 = vmul.f32 %v6638_v18, %v3645_v5  ;;  %v3644_v47 = vadd.f32 %v3605_v23, %v3254_v33 }
 0x1f7   : > { %v3720_v13 = vadd.f32 %v6648_v60, %v3681_v54 }
 0x1f8   : > { %3785 = vst.msk [vmem:[%s6664_s29 + $0xe8] sm:$0xff] %vm271_vm0, %v3753_v59  ;;  %v3723_v8 = vadd.f32 %v6648_v60, %v3684_v29  ;;  %v3683_v63 = vmul.f32 %v6638_v18, %v3644_v47 }
 0x1f9   : > { %v3752_v61 = vmax.f32 %v3720_v13, 0.0 }
 0x1fa   : > { %v3755_v58 = vmax.f32 %v3723_v8, 0.0  ;;  %v3722_v36 = vadd.f32 %v6648_v60, %v3683_v63 }
 0x1fb   : > { %3784 = vst.msk [vmem:[%s6664_s29 + $0xe0] sm:$0xff] %vm271_vm0, %v3752_v61 }
 0x1fc   : > { %3787 = vst.msk [vmem:[%s6664_s29 + $0xf8] sm:$0xff] %vm271_vm0, %v3755_v58  ;;  %v3754_v32 = vmax.f32 %v3722_v36, 0.0 }
 0x1fe   : > { %3786 = vst.msk [vmem:[%s6664_s29 + $0xf0] sm:$0xff] %vm271_vm0, %v3754_v32 }
 0x1ff PF: > { %s14_s15 = sadd.s32 1, %s5219_s15  }
 0x200   : > { %p11_p4 = scmp.ge.s32.totalorder %s14_s15, 4  }
 0x202   :  { %13 = sbr.rel (!%p11_p4) target bundleno = 1 (0x1), region = 76 }

</bundles_post_ra>
